<compile_context>
chip_gen: v6e
topology: v6e:2x2x1
jax: 0.10.0
libtpu: 0.0.40
codegen_flags: <defaults>
</compile_context>

<pallas_src>
from functools import partial

import numpy as np
import jax
import jax.numpy as jnp
from jax.experimental import pallas as pl
from jax.experimental.pallas import tpu as pltpu


# ------------------------------------------------------------------ in-kernel helpers

def _ln(x, g, b, eps):
    mu = jnp.mean(x, axis=-1, keepdims=True)
    xc = x - mu
    var = jnp.mean(xc * xc, axis=-1, keepdims=True)
    return xc * jax.lax.rsqrt(var + eps) * g + b


def _mha(xq, xkv, qw, qb, kw, kb, vw, vb, pw, pb, attn_bias=None):
    """Multi-head attention with per-head pre-split weights (softmax scale folded into q).

    xq: (Nq, C), xkv: (Nk, C); qw/kw/vw: (H, C, Dh); qb/kb/vb: (H, 1, Dh); pw: (H, Dh, C); pb: (1, C).
    Per-head outputs are folded straight into the output projection (no lane-dim concatenation).
    """
    num_heads = qw.shape[0]
    out = None
    for h in range(num_heads):
        q = jnp.dot(xq, qw[h], preferred_element_type=jnp.float32) + qb[h]
        k = jnp.dot(xkv, kw[h], preferred_element_type=jnp.float32) + kb[h]
        v = jnp.dot(xkv, vw[h], preferred_element_type=jnp.float32) + vb[h]
        # contract last dim of both operands: no explicit K transpose
        s = jax.lax.dot_general(q, k, (((1,), (1,)), ((), ())),
                                preferred_element_type=jnp.float32)
        if attn_bias is not None:
            s = s + attn_bias
        s = s - jnp.max(s, axis=-1, keepdims=True)
        e = jnp.exp(s)
        p = e / jnp.sum(e, axis=-1, keepdims=True)
        o = jnp.dot(p, v, preferred_element_type=jnp.float32)
        c = jnp.dot(o, pw[h], preferred_element_type=jnp.float32)
        out = c if out is None else out + c
    return out + pb


def _block(x, blk, d, eps, attn_bias=None, xkv=None, return_cv=False):
    """Pre-norm transformer block (timm style), depth index d into stacked weights.

    If xkv is given, K/V come from xkv (Block.cross_forward).  If return_cv, also return norm1(x)
    (the cross-view signal emitted by 'Sensor' blocks)."""
    (ln1g, ln1b, qw, qb, kw, kb, vw, vb, pw, pb,
     ln2g, ln2b, f1w, f1b, f2w, f2b) = blk
    h = _ln(x, ln1g[d], ln1b[d], eps)
    x = x + _mha(h, h if xkv is None else xkv,
                 qw[d], qb[d], kw[d], kb[d], vw[d], vb[d], pw[d], pb[d],
                 attn_bias=attn_bias)
    m = _ln(x, ln2g[d], ln2b[d], eps)
    m = jnp.dot(m, f1w[d], preferred_element_type=jnp.float32) + f1b[d]
    # TODO(synk): PyTorch nn.GELU defaults to exact erf; tanh approximation used here.
    m = jax.nn.gelu(m, approximate=True)
    m = jnp.dot(m, f2w[d], preferred_element_type=jnp.float32) + f2b[d]
    x = x + m
    return (x, h) if return_cv else x


# ------------------------------------------------------------------ the fused forward kernel

def _fused_forward_kernel(*refs, fuse_acc, eps, eps_head):
    inp_ref = refs[0]
    w = refs[1:-5]
    out_ref = refs[-5]
    xa_buf, xsp_buf, xt_buf, cls_buf = refs[-4:]

    it = iter(w)

    def take(n):
        return [next(it) for _ in range(n)]

    acc_ew, acc_ebp, acc_cls0, acc_ng, acc_nb, acc_fw, acc_fb = take(7)
    acc_blk = take(16)
    sp_ew, sp_ebp, sp_cls0, sp_bias, sp_ng, sp_nb = take(6)
    sp_blk = take(16)
    pu_w, pu_b, tp_pos, tp_ng, tp_nb = take(5)
    tp_blk = take(16)
    h_lng, h_lnb, h_w, h_b = take(4)

    Cin, Se = sp_ew.shape
    Ca, Te = acc_ew.shape
    Af = acc_ebp.shape[0]
    J = sp_ebp.shape[0]
    F = tp_pos.shape[0] - 1
    nJ = F * J

    inp = inp_ref[0]                                       # (F, P, coords) -- tiny, stays on-chip

    # ---------------- acceleration stream ('Sensor' blocks) ----------------
    acc_in = inp[0, J + 18:J + 18 + Af, :Ca]               # (Af, Ca)
    xa_buf[:Af, :] = (jnp.dot(acc_in, acc_ew[...], preferred_element_type=jnp.float32)
                      + acc_ebp[...])                      # embed bias + pos pre-folded
    xa_buf[Af:, :] = acc_cls0[...]                         # cls token + its pos pre-folded
    xa = xa_buf[...]
    # TODO(synk): cv signal assumed to be norm1(block input) -- verify against Block('Sensor').
    cv_signals = []
    for d in range(acc_blk[2].shape[0]):                   # adepth (unrolled)
        xa, cv = _block(xa, acc_blk, d, eps, return_cv=True)
        cv_signals.append(cv)
    sx_cls = _ln(xa[Af:Af + 1, :], acc_ng[...], acc_nb[...], eps)    # op_type == 'cls'
    if fuse_acc:
        sxf = inp[0, J:J + 18, 0:1]                        # (18, 1)
        sx_cls = sx_cls + jnp.sum(sxf * acc_fw[...], axis=0, keepdims=True) + acc_fb[...]

    # ---------------- spatial stream: all F frames' tokens flattened into one slab ----------------
    sp_ew_v = sp_ew[...]
    sp_ebp_v = sp_ebp[...]
    for f in range(F):
        jf = inp[f, :J, :Cin]                              # (J, Cin)
        xsp_buf[f * J:(f + 1) * J, :] = (
            jnp.dot(jf, sp_ew_v, preferred_element_type=jnp.float32) + sp_ebp_v)
    xsp_buf[nJ:, :] = jnp.broadcast_to(sp_cls0[...], (F, Se))
    x = xsp_buf[...]                                       # (F*(J+1), Se)
    bias = sp_bias[...]                                    # block-diagonal (per-frame) attention bias
    for d in range(sp_blk[2].shape[0]):                    # sdepth (unrolled)
        x = _block(x, sp_blk, d, eps, attn_bias=bias)
    x = _ln(x, sp_ng[...], sp_nb[...], eps)
    xsp_buf[...] = x                                       # park normed tokens for the re-layout

    # re-layout: joint tokens -> (F, J*Se) temporal rows, spatial cls tokens -> (1, F*Se)
    for f in range(F):
        for j in range(J):
            xt_buf[f:f + 1, j * Se:(j + 1) * Se] = xsp_buf[f * J + j:f * J + j + 1, :]
        cls_buf[0:1, f * Se:(f + 1) * Se] = xsp_buf[nJ + f:nJ + f + 1, :]

    # ---------------- temporal stream (cross-attention to acc cv signals) ----------------
    xt_buf[F:, :] = (jnp.dot(cls_buf[...], pu_w[...], preferred_element_type=jnp.float32)
                     + pu_b[...])                          # proj_up_clstoken
    xt = xt_buf[...] + tp_pos[...]
    for d in range(tp_blk[2].shape[0]):                    # tdepth (unrolled)
        xt = _block(xt, tp_blk, d, eps, xkv=cv_signals[d])
    xt_cls = _ln(xt[F:F + 1, :], tp_ng[...], tp_nb[...], eps)        # op_type == 'cls'

    # ---------------- fused classification head ----------------
    z = _ln(xt_cls + sx_cls, h_lng[...], h_lnb[...], eps_head)
    logits = jnp.dot(z, h_w[...], preferred_element_type=jnp.float32) + h_b[...]
    m = jnp.max(logits, axis=-1, keepdims=True)
    lz = logits - m
    out_ref[0] = lz - jnp.log(jnp.sum(jnp.exp(lz), axis=-1, keepdims=True))


# ------------------------------------------------------------------ pallas_call wrapper

def forward(inputs, weights, cfg):
    B, F, P, Cc = inputs.shape
    J, Se, Af = cfg["num_joints"], cfg["spatial_embed"], cfg["acc_frames"]
    Te = Se * J
    NC = cfg["num_classes"]

    in_specs = [pl.BlockSpec((1, F, P, Cc), lambda i: (i, 0, 0, 0))]
    for wgt in weights:                                    # replicated (constant-index) weights
        in_specs.append(pl.BlockSpec(wgt.shape, lambda i, _n=wgt.ndim: (0,) * _n))

    out = pl.pallas_call(
        partial(_fused_forward_kernel,
                fuse_acc=cfg["fuse_acc_features"], eps=1e-6, eps_head=1e-5),
        out_shape=jax.ShapeDtypeStruct((B, 1, NC), jnp.float32),
        grid=(B,),
        in_specs=in_specs,
        out_specs=pl.BlockSpec((1, 1, NC), lambda i: (i, 0, 0)),
        scratch_shapes=[
            pltpu.VMEM((Af + 1, Te), jnp.float32),         # acc tokens
            pltpu.VMEM((F * (J + 1), Se), jnp.float32),    # flattened spatial tokens
            pltpu.VMEM((F + 1, Te), jnp.float32),          # temporal tokens
            pltpu.VMEM((1, F * Se), jnp.float32),          # spatial cls-token slab
        ],
        compiler_params=pltpu.CompilerParams(dimension_semantics=("parallel",)),
    )(inputs, *weights)
    return out[:, 0, :]


# ------------------------------------------------------------------ parameter init (PyTorch-like layout)

def init_params(key, cfg):
    Se, J, F, Af = cfg["spatial_embed"], cfg["num_joints"], cfg["mocap_frames"], cfg["acc_frames"]
    Te = Se * J
    hs = int(Se * cfg["mlp_ratio"])
    ht = int(Te * cfg["mlp_ratio"])
    keys = iter(jax.random.split(key, 128))

    def lin(fin, fout):
        w = jax.random.normal(next(keys), (fin, fout), jnp.float32) * 0.02
        b = jax.random.normal(next(keys), (fout,), jnp.float32) * 0.02
        return w, b

    def blk(dim, hidden):
        qkv_w, qkv_b = lin(dim, 3 * dim)
        proj_w, proj_b = lin(dim, dim)
        fc1_w, fc1_b = lin(dim, hidden)
        fc2_w, fc2_b = lin(hidden, dim)
        return dict(ln1_g=jnp.ones((dim,), jnp.float32), ln1_b=jnp.zeros((dim,), jnp.float32),
                    qkv_w=qkv_w, qkv_b=qkv_b, proj_w=proj_w, proj_b=proj_b,
                    ln2_g=jnp.ones((dim,), jnp.float32), ln2_b=jnp.zeros((dim,), jnp.float32),
                    fc1_w=fc1_w, fc1_b=fc1_b, fc2_w=fc2_w, fc2_b=fc2_b)

    p = {}
    p["spat_embed_w"], p["spat_embed_b"] = lin(cfg["in_chans"], Se)
    p["spat_pos_embed"] = 0.02 * jax.random.normal(next(keys), (J + 1, Se), jnp.float32)
    p["spat_token"] = 0.02 * jax.random.normal(next(keys), (1, Se), jnp.float32)
    p["proj_up_w"], p["proj_up_b"] = lin(F * Se, Te)
    p["temp_pos_embed"] = 0.02 * jax.random.normal(next(keys), (F + 1, Te), jnp.float32)
    p["acc_embed_w"], p["acc_embed_b"] = lin(cfg["acc_coords"], Te)
    p["acc_pos_embed"] = 0.02 * jax.random.normal(next(keys), (Af + 1, Te), jnp.float32)
    p["acc_token"] = 0.02 * jax.random.normal(next(keys), (1, Te), jnp.float32)
    p["acc_feat_w"], p["acc_feat_b"] = lin(cfg["acc_features"], Te)
    p["spat_blocks"] = [blk(Se, hs) for _ in range(cfg["sdepth"])]
    p["acc_blocks"] = [blk(Te, ht) for _ in range(cfg["adepth"])]
    p["temp_blocks"] = [blk(Te, ht) for _ in range(cfg["tdepth"])]
    p["spat_norm_g"], p["spat_norm_b"] = jnp.ones((Se,), jnp.float32), jnp.zeros((Se,), jnp.float32)
    p["acc_norm_g"], p["acc_norm_b"] = jnp.ones((Te,), jnp.float32), jnp.zeros((Te,), jnp.float32)
    p["temp_norm_g"], p["temp_norm_b"] = jnp.ones((Te,), jnp.float32), jnp.zeros((Te,), jnp.float32)
    p["head_ln_g"], p["head_ln_b"] = jnp.ones((Te,), jnp.float32), jnp.zeros((Te,), jnp.float32)
    p["head_w"], p["head_b"] = lin(Te, cfg["num_classes"])
    return p


# ------------------------------------------------------------------ one-time wrapper-side weight re-layout

def _stack_blocks(blocks, dim, num_heads):
    """Stack per-depth block params and pre-split q/k/v/proj per head; fold softmax scale into q."""
    Dh = dim // num_heads
    scale = Dh ** -0.5
    acc = [[] for _ in range(16)]
    for bp in blocks:
        qkv_w, qkv_b = bp["qkv_w"], bp["qkv_b"]

        def split(w_cols, b_cols, s=1.0):
            wh = (w_cols * s).reshape(dim, num_heads, Dh).transpose(1, 0, 2)   # (H, dim, Dh)
            bh = (b_cols * s).reshape(num_heads, 1, Dh)
            return wh, bh

        qw, qb = split(qkv_w[:, :dim], qkv_b[:dim], scale)
        kw, kb = split(qkv_w[:, dim:2 * dim], qkv_b[dim:2 * dim])
        vw, vb = split(qkv_w[:, 2 * dim:], qkv_b[2 * dim:])
        pw = bp["proj_w"].reshape(num_heads, Dh, dim)
        fields = [bp["ln1_g"].reshape(1, dim), bp["ln1_b"].reshape(1, dim),
                  qw, qb, kw, kb, vw, vb, pw, bp["proj_b"].reshape(1, dim),
                  bp["ln2_g"].reshape(1, dim), bp["ln2_b"].reshape(1, dim),
                  bp["fc1_w"], bp["fc1_b"].reshape(1, -1),
                  bp["fc2_w"], bp["fc2_b"].reshape(1, dim)]
        for i, fld in enumerate(fields):
            acc[i].append(fld)
    return [jnp.stack(a, axis=0) for a in acc]


def prepare_params(p, cfg):
    assert cfg["adepth"] >= cfg["tdepth"], \
        "temporal blocks cross-attend cv_signals[i]; requires adepth >= tdepth"
    nh = cfg["num_heads"]
    J, Se, F, Af = cfg["num_joints"], cfg["spatial_embed"], cfg["mocap_frames"], cfg["acc_frames"]
    Te = Se * J
    assert Se % nh == 0 and Te % nh == 0

    # block-diagonal additive attention bias for the flattened spatial token slab
    # (joint tokens f-major, then the F cls tokens)
    ids = np.concatenate([np.repeat(np.arange(F), J), np.arange(F)])
    attn_bias = np.where(ids[:, None] == ids[None, :], 0.0, -1e30).astype(np.float32)

    w = []
    # acceleration stream
    w += [p["acc_embed_w"],
          p["acc_embed_b"][None, :] + p["acc_pos_embed"][:Af],
          p["acc_token"] + p["acc_pos_embed"][Af:Af + 1],
          p["acc_norm_g"][None, :], p["acc_norm_b"][None, :],
          p["acc_feat_w"], p["acc_feat_b"][None, :]]
    w += _stack_blocks(p["acc_blocks"], Te, nh)
    # spatial stream
    w += [p["spat_embed_w"],
          p["spat_embed_b"][None, :] + p["spat_pos_embed"][:J],
          p["spat_token"] + p["spat_pos_embed"][J:J + 1],
          jnp.asarray(attn_bias),
          p["spat_norm_g"][None, :], p["spat_norm_b"][None, :]]
    w += _stack_blocks(p["spat_blocks"], Se, nh)
    # temporal stream
    w += [p["proj_up_w"], p["proj_up_b"][None, :], p["temp_pos_embed"],
          p["temp_norm_g"][None, :], p["temp_norm_b"][None, :]]
    w += _stack_blocks(p["temp_blocks"], Te, nh)
    # classification head
    w += [p["head_ln_g"][None, :], p["head_ln_b"][None, :],
          p["head_w"], p["head_b"][None, :]]
    return w


# ------------------------------------------------------------------ pure-JAX reference (correctness check)

def reference_forward(inputs, p, cfg):
    B = inputs.shape[0]
    J, Cin, Ca = cfg["num_joints"], cfg["in_chans"], cfg["acc_coords"]
    F, Af, nh = cfg["mocap_frames"], cfg["acc_frames"], cfg["num_heads"]
    Se = cfg["spatial_embed"]
    Te = Se * J

    def ln(x, g, b, e=1e-6):
        mu = x.mean(-1, keepdims=True)
        v = ((x - mu) ** 2).mean(-1, keepdims=True)
        return (x - mu) / jnp.sqrt(v + e) * g + b

    def attn(xq, xkv, bp, dim):
        Dh = dim // nh
        scale = Dh ** -0.5
        q = xq @ bp["qkv_w"][:, :dim] + bp["qkv_b"][:dim]
        k = xkv @ bp["qkv_w"][:, dim:2 * dim] + bp["qkv_b"][dim:2 * dim]
        v = xkv @ bp["qkv_w"][:, 2 * dim:] + bp["qkv_b"][2 * dim:]
        heads = []
        for h in range(nh):
            sl = slice(h * Dh, (h + 1) * Dh)
            s = (q[..., sl] * scale) @ jnp.swapaxes(k[..., sl], -1, -2)
            heads.append(jax.nn.softmax(s, axis=-1) @ v[..., sl])
        return jnp.concatenate(heads, axis=-1) @ bp["proj_w"] + bp["proj_b"]

    def block(x, bp, dim, xkv=None):
        h = ln(x, bp["ln1_g"], bp["ln1_b"])
        x = x + attn(h, h if xkv is None else xkv, bp, dim)
        h2 = ln(x, bp["ln2_g"], bp["ln2_b"])
        h2 = jax.nn.gelu(h2 @ bp["fc1_w"] + bp["fc1_b"], approximate=True)
        return x + h2 @ bp["fc2_w"] + bp["fc2_b"]

    x = inputs[:, :, :J, :Cin]
    sxf = inputs[:, 0, J:J + 18, 0]
    sx = inputs[:, 0, J + 18:, :Ca]

    xa = sx @ p["acc_embed_w"] + p["acc_embed_b"]
    xa = jnp.concatenate([xa, jnp.broadcast_to(p["acc_token"][None], (B, 1, Te))], axis=1)
    xa = xa + p["acc_pos_embed"][None]
    cvs = []
    for bp in p["acc_blocks"]:
        cvs.append(ln(xa, bp["ln1_g"], bp["ln1_b"]))
        xa = block(xa, bp, Te)
    xa = ln(xa, p["acc_norm_g"], p["acc_norm_b"])
    sx_cls = xa[:, -1, :]
    if cfg["fuse_acc_features"]:
        sx_cls = sx_cls + (sxf @ p["acc_feat_w"] + p["acc_feat_b"])

    xs = x.reshape(B * F, J, Cin) @ p["spat_embed_w"] + p["spat_embed_b"]
    xs = jnp.concatenate([xs, jnp.broadcast_to(p["spat_token"][None], (B * F, 1, Se))], axis=1)
    xs = xs + p["spat_pos_embed"][None]
    for bp in p["spat_blocks"]:
        xs = block(xs, bp, Se)
    xs = ln(xs, p["spat_norm_g"], p["spat_norm_b"])
    cls = xs[:, -1, :].reshape(B, F * Se)
    xj = xs[:, :J, :].reshape(B, F, J * Se)

    tcls = (cls @ p["proj_up_w"] + p["proj_up_b"])[:, None, :]
    xt = jnp.concatenate([xj, tcls], axis=1) + p["temp_pos_embed"][None]
    for i, bp in enumerate(p["temp_blocks"]):
        xt = block(xt, bp, Te, xkv=cvs[i])
    xt = ln(xt, p["temp_norm_g"], p["temp_norm_b"])
    xt_cls = xt[:, -1, :]

    z = ln(xt_cls + sx_cls, p["head_ln_g"], p["head_ln_b"], 1e-5)
    logits = z @ p["head_w"] + p["head_b"]
    return jax.nn.log_softmax(logits, axis=-1)


# ------------------------------------------------------------------ main

if __name__ == "__main__":
    cfg = dict(
        mocap_frames=8,
        acc_frames=6,
        num_joints=4,
        in_chans=3,
        acc_coords=3,
        acc_features=18,
        spatial_embed=8,
        sdepth=2,
        adepth=2,
        tdepth=2,
        num_heads=2,
        mlp_ratio=2.0,
        num_classes=6,
        fuse_acc_features=False,
    )

    key = jax.random.PRNGKey(0)
    k_in, k_par = jax.random.split(key)

    # input layout matches the PyTorch module: (b, mocap_frames, num_joints + 18 + acc_frames, coords)
    P = cfg["num_joints"] + 18 + cfg["acc_frames"]          # 4 + 18 + 6 = 28
    inputs = jax.random.normal(k_in, (2, cfg["mocap_frames"], P, 3), jnp.float32)

    params = init_params(k_par, cfg)
    kweights = prepare_params(params, cfg)                   # one-time re-layout, outside jit

    fwd = jax.jit(partial(forward, cfg=cfg))
    out = jax.block_until_ready(fwd(inputs, kweights))

    assert out.shape == (2, cfg["num_classes"])
    assert bool(jnp.all(jnp.isfinite(out)))
    # rows of log_softmax must (approximately) sum to 1 after exp
    assert bool(jnp.allclose(jnp.sum(jnp.exp(out), axis=-1), 1.0, atol=1e-4))

    # compare against a pure-JAX reference built from the raw (un-prepared) parameters
    ref = reference_forward(inputs, params, cfg)
    err = float(jnp.max(jnp.abs(out - ref)))
    assert err < 2e-3, f"kernel vs pure-JAX reference mismatch: max abs err = {err}"

    print("KERNEL_OK")
</pallas_src>

<mosaic_0001>
module attributes {stable_mosaic.version = 11 : i64} {
  func.func @_fused_forward_kernel(%arg0: i32, %arg1: memref<1x8x28x3xf32, #tpu.memory_space<vmem>>, %arg2: memref<3x32xf32, #tpu.memory_space<vmem>>, %arg3: memref<6x32xf32, #tpu.memory_space<vmem>>, %arg4: memref<1x32xf32, #tpu.memory_space<vmem>>, %arg5: memref<1x32xf32, #tpu.memory_space<vmem>>, %arg6: memref<1x32xf32, #tpu.memory_space<vmem>>, %arg7: memref<18x32xf32, #tpu.memory_space<vmem>>, %arg8: memref<1x32xf32, #tpu.memory_space<vmem>>, %arg9: memref<2x1x32xf32, #tpu.memory_space<vmem>>, %arg10: memref<2x1x32xf32, #tpu.memory_space<vmem>>, %arg11: memref<2x2x32x16xf32, #tpu.memory_space<vmem>>, %arg12: memref<2x2x1x16xf32, #tpu.memory_space<vmem>>, %arg13: memref<2x2x32x16xf32, #tpu.memory_space<vmem>>, %arg14: memref<2x2x1x16xf32, #tpu.memory_space<vmem>>, %arg15: memref<2x2x32x16xf32, #tpu.memory_space<vmem>>, %arg16: memref<2x2x1x16xf32, #tpu.memory_space<vmem>>, %arg17: memref<2x2x16x32xf32, #tpu.memory_space<vmem>>, %arg18: memref<2x1x32xf32, #tpu.memory_space<vmem>>, %arg19: memref<2x1x32xf32, #tpu.memory_space<vmem>>, %arg20: memref<2x1x32xf32, #tpu.memory_space<vmem>>, %arg21: memref<2x32x64xf32, #tpu.memory_space<vmem>>, %arg22: memref<2x1x64xf32, #tpu.memory_space<vmem>>, %arg23: memref<2x64x32xf32, #tpu.memory_space<vmem>>, %arg24: memref<2x1x32xf32, #tpu.memory_space<vmem>>, %arg25: memref<3x8xf32, #tpu.memory_space<vmem>>, %arg26: memref<4x8xf32, #tpu.memory_space<vmem>>, %arg27: memref<1x8xf32, #tpu.memory_space<vmem>>, %arg28: memref<40x40xf32, #tpu.memory_space<vmem>>, %arg29: memref<1x8xf32, #tpu.memory_space<vmem>>, %arg30: memref<1x8xf32, #tpu.memory_space<vmem>>, %arg31: memref<2x1x8xf32, #tpu.memory_space<vmem>>, %arg32: memref<2x1x8xf32, #tpu.memory_space<vmem>>, %arg33: memref<2x2x8x4xf32, #tpu.memory_space<vmem>>, %arg34: memref<2x2x1x4xf32, #tpu.memory_space<vmem>>, %arg35: memref<2x2x8x4xf32, #tpu.memory_space<vmem>>, %arg36: memref<2x2x1x4xf32, #tpu.memory_space<vmem>>, %arg37: memref<2x2x8x4xf32, #tpu.memory_space<vmem>>, %arg38: memref<2x2x1x4xf32, #tpu.memory_space<vmem>>, %arg39: memref<2x2x4x8xf32, #tpu.memory_space<vmem>>, %arg40: memref<2x1x8xf32, #tpu.memory_space<vmem>>, %arg41: memref<2x1x8xf32, #tpu.memory_space<vmem>>, %arg42: memref<2x1x8xf32, #tpu.memory_space<vmem>>, %arg43: memref<2x8x16xf32, #tpu.memory_space<vmem>>, %arg44: memref<2x1x16xf32, #tpu.memory_space<vmem>>, %arg45: memref<2x16x8xf32, #tpu.memory_space<vmem>>, %arg46: memref<2x1x8xf32, #tpu.memory_space<vmem>>, %arg47: memref<64x32xf32, #tpu.memory_space<vmem>>, %arg48: memref<1x32xf32, #tpu.memory_space<vmem>>, %arg49: memref<9x32xf32, #tpu.memory_space<vmem>>, %arg50: memref<1x32xf32, #tpu.memory_space<vmem>>, %arg51: memref<1x32xf32, #tpu.memory_space<vmem>>, %arg52: memref<2x1x32xf32, #tpu.memory_space<vmem>>, %arg53: memref<2x1x32xf32, #tpu.memory_space<vmem>>, %arg54: memref<2x2x32x16xf32, #tpu.memory_space<vmem>>, %arg55: memref<2x2x1x16xf32, #tpu.memory_space<vmem>>, %arg56: memref<2x2x32x16xf32, #tpu.memory_space<vmem>>, %arg57: memref<2x2x1x16xf32, #tpu.memory_space<vmem>>, %arg58: memref<2x2x32x16xf32, #tpu.memory_space<vmem>>, %arg59: memref<2x2x1x16xf32, #tpu.memory_space<vmem>>, %arg60: memref<2x2x16x32xf32, #tpu.memory_space<vmem>>, %arg61: memref<2x1x32xf32, #tpu.memory_space<vmem>>, %arg62: memref<2x1x32xf32, #tpu.memory_space<vmem>>, %arg63: memref<2x1x32xf32, #tpu.memory_space<vmem>>, %arg64: memref<2x32x64xf32, #tpu.memory_space<vmem>>, %arg65: memref<2x1x64xf32, #tpu.memory_space<vmem>>, %arg66: memref<2x64x32xf32, #tpu.memory_space<vmem>>, %arg67: memref<2x1x32xf32, #tpu.memory_space<vmem>>, %arg68: memref<1x32xf32, #tpu.memory_space<vmem>>, %arg69: memref<1x32xf32, #tpu.memory_space<vmem>>, %arg70: memref<32x6xf32, #tpu.memory_space<vmem>>, %arg71: memref<1x6xf32, #tpu.memory_space<vmem>>, %arg72: memref<1x1x6xf32, #tpu.memory_space<vmem>>, %arg73: memref<7x32xf32, #tpu.memory_space<vmem>>, %arg74: memref<40x8xf32, #tpu.memory_space<vmem>>, %arg75: memref<9x32xf32, #tpu.memory_space<vmem>>, %arg76: memref<1x64xf32, #tpu.memory_space<vmem>>) attributes {dimension_semantics = [#tpu.dimension_semantics<parallel>], iteration_bounds = array<i64: 2>, scalar_prefetch = 0 : i64, scratch_operands = 4 : i64, tpu.core_type = #tpu.core_type<tc>, window_params = [{transform_indices = @transform_0, window_bounds = array<i64: 1, 8, 28, 3>}, {pipeline_mode = #tpu.pipeline_mode<synchronous>, transform_indices = @transform_1, window_bounds = array<i64: 3, 32>}, {pipeline_mode = #tpu.pipeline_mode<synchronous>, transform_indices = @transform_2, window_bounds = array<i64: 6, 32>}, {pipeline_mode = #tpu.pipeline_mode<synchronous>, transform_indices = @transform_3, window_bounds = array<i64: 1, 32>}, {pipeline_mode = #tpu.pipeline_mode<synchronous>, transform_indices = @transform_4, window_bounds = array<i64: 1, 32>}, {pipeline_mode = #tpu.pipeline_mode<synchronous>, transform_indices = @transform_5, window_bounds = array<i64: 1, 32>}, {pipeline_mode = #tpu.pipeline_mode<synchronous>, transform_indices = @transform_6, window_bounds = array<i64: 18, 32>}, {pipeline_mode = #tpu.pipeline_mode<synchronous>, transform_indices = @transform_7, window_bounds = array<i64: 1, 32>}, {pipeline_mode = #tpu.pipeline_mode<synchronous>, transform_indices = @transform_8, window_bounds = array<i64: 2, 1, 32>}, {pipeline_mode = #tpu.pipeline_mode<synchronous>, transform_indices = @transform_9, window_bounds = array<i64: 2, 1, 32>}, {pipeline_mode = #tpu.pipeline_mode<synchronous>, transform_indices = @transform_10, window_bounds = array<i64: 2, 2, 32, 16>}, {pipeline_mode = #tpu.pipeline_mode<synchronous>, transform_indices = @transform_11, window_bounds = array<i64: 2, 2, 1, 16>}, {pipeline_mode = #tpu.pipeline_mode<synchronous>, transform_indices = @transform_12, window_bounds = array<i64: 2, 2, 32, 16>}, {pipeline_mode = #tpu.pipeline_mode<synchronous>, transform_indices = @transform_13, window_bounds = array<i64: 2, 2, 1, 16>}, {pipeline_mode = #tpu.pipeline_mode<synchronous>, transform_indices = @transform_14, window_bounds = array<i64: 2, 2, 32, 16>}, {pipeline_mode = #tpu.pipeline_mode<synchronous>, transform_indices = @transform_15, window_bounds = array<i64: 2, 2, 1, 16>}, {pipeline_mode = #tpu.pipeline_mode<synchronous>, transform_indices = @transform_16, window_bounds = array<i64: 2, 2, 16, 32>}, {pipeline_mode = #tpu.pipeline_mode<synchronous>, transform_indices = @transform_17, window_bounds = array<i64: 2, 1, 32>}, {pipeline_mode = #tpu.pipeline_mode<synchronous>, transform_indices = @transform_18, window_bounds = array<i64: 2, 1, 32>}, {pipeline_mode = #tpu.pipeline_mode<synchronous>, transform_indices = @transform_19, window_bounds = array<i64: 2, 1, 32>}, {pipeline_mode = #tpu.pipeline_mode<synchronous>, transform_indices = @transform_20, window_bounds = array<i64: 2, 32, 64>}, {pipeline_mode = #tpu.pipeline_mode<synchronous>, transform_indices = @transform_21, window_bounds = array<i64: 2, 1, 64>}, {pipeline_mode = #tpu.pipeline_mode<synchronous>, transform_indices = @transform_22, window_bounds = array<i64: 2, 64, 32>}, {pipeline_mode = #tpu.pipeline_mode<synchronous>, transform_indices = @transform_23, window_bounds = array<i64: 2, 1, 32>}, {pipeline_mode = #tpu.pipeline_mode<synchronous>, transform_indices = @transform_24, window_bounds = array<i64: 3, 8>}, {pipeline_mode = #tpu.pipeline_mode<synchronous>, transform_indices = @transform_25, window_bounds = array<i64: 4, 8>}, {pipeline_mode = #tpu.pipeline_mode<synchronous>, transform_indices = @transform_26, window_bounds = array<i64: 1, 8>}, {pipeline_mode = #tpu.pipeline_mode<synchronous>, transform_indices = @transform_27, window_bounds = array<i64: 40, 40>}, {pipeline_mode = #tpu.pipeline_mode<synchronous>, transform_indices = @transform_28, window_bounds = array<i64: 1, 8>}, {pipeline_mode = #tpu.pipeline_mode<synchronous>, transform_indices = @transform_29, window_bounds = array<i64: 1, 8>}, {pipeline_mode = #tpu.pipeline_mode<synchronous>, transform_indices = @transform_30, window_bounds = array<i64: 2, 1, 8>}, {pipeline_mode = #tpu.pipeline_mode<synchronous>, transform_indices = @transform_31, window_bounds = array<i64: 2, 1, 8>}, {pipeline_mode = #tpu.pipeline_mode<synchronous>, transform_indices = @transform_32, window_bounds = array<i64: 2, 2, 8, 4>}, {pipeline_mode = #tpu.pipeline_mode<synchronous>, transform_indices = @transform_33, window_bounds = array<i64: 2, 2, 1, 4>}, {pipeline_mode = #tpu.pipeline_mode<synchronous>, transform_indices = @transform_34, window_bounds = array<i64: 2, 2, 8, 4>}, {pipeline_mode = #tpu.pipeline_mode<synchronous>, transform_indices = @transform_35, window_bounds = array<i64: 2, 2, 1, 4>}, {pipeline_mode = #tpu.pipeline_mode<synchronous>, transform_indices = @transform_36, window_bounds = array<i64: 2, 2, 8, 4>}, {pipeline_mode = #tpu.pipeline_mode<synchronous>, transform_indices = @transform_37, window_bounds = array<i64: 2, 2, 1, 4>}, {pipeline_mode = #tpu.pipeline_mode<synchronous>, transform_indices = @transform_38, window_bounds = array<i64: 2, 2, 4, 8>}, {pipeline_mode = #tpu.pipeline_mode<synchronous>, transform_indices = @transform_39, window_bounds = array<i64: 2, 1, 8>}, {pipeline_mode = #tpu.pipeline_mode<synchronous>, transform_indices = @transform_40, window_bounds = array<i64: 2, 1, 8>}, {pipeline_mode = #tpu.pipeline_mode<synchronous>, transform_indices = @transform_41, window_bounds = array<i64: 2, 1, 8>}, {pipeline_mode = #tpu.pipeline_mode<synchronous>, transform_indices = @transform_42, window_bounds = array<i64: 2, 8, 16>}, {pipeline_mode = #tpu.pipeline_mode<synchronous>, transform_indices = @transform_43, window_bounds = array<i64: 2, 1, 16>}, {pipeline_mode = #tpu.pipeline_mode<synchronous>, transform_indices = @transform_44, window_bounds = array<i64: 2, 16, 8>}, {pipeline_mode = #tpu.pipeline_mode<synchronous>, transform_indices = @transform_45, window_bounds = array<i64: 2, 1, 8>}, {pipeline_mode = #tpu.pipeline_mode<synchronous>, transform_indices = @transform_46, window_bounds = array<i64: 64, 32>}, {pipeline_mode = #tpu.pipeline_mode<synchronous>, transform_indices = @transform_47, window_bounds = array<i64: 1, 32>}, {pipeline_mode = #tpu.pipeline_mode<synchronous>, transform_indices = @transform_48, window_bounds = array<i64: 9, 32>}, {pipeline_mode = #tpu.pipeline_mode<synchronous>, transform_indices = @transform_49, window_bounds = array<i64: 1, 32>}, {pipeline_mode = #tpu.pipeline_mode<synchronous>, transform_indices = @transform_50, window_bounds = array<i64: 1, 32>}, {pipeline_mode = #tpu.pipeline_mode<synchronous>, transform_indices = @transform_51, window_bounds = array<i64: 2, 1, 32>}, {pipeline_mode = #tpu.pipeline_mode<synchronous>, transform_indices = @transform_52, window_bounds = array<i64: 2, 1, 32>}, {pipeline_mode = #tpu.pipeline_mode<synchronous>, transform_indices = @transform_53, window_bounds = array<i64: 2, 2, 32, 16>}, {pipeline_mode = #tpu.pipeline_mode<synchronous>, transform_indices = @transform_54, window_bounds = array<i64: 2, 2, 1, 16>}, {pipeline_mode = #tpu.pipeline_mode<synchronous>, transform_indices = @transform_55, window_bounds = array<i64: 2, 2, 32, 16>}, {pipeline_mode = #tpu.pipeline_mode<synchronous>, transform_indices = @transform_56, window_bounds = array<i64: 2, 2, 1, 16>}, {pipeline_mode = #tpu.pipeline_mode<synchronous>, transform_indices = @transform_57, window_bounds = array<i64: 2, 2, 32, 16>}, {pipeline_mode = #tpu.pipeline_mode<synchronous>, transform_indices = @transform_58, window_bounds = array<i64: 2, 2, 1, 16>}, {pipeline_mode = #tpu.pipeline_mode<synchronous>, transform_indices = @transform_59, window_bounds = array<i64: 2, 2, 16, 32>}, {pipeline_mode = #tpu.pipeline_mode<synchronous>, transform_indices = @transform_60, window_bounds = array<i64: 2, 1, 32>}, {pipeline_mode = #tpu.pipeline_mode<synchronous>, transform_indices = @transform_61, window_bounds = array<i64: 2, 1, 32>}, {pipeline_mode = #tpu.pipeline_mode<synchronous>, transform_indices = @transform_62, window_bounds = array<i64: 2, 1, 32>}, {pipeline_mode = #tpu.pipeline_mode<synchronous>, transform_indices = @transform_63, window_bounds = array<i64: 2, 32, 64>}, {pipeline_mode = #tpu.pipeline_mode<synchronous>, transform_indices = @transform_64, window_bounds = array<i64: 2, 1, 64>}, {pipeline_mode = #tpu.pipeline_mode<synchronous>, transform_indices = @transform_65, window_bounds = array<i64: 2, 64, 32>}, {pipeline_mode = #tpu.pipeline_mode<synchronous>, transform_indices = @transform_66, window_bounds = array<i64: 2, 1, 32>}, {pipeline_mode = #tpu.pipeline_mode<synchronous>, transform_indices = @transform_67, window_bounds = array<i64: 1, 32>}, {pipeline_mode = #tpu.pipeline_mode<synchronous>, transform_indices = @transform_68, window_bounds = array<i64: 1, 32>}, {pipeline_mode = #tpu.pipeline_mode<synchronous>, transform_indices = @transform_69, window_bounds = array<i64: 32, 6>}, {pipeline_mode = #tpu.pipeline_mode<synchronous>, transform_indices = @transform_70, window_bounds = array<i64: 1, 6>}, {transform_indices = @transform_71, window_bounds = array<i64: 1, 1, 6>}]} {
    %c0 = arith.constant 0 : index
    %c0_0 = arith.constant 0 : index
    %c0_1 = arith.constant 0 : index
    %c0_2 = arith.constant 0 : index
    %0 = vector.load %arg1[%c0, %c0_0, %c0_1, %c0_2] : memref<1x8x28x3xf32, #tpu.memory_space<vmem>>, vector<1x8x28x3xf32>
    %1 = vector.shape_cast %0 : vector<1x8x28x3xf32> to vector<8x28x3xf32>
    %2 = vector.extract_strided_slice %1 {offsets = [0, 22, 0], sizes = [1, 6, 3], strides = [1, 1, 1]} : vector<8x28x3xf32> to vector<1x6x3xf32>
    %3 = vector.shape_cast %2 : vector<1x6x3xf32> to vector<6x3xf32>
    %c0_3 = arith.constant 0 : index
    %c0_4 = arith.constant 0 : index
    %4 = vector.load %arg2[%c0_3, %c0_4] : memref<3x32xf32, #tpu.memory_space<vmem>>, vector<3x32xf32>
    %cst = arith.constant dense<0.000000e+00> : vector<6x32xf32>
    %5 = tpu.matmul %3, %4, %cst {dimension_numbers = #tpu.dot_dimension_numbers<[1], [0], [0], [1], [0, 0, 1, 1], [], []>} : vector<6x3xf32>, vector<3x32xf32>, vector<6x32xf32> -> vector<6x32xf32>
    %c0_5 = arith.constant 0 : index
    %c0_6 = arith.constant 0 : index
    %6 = vector.load %arg3[%c0_5, %c0_6] : memref<6x32xf32, #tpu.memory_space<vmem>>, vector<6x32xf32>
    %7 = arith.addf %5, %6 : vector<6x32xf32>
    %c0_7 = arith.constant 0 : index
    %c0_8 = arith.constant 0 : index
    %8 = vector.load %arg73[%c0_7, %c0_8] : memref<7x32xf32, #tpu.memory_space<vmem>>, vector<6x32xf32>
    tpu.vector_store %arg73[%c0_7, %c0_8], %7 {strides = array<i32>} : memref<7x32xf32, #tpu.memory_space<vmem>>, vector<6x32xf32>,
    %c0_9 = arith.constant 0 : index
    %c0_10 = arith.constant 0 : index
    %9 = vector.load %arg4[%c0_9, %c0_10] : memref<1x32xf32, #tpu.memory_space<vmem>>, vector<1x32xf32>
    %c6 = arith.constant 6 : index
    %c0_11 = arith.constant 0 : index
    %10 = vector.load %arg73[%c6, %c0_11] : memref<7x32xf32, #tpu.memory_space<vmem>>, vector<1x32xf32>
    tpu.vector_store %arg73[%c6, %c0_11], %9 {strides = array<i32>} : memref<7x32xf32, #tpu.memory_space<vmem>>, vector<1x32xf32>,
    %c0_12 = arith.constant 0 : index
    %c0_13 = arith.constant 0 : index
    %11 = vector.load %arg73[%c0_12, %c0_13] : memref<7x32xf32, #tpu.memory_space<vmem>>, vector<7x32xf32>
    %c0_14 = arith.constant 0 : index
    %c0_15 = arith.constant 0 : index
    %c0_16 = arith.constant 0 : index
    %12 = vector.load %arg9[%c0_14, %c0_15, %c0_16] : memref<2x1x32xf32, #tpu.memory_space<vmem>>, vector<1x1x32xf32>
    %13 = vector.shape_cast %12 : vector<1x1x32xf32> to vector<1x32xf32>
    %c0_17 = arith.constant 0 : index
    %c0_18 = arith.constant 0 : index
    %c0_19 = arith.constant 0 : index
    %14 = vector.load %arg10[%c0_17, %c0_18, %c0_19] : memref<2x1x32xf32, #tpu.memory_space<vmem>>, vector<1x1x32xf32>
    %15 = vector.shape_cast %14 : vector<1x1x32xf32> to vector<1x32xf32>
    %cst_20 = arith.constant dense<0.000000e+00> : vector<7xf32>
    %16 = vector.multi_reduction <add>, %11, %cst_20 [1] : vector<7x32xf32> to vector<7xf32>
    %17 = vector.shape_cast %16 : vector<7xf32> to vector<7x1xf32>
    %cst_21 = arith.constant 3.200000e+01 : f32
    %18 = vector.broadcast %cst_21 : f32 to vector<7x1xf32>
    %19 = arith.divf %17, %18 : vector<7x1xf32>
    %20 = vector.broadcast %19 : vector<7x1xf32> to vector<7x32xf32>
    %21 = arith.subf %11, %20 : vector<7x32xf32>
    %22 = arith.mulf %21, %21 : vector<7x32xf32>
    %cst_22 = arith.constant dense<0.000000e+00> : vector<7xf32>
    %23 = vector.multi_reduction <add>, %22, %cst_22 [1] : vector<7x32xf32> to vector<7xf32>
    %24 = vector.shape_cast %23 : vector<7xf32> to vector<7x1xf32>
    %cst_23 = arith.constant 3.200000e+01 : f32
    %25 = vector.broadcast %cst_23 : f32 to vector<7x1xf32>
    %26 = arith.divf %24, %25 : vector<7x1xf32>
    %cst_24 = arith.constant 9.99999997E-7 : f32
    %27 = vector.broadcast %cst_24 : f32 to vector<7x1xf32>
    %28 = arith.addf %26, %27 : vector<7x1xf32>
    %29 = math.rsqrt %28 : vector<7x1xf32>
    %30 = vector.broadcast %29 : vector<7x1xf32> to vector<7x32xf32>
    %31 = arith.mulf %21, %30 : vector<7x32xf32>
    %32 = vector.broadcast %13 : vector<1x32xf32> to vector<7x32xf32>
    %33 = arith.mulf %31, %32 : vector<7x32xf32>
    %34 = vector.broadcast %15 : vector<1x32xf32> to vector<7x32xf32>
    %35 = arith.addf %33, %34 : vector<7x32xf32>
    %c0_25 = arith.constant 0 : index
    %c0_26 = arith.constant 0 : index
    %c0_27 = arith.constant 0 : index
    %c0_28 = arith.constant 0 : index
    %36 = vector.load %arg11[%c0_25, %c0_26, %c0_27, %c0_28] : memref<2x2x32x16xf32, #tpu.memory_space<vmem>>, vector<1x2x32x16xf32>
    %37 = vector.shape_cast %36 : vector<1x2x32x16xf32> to vector<2x32x16xf32>
    %c0_29 = arith.constant 0 : index
    %c0_30 = arith.constant 0 : index
    %c0_31 = arith.constant 0 : index
    %c0_32 = arith.constant 0 : index
    %38 = vector.load %arg12[%c0_29, %c0_30, %c0_31, %c0_32] : memref<2x2x1x16xf32, #tpu.memory_space<vmem>>, vector<1x2x1x16xf32>
    %39 = vector.shape_cast %38 : vector<1x2x1x16xf32> to vector<2x1x16xf32>
    %c0_33 = arith.constant 0 : index
    %c0_34 = arith.constant 0 : index
    %c0_35 = arith.constant 0 : index
    %c0_36 = arith.constant 0 : index
    %40 = vector.load %arg13[%c0_33, %c0_34, %c0_35, %c0_36] : memref<2x2x32x16xf32, #tpu.memory_space<vmem>>, vector<1x2x32x16xf32>
    %41 = vector.shape_cast %40 : vector<1x2x32x16xf32> to vector<2x32x16xf32>
    %c0_37 = arith.constant 0 : index
    %c0_38 = arith.constant 0 : index
    %c0_39 = arith.constant 0 : index
    %c0_40 = arith.constant 0 : index
    %42 = vector.load %arg14[%c0_37, %c0_38, %c0_39, %c0_40] : memref<2x2x1x16xf32, #tpu.memory_space<vmem>>, vector<1x2x1x16xf32>
    %43 = vector.shape_cast %42 : vector<1x2x1x16xf32> to vector<2x1x16xf32>
    %c0_41 = arith.constant 0 : index
    %c0_42 = arith.constant 0 : index
    %c0_43 = arith.constant 0 : index
    %c0_44 = arith.constant 0 : index
    %44 = vector.load %arg15[%c0_41, %c0_42, %c0_43, %c0_44] : memref<2x2x32x16xf32, #tpu.memory_space<vmem>>, vector<1x2x32x16xf32>
    %45 = vector.shape_cast %44 : vector<1x2x32x16xf32> to vector<2x32x16xf32>
    %c0_45 = arith.constant 0 : index
    %c0_46 = arith.constant 0 : index
    %c0_47 = arith.constant 0 : index
    %c0_48 = arith.constant 0 : index
    %46 = vector.load %arg16[%c0_45, %c0_46, %c0_47, %c0_48] : memref<2x2x1x16xf32, #tpu.memory_space<vmem>>, vector<1x2x1x16xf32>
    %47 = vector.shape_cast %46 : vector<1x2x1x16xf32> to vector<2x1x16xf32>
    %c0_49 = arith.constant 0 : index
    %c0_50 = arith.constant 0 : index
    %c0_51 = arith.constant 0 : index
    %c0_52 = arith.constant 0 : index
    %48 = vector.load %arg17[%c0_49, %c0_50, %c0_51, %c0_52] : memref<2x2x16x32xf32, #tpu.memory_space<vmem>>, vector<1x2x16x32xf32>
    %49 = vector.shape_cast %48 : vector<1x2x16x32xf32> to vector<2x16x32xf32>
    %c0_53 = arith.constant 0 : index
    %c0_54 = arith.constant 0 : index
    %c0_55 = arith.constant 0 : index
    %50 = vector.load %arg18[%c0_53, %c0_54, %c0_55] : memref<2x1x32xf32, #tpu.memory_space<vmem>>, vector<1x1x32xf32>
    %51 = vector.shape_cast %50 : vector<1x1x32xf32> to vector<1x32xf32>
    %52 = vector.extract_strided_slice %37 {offsets = [0, 0, 0], sizes = [1, 32, 16], strides = [1, 1, 1]} : vector<2x32x16xf32> to vector<1x32x16xf32>
    %53 = vector.shape_cast %52 : vector<1x32x16xf32> to vector<32x16xf32>
    %cst_56 = arith.constant dense<0.000000e+00> : vector<7x16xf32>
    %54 = tpu.matmul %35, %53, %cst_56 {dimension_numbers = #tpu.dot_dimension_numbers<[1], [0], [0], [1], [0, 0, 1, 1], [], []>} : vector<7x32xf32>, vector<32x16xf32>, vector<7x16xf32> -> vector<7x16xf32>
    %55 = vector.extract_strided_slice %39 {offsets = [0, 0, 0], sizes = [1, 1, 16], strides = [1, 1, 1]} : vector<2x1x16xf32> to vector<1x1x16xf32>
    %56 = vector.shape_cast %55 : vector<1x1x16xf32> to vector<1x16xf32>
    %57 = vector.broadcast %56 : vector<1x16xf32> to vector<7x16xf32>
    %58 = arith.addf %54, %57 : vector<7x16xf32>
    %59 = vector.extract_strided_slice %41 {offsets = [0, 0, 0], sizes = [1, 32, 16], strides = [1, 1, 1]} : vector<2x32x16xf32> to vector<1x32x16xf32>
    %60 = vector.shape_cast %59 : vector<1x32x16xf32> to vector<32x16xf32>
    %cst_57 = arith.constant dense<0.000000e+00> : vector<7x16xf32>
    %61 = tpu.matmul %35, %60, %cst_57 {dimension_numbers = #tpu.dot_dimension_numbers<[1], [0], [0], [1], [0, 0, 1, 1], [], []>} : vector<7x32xf32>, vector<32x16xf32>, vector<7x16xf32> -> vector<7x16xf32>
    %62 = vector.extract_strided_slice %43 {offsets = [0, 0, 0], sizes = [1, 1, 16], strides = [1, 1, 1]} : vector<2x1x16xf32> to vector<1x1x16xf32>
    %63 = vector.shape_cast %62 : vector<1x1x16xf32> to vector<1x16xf32>
    %64 = vector.broadcast %63 : vector<1x16xf32> to vector<7x16xf32>
    %65 = arith.addf %61, %64 : vector<7x16xf32>
    %66 = vector.extract_strided_slice %45 {offsets = [0, 0, 0], sizes = [1, 32, 16], strides = [1, 1, 1]} : vector<2x32x16xf32> to vector<1x32x16xf32>
    %67 = vector.shape_cast %66 : vector<1x32x16xf32> to vector<32x16xf32>
    %cst_58 = arith.constant dense<0.000000e+00> : vector<7x16xf32>
    %68 = tpu.matmul %35, %67, %cst_58 {dimension_numbers = #tpu.dot_dimension_numbers<[1], [0], [0], [1], [0, 0, 1, 1], [], []>} : vector<7x32xf32>, vector<32x16xf32>, vector<7x16xf32> -> vector<7x16xf32>
    %69 = vector.extract_strided_slice %47 {offsets = [0, 0, 0], sizes = [1, 1, 16], strides = [1, 1, 1]} : vector<2x1x16xf32> to vector<1x1x16xf32>
    %70 = vector.shape_cast %69 : vector<1x1x16xf32> to vector<1x16xf32>
    %71 = vector.broadcast %70 : vector<1x16xf32> to vector<7x16xf32>
    %72 = arith.addf %68, %71 : vector<7x16xf32>
    %cst_59 = arith.constant dense<0.000000e+00> : vector<7x7xf32>
    %73 = tpu.matmul %58, %65, %cst_59 {dimension_numbers = #tpu.dot_dimension_numbers<[1], [1], [0], [0], [0, 0, 1, 0], [], []>} : vector<7x16xf32>, vector<7x16xf32>, vector<7x7xf32> -> vector<7x7xf32>
    %cst_60 = arith.constant dense<0xFF800000> : vector<7xf32>
    %74 = vector.multi_reduction <maximumf>, %73, %cst_60 [1] : vector<7x7xf32> to vector<7xf32>
    %75 = vector.shape_cast %74 : vector<7xf32> to vector<7x1xf32>
    %76 = vector.broadcast %75 : vector<7x1xf32> to vector<7x7xf32>
    %77 = arith.subf %73, %76 : vector<7x7xf32>
    %78 = math.exp %77 : vector<7x7xf32>
    %cst_61 = arith.constant dense<0.000000e+00> : vector<7xf32>
    %79 = vector.multi_reduction <add>, %78, %cst_61 [1] : vector<7x7xf32> to vector<7xf32>
    %80 = vector.shape_cast %79 : vector<7xf32> to vector<7x1xf32>
    %81 = vector.broadcast %80 : vector<7x1xf32> to vector<7x7xf32>
    %82 = arith.divf %78, %81 : vector<7x7xf32>
    %cst_62 = arith.constant dense<0.000000e+00> : vector<7x16xf32>
    %83 = tpu.matmul %82, %72, %cst_62 {dimension_numbers = #tpu.dot_dimension_numbers<[1], [0], [0], [1], [0, 0, 1, 1], [], []>} : vector<7x7xf32>, vector<7x16xf32>, vector<7x16xf32> -> vector<7x16xf32>
    %84 = vector.extract_strided_slice %49 {offsets = [0, 0, 0], sizes = [1, 16, 32], strides = [1, 1, 1]} : vector<2x16x32xf32> to vector<1x16x32xf32>
    %85 = vector.shape_cast %84 : vector<1x16x32xf32> to vector<16x32xf32>
    %cst_63 = arith.constant dense<0.000000e+00> : vector<7x32xf32>
    %86 = tpu.matmul %83, %85, %cst_63 {dimension_numbers = #tpu.dot_dimension_numbers<[1], [0], [0], [1], [0, 0, 1, 1], [], []>} : vector<7x16xf32>, vector<16x32xf32>, vector<7x32xf32> -> vector<7x32xf32>
    %87 = vector.extract_strided_slice %37 {offsets = [1, 0, 0], sizes = [1, 32, 16], strides = [1, 1, 1]} : vector<2x32x16xf32> to vector<1x32x16xf32>
    %88 = vector.shape_cast %87 : vector<1x32x16xf32> to vector<32x16xf32>
    %cst_64 = arith.constant dense<0.000000e+00> : vector<7x16xf32>
    %89 = tpu.matmul %35, %88, %cst_64 {dimension_numbers = #tpu.dot_dimension_numbers<[1], [0], [0], [1], [0, 0, 1, 1], [], []>} : vector<7x32xf32>, vector<32x16xf32>, vector<7x16xf32> -> vector<7x16xf32>
    %90 = vector.extract_strided_slice %39 {offsets = [1, 0, 0], sizes = [1, 1, 16], strides = [1, 1, 1]} : vector<2x1x16xf32> to vector<1x1x16xf32>
    %91 = vector.shape_cast %90 : vector<1x1x16xf32> to vector<1x16xf32>
    %92 = vector.broadcast %91 : vector<1x16xf32> to vector<7x16xf32>
    %93 = arith.addf %89, %92 : vector<7x16xf32>
    %94 = vector.extract_strided_slice %41 {offsets = [1, 0, 0], sizes = [1, 32, 16], strides = [1, 1, 1]} : vector<2x32x16xf32> to vector<1x32x16xf32>
    %95 = vector.shape_cast %94 : vector<1x32x16xf32> to vector<32x16xf32>
    %cst_65 = arith.constant dense<0.000000e+00> : vector<7x16xf32>
    %96 = tpu.matmul %35, %95, %cst_65 {dimension_numbers = #tpu.dot_dimension_numbers<[1], [0], [0], [1], [0, 0, 1, 1], [], []>} : vector<7x32xf32>, vector<32x16xf32>, vector<7x16xf32> -> vector<7x16xf32>
    %97 = vector.extract_strided_slice %43 {offsets = [1, 0, 0], sizes = [1, 1, 16], strides = [1, 1, 1]} : vector<2x1x16xf32> to vector<1x1x16xf32>
    %98 = vector.shape_cast %97 : vector<1x1x16xf32> to vector<1x16xf32>
    %99 = vector.broadcast %98 : vector<1x16xf32> to vector<7x16xf32>
    %100 = arith.addf %96, %99 : vector<7x16xf32>
    %101 = vector.extract_strided_slice %45 {offsets = [1, 0, 0], sizes = [1, 32, 16], strides = [1, 1, 1]} : vector<2x32x16xf32> to vector<1x32x16xf32>
    %102 = vector.shape_cast %101 : vector<1x32x16xf32> to vector<32x16xf32>
    %cst_66 = arith.constant dense<0.000000e+00> : vector<7x16xf32>
    %103 = tpu.matmul %35, %102, %cst_66 {dimension_numbers = #tpu.dot_dimension_numbers<[1], [0], [0], [1], [0, 0, 1, 1], [], []>} : vector<7x32xf32>, vector<32x16xf32>, vector<7x16xf32> -> vector<7x16xf32>
    %104 = vector.extract_strided_slice %47 {offsets = [1, 0, 0], sizes = [1, 1, 16], strides = [1, 1, 1]} : vector<2x1x16xf32> to vector<1x1x16xf32>
    %105 = vector.shape_cast %104 : vector<1x1x16xf32> to vector<1x16xf32>
    %106 = vector.broadcast %105 : vector<1x16xf32> to vector<7x16xf32>
    %107 = arith.addf %103, %106 : vector<7x16xf32>
    %cst_67 = arith.constant dense<0.000000e+00> : vector<7x7xf32>
    %108 = tpu.matmul %93, %100, %cst_67 {dimension_numbers = #tpu.dot_dimension_numbers<[1], [1], [0], [0], [0, 0, 1, 0], [], []>} : vector<7x16xf32>, vector<7x16xf32>, vector<7x7xf32> -> vector<7x7xf32>
    %cst_68 = arith.constant dense<0xFF800000> : vector<7xf32>
    %109 = vector.multi_reduction <maximumf>, %108, %cst_68 [1] : vector<7x7xf32> to vector<7xf32>
    %110 = vector.shape_cast %109 : vector<7xf32> to vector<7x1xf32>
    %111 = vector.broadcast %110 : vector<7x1xf32> to vector<7x7xf32>
    %112 = arith.subf %108, %111 : vector<7x7xf32>
    %113 = math.exp %112 : vector<7x7xf32>
    %cst_69 = arith.constant dense<0.000000e+00> : vector<7xf32>
    %114 = vector.multi_reduction <add>, %113, %cst_69 [1] : vector<7x7xf32> to vector<7xf32>
    %115 = vector.shape_cast %114 : vector<7xf32> to vector<7x1xf32>
    %116 = vector.broadcast %115 : vector<7x1xf32> to vector<7x7xf32>
    %117 = arith.divf %113, %116 : vector<7x7xf32>
    %cst_70 = arith.constant dense<0.000000e+00> : vector<7x16xf32>
    %118 = tpu.matmul %117, %107, %cst_70 {dimension_numbers = #tpu.dot_dimension_numbers<[1], [0], [0], [1], [0, 0, 1, 1], [], []>} : vector<7x7xf32>, vector<7x16xf32>, vector<7x16xf32> -> vector<7x16xf32>
    %119 = vector.extract_strided_slice %49 {offsets = [1, 0, 0], sizes = [1, 16, 32], strides = [1, 1, 1]} : vector<2x16x32xf32> to vector<1x16x32xf32>
    %120 = vector.shape_cast %119 : vector<1x16x32xf32> to vector<16x32xf32>
    %cst_71 = arith.constant dense<0.000000e+00> : vector<7x32xf32>
    %121 = tpu.matmul %118, %120, %cst_71 {dimension_numbers = #tpu.dot_dimension_numbers<[1], [0], [0], [1], [0, 0, 1, 1], [], []>} : vector<7x16xf32>, vector<16x32xf32>, vector<7x32xf32> -> vector<7x32xf32>
    %122 = arith.addf %86, %121 : vector<7x32xf32>
    %123 = vector.broadcast %51 : vector<1x32xf32> to vector<7x32xf32>
    %124 = arith.addf %122, %123 : vector<7x32xf32>
    %125 = arith.addf %11, %124 : vector<7x32xf32>
    %c0_72 = arith.constant 0 : index
    %c0_73 = arith.constant 0 : index
    %c0_74 = arith.constant 0 : index
    %126 = vector.load %arg19[%c0_72, %c0_73, %c0_74] : memref<2x1x32xf32, #tpu.memory_space<vmem>>, vector<1x1x32xf32>
    %127 = vector.shape_cast %126 : vector<1x1x32xf32> to vector<1x32xf32>
    %c0_75 = arith.constant 0 : index
    %c0_76 = arith.constant 0 : index
    %c0_77 = arith.constant 0 : index
    %128 = vector.load %arg20[%c0_75, %c0_76, %c0_77] : memref<2x1x32xf32, #tpu.memory_space<vmem>>, vector<1x1x32xf32>
    %129 = vector.shape_cast %128 : vector<1x1x32xf32> to vector<1x32xf32>
    %cst_78 = arith.constant dense<0.000000e+00> : vector<7xf32>
    %130 = vector.multi_reduction <add>, %125, %cst_78 [1] : vector<7x32xf32> to vector<7xf32>
    %131 = vector.shape_cast %130 : vector<7xf32> to vector<7x1xf32>
    %cst_79 = arith.constant 3.200000e+01 : f32
    %132 = vector.broadcast %cst_79 : f32 to vector<7x1xf32>
    %133 = arith.divf %131, %132 : vector<7x1xf32>
    %134 = vector.broadcast %133 : vector<7x1xf32> to vector<7x32xf32>
    %135 = arith.subf %125, %134 : vector<7x32xf32>
    %136 = arith.mulf %135, %135 : vector<7x32xf32>
    %cst_80 = arith.constant dense<0.000000e+00> : vector<7xf32>
    %137 = vector.multi_reduction <add>, %136, %cst_80 [1] : vector<7x32xf32> to vector<7xf32>
    %138 = vector.shape_cast %137 : vector<7xf32> to vector<7x1xf32>
    %cst_81 = arith.constant 3.200000e+01 : f32
    %139 = vector.broadcast %cst_81 : f32 to vector<7x1xf32>
    %140 = arith.divf %138, %139 : vector<7x1xf32>
    %cst_82 = arith.constant 9.99999997E-7 : f32
    %141 = vector.broadcast %cst_82 : f32 to vector<7x1xf32>
    %142 = arith.addf %140, %141 : vector<7x1xf32>
    %143 = math.rsqrt %142 : vector<7x1xf32>
    %144 = vector.broadcast %143 : vector<7x1xf32> to vector<7x32xf32>
    %145 = arith.mulf %135, %144 : vector<7x32xf32>
    %146 = vector.broadcast %127 : vector<1x32xf32> to vector<7x32xf32>
    %147 = arith.mulf %145, %146 : vector<7x32xf32>
    %148 = vector.broadcast %129 : vector<1x32xf32> to vector<7x32xf32>
    %149 = arith.addf %147, %148 : vector<7x32xf32>
    %c0_83 = arith.constant 0 : index
    %c0_84 = arith.constant 0 : index
    %c0_85 = arith.constant 0 : index
    %150 = vector.load %arg21[%c0_83, %c0_84, %c0_85] : memref<2x32x64xf32, #tpu.memory_space<vmem>>, vector<1x32x64xf32>
    %151 = vector.shape_cast %150 : vector<1x32x64xf32> to vector<32x64xf32>
    %cst_86 = arith.constant dense<0.000000e+00> : vector<7x64xf32>
    %152 = tpu.matmul %149, %151, %cst_86 {dimension_numbers = #tpu.dot_dimension_numbers<[1], [0], [0], [1], [0, 0, 1, 1], [], []>} : vector<7x32xf32>, vector<32x64xf32>, vector<7x64xf32> -> vector<7x64xf32>
    %c0_87 = arith.constant 0 : index
    %c0_88 = arith.constant 0 : index
    %c0_89 = arith.constant 0 : index
    %153 = vector.load %arg22[%c0_87, %c0_88, %c0_89] : memref<2x1x64xf32, #tpu.memory_space<vmem>>, vector<1x1x64xf32>
    %154 = vector.shape_cast %153 : vector<1x1x64xf32> to vector<1x64xf32>
    %155 = vector.broadcast %154 : vector<1x64xf32> to vector<7x64xf32>
    %156 = arith.addf %152, %155 : vector<7x64xf32>
    %157 = arith.mulf %156, %156 : vector<7x64xf32>
    %158 = arith.mulf %156, %157 : vector<7x64xf32>
    %cst_90 = arith.constant 4.471500e-02 : f32
    %159 = vector.broadcast %cst_90 : f32 to vector<7x64xf32>
    %160 = arith.mulf %159, %158 : vector<7x64xf32>
    %161 = arith.addf %156, %160 : vector<7x64xf32>
    %cst_91 = arith.constant 0.797884583 : f32
    %162 = vector.broadcast %cst_91 : f32 to vector<7x64xf32>
    %163 = arith.mulf %162, %161 : vector<7x64xf32>
    %164 = math.tanh %163 : vector<7x64xf32>
    %cst_92 = arith.constant 1.000000e+00 : f32
    %165 = vector.broadcast %cst_92 : f32 to vector<7x64xf32>
    %166 = arith.addf %165, %164 : vector<7x64xf32>
    %cst_93 = arith.constant 5.000000e-01 : f32
    %167 = vector.broadcast %cst_93 : f32 to vector<7x64xf32>
    %168 = arith.mulf %167, %166 : vector<7x64xf32>
    %169 = arith.mulf %156, %168 : vector<7x64xf32>
    %c0_94 = arith.constant 0 : index
    %c0_95 = arith.constant 0 : index
    %c0_96 = arith.constant 0 : index
    %170 = vector.load %arg23[%c0_94, %c0_95, %c0_96] : memref<2x64x32xf32, #tpu.memory_space<vmem>>, vector<1x64x32xf32>
    %171 = vector.shape_cast %170 : vector<1x64x32xf32> to vector<64x32xf32>
    %cst_97 = arith.constant dense<0.000000e+00> : vector<7x32xf32>
    %172 = tpu.matmul %169, %171, %cst_97 {dimension_numbers = #tpu.dot_dimension_numbers<[1], [0], [0], [1], [0, 0, 1, 1], [], []>} : vector<7x64xf32>, vector<64x32xf32>, vector<7x32xf32> -> vector<7x32xf32>
    %c0_98 = arith.constant 0 : index
    %c0_99 = arith.constant 0 : index
    %c0_100 = arith.constant 0 : index
    %173 = vector.load %arg24[%c0_98, %c0_99, %c0_100] : memref<2x1x32xf32, #tpu.memory_space<vmem>>, vector<1x1x32xf32>
    %174 = vector.shape_cast %173 : vector<1x1x32xf32> to vector<1x32xf32>
    %175 = vector.broadcast %174 : vector<1x32xf32> to vector<7x32xf32>
    %176 = arith.addf %172, %175 : vector<7x32xf32>
    %177 = arith.addf %125, %176 : vector<7x32xf32>
    %c1 = arith.constant 1 : index
    %c0_101 = arith.constant 0 : index
    %c0_102 = arith.constant 0 : index
    %178 = vector.load %arg9[%c1, %c0_101, %c0_102] : memref<2x1x32xf32, #tpu.memory_space<vmem>>, vector<1x1x32xf32>
    %179 = vector.shape_cast %178 : vector<1x1x32xf32> to vector<1x32xf32>
    %c1_103 = arith.constant 1 : index
    %c0_104 = arith.constant 0 : index
    %c0_105 = arith.constant 0 : index
    %180 = vector.load %arg10[%c1_103, %c0_104, %c0_105] : memref<2x1x32xf32, #tpu.memory_space<vmem>>, vector<1x1x32xf32>
    %181 = vector.shape_cast %180 : vector<1x1x32xf32> to vector<1x32xf32>
    %cst_106 = arith.constant dense<0.000000e+00> : vector<7xf32>
    %182 = vector.multi_reduction <add>, %177, %cst_106 [1] : vector<7x32xf32> to vector<7xf32>
    %183 = vector.shape_cast %182 : vector<7xf32> to vector<7x1xf32>
    %cst_107 = arith.constant 3.200000e+01 : f32
    %184 = vector.broadcast %cst_107 : f32 to vector<7x1xf32>
    %185 = arith.divf %183, %184 : vector<7x1xf32>
    %186 = vector.broadcast %185 : vector<7x1xf32> to vector<7x32xf32>
    %187 = arith.subf %177, %186 : vector<7x32xf32>
    %188 = arith.mulf %187, %187 : vector<7x32xf32>
    %cst_108 = arith.constant dense<0.000000e+00> : vector<7xf32>
    %189 = vector.multi_reduction <add>, %188, %cst_108 [1] : vector<7x32xf32> to vector<7xf32>
    %190 = vector.shape_cast %189 : vector<7xf32> to vector<7x1xf32>
    %cst_109 = arith.constant 3.200000e+01 : f32
    %191 = vector.broadcast %cst_109 : f32 to vector<7x1xf32>
    %192 = arith.divf %190, %191 : vector<7x1xf32>
    %cst_110 = arith.constant 9.99999997E-7 : f32
    %193 = vector.broadcast %cst_110 : f32 to vector<7x1xf32>
    %194 = arith.addf %192, %193 : vector<7x1xf32>
    %195 = math.rsqrt %194 : vector<7x1xf32>
    %196 = vector.broadcast %195 : vector<7x1xf32> to vector<7x32xf32>
    %197 = arith.mulf %187, %196 : vector<7x32xf32>
    %198 = vector.broadcast %179 : vector<1x32xf32> to vector<7x32xf32>
    %199 = arith.mulf %197, %198 : vector<7x32xf32>
    %200 = vector.broadcast %181 : vector<1x32xf32> to vector<7x32xf32>
    %201 = arith.addf %199, %200 : vector<7x32xf32>
    %c1_111 = arith.constant 1 : index
    %c0_112 = arith.constant 0 : index
    %c0_113 = arith.constant 0 : index
    %c0_114 = arith.constant 0 : index
    %202 = vector.load %arg11[%c1_111, %c0_112, %c0_113, %c0_114] : memref<2x2x32x16xf32, #tpu.memory_space<vmem>>, vector<1x2x32x16xf32>
    %203 = vector.shape_cast %202 : vector<1x2x32x16xf32> to vector<2x32x16xf32>
    %c1_115 = arith.constant 1 : index
    %c0_116 = arith.constant 0 : index
    %c0_117 = arith.constant 0 : index
    %c0_118 = arith.constant 0 : index
    %204 = vector.load %arg12[%c1_115, %c0_116, %c0_117, %c0_118] : memref<2x2x1x16xf32, #tpu.memory_space<vmem>>, vector<1x2x1x16xf32>
    %205 = vector.shape_cast %204 : vector<1x2x1x16xf32> to vector<2x1x16xf32>
    %c1_119 = arith.constant 1 : index
    %c0_120 = arith.constant 0 : index
    %c0_121 = arith.constant 0 : index
    %c0_122 = arith.constant 0 : index
    %206 = vector.load %arg13[%c1_119, %c0_120, %c0_121, %c0_122] : memref<2x2x32x16xf32, #tpu.memory_space<vmem>>, vector<1x2x32x16xf32>
    %207 = vector.shape_cast %206 : vector<1x2x32x16xf32> to vector<2x32x16xf32>
    %c1_123 = arith.constant 1 : index
    %c0_124 = arith.constant 0 : index
    %c0_125 = arith.constant 0 : index
    %c0_126 = arith.constant 0 : index
    %208 = vector.load %arg14[%c1_123, %c0_124, %c0_125, %c0_126] : memref<2x2x1x16xf32, #tpu.memory_space<vmem>>, vector<1x2x1x16xf32>
    %209 = vector.shape_cast %208 : vector<1x2x1x16xf32> to vector<2x1x16xf32>
    %c1_127 = arith.constant 1 : index
    %c0_128 = arith.constant 0 : index
    %c0_129 = arith.constant 0 : index
    %c0_130 = arith.constant 0 : index
    %210 = vector.load %arg15[%c1_127, %c0_128, %c0_129, %c0_130] : memref<2x2x32x16xf32, #tpu.memory_space<vmem>>, vector<1x2x32x16xf32>
    %211 = vector.shape_cast %210 : vector<1x2x32x16xf32> to vector<2x32x16xf32>
    %c1_131 = arith.constant 1 : index
    %c0_132 = arith.constant 0 : index
    %c0_133 = arith.constant 0 : index
    %c0_134 = arith.constant 0 : index
    %212 = vector.load %arg16[%c1_131, %c0_132, %c0_133, %c0_134] : memref<2x2x1x16xf32, #tpu.memory_space<vmem>>, vector<1x2x1x16xf32>
    %213 = vector.shape_cast %212 : vector<1x2x1x16xf32> to vector<2x1x16xf32>
    %c1_135 = arith.constant 1 : index
    %c0_136 = arith.constant 0 : index
    %c0_137 = arith.constant 0 : index
    %c0_138 = arith.constant 0 : index
    %214 = vector.load %arg17[%c1_135, %c0_136, %c0_137, %c0_138] : memref<2x2x16x32xf32, #tpu.memory_space<vmem>>, vector<1x2x16x32xf32>
    %215 = vector.shape_cast %214 : vector<1x2x16x32xf32> to vector<2x16x32xf32>
    %c1_139 = arith.constant 1 : index
    %c0_140 = arith.constant 0 : index
    %c0_141 = arith.constant 0 : index
    %216 = vector.load %arg18[%c1_139, %c0_140, %c0_141] : memref<2x1x32xf32, #tpu.memory_space<vmem>>, vector<1x1x32xf32>
    %217 = vector.shape_cast %216 : vector<1x1x32xf32> to vector<1x32xf32>
    %218 = vector.extract_strided_slice %203 {offsets = [0, 0, 0], sizes = [1, 32, 16], strides = [1, 1, 1]} : vector<2x32x16xf32> to vector<1x32x16xf32>
    %219 = vector.shape_cast %218 : vector<1x32x16xf32> to vector<32x16xf32>
    %cst_142 = arith.constant dense<0.000000e+00> : vector<7x16xf32>
    %220 = tpu.matmul %201, %219, %cst_142 {dimension_numbers = #tpu.dot_dimension_numbers<[1], [0], [0], [1], [0, 0, 1, 1], [], []>} : vector<7x32xf32>, vector<32x16xf32>, vector<7x16xf32> -> vector<7x16xf32>
    %221 = vector.extract_strided_slice %205 {offsets = [0, 0, 0], sizes = [1, 1, 16], strides = [1, 1, 1]} : vector<2x1x16xf32> to vector<1x1x16xf32>
    %222 = vector.shape_cast %221 : vector<1x1x16xf32> to vector<1x16xf32>
    %223 = vector.broadcast %222 : vector<1x16xf32> to vector<7x16xf32>
    %224 = arith.addf %220, %223 : vector<7x16xf32>
    %225 = vector.extract_strided_slice %207 {offsets = [0, 0, 0], sizes = [1, 32, 16], strides = [1, 1, 1]} : vector<2x32x16xf32> to vector<1x32x16xf32>
    %226 = vector.shape_cast %225 : vector<1x32x16xf32> to vector<32x16xf32>
    %cst_143 = arith.constant dense<0.000000e+00> : vector<7x16xf32>
    %227 = tpu.matmul %201, %226, %cst_143 {dimension_numbers = #tpu.dot_dimension_numbers<[1], [0], [0], [1], [0, 0, 1, 1], [], []>} : vector<7x32xf32>, vector<32x16xf32>, vector<7x16xf32> -> vector<7x16xf32>
    %228 = vector.extract_strided_slice %209 {offsets = [0, 0, 0], sizes = [1, 1, 16], strides = [1, 1, 1]} : vector<2x1x16xf32> to vector<1x1x16xf32>
    %229 = vector.shape_cast %228 : vector<1x1x16xf32> to vector<1x16xf32>
    %230 = vector.broadcast %229 : vector<1x16xf32> to vector<7x16xf32>
    %231 = arith.addf %227, %230 : vector<7x16xf32>
    %232 = vector.extract_strided_slice %211 {offsets = [0, 0, 0], sizes = [1, 32, 16], strides = [1, 1, 1]} : vector<2x32x16xf32> to vector<1x32x16xf32>
    %233 = vector.shape_cast %232 : vector<1x32x16xf32> to vector<32x16xf32>
    %cst_144 = arith.constant dense<0.000000e+00> : vector<7x16xf32>
    %234 = tpu.matmul %201, %233, %cst_144 {dimension_numbers = #tpu.dot_dimension_numbers<[1], [0], [0], [1], [0, 0, 1, 1], [], []>} : vector<7x32xf32>, vector<32x16xf32>, vector<7x16xf32> -> vector<7x16xf32>
    %235 = vector.extract_strided_slice %213 {offsets = [0, 0, 0], sizes = [1, 1, 16], strides = [1, 1, 1]} : vector<2x1x16xf32> to vector<1x1x16xf32>
    %236 = vector.shape_cast %235 : vector<1x1x16xf32> to vector<1x16xf32>
    %237 = vector.broadcast %236 : vector<1x16xf32> to vector<7x16xf32>
    %238 = arith.addf %234, %237 : vector<7x16xf32>
    %cst_145 = arith.constant dense<0.000000e+00> : vector<7x7xf32>
    %239 = tpu.matmul %224, %231, %cst_145 {dimension_numbers = #tpu.dot_dimension_numbers<[1], [1], [0], [0], [0, 0, 1, 0], [], []>} : vector<7x16xf32>, vector<7x16xf32>, vector<7x7xf32> -> vector<7x7xf32>
    %cst_146 = arith.constant dense<0xFF800000> : vector<7xf32>
    %240 = vector.multi_reduction <maximumf>, %239, %cst_146 [1] : vector<7x7xf32> to vector<7xf32>
    %241 = vector.shape_cast %240 : vector<7xf32> to vector<7x1xf32>
    %242 = vector.broadcast %241 : vector<7x1xf32> to vector<7x7xf32>
    %243 = arith.subf %239, %242 : vector<7x7xf32>
    %244 = math.exp %243 : vector<7x7xf32>
    %cst_147 = arith.constant dense<0.000000e+00> : vector<7xf32>
    %245 = vector.multi_reduction <add>, %244, %cst_147 [1] : vector<7x7xf32> to vector<7xf32>
    %246 = vector.shape_cast %245 : vector<7xf32> to vector<7x1xf32>
    %247 = vector.broadcast %246 : vector<7x1xf32> to vector<7x7xf32>
    %248 = arith.divf %244, %247 : vector<7x7xf32>
    %cst_148 = arith.constant dense<0.000000e+00> : vector<7x16xf32>
    %249 = tpu.matmul %248, %238, %cst_148 {dimension_numbers = #tpu.dot_dimension_numbers<[1], [0], [0], [1], [0, 0, 1, 1], [], []>} : vector<7x7xf32>, vector<7x16xf32>, vector<7x16xf32> -> vector<7x16xf32>
    %250 = vector.extract_strided_slice %215 {offsets = [0, 0, 0], sizes = [1, 16, 32], strides = [1, 1, 1]} : vector<2x16x32xf32> to vector<1x16x32xf32>
    %251 = vector.shape_cast %250 : vector<1x16x32xf32> to vector<16x32xf32>
    %cst_149 = arith.constant dense<0.000000e+00> : vector<7x32xf32>
    %252 = tpu.matmul %249, %251, %cst_149 {dimension_numbers = #tpu.dot_dimension_numbers<[1], [0], [0], [1], [0, 0, 1, 1], [], []>} : vector<7x16xf32>, vector<16x32xf32>, vector<7x32xf32> -> vector<7x32xf32>
    %253 = vector.extract_strided_slice %203 {offsets = [1, 0, 0], sizes = [1, 32, 16], strides = [1, 1, 1]} : vector<2x32x16xf32> to vector<1x32x16xf32>
    %254 = vector.shape_cast %253 : vector<1x32x16xf32> to vector<32x16xf32>
    %cst_150 = arith.constant dense<0.000000e+00> : vector<7x16xf32>
    %255 = tpu.matmul %201, %254, %cst_150 {dimension_numbers = #tpu.dot_dimension_numbers<[1], [0], [0], [1], [0, 0, 1, 1], [], []>} : vector<7x32xf32>, vector<32x16xf32>, vector<7x16xf32> -> vector<7x16xf32>
    %256 = vector.extract_strided_slice %205 {offsets = [1, 0, 0], sizes = [1, 1, 16], strides = [1, 1, 1]} : vector<2x1x16xf32> to vector<1x1x16xf32>
    %257 = vector.shape_cast %256 : vector<1x1x16xf32> to vector<1x16xf32>
    %258 = vector.broadcast %257 : vector<1x16xf32> to vector<7x16xf32>
    %259 = arith.addf %255, %258 : vector<7x16xf32>
    %260 = vector.extract_strided_slice %207 {offsets = [1, 0, 0], sizes = [1, 32, 16], strides = [1, 1, 1]} : vector<2x32x16xf32> to vector<1x32x16xf32>
    %261 = vector.shape_cast %260 : vector<1x32x16xf32> to vector<32x16xf32>
    %cst_151 = arith.constant dense<0.000000e+00> : vector<7x16xf32>
    %262 = tpu.matmul %201, %261, %cst_151 {dimension_numbers = #tpu.dot_dimension_numbers<[1], [0], [0], [1], [0, 0, 1, 1], [], []>} : vector<7x32xf32>, vector<32x16xf32>, vector<7x16xf32> -> vector<7x16xf32>
    %263 = vector.extract_strided_slice %209 {offsets = [1, 0, 0], sizes = [1, 1, 16], strides = [1, 1, 1]} : vector<2x1x16xf32> to vector<1x1x16xf32>
    %264 = vector.shape_cast %263 : vector<1x1x16xf32> to vector<1x16xf32>
    %265 = vector.broadcast %264 : vector<1x16xf32> to vector<7x16xf32>
    %266 = arith.addf %262, %265 : vector<7x16xf32>
    %267 = vector.extract_strided_slice %211 {offsets = [1, 0, 0], sizes = [1, 32, 16], strides = [1, 1, 1]} : vector<2x32x16xf32> to vector<1x32x16xf32>
    %268 = vector.shape_cast %267 : vector<1x32x16xf32> to vector<32x16xf32>
    %cst_152 = arith.constant dense<0.000000e+00> : vector<7x16xf32>
    %269 = tpu.matmul %201, %268, %cst_152 {dimension_numbers = #tpu.dot_dimension_numbers<[1], [0], [0], [1], [0, 0, 1, 1], [], []>} : vector<7x32xf32>, vector<32x16xf32>, vector<7x16xf32> -> vector<7x16xf32>
    %270 = vector.extract_strided_slice %213 {offsets = [1, 0, 0], sizes = [1, 1, 16], strides = [1, 1, 1]} : vector<2x1x16xf32> to vector<1x1x16xf32>
    %271 = vector.shape_cast %270 : vector<1x1x16xf32> to vector<1x16xf32>
    %272 = vector.broadcast %271 : vector<1x16xf32> to vector<7x16xf32>
    %273 = arith.addf %269, %272 : vector<7x16xf32>
    %cst_153 = arith.constant dense<0.000000e+00> : vector<7x7xf32>
    %274 = tpu.matmul %259, %266, %cst_153 {dimension_numbers = #tpu.dot_dimension_numbers<[1], [1], [0], [0], [0, 0, 1, 0], [], []>} : vector<7x16xf32>, vector<7x16xf32>, vector<7x7xf32> -> vector<7x7xf32>
    %cst_154 = arith.constant dense<0xFF800000> : vector<7xf32>
    %275 = vector.multi_reduction <maximumf>, %274, %cst_154 [1] : vector<7x7xf32> to vector<7xf32>
    %276 = vector.shape_cast %275 : vector<7xf32> to vector<7x1xf32>
    %277 = vector.broadcast %276 : vector<7x1xf32> to vector<7x7xf32>
    %278 = arith.subf %274, %277 : vector<7x7xf32>
    %279 = math.exp %278 : vector<7x7xf32>
    %cst_155 = arith.constant dense<0.000000e+00> : vector<7xf32>
    %280 = vector.multi_reduction <add>, %279, %cst_155 [1] : vector<7x7xf32> to vector<7xf32>
    %281 = vector.shape_cast %280 : vector<7xf32> to vector<7x1xf32>
    %282 = vector.broadcast %281 : vector<7x1xf32> to vector<7x7xf32>
    %283 = arith.divf %279, %282 : vector<7x7xf32>
    %cst_156 = arith.constant dense<0.000000e+00> : vector<7x16xf32>
    %284 = tpu.matmul %283, %273, %cst_156 {dimension_numbers = #tpu.dot_dimension_numbers<[1], [0], [0], [1], [0, 0, 1, 1], [], []>} : vector<7x7xf32>, vector<7x16xf32>, vector<7x16xf32> -> vector<7x16xf32>
    %285 = vector.extract_strided_slice %215 {offsets = [1, 0, 0], sizes = [1, 16, 32], strides = [1, 1, 1]} : vector<2x16x32xf32> to vector<1x16x32xf32>
    %286 = vector.shape_cast %285 : vector<1x16x32xf32> to vector<16x32xf32>
    %cst_157 = arith.constant dense<0.000000e+00> : vector<7x32xf32>
    %287 = tpu.matmul %284, %286, %cst_157 {dimension_numbers = #tpu.dot_dimension_numbers<[1], [0], [0], [1], [0, 0, 1, 1], [], []>} : vector<7x16xf32>, vector<16x32xf32>, vector<7x32xf32> -> vector<7x32xf32>
    %288 = arith.addf %252, %287 : vector<7x32xf32>
    %289 = vector.broadcast %217 : vector<1x32xf32> to vector<7x32xf32>
    %290 = arith.addf %288, %289 : vector<7x32xf32>
    %291 = arith.addf %177, %290 : vector<7x32xf32>
    %c1_158 = arith.constant 1 : index
    %c0_159 = arith.constant 0 : index
    %c0_160 = arith.constant 0 : index
    %292 = vector.load %arg19[%c1_158, %c0_159, %c0_160] : memref<2x1x32xf32, #tpu.memory_space<vmem>>, vector<1x1x32xf32>
    %293 = vector.shape_cast %292 : vector<1x1x32xf32> to vector<1x32xf32>
    %c1_161 = arith.constant 1 : index
    %c0_162 = arith.constant 0 : index
    %c0_163 = arith.constant 0 : index
    %294 = vector.load %arg20[%c1_161, %c0_162, %c0_163] : memref<2x1x32xf32, #tpu.memory_space<vmem>>, vector<1x1x32xf32>
    %295 = vector.shape_cast %294 : vector<1x1x32xf32> to vector<1x32xf32>
    %cst_164 = arith.constant dense<0.000000e+00> : vector<7xf32>
    %296 = vector.multi_reduction <add>, %291, %cst_164 [1] : vector<7x32xf32> to vector<7xf32>
    %297 = vector.shape_cast %296 : vector<7xf32> to vector<7x1xf32>
    %cst_165 = arith.constant 3.200000e+01 : f32
    %298 = vector.broadcast %cst_165 : f32 to vector<7x1xf32>
    %299 = arith.divf %297, %298 : vector<7x1xf32>
    %300 = vector.broadcast %299 : vector<7x1xf32> to vector<7x32xf32>
    %301 = arith.subf %291, %300 : vector<7x32xf32>
    %302 = arith.mulf %301, %301 : vector<7x32xf32>
    %cst_166 = arith.constant dense<0.000000e+00> : vector<7xf32>
    %303 = vector.multi_reduction <add>, %302, %cst_166 [1] : vector<7x32xf32> to vector<7xf32>
    %304 = vector.shape_cast %303 : vector<7xf32> to vector<7x1xf32>
    %cst_167 = arith.constant 3.200000e+01 : f32
    %305 = vector.broadcast %cst_167 : f32 to vector<7x1xf32>
    %306 = arith.divf %304, %305 : vector<7x1xf32>
    %cst_168 = arith.constant 9.99999997E-7 : f32
    %307 = vector.broadcast %cst_168 : f32 to vector<7x1xf32>
    %308 = arith.addf %306, %307 : vector<7x1xf32>
    %309 = math.rsqrt %308 : vector<7x1xf32>
    %310 = vector.broadcast %309 : vector<7x1xf32> to vector<7x32xf32>
    %311 = arith.mulf %301, %310 : vector<7x32xf32>
    %312 = vector.broadcast %293 : vector<1x32xf32> to vector<7x32xf32>
    %313 = arith.mulf %311, %312 : vector<7x32xf32>
    %314 = vector.broadcast %295 : vector<1x32xf32> to vector<7x32xf32>
    %315 = arith.addf %313, %314 : vector<7x32xf32>
    %c1_169 = arith.constant 1 : index
    %c0_170 = arith.constant 0 : index
    %c0_171 = arith.constant 0 : index
    %316 = vector.load %arg21[%c1_169, %c0_170, %c0_171] : memref<2x32x64xf32, #tpu.memory_space<vmem>>, vector<1x32x64xf32>
    %317 = vector.shape_cast %316 : vector<1x32x64xf32> to vector<32x64xf32>
    %cst_172 = arith.constant dense<0.000000e+00> : vector<7x64xf32>
    %318 = tpu.matmul %315, %317, %cst_172 {dimension_numbers = #tpu.dot_dimension_numbers<[1], [0], [0], [1], [0, 0, 1, 1], [], []>} : vector<7x32xf32>, vector<32x64xf32>, vector<7x64xf32> -> vector<7x64xf32>
    %c1_173 = arith.constant 1 : index
    %c0_174 = arith.constant 0 : index
    %c0_175 = arith.constant 0 : index
    %319 = vector.load %arg22[%c1_173, %c0_174, %c0_175] : memref<2x1x64xf32, #tpu.memory_space<vmem>>, vector<1x1x64xf32>
    %320 = vector.shape_cast %319 : vector<1x1x64xf32> to vector<1x64xf32>
    %321 = vector.broadcast %320 : vector<1x64xf32> to vector<7x64xf32>
    %322 = arith.addf %318, %321 : vector<7x64xf32>
    %323 = arith.mulf %322, %322 : vector<7x64xf32>
    %324 = arith.mulf %322, %323 : vector<7x64xf32>
    %cst_176 = arith.constant 4.471500e-02 : f32
    %325 = vector.broadcast %cst_176 : f32 to vector<7x64xf32>
    %326 = arith.mulf %325, %324 : vector<7x64xf32>
    %327 = arith.addf %322, %326 : vector<7x64xf32>
    %cst_177 = arith.constant 0.797884583 : f32
    %328 = vector.broadcast %cst_177 : f32 to vector<7x64xf32>
    %329 = arith.mulf %328, %327 : vector<7x64xf32>
    %330 = math.tanh %329 : vector<7x64xf32>
    %cst_178 = arith.constant 1.000000e+00 : f32
    %331 = vector.broadcast %cst_178 : f32 to vector<7x64xf32>
    %332 = arith.addf %331, %330 : vector<7x64xf32>
    %cst_179 = arith.constant 5.000000e-01 : f32
    %333 = vector.broadcast %cst_179 : f32 to vector<7x64xf32>
    %334 = arith.mulf %333, %332 : vector<7x64xf32>
    %335 = arith.mulf %322, %334 : vector<7x64xf32>
    %c1_180 = arith.constant 1 : index
    %c0_181 = arith.constant 0 : index
    %c0_182 = arith.constant 0 : index
    %336 = vector.load %arg23[%c1_180, %c0_181, %c0_182] : memref<2x64x32xf32, #tpu.memory_space<vmem>>, vector<1x64x32xf32>
    %337 = vector.shape_cast %336 : vector<1x64x32xf32> to vector<64x32xf32>
    %cst_183 = arith.constant dense<0.000000e+00> : vector<7x32xf32>
    %338 = tpu.matmul %335, %337, %cst_183 {dimension_numbers = #tpu.dot_dimension_numbers<[1], [0], [0], [1], [0, 0, 1, 1], [], []>} : vector<7x64xf32>, vector<64x32xf32>, vector<7x32xf32> -> vector<7x32xf32>
    %c1_184 = arith.constant 1 : index
    %c0_185 = arith.constant 0 : index
    %c0_186 = arith.constant 0 : index
    %339 = vector.load %arg24[%c1_184, %c0_185, %c0_186] : memref<2x1x32xf32, #tpu.memory_space<vmem>>, vector<1x1x32xf32>
    %340 = vector.shape_cast %339 : vector<1x1x32xf32> to vector<1x32xf32>
    %341 = vector.broadcast %340 : vector<1x32xf32> to vector<7x32xf32>
    %342 = arith.addf %338, %341 : vector<7x32xf32>
    %343 = arith.addf %291, %342 : vector<7x32xf32>
    %344 = vector.extract_strided_slice %343 {offsets = [6, 0], sizes = [1, 32], strides = [1, 1]} : vector<7x32xf32> to vector<1x32xf32>
    %c0_187 = arith.constant 0 : index
    %c0_188 = arith.constant 0 : index
    %345 = vector.load %arg5[%c0_187, %c0_188] : memref<1x32xf32, #tpu.memory_space<vmem>>, vector<1x32xf32>
    %c0_189 = arith.constant 0 : index
    %c0_190 = arith.constant 0 : index
    %346 = vector.load %arg6[%c0_189, %c0_190] : memref<1x32xf32, #tpu.memory_space<vmem>>, vector<1x32xf32>
    %cst_191 = arith.constant dense<0.000000e+00> : vector<1xf32>
    %347 = vector.multi_reduction <add>, %344, %cst_191 [1] : vector<1x32xf32> to vector<1xf32>
    %348 = vector.shape_cast %347 : vector<1xf32> to vector<1x1xf32>
    %cst_192 = arith.constant 3.200000e+01 : f32
    %349 = vector.broadcast %cst_192 : f32 to vector<1x1xf32>
    %350 = arith.divf %348, %349 : vector<1x1xf32>
    %351 = vector.broadcast %350 : vector<1x1xf32> to vector<1x32xf32>
    %352 = arith.subf %344, %351 : vector<1x32xf32>
    %353 = arith.mulf %352, %352 : vector<1x32xf32>
    %cst_193 = arith.constant dense<0.000000e+00> : vector<1xf32>
    %354 = vector.multi_reduction <add>, %353, %cst_193 [1] : vector<1x32xf32> to vector<1xf32>
    %355 = vector.shape_cast %354 : vector<1xf32> to vector<1x1xf32>
    %cst_194 = arith.constant 3.200000e+01 : f32
    %356 = vector.broadcast %cst_194 : f32 to vector<1x1xf32>
    %357 = arith.divf %355, %356 : vector<1x1xf32>
    %cst_195 = arith.constant 9.99999997E-7 : f32
    %358 = vector.broadcast %cst_195 : f32 to vector<1x1xf32>
    %359 = arith.addf %357, %358 : vector<1x1xf32>
    %360 = math.rsqrt %359 : vector<1x1xf32>
    %361 = vector.broadcast %360 : vector<1x1xf32> to vector<1x32xf32>
    %362 = arith.mulf %352, %361 : vector<1x32xf32>
    %363 = arith.mulf %362, %345 : vector<1x32xf32>
    %364 = arith.addf %363, %346 : vector<1x32xf32>
    %c0_196 = arith.constant 0 : index
    %c0_197 = arith.constant 0 : index
    %365 = vector.load %arg25[%c0_196, %c0_197] : memref<3x8xf32, #tpu.memory_space<vmem>>, vector<3x8xf32>
    %c0_198 = arith.constant 0 : index
    %c0_199 = arith.constant 0 : index
    %366 = vector.load %arg26[%c0_198, %c0_199] : memref<4x8xf32, #tpu.memory_space<vmem>>, vector<4x8xf32>
    %367 = vector.extract_strided_slice %1 {offsets = [0, 0, 0], sizes = [1, 4, 3], strides = [1, 1, 1]} : vector<8x28x3xf32> to vector<1x4x3xf32>
    %368 = vector.shape_cast %367 : vector<1x4x3xf32> to vector<4x3xf32>
    %cst_200 = arith.constant dense<0.000000e+00> : vector<4x8xf32>
    %369 = tpu.matmul %368, %365, %cst_200 {dimension_numbers = #tpu.dot_dimension_numbers<[1], [0], [0], [1], [0, 0, 1, 1], [], []>} : vector<4x3xf32>, vector<3x8xf32>, vector<4x8xf32> -> vector<4x8xf32>
    %370 = arith.addf %369, %366 : vector<4x8xf32>
    %c0_201 = arith.constant 0 : index
    %c0_202 = arith.constant 0 : index
    %371 = vector.load %arg74[%c0_201, %c0_202] : memref<40x8xf32, #tpu.memory_space<vmem>>, vector<4x8xf32>
    tpu.vector_store %arg74[%c0_201, %c0_202], %370 {strides = array<i32>} : memref<40x8xf32, #tpu.memory_space<vmem>>, vector<4x8xf32>,
    %372 = vector.extract_strided_slice %1 {offsets = [1, 0, 0], sizes = [1, 4, 3], strides = [1, 1, 1]} : vector<8x28x3xf32> to vector<1x4x3xf32>
    %373 = vector.shape_cast %372 : vector<1x4x3xf32> to vector<4x3xf32>
    %cst_203 = arith.constant dense<0.000000e+00> : vector<4x8xf32>
    %374 = tpu.matmul %373, %365, %cst_203 {dimension_numbers = #tpu.dot_dimension_numbers<[1], [0], [0], [1], [0, 0, 1, 1], [], []>} : vector<4x3xf32>, vector<3x8xf32>, vector<4x8xf32> -> vector<4x8xf32>
    %375 = arith.addf %374, %366 : vector<4x8xf32>
    %c4 = arith.constant 4 : index
    %c0_204 = arith.constant 0 : index
    %376 = vector.load %arg74[%c4, %c0_204] : memref<40x8xf32, #tpu.memory_space<vmem>>, vector<4x8xf32>
    tpu.vector_store %arg74[%c4, %c0_204], %375 {strides = array<i32>} : memref<40x8xf32, #tpu.memory_space<vmem>>, vector<4x8xf32>,
    %377 = vector.extract_strided_slice %1 {offsets = [2, 0, 0], sizes = [1, 4, 3], strides = [1, 1, 1]} : vector<8x28x3xf32> to vector<1x4x3xf32>
    %378 = vector.shape_cast %377 : vector<1x4x3xf32> to vector<4x3xf32>
    %cst_205 = arith.constant dense<0.000000e+00> : vector<4x8xf32>
    %379 = tpu.matmul %378, %365, %cst_205 {dimension_numbers = #tpu.dot_dimension_numbers<[1], [0], [0], [1], [0, 0, 1, 1], [], []>} : vector<4x3xf32>, vector<3x8xf32>, vector<4x8xf32> -> vector<4x8xf32>
    %380 = arith.addf %379, %366 : vector<4x8xf32>
    %c8 = arith.constant 8 : index
    %c0_206 = arith.constant 0 : index
    %381 = vector.load %arg74[%c8, %c0_206] : memref<40x8xf32, #tpu.memory_space<vmem>>, vector<4x8xf32>
    tpu.vector_store %arg74[%c8, %c0_206], %380 {strides = array<i32>} : memref<40x8xf32, #tpu.memory_space<vmem>>, vector<4x8xf32>,
    %382 = vector.extract_strided_slice %1 {offsets = [3, 0, 0], sizes = [1, 4, 3], strides = [1, 1, 1]} : vector<8x28x3xf32> to vector<1x4x3xf32>
    %383 = vector.shape_cast %382 : vector<1x4x3xf32> to vector<4x3xf32>
    %cst_207 = arith.constant dense<0.000000e+00> : vector<4x8xf32>
    %384 = tpu.matmul %383, %365, %cst_207 {dimension_numbers = #tpu.dot_dimension_numbers<[1], [0], [0], [1], [0, 0, 1, 1], [], []>} : vector<4x3xf32>, vector<3x8xf32>, vector<4x8xf32> -> vector<4x8xf32>
    %385 = arith.addf %384, %366 : vector<4x8xf32>
    %c12 = arith.constant 12 : index
    %c0_208 = arith.constant 0 : index
    %386 = vector.load %arg74[%c12, %c0_208] : memref<40x8xf32, #tpu.memory_space<vmem>>, vector<4x8xf32>
    tpu.vector_store %arg74[%c12, %c0_208], %385 {strides = array<i32>} : memref<40x8xf32, #tpu.memory_space<vmem>>, vector<4x8xf32>,
    %387 = vector.extract_strided_slice %1 {offsets = [4, 0, 0], sizes = [1, 4, 3], strides = [1, 1, 1]} : vector<8x28x3xf32> to vector<1x4x3xf32>
    %388 = vector.shape_cast %387 : vector<1x4x3xf32> to vector<4x3xf32>
    %cst_209 = arith.constant dense<0.000000e+00> : vector<4x8xf32>
    %389 = tpu.matmul %388, %365, %cst_209 {dimension_numbers = #tpu.dot_dimension_numbers<[1], [0], [0], [1], [0, 0, 1, 1], [], []>} : vector<4x3xf32>, vector<3x8xf32>, vector<4x8xf32> -> vector<4x8xf32>
    %390 = arith.addf %389, %366 : vector<4x8xf32>
    %c16 = arith.constant 16 : index
    %c0_210 = arith.constant 0 : index
    %391 = vector.load %arg74[%c16, %c0_210] : memref<40x8xf32, #tpu.memory_space<vmem>>, vector<4x8xf32>
    tpu.vector_store %arg74[%c16, %c0_210], %390 {strides = array<i32>} : memref<40x8xf32, #tpu.memory_space<vmem>>, vector<4x8xf32>,
    %392 = vector.extract_strided_slice %1 {offsets = [5, 0, 0], sizes = [1, 4, 3], strides = [1, 1, 1]} : vector<8x28x3xf32> to vector<1x4x3xf32>
    %393 = vector.shape_cast %392 : vector<1x4x3xf32> to vector<4x3xf32>
    %cst_211 = arith.constant dense<0.000000e+00> : vector<4x8xf32>
    %394 = tpu.matmul %393, %365, %cst_211 {dimension_numbers = #tpu.dot_dimension_numbers<[1], [0], [0], [1], [0, 0, 1, 1], [], []>} : vector<4x3xf32>, vector<3x8xf32>, vector<4x8xf32> -> vector<4x8xf32>
    %395 = arith.addf %394, %366 : vector<4x8xf32>
    %c20 = arith.constant 20 : index
    %c0_212 = arith.constant 0 : index
    %396 = vector.load %arg74[%c20, %c0_212] : memref<40x8xf32, #tpu.memory_space<vmem>>, vector<4x8xf32>
    tpu.vector_store %arg74[%c20, %c0_212], %395 {strides = array<i32>} : memref<40x8xf32, #tpu.memory_space<vmem>>, vector<4x8xf32>,
    %397 = vector.extract_strided_slice %1 {offsets = [6, 0, 0], sizes = [1, 4, 3], strides = [1, 1, 1]} : vector<8x28x3xf32> to vector<1x4x3xf32>
    %398 = vector.shape_cast %397 : vector<1x4x3xf32> to vector<4x3xf32>
    %cst_213 = arith.constant dense<0.000000e+00> : vector<4x8xf32>
    %399 = tpu.matmul %398, %365, %cst_213 {dimension_numbers = #tpu.dot_dimension_numbers<[1], [0], [0], [1], [0, 0, 1, 1], [], []>} : vector<4x3xf32>, vector<3x8xf32>, vector<4x8xf32> -> vector<4x8xf32>
    %400 = arith.addf %399, %366 : vector<4x8xf32>
    %c24 = arith.constant 24 : index
    %c0_214 = arith.constant 0 : index
    %401 = vector.load %arg74[%c24, %c0_214] : memref<40x8xf32, #tpu.memory_space<vmem>>, vector<4x8xf32>
    tpu.vector_store %arg74[%c24, %c0_214], %400 {strides = array<i32>} : memref<40x8xf32, #tpu.memory_space<vmem>>, vector<4x8xf32>,
    %402 = vector.extract_strided_slice %1 {offsets = [7, 0, 0], sizes = [1, 4, 3], strides = [1, 1, 1]} : vector<8x28x3xf32> to vector<1x4x3xf32>
    %403 = vector.shape_cast %402 : vector<1x4x3xf32> to vector<4x3xf32>
    %cst_215 = arith.constant dense<0.000000e+00> : vector<4x8xf32>
    %404 = tpu.matmul %403, %365, %cst_215 {dimension_numbers = #tpu.dot_dimension_numbers<[1], [0], [0], [1], [0, 0, 1, 1], [], []>} : vector<4x3xf32>, vector<3x8xf32>, vector<4x8xf32> -> vector<4x8xf32>
    %405 = arith.addf %404, %366 : vector<4x8xf32>
    %c28 = arith.constant 28 : index
    %c0_216 = arith.constant 0 : index
    %406 = vector.load %arg74[%c28, %c0_216] : memref<40x8xf32, #tpu.memory_space<vmem>>, vector<4x8xf32>
    tpu.vector_store %arg74[%c28, %c0_216], %405 {strides = array<i32>} : memref<40x8xf32, #tpu.memory_space<vmem>>, vector<4x8xf32>,
    %c0_217 = arith.constant 0 : index
    %c0_218 = arith.constant 0 : index
    %407 = vector.load %arg27[%c0_217, %c0_218] : memref<1x8xf32, #tpu.memory_space<vmem>>, vector<1x8xf32>
    %408 = vector.shape_cast %407 : vector<1x8xf32> to vector<1x8xf32>
    %409 = vector.broadcast %408 : vector<1x8xf32> to vector<8x8xf32>
    %c32 = arith.constant 32 : index
    %c0_219 = arith.constant 0 : index
    %410 = vector.load %arg74[%c32, %c0_219] : memref<40x8xf32, #tpu.memory_space<vmem>>, vector<8x8xf32>
    tpu.vector_store %arg74[%c32, %c0_219], %409 {strides = array<i32>} : memref<40x8xf32, #tpu.memory_space<vmem>>, vector<8x8xf32>,
    %c0_220 = arith.constant 0 : index
    %c0_221 = arith.constant 0 : index
    %411 = vector.load %arg74[%c0_220, %c0_221] : memref<40x8xf32, #tpu.memory_space<vmem>>, vector<40x8xf32>
    %c0_222 = arith.constant 0 : index
    %c0_223 = arith.constant 0 : index
    %412 = vector.load %arg28[%c0_222, %c0_223] : memref<40x40xf32, #tpu.memory_space<vmem>>, vector<40x40xf32>
    %c0_224 = arith.constant 0 : index
    %c0_225 = arith.constant 0 : index
    %c0_226 = arith.constant 0 : index
    %413 = vector.load %arg31[%c0_224, %c0_225, %c0_226] : memref<2x1x8xf32, #tpu.memory_space<vmem>>, vector<1x1x8xf32>
    %414 = vector.shape_cast %413 : vector<1x1x8xf32> to vector<1x8xf32>
    %c0_227 = arith.constant 0 : index
    %c0_228 = arith.constant 0 : index
    %c0_229 = arith.constant 0 : index
    %415 = vector.load %arg32[%c0_227, %c0_228, %c0_229] : memref<2x1x8xf32, #tpu.memory_space<vmem>>, vector<1x1x8xf32>
    %416 = vector.shape_cast %415 : vector<1x1x8xf32> to vector<1x8xf32>
    %cst_230 = arith.constant dense<0.000000e+00> : vector<40xf32>
    %417 = vector.multi_reduction <add>, %411, %cst_230 [1] : vector<40x8xf32> to vector<40xf32>
    %418 = vector.shape_cast %417 : vector<40xf32> to vector<40x1xf32>
    %cst_231 = arith.constant 8.000000e+00 : f32
    %419 = vector.broadcast %cst_231 : f32 to vector<40x1xf32>
    %420 = arith.divf %418, %419 : vector<40x1xf32>
    %421 = vector.broadcast %420 : vector<40x1xf32> to vector<40x8xf32>
    %422 = arith.subf %411, %421 : vector<40x8xf32>
    %423 = arith.mulf %422, %422 : vector<40x8xf32>
    %cst_232 = arith.constant dense<0.000000e+00> : vector<40xf32>
    %424 = vector.multi_reduction <add>, %423, %cst_232 [1] : vector<40x8xf32> to vector<40xf32>
    %425 = vector.shape_cast %424 : vector<40xf32> to vector<40x1xf32>
    %cst_233 = arith.constant 8.000000e+00 : f32
    %426 = vector.broadcast %cst_233 : f32 to vector<40x1xf32>
    %427 = arith.divf %425, %426 : vector<40x1xf32>
    %cst_234 = arith.constant 9.99999997E-7 : f32
    %428 = vector.broadcast %cst_234 : f32 to vector<40x1xf32>
    %429 = arith.addf %427, %428 : vector<40x1xf32>
    %430 = math.rsqrt %429 : vector<40x1xf32>
    %431 = vector.broadcast %430 : vector<40x1xf32> to vector<40x8xf32>
    %432 = arith.mulf %422, %431 : vector<40x8xf32>
    %433 = vector.broadcast %414 : vector<1x8xf32> to vector<40x8xf32>
    %434 = arith.mulf %432, %433 : vector<40x8xf32>
    %435 = vector.broadcast %416 : vector<1x8xf32> to vector<40x8xf32>
    %436 = arith.addf %434, %435 : vector<40x8xf32>
    %c0_235 = arith.constant 0 : index
    %c0_236 = arith.constant 0 : index
    %c0_237 = arith.constant 0 : index
    %c0_238 = arith.constant 0 : index
    %437 = vector.load %arg33[%c0_235, %c0_236, %c0_237, %c0_238] : memref<2x2x8x4xf32, #tpu.memory_space<vmem>>, vector<1x2x8x4xf32>
    %438 = vector.shape_cast %437 : vector<1x2x8x4xf32> to vector<2x8x4xf32>
    %c0_239 = arith.constant 0 : index
    %c0_240 = arith.constant 0 : index
    %c0_241 = arith.constant 0 : index
    %c0_242 = arith.constant 0 : index
    %439 = vector.load %arg34[%c0_239, %c0_240, %c0_241, %c0_242] : memref<2x2x1x4xf32, #tpu.memory_space<vmem>>, vector<1x2x1x4xf32>
    %440 = vector.shape_cast %439 : vector<1x2x1x4xf32> to vector<2x1x4xf32>
    %c0_243 = arith.constant 0 : index
    %c0_244 = arith.constant 0 : index
    %c0_245 = arith.constant 0 : index
    %c0_246 = arith.constant 0 : index
    %441 = vector.load %arg35[%c0_243, %c0_244, %c0_245, %c0_246] : memref<2x2x8x4xf32, #tpu.memory_space<vmem>>, vector<1x2x8x4xf32>
    %442 = vector.shape_cast %441 : vector<1x2x8x4xf32> to vector<2x8x4xf32>
    %c0_247 = arith.constant 0 : index
    %c0_248 = arith.constant 0 : index
    %c0_249 = arith.constant 0 : index
    %c0_250 = arith.constant 0 : index
    %443 = vector.load %arg36[%c0_247, %c0_248, %c0_249, %c0_250] : memref<2x2x1x4xf32, #tpu.memory_space<vmem>>, vector<1x2x1x4xf32>
    %444 = vector.shape_cast %443 : vector<1x2x1x4xf32> to vector<2x1x4xf32>
    %c0_251 = arith.constant 0 : index
    %c0_252 = arith.constant 0 : index
    %c0_253 = arith.constant 0 : index
    %c0_254 = arith.constant 0 : index
    %445 = vector.load %arg37[%c0_251, %c0_252, %c0_253, %c0_254] : memref<2x2x8x4xf32, #tpu.memory_space<vmem>>, vector<1x2x8x4xf32>
    %446 = vector.shape_cast %445 : vector<1x2x8x4xf32> to vector<2x8x4xf32>
    %c0_255 = arith.constant 0 : index
    %c0_256 = arith.constant 0 : index
    %c0_257 = arith.constant 0 : index
    %c0_258 = arith.constant 0 : index
    %447 = vector.load %arg38[%c0_255, %c0_256, %c0_257, %c0_258] : memref<2x2x1x4xf32, #tpu.memory_space<vmem>>, vector<1x2x1x4xf32>
    %448 = vector.shape_cast %447 : vector<1x2x1x4xf32> to vector<2x1x4xf32>
    %c0_259 = arith.constant 0 : index
    %c0_260 = arith.constant 0 : index
    %c0_261 = arith.constant 0 : index
    %c0_262 = arith.constant 0 : index
    %449 = vector.load %arg39[%c0_259, %c0_260, %c0_261, %c0_262] : memref<2x2x4x8xf32, #tpu.memory_space<vmem>>, vector<1x2x4x8xf32>
    %450 = vector.shape_cast %449 : vector<1x2x4x8xf32> to vector<2x4x8xf32>
    %c0_263 = arith.constant 0 : index
    %c0_264 = arith.constant 0 : index
    %c0_265 = arith.constant 0 : index
    %451 = vector.load %arg40[%c0_263, %c0_264, %c0_265] : memref<2x1x8xf32, #tpu.memory_space<vmem>>, vector<1x1x8xf32>
    %452 = vector.shape_cast %451 : vector<1x1x8xf32> to vector<1x8xf32>
    %453 = vector.extract_strided_slice %438 {offsets = [0, 0, 0], sizes = [1, 8, 4], strides = [1, 1, 1]} : vector<2x8x4xf32> to vector<1x8x4xf32>
    %454 = vector.shape_cast %453 : vector<1x8x4xf32> to vector<8x4xf32>
    %cst_266 = arith.constant dense<0.000000e+00> : vector<40x4xf32>
    %455 = tpu.matmul %436, %454, %cst_266 {dimension_numbers = #tpu.dot_dimension_numbers<[1], [0], [0], [1], [0, 0, 1, 1], [], []>} : vector<40x8xf32>, vector<8x4xf32>, vector<40x4xf32> -> vector<40x4xf32>
    %456 = vector.extract_strided_slice %440 {offsets = [0, 0, 0], sizes = [1, 1, 4], strides = [1, 1, 1]} : vector<2x1x4xf32> to vector<1x1x4xf32>
    %457 = vector.shape_cast %456 : vector<1x1x4xf32> to vector<1x4xf32>
    %458 = vector.broadcast %457 : vector<1x4xf32> to vector<40x4xf32>
    %459 = arith.addf %455, %458 : vector<40x4xf32>
    %460 = vector.extract_strided_slice %442 {offsets = [0, 0, 0], sizes = [1, 8, 4], strides = [1, 1, 1]} : vector<2x8x4xf32> to vector<1x8x4xf32>
    %461 = vector.shape_cast %460 : vector<1x8x4xf32> to vector<8x4xf32>
    %cst_267 = arith.constant dense<0.000000e+00> : vector<40x4xf32>
    %462 = tpu.matmul %436, %461, %cst_267 {dimension_numbers = #tpu.dot_dimension_numbers<[1], [0], [0], [1], [0, 0, 1, 1], [], []>} : vector<40x8xf32>, vector<8x4xf32>, vector<40x4xf32> -> vector<40x4xf32>
    %463 = vector.extract_strided_slice %444 {offsets = [0, 0, 0], sizes = [1, 1, 4], strides = [1, 1, 1]} : vector<2x1x4xf32> to vector<1x1x4xf32>
    %464 = vector.shape_cast %463 : vector<1x1x4xf32> to vector<1x4xf32>
    %465 = vector.broadcast %464 : vector<1x4xf32> to vector<40x4xf32>
    %466 = arith.addf %462, %465 : vector<40x4xf32>
    %467 = vector.extract_strided_slice %446 {offsets = [0, 0, 0], sizes = [1, 8, 4], strides = [1, 1, 1]} : vector<2x8x4xf32> to vector<1x8x4xf32>
    %468 = vector.shape_cast %467 : vector<1x8x4xf32> to vector<8x4xf32>
    %cst_268 = arith.constant dense<0.000000e+00> : vector<40x4xf32>
    %469 = tpu.matmul %436, %468, %cst_268 {dimension_numbers = #tpu.dot_dimension_numbers<[1], [0], [0], [1], [0, 0, 1, 1], [], []>} : vector<40x8xf32>, vector<8x4xf32>, vector<40x4xf32> -> vector<40x4xf32>
    %470 = vector.extract_strided_slice %448 {offsets = [0, 0, 0], sizes = [1, 1, 4], strides = [1, 1, 1]} : vector<2x1x4xf32> to vector<1x1x4xf32>
    %471 = vector.shape_cast %470 : vector<1x1x4xf32> to vector<1x4xf32>
    %472 = vector.broadcast %471 : vector<1x4xf32> to vector<40x4xf32>
    %473 = arith.addf %469, %472 : vector<40x4xf32>
    %cst_269 = arith.constant dense<0.000000e+00> : vector<40x40xf32>
    %474 = tpu.matmul %459, %466, %cst_269 {dimension_numbers = #tpu.dot_dimension_numbers<[1], [1], [0], [0], [0, 0, 1, 0], [], []>} : vector<40x4xf32>, vector<40x4xf32>, vector<40x40xf32> -> vector<40x40xf32>
    %475 = arith.addf %474, %412 : vector<40x40xf32>
    %cst_270 = arith.constant dense<0xFF800000> : vector<40xf32>
    %476 = vector.multi_reduction <maximumf>, %475, %cst_270 [1] : vector<40x40xf32> to vector<40xf32>
    %477 = vector.shape_cast %476 : vector<40xf32> to vector<40x1xf32>
    %478 = vector.broadcast %477 : vector<40x1xf32> to vector<40x40xf32>
    %479 = arith.subf %475, %478 : vector<40x40xf32>
    %480 = math.exp %479 : vector<40x40xf32>
    %cst_271 = arith.constant dense<0.000000e+00> : vector<40xf32>
    %481 = vector.multi_reduction <add>, %480, %cst_271 [1] : vector<40x40xf32> to vector<40xf32>
    %482 = vector.shape_cast %481 : vector<40xf32> to vector<40x1xf32>
    %483 = vector.broadcast %482 : vector<40x1xf32> to vector<40x40xf32>
    %484 = arith.divf %480, %483 : vector<40x40xf32>
    %cst_272 = arith.constant dense<0.000000e+00> : vector<40x4xf32>
    %485 = tpu.matmul %484, %473, %cst_272 {dimension_numbers = #tpu.dot_dimension_numbers<[1], [0], [0], [1], [0, 0, 1, 1], [], []>} : vector<40x40xf32>, vector<40x4xf32>, vector<40x4xf32> -> vector<40x4xf32>
    %486 = vector.extract_strided_slice %450 {offsets = [0, 0, 0], sizes = [1, 4, 8], strides = [1, 1, 1]} : vector<2x4x8xf32> to vector<1x4x8xf32>
    %487 = vector.shape_cast %486 : vector<1x4x8xf32> to vector<4x8xf32>
    %cst_273 = arith.constant dense<0.000000e+00> : vector<40x8xf32>
    %488 = tpu.matmul %485, %487, %cst_273 {dimension_numbers = #tpu.dot_dimension_numbers<[1], [0], [0], [1], [0, 0, 1, 1], [], []>} : vector<40x4xf32>, vector<4x8xf32>, vector<40x8xf32> -> vector<40x8xf32>
    %489 = vector.extract_strided_slice %438 {offsets = [1, 0, 0], sizes = [1, 8, 4], strides = [1, 1, 1]} : vector<2x8x4xf32> to vector<1x8x4xf32>
    %490 = vector.shape_cast %489 : vector<1x8x4xf32> to vector<8x4xf32>
    %cst_274 = arith.constant dense<0.000000e+00> : vector<40x4xf32>
    %491 = tpu.matmul %436, %490, %cst_274 {dimension_numbers = #tpu.dot_dimension_numbers<[1], [0], [0], [1], [0, 0, 1, 1], [], []>} : vector<40x8xf32>, vector<8x4xf32>, vector<40x4xf32> -> vector<40x4xf32>
    %492 = vector.extract_strided_slice %440 {offsets = [1, 0, 0], sizes = [1, 1, 4], strides = [1, 1, 1]} : vector<2x1x4xf32> to vector<1x1x4xf32>
    %493 = vector.shape_cast %492 : vector<1x1x4xf32> to vector<1x4xf32>
    %494 = vector.broadcast %493 : vector<1x4xf32> to vector<40x4xf32>
    %495 = arith.addf %491, %494 : vector<40x4xf32>
    %496 = vector.extract_strided_slice %442 {offsets = [1, 0, 0], sizes = [1, 8, 4], strides = [1, 1, 1]} : vector<2x8x4xf32> to vector<1x8x4xf32>
    %497 = vector.shape_cast %496 : vector<1x8x4xf32> to vector<8x4xf32>
    %cst_275 = arith.constant dense<0.000000e+00> : vector<40x4xf32>
    %498 = tpu.matmul %436, %497, %cst_275 {dimension_numbers = #tpu.dot_dimension_numbers<[1], [0], [0], [1], [0, 0, 1, 1], [], []>} : vector<40x8xf32>, vector<8x4xf32>, vector<40x4xf32> -> vector<40x4xf32>
    %499 = vector.extract_strided_slice %444 {offsets = [1, 0, 0], sizes = [1, 1, 4], strides = [1, 1, 1]} : vector<2x1x4xf32> to vector<1x1x4xf32>
    %500 = vector.shape_cast %499 : vector<1x1x4xf32> to vector<1x4xf32>
    %501 = vector.broadcast %500 : vector<1x4xf32> to vector<40x4xf32>
    %502 = arith.addf %498, %501 : vector<40x4xf32>
    %503 = vector.extract_strided_slice %446 {offsets = [1, 0, 0], sizes = [1, 8, 4], strides = [1, 1, 1]} : vector<2x8x4xf32> to vector<1x8x4xf32>
    %504 = vector.shape_cast %503 : vector<1x8x4xf32> to vector<8x4xf32>
    %cst_276 = arith.constant dense<0.000000e+00> : vector<40x4xf32>
    %505 = tpu.matmul %436, %504, %cst_276 {dimension_numbers = #tpu.dot_dimension_numbers<[1], [0], [0], [1], [0, 0, 1, 1], [], []>} : vector<40x8xf32>, vector<8x4xf32>, vector<40x4xf32> -> vector<40x4xf32>
    %506 = vector.extract_strided_slice %448 {offsets = [1, 0, 0], sizes = [1, 1, 4], strides = [1, 1, 1]} : vector<2x1x4xf32> to vector<1x1x4xf32>
    %507 = vector.shape_cast %506 : vector<1x1x4xf32> to vector<1x4xf32>
    %508 = vector.broadcast %507 : vector<1x4xf32> to vector<40x4xf32>
    %509 = arith.addf %505, %508 : vector<40x4xf32>
    %cst_277 = arith.constant dense<0.000000e+00> : vector<40x40xf32>
    %510 = tpu.matmul %495, %502, %cst_277 {dimension_numbers = #tpu.dot_dimension_numbers<[1], [1], [0], [0], [0, 0, 1, 0], [], []>} : vector<40x4xf32>, vector<40x4xf32>, vector<40x40xf32> -> vector<40x40xf32>
    %511 = arith.addf %510, %412 : vector<40x40xf32>
    %cst_278 = arith.constant dense<0xFF800000> : vector<40xf32>
    %512 = vector.multi_reduction <maximumf>, %511, %cst_278 [1] : vector<40x40xf32> to vector<40xf32>
    %513 = vector.shape_cast %512 : vector<40xf32> to vector<40x1xf32>
    %514 = vector.broadcast %513 : vector<40x1xf32> to vector<40x40xf32>
    %515 = arith.subf %511, %514 : vector<40x40xf32>
    %516 = math.exp %515 : vector<40x40xf32>
    %cst_279 = arith.constant dense<0.000000e+00> : vector<40xf32>
    %517 = vector.multi_reduction <add>, %516, %cst_279 [1] : vector<40x40xf32> to vector<40xf32>
    %518 = vector.shape_cast %517 : vector<40xf32> to vector<40x1xf32>
    %519 = vector.broadcast %518 : vector<40x1xf32> to vector<40x40xf32>
    %520 = arith.divf %516, %519 : vector<40x40xf32>
    %cst_280 = arith.constant dense<0.000000e+00> : vector<40x4xf32>
    %521 = tpu.matmul %520, %509, %cst_280 {dimension_numbers = #tpu.dot_dimension_numbers<[1], [0], [0], [1], [0, 0, 1, 1], [], []>} : vector<40x40xf32>, vector<40x4xf32>, vector<40x4xf32> -> vector<40x4xf32>
    %522 = vector.extract_strided_slice %450 {offsets = [1, 0, 0], sizes = [1, 4, 8], strides = [1, 1, 1]} : vector<2x4x8xf32> to vector<1x4x8xf32>
    %523 = vector.shape_cast %522 : vector<1x4x8xf32> to vector<4x8xf32>
    %cst_281 = arith.constant dense<0.000000e+00> : vector<40x8xf32>
    %524 = tpu.matmul %521, %523, %cst_281 {dimension_numbers = #tpu.dot_dimension_numbers<[1], [0], [0], [1], [0, 0, 1, 1], [], []>} : vector<40x4xf32>, vector<4x8xf32>, vector<40x8xf32> -> vector<40x8xf32>
    %525 = arith.addf %488, %524 : vector<40x8xf32>
    %526 = vector.broadcast %452 : vector<1x8xf32> to vector<40x8xf32>
    %527 = arith.addf %525, %526 : vector<40x8xf32>
    %528 = arith.addf %411, %527 : vector<40x8xf32>
    %c0_282 = arith.constant 0 : index
    %c0_283 = arith.constant 0 : index
    %c0_284 = arith.constant 0 : index
    %529 = vector.load %arg41[%c0_282, %c0_283, %c0_284] : memref<2x1x8xf32, #tpu.memory_space<vmem>>, vector<1x1x8xf32>
    %530 = vector.shape_cast %529 : vector<1x1x8xf32> to vector<1x8xf32>
    %c0_285 = arith.constant 0 : index
    %c0_286 = arith.constant 0 : index
    %c0_287 = arith.constant 0 : index
    %531 = vector.load %arg42[%c0_285, %c0_286, %c0_287] : memref<2x1x8xf32, #tpu.memory_space<vmem>>, vector<1x1x8xf32>
    %532 = vector.shape_cast %531 : vector<1x1x8xf32> to vector<1x8xf32>
    %cst_288 = arith.constant dense<0.000000e+00> : vector<40xf32>
    %533 = vector.multi_reduction <add>, %528, %cst_288 [1] : vector<40x8xf32> to vector<40xf32>
    %534 = vector.shape_cast %533 : vector<40xf32> to vector<40x1xf32>
    %cst_289 = arith.constant 8.000000e+00 : f32
    %535 = vector.broadcast %cst_289 : f32 to vector<40x1xf32>
    %536 = arith.divf %534, %535 : vector<40x1xf32>
    %537 = vector.broadcast %536 : vector<40x1xf32> to vector<40x8xf32>
    %538 = arith.subf %528, %537 : vector<40x8xf32>
    %539 = arith.mulf %538, %538 : vector<40x8xf32>
    %cst_290 = arith.constant dense<0.000000e+00> : vector<40xf32>
    %540 = vector.multi_reduction <add>, %539, %cst_290 [1] : vector<40x8xf32> to vector<40xf32>
    %541 = vector.shape_cast %540 : vector<40xf32> to vector<40x1xf32>
    %cst_291 = arith.constant 8.000000e+00 : f32
    %542 = vector.broadcast %cst_291 : f32 to vector<40x1xf32>
    %543 = arith.divf %541, %542 : vector<40x1xf32>
    %cst_292 = arith.constant 9.99999997E-7 : f32
    %544 = vector.broadcast %cst_292 : f32 to vector<40x1xf32>
    %545 = arith.addf %543, %544 : vector<40x1xf32>
    %546 = math.rsqrt %545 : vector<40x1xf32>
    %547 = vector.broadcast %546 : vector<40x1xf32> to vector<40x8xf32>
    %548 = arith.mulf %538, %547 : vector<40x8xf32>
    %549 = vector.broadcast %530 : vector<1x8xf32> to vector<40x8xf32>
    %550 = arith.mulf %548, %549 : vector<40x8xf32>
    %551 = vector.broadcast %532 : vector<1x8xf32> to vector<40x8xf32>
    %552 = arith.addf %550, %551 : vector<40x8xf32>
    %c0_293 = arith.constant 0 : index
    %c0_294 = arith.constant 0 : index
    %c0_295 = arith.constant 0 : index
    %553 = vector.load %arg43[%c0_293, %c0_294, %c0_295] : memref<2x8x16xf32, #tpu.memory_space<vmem>>, vector<1x8x16xf32>
    %554 = vector.shape_cast %553 : vector<1x8x16xf32> to vector<8x16xf32>
    %cst_296 = arith.constant dense<0.000000e+00> : vector<40x16xf32>
    %555 = tpu.matmul %552, %554, %cst_296 {dimension_numbers = #tpu.dot_dimension_numbers<[1], [0], [0], [1], [0, 0, 1, 1], [], []>} : vector<40x8xf32>, vector<8x16xf32>, vector<40x16xf32> -> vector<40x16xf32>
    %c0_297 = arith.constant 0 : index
    %c0_298 = arith.constant 0 : index
    %c0_299 = arith.constant 0 : index
    %556 = vector.load %arg44[%c0_297, %c0_298, %c0_299] : memref<2x1x16xf32, #tpu.memory_space<vmem>>, vector<1x1x16xf32>
    %557 = vector.shape_cast %556 : vector<1x1x16xf32> to vector<1x16xf32>
    %558 = vector.broadcast %557 : vector<1x16xf32> to vector<40x16xf32>
    %559 = arith.addf %555, %558 : vector<40x16xf32>
    %560 = arith.mulf %559, %559 : vector<40x16xf32>
    %561 = arith.mulf %559, %560 : vector<40x16xf32>
    %cst_300 = arith.constant 4.471500e-02 : f32
    %562 = vector.broadcast %cst_300 : f32 to vector<40x16xf32>
    %563 = arith.mulf %562, %561 : vector<40x16xf32>
    %564 = arith.addf %559, %563 : vector<40x16xf32>
    %cst_301 = arith.constant 0.797884583 : f32
    %565 = vector.broadcast %cst_301 : f32 to vector<40x16xf32>
    %566 = arith.mulf %565, %564 : vector<40x16xf32>
    %567 = math.tanh %566 : vector<40x16xf32>
    %cst_302 = arith.constant 1.000000e+00 : f32
    %568 = vector.broadcast %cst_302 : f32 to vector<40x16xf32>
    %569 = arith.addf %568, %567 : vector<40x16xf32>
    %cst_303 = arith.constant 5.000000e-01 : f32
    %570 = vector.broadcast %cst_303 : f32 to vector<40x16xf32>
    %571 = arith.mulf %570, %569 : vector<40x16xf32>
    %572 = arith.mulf %559, %571 : vector<40x16xf32>
    %c0_304 = arith.constant 0 : index
    %c0_305 = arith.constant 0 : index
    %c0_306 = arith.constant 0 : index
    %573 = vector.load %arg45[%c0_304, %c0_305, %c0_306] : memref<2x16x8xf32, #tpu.memory_space<vmem>>, vector<1x16x8xf32>
    %574 = vector.shape_cast %573 : vector<1x16x8xf32> to vector<16x8xf32>
    %cst_307 = arith.constant dense<0.000000e+00> : vector<40x8xf32>
    %575 = tpu.matmul %572, %574, %cst_307 {dimension_numbers = #tpu.dot_dimension_numbers<[1], [0], [0], [1], [0, 0, 1, 1], [], []>} : vector<40x16xf32>, vector<16x8xf32>, vector<40x8xf32> -> vector<40x8xf32>
    %c0_308 = arith.constant 0 : index
    %c0_309 = arith.constant 0 : index
    %c0_310 = arith.constant 0 : index
    %576 = vector.load %arg46[%c0_308, %c0_309, %c0_310] : memref<2x1x8xf32, #tpu.memory_space<vmem>>, vector<1x1x8xf32>
    %577 = vector.shape_cast %576 : vector<1x1x8xf32> to vector<1x8xf32>
    %578 = vector.broadcast %577 : vector<1x8xf32> to vector<40x8xf32>
    %579 = arith.addf %575, %578 : vector<40x8xf32>
    %580 = arith.addf %528, %579 : vector<40x8xf32>
    %c1_311 = arith.constant 1 : index
    %c0_312 = arith.constant 0 : index
    %c0_313 = arith.constant 0 : index
    %581 = vector.load %arg31[%c1_311, %c0_312, %c0_313] : memref<2x1x8xf32, #tpu.memory_space<vmem>>, vector<1x1x8xf32>
    %582 = vector.shape_cast %581 : vector<1x1x8xf32> to vector<1x8xf32>
    %c1_314 = arith.constant 1 : index
    %c0_315 = arith.constant 0 : index
    %c0_316 = arith.constant 0 : index
    %583 = vector.load %arg32[%c1_314, %c0_315, %c0_316] : memref<2x1x8xf32, #tpu.memory_space<vmem>>, vector<1x1x8xf32>
    %584 = vector.shape_cast %583 : vector<1x1x8xf32> to vector<1x8xf32>
    %cst_317 = arith.constant dense<0.000000e+00> : vector<40xf32>
    %585 = vector.multi_reduction <add>, %580, %cst_317 [1] : vector<40x8xf32> to vector<40xf32>
    %586 = vector.shape_cast %585 : vector<40xf32> to vector<40x1xf32>
    %cst_318 = arith.constant 8.000000e+00 : f32
    %587 = vector.broadcast %cst_318 : f32 to vector<40x1xf32>
    %588 = arith.divf %586, %587 : vector<40x1xf32>
    %589 = vector.broadcast %588 : vector<40x1xf32> to vector<40x8xf32>
    %590 = arith.subf %580, %589 : vector<40x8xf32>
    %591 = arith.mulf %590, %590 : vector<40x8xf32>
    %cst_319 = arith.constant dense<0.000000e+00> : vector<40xf32>
    %592 = vector.multi_reduction <add>, %591, %cst_319 [1] : vector<40x8xf32> to vector<40xf32>
    %593 = vector.shape_cast %592 : vector<40xf32> to vector<40x1xf32>
    %cst_320 = arith.constant 8.000000e+00 : f32
    %594 = vector.broadcast %cst_320 : f32 to vector<40x1xf32>
    %595 = arith.divf %593, %594 : vector<40x1xf32>
    %cst_321 = arith.constant 9.99999997E-7 : f32
    %596 = vector.broadcast %cst_321 : f32 to vector<40x1xf32>
    %597 = arith.addf %595, %596 : vector<40x1xf32>
    %598 = math.rsqrt %597 : vector<40x1xf32>
    %599 = vector.broadcast %598 : vector<40x1xf32> to vector<40x8xf32>
    %600 = arith.mulf %590, %599 : vector<40x8xf32>
    %601 = vector.broadcast %582 : vector<1x8xf32> to vector<40x8xf32>
    %602 = arith.mulf %600, %601 : vector<40x8xf32>
    %603 = vector.broadcast %584 : vector<1x8xf32> to vector<40x8xf32>
    %604 = arith.addf %602, %603 : vector<40x8xf32>
    %c1_322 = arith.constant 1 : index
    %c0_323 = arith.constant 0 : index
    %c0_324 = arith.constant 0 : index
    %c0_325 = arith.constant 0 : index
    %605 = vector.load %arg33[%c1_322, %c0_323, %c0_324, %c0_325] : memref<2x2x8x4xf32, #tpu.memory_space<vmem>>, vector<1x2x8x4xf32>
    %606 = vector.shape_cast %605 : vector<1x2x8x4xf32> to vector<2x8x4xf32>
    %c1_326 = arith.constant 1 : index
    %c0_327 = arith.constant 0 : index
    %c0_328 = arith.constant 0 : index
    %c0_329 = arith.constant 0 : index
    %607 = vector.load %arg34[%c1_326, %c0_327, %c0_328, %c0_329] : memref<2x2x1x4xf32, #tpu.memory_space<vmem>>, vector<1x2x1x4xf32>
    %608 = vector.shape_cast %607 : vector<1x2x1x4xf32> to vector<2x1x4xf32>
    %c1_330 = arith.constant 1 : index
    %c0_331 = arith.constant 0 : index
    %c0_332 = arith.constant 0 : index
    %c0_333 = arith.constant 0 : index
    %609 = vector.load %arg35[%c1_330, %c0_331, %c0_332, %c0_333] : memref<2x2x8x4xf32, #tpu.memory_space<vmem>>, vector<1x2x8x4xf32>
    %610 = vector.shape_cast %609 : vector<1x2x8x4xf32> to vector<2x8x4xf32>
    %c1_334 = arith.constant 1 : index
    %c0_335 = arith.constant 0 : index
    %c0_336 = arith.constant 0 : index
    %c0_337 = arith.constant 0 : index
    %611 = vector.load %arg36[%c1_334, %c0_335, %c0_336, %c0_337] : memref<2x2x1x4xf32, #tpu.memory_space<vmem>>, vector<1x2x1x4xf32>
    %612 = vector.shape_cast %611 : vector<1x2x1x4xf32> to vector<2x1x4xf32>
    %c1_338 = arith.constant 1 : index
    %c0_339 = arith.constant 0 : index
    %c0_340 = arith.constant 0 : index
    %c0_341 = arith.constant 0 : index
    %613 = vector.load %arg37[%c1_338, %c0_339, %c0_340, %c0_341] : memref<2x2x8x4xf32, #tpu.memory_space<vmem>>, vector<1x2x8x4xf32>
    %614 = vector.shape_cast %613 : vector<1x2x8x4xf32> to vector<2x8x4xf32>
    %c1_342 = arith.constant 1 : index
    %c0_343 = arith.constant 0 : index
    %c0_344 = arith.constant 0 : index
    %c0_345 = arith.constant 0 : index
    %615 = vector.load %arg38[%c1_342, %c0_343, %c0_344, %c0_345] : memref<2x2x1x4xf32, #tpu.memory_space<vmem>>, vector<1x2x1x4xf32>
    %616 = vector.shape_cast %615 : vector<1x2x1x4xf32> to vector<2x1x4xf32>
    %c1_346 = arith.constant 1 : index
    %c0_347 = arith.constant 0 : index
    %c0_348 = arith.constant 0 : index
    %c0_349 = arith.constant 0 : index
    %617 = vector.load %arg39[%c1_346, %c0_347, %c0_348, %c0_349] : memref<2x2x4x8xf32, #tpu.memory_space<vmem>>, vector<1x2x4x8xf32>
    %618 = vector.shape_cast %617 : vector<1x2x4x8xf32> to vector<2x4x8xf32>
    %c1_350 = arith.constant 1 : index
    %c0_351 = arith.constant 0 : index
    %c0_352 = arith.constant 0 : index
    %619 = vector.load %arg40[%c1_350, %c0_351, %c0_352] : memref<2x1x8xf32, #tpu.memory_space<vmem>>, vector<1x1x8xf32>
    %620 = vector.shape_cast %619 : vector<1x1x8xf32> to vector<1x8xf32>
    %621 = vector.extract_strided_slice %606 {offsets = [0, 0, 0], sizes = [1, 8, 4], strides = [1, 1, 1]} : vector<2x8x4xf32> to vector<1x8x4xf32>
    %622 = vector.shape_cast %621 : vector<1x8x4xf32> to vector<8x4xf32>
    %cst_353 = arith.constant dense<0.000000e+00> : vector<40x4xf32>
    %623 = tpu.matmul %604, %622, %cst_353 {dimension_numbers = #tpu.dot_dimension_numbers<[1], [0], [0], [1], [0, 0, 1, 1], [], []>} : vector<40x8xf32>, vector<8x4xf32>, vector<40x4xf32> -> vector<40x4xf32>
    %624 = vector.extract_strided_slice %608 {offsets = [0, 0, 0], sizes = [1, 1, 4], strides = [1, 1, 1]} : vector<2x1x4xf32> to vector<1x1x4xf32>
    %625 = vector.shape_cast %624 : vector<1x1x4xf32> to vector<1x4xf32>
    %626 = vector.broadcast %625 : vector<1x4xf32> to vector<40x4xf32>
    %627 = arith.addf %623, %626 : vector<40x4xf32>
    %628 = vector.extract_strided_slice %610 {offsets = [0, 0, 0], sizes = [1, 8, 4], strides = [1, 1, 1]} : vector<2x8x4xf32> to vector<1x8x4xf32>
    %629 = vector.shape_cast %628 : vector<1x8x4xf32> to vector<8x4xf32>
    %cst_354 = arith.constant dense<0.000000e+00> : vector<40x4xf32>
    %630 = tpu.matmul %604, %629, %cst_354 {dimension_numbers = #tpu.dot_dimension_numbers<[1], [0], [0], [1], [0, 0, 1, 1], [], []>} : vector<40x8xf32>, vector<8x4xf32>, vector<40x4xf32> -> vector<40x4xf32>
    %631 = vector.extract_strided_slice %612 {offsets = [0, 0, 0], sizes = [1, 1, 4], strides = [1, 1, 1]} : vector<2x1x4xf32> to vector<1x1x4xf32>
    %632 = vector.shape_cast %631 : vector<1x1x4xf32> to vector<1x4xf32>
    %633 = vector.broadcast %632 : vector<1x4xf32> to vector<40x4xf32>
    %634 = arith.addf %630, %633 : vector<40x4xf32>
    %635 = vector.extract_strided_slice %614 {offsets = [0, 0, 0], sizes = [1, 8, 4], strides = [1, 1, 1]} : vector<2x8x4xf32> to vector<1x8x4xf32>
    %636 = vector.shape_cast %635 : vector<1x8x4xf32> to vector<8x4xf32>
    %cst_355 = arith.constant dense<0.000000e+00> : vector<40x4xf32>
    %637 = tpu.matmul %604, %636, %cst_355 {dimension_numbers = #tpu.dot_dimension_numbers<[1], [0], [0], [1], [0, 0, 1, 1], [], []>} : vector<40x8xf32>, vector<8x4xf32>, vector<40x4xf32> -> vector<40x4xf32>
    %638 = vector.extract_strided_slice %616 {offsets = [0, 0, 0], sizes = [1, 1, 4], strides = [1, 1, 1]} : vector<2x1x4xf32> to vector<1x1x4xf32>
    %639 = vector.shape_cast %638 : vector<1x1x4xf32> to vector<1x4xf32>
    %640 = vector.broadcast %639 : vector<1x4xf32> to vector<40x4xf32>
    %641 = arith.addf %637, %640 : vector<40x4xf32>
    %cst_356 = arith.constant dense<0.000000e+00> : vector<40x40xf32>
    %642 = tpu.matmul %627, %634, %cst_356 {dimension_numbers = #tpu.dot_dimension_numbers<[1], [1], [0], [0], [0, 0, 1, 0], [], []>} : vector<40x4xf32>, vector<40x4xf32>, vector<40x40xf32> -> vector<40x40xf32>
    %643 = arith.addf %642, %412 : vector<40x40xf32>
    %cst_357 = arith.constant dense<0xFF800000> : vector<40xf32>
    %644 = vector.multi_reduction <maximumf>, %643, %cst_357 [1] : vector<40x40xf32> to vector<40xf32>
    %645 = vector.shape_cast %644 : vector<40xf32> to vector<40x1xf32>
    %646 = vector.broadcast %645 : vector<40x1xf32> to vector<40x40xf32>
    %647 = arith.subf %643, %646 : vector<40x40xf32>
    %648 = math.exp %647 : vector<40x40xf32>
    %cst_358 = arith.constant dense<0.000000e+00> : vector<40xf32>
    %649 = vector.multi_reduction <add>, %648, %cst_358 [1] : vector<40x40xf32> to vector<40xf32>
    %650 = vector.shape_cast %649 : vector<40xf32> to vector<40x1xf32>
    %651 = vector.broadcast %650 : vector<40x1xf32> to vector<40x40xf32>
    %652 = arith.divf %648, %651 : vector<40x40xf32>
    %cst_359 = arith.constant dense<0.000000e+00> : vector<40x4xf32>
    %653 = tpu.matmul %652, %641, %cst_359 {dimension_numbers = #tpu.dot_dimension_numbers<[1], [0], [0], [1], [0, 0, 1, 1], [], []>} : vector<40x40xf32>, vector<40x4xf32>, vector<40x4xf32> -> vector<40x4xf32>
    %654 = vector.extract_strided_slice %618 {offsets = [0, 0, 0], sizes = [1, 4, 8], strides = [1, 1, 1]} : vector<2x4x8xf32> to vector<1x4x8xf32>
    %655 = vector.shape_cast %654 : vector<1x4x8xf32> to vector<4x8xf32>
    %cst_360 = arith.constant dense<0.000000e+00> : vector<40x8xf32>
    %656 = tpu.matmul %653, %655, %cst_360 {dimension_numbers = #tpu.dot_dimension_numbers<[1], [0], [0], [1], [0, 0, 1, 1], [], []>} : vector<40x4xf32>, vector<4x8xf32>, vector<40x8xf32> -> vector<40x8xf32>
    %657 = vector.extract_strided_slice %606 {offsets = [1, 0, 0], sizes = [1, 8, 4], strides = [1, 1, 1]} : vector<2x8x4xf32> to vector<1x8x4xf32>
    %658 = vector.shape_cast %657 : vector<1x8x4xf32> to vector<8x4xf32>
    %cst_361 = arith.constant dense<0.000000e+00> : vector<40x4xf32>
    %659 = tpu.matmul %604, %658, %cst_361 {dimension_numbers = #tpu.dot_dimension_numbers<[1], [0], [0], [1], [0, 0, 1, 1], [], []>} : vector<40x8xf32>, vector<8x4xf32>, vector<40x4xf32> -> vector<40x4xf32>
    %660 = vector.extract_strided_slice %608 {offsets = [1, 0, 0], sizes = [1, 1, 4], strides = [1, 1, 1]} : vector<2x1x4xf32> to vector<1x1x4xf32>
    %661 = vector.shape_cast %660 : vector<1x1x4xf32> to vector<1x4xf32>
    %662 = vector.broadcast %661 : vector<1x4xf32> to vector<40x4xf32>
    %663 = arith.addf %659, %662 : vector<40x4xf32>
    %664 = vector.extract_strided_slice %610 {offsets = [1, 0, 0], sizes = [1, 8, 4], strides = [1, 1, 1]} : vector<2x8x4xf32> to vector<1x8x4xf32>
    %665 = vector.shape_cast %664 : vector<1x8x4xf32> to vector<8x4xf32>
    %cst_362 = arith.constant dense<0.000000e+00> : vector<40x4xf32>
    %666 = tpu.matmul %604, %665, %cst_362 {dimension_numbers = #tpu.dot_dimension_numbers<[1], [0], [0], [1], [0, 0, 1, 1], [], []>} : vector<40x8xf32>, vector<8x4xf32>, vector<40x4xf32> -> vector<40x4xf32>
    %667 = vector.extract_strided_slice %612 {offsets = [1, 0, 0], sizes = [1, 1, 4], strides = [1, 1, 1]} : vector<2x1x4xf32> to vector<1x1x4xf32>
    %668 = vector.shape_cast %667 : vector<1x1x4xf32> to vector<1x4xf32>
    %669 = vector.broadcast %668 : vector<1x4xf32> to vector<40x4xf32>
    %670 = arith.addf %666, %669 : vector<40x4xf32>
    %671 = vector.extract_strided_slice %614 {offsets = [1, 0, 0], sizes = [1, 8, 4], strides = [1, 1, 1]} : vector<2x8x4xf32> to vector<1x8x4xf32>
    %672 = vector.shape_cast %671 : vector<1x8x4xf32> to vector<8x4xf32>
    %cst_363 = arith.constant dense<0.000000e+00> : vector<40x4xf32>
    %673 = tpu.matmul %604, %672, %cst_363 {dimension_numbers = #tpu.dot_dimension_numbers<[1], [0], [0], [1], [0, 0, 1, 1], [], []>} : vector<40x8xf32>, vector<8x4xf32>, vector<40x4xf32> -> vector<40x4xf32>
    %674 = vector.extract_strided_slice %616 {offsets = [1, 0, 0], sizes = [1, 1, 4], strides = [1, 1, 1]} : vector<2x1x4xf32> to vector<1x1x4xf32>
    %675 = vector.shape_cast %674 : vector<1x1x4xf32> to vector<1x4xf32>
    %676 = vector.broadcast %675 : vector<1x4xf32> to vector<40x4xf32>
    %677 = arith.addf %673, %676 : vector<40x4xf32>
    %cst_364 = arith.constant dense<0.000000e+00> : vector<40x40xf32>
    %678 = tpu.matmul %663, %670, %cst_364 {dimension_numbers = #tpu.dot_dimension_numbers<[1], [1], [0], [0], [0, 0, 1, 0], [], []>} : vector<40x4xf32>, vector<40x4xf32>, vector<40x40xf32> -> vector<40x40xf32>
    %679 = arith.addf %678, %412 : vector<40x40xf32>
    %cst_365 = arith.constant dense<0xFF800000> : vector<40xf32>
    %680 = vector.multi_reduction <maximumf>, %679, %cst_365 [1] : vector<40x40xf32> to vector<40xf32>
    %681 = vector.shape_cast %680 : vector<40xf32> to vector<40x1xf32>
    %682 = vector.broadcast %681 : vector<40x1xf32> to vector<40x40xf32>
    %683 = arith.subf %679, %682 : vector<40x40xf32>
    %684 = math.exp %683 : vector<40x40xf32>
    %cst_366 = arith.constant dense<0.000000e+00> : vector<40xf32>
    %685 = vector.multi_reduction <add>, %684, %cst_366 [1] : vector<40x40xf32> to vector<40xf32>
    %686 = vector.shape_cast %685 : vector<40xf32> to vector<40x1xf32>
    %687 = vector.broadcast %686 : vector<40x1xf32> to vector<40x40xf32>
    %688 = arith.divf %684, %687 : vector<40x40xf32>
    %cst_367 = arith.constant dense<0.000000e+00> : vector<40x4xf32>
    %689 = tpu.matmul %688, %677, %cst_367 {dimension_numbers = #tpu.dot_dimension_numbers<[1], [0], [0], [1], [0, 0, 1, 1], [], []>} : vector<40x40xf32>, vector<40x4xf32>, vector<40x4xf32> -> vector<40x4xf32>
    %690 = vector.extract_strided_slice %618 {offsets = [1, 0, 0], sizes = [1, 4, 8], strides = [1, 1, 1]} : vector<2x4x8xf32> to vector<1x4x8xf32>
    %691 = vector.shape_cast %690 : vector<1x4x8xf32> to vector<4x8xf32>
    %cst_368 = arith.constant dense<0.000000e+00> : vector<40x8xf32>
    %692 = tpu.matmul %689, %691, %cst_368 {dimension_numbers = #tpu.dot_dimension_numbers<[1], [0], [0], [1], [0, 0, 1, 1], [], []>} : vector<40x4xf32>, vector<4x8xf32>, vector<40x8xf32> -> vector<40x8xf32>
    %693 = arith.addf %656, %692 : vector<40x8xf32>
    %694 = vector.broadcast %620 : vector<1x8xf32> to vector<40x8xf32>
    %695 = arith.addf %693, %694 : vector<40x8xf32>
    %696 = arith.addf %580, %695 : vector<40x8xf32>
    %c1_369 = arith.constant 1 : index
    %c0_370 = arith.constant 0 : index
    %c0_371 = arith.constant 0 : index
    %697 = vector.load %arg41[%c1_369, %c0_370, %c0_371] : memref<2x1x8xf32, #tpu.memory_space<vmem>>, vector<1x1x8xf32>
    %698 = vector.shape_cast %697 : vector<1x1x8xf32> to vector<1x8xf32>
    %c1_372 = arith.constant 1 : index
    %c0_373 = arith.constant 0 : index
    %c0_374 = arith.constant 0 : index
    %699 = vector.load %arg42[%c1_372, %c0_373, %c0_374] : memref<2x1x8xf32, #tpu.memory_space<vmem>>, vector<1x1x8xf32>
    %700 = vector.shape_cast %699 : vector<1x1x8xf32> to vector<1x8xf32>
    %cst_375 = arith.constant dense<0.000000e+00> : vector<40xf32>
    %701 = vector.multi_reduction <add>, %696, %cst_375 [1] : vector<40x8xf32> to vector<40xf32>
    %702 = vector.shape_cast %701 : vector<40xf32> to vector<40x1xf32>
    %cst_376 = arith.constant 8.000000e+00 : f32
    %703 = vector.broadcast %cst_376 : f32 to vector<40x1xf32>
    %704 = arith.divf %702, %703 : vector<40x1xf32>
    %705 = vector.broadcast %704 : vector<40x1xf32> to vector<40x8xf32>
    %706 = arith.subf %696, %705 : vector<40x8xf32>
    %707 = arith.mulf %706, %706 : vector<40x8xf32>
    %cst_377 = arith.constant dense<0.000000e+00> : vector<40xf32>
    %708 = vector.multi_reduction <add>, %707, %cst_377 [1] : vector<40x8xf32> to vector<40xf32>
    %709 = vector.shape_cast %708 : vector<40xf32> to vector<40x1xf32>
    %cst_378 = arith.constant 8.000000e+00 : f32
    %710 = vector.broadcast %cst_378 : f32 to vector<40x1xf32>
    %711 = arith.divf %709, %710 : vector<40x1xf32>
    %cst_379 = arith.constant 9.99999997E-7 : f32
    %712 = vector.broadcast %cst_379 : f32 to vector<40x1xf32>
    %713 = arith.addf %711, %712 : vector<40x1xf32>
    %714 = math.rsqrt %713 : vector<40x1xf32>
    %715 = vector.broadcast %714 : vector<40x1xf32> to vector<40x8xf32>
    %716 = arith.mulf %706, %715 : vector<40x8xf32>
    %717 = vector.broadcast %698 : vector<1x8xf32> to vector<40x8xf32>
    %718 = arith.mulf %716, %717 : vector<40x8xf32>
    %719 = vector.broadcast %700 : vector<1x8xf32> to vector<40x8xf32>
    %720 = arith.addf %718, %719 : vector<40x8xf32>
    %c1_380 = arith.constant 1 : index
    %c0_381 = arith.constant 0 : index
    %c0_382 = arith.constant 0 : index
    %721 = vector.load %arg43[%c1_380, %c0_381, %c0_382] : memref<2x8x16xf32, #tpu.memory_space<vmem>>, vector<1x8x16xf32>
    %722 = vector.shape_cast %721 : vector<1x8x16xf32> to vector<8x16xf32>
    %cst_383 = arith.constant dense<0.000000e+00> : vector<40x16xf32>
    %723 = tpu.matmul %720, %722, %cst_383 {dimension_numbers = #tpu.dot_dimension_numbers<[1], [0], [0], [1], [0, 0, 1, 1], [], []>} : vector<40x8xf32>, vector<8x16xf32>, vector<40x16xf32> -> vector<40x16xf32>
    %c1_384 = arith.constant 1 : index
    %c0_385 = arith.constant 0 : index
    %c0_386 = arith.constant 0 : index
    %724 = vector.load %arg44[%c1_384, %c0_385, %c0_386] : memref<2x1x16xf32, #tpu.memory_space<vmem>>, vector<1x1x16xf32>
    %725 = vector.shape_cast %724 : vector<1x1x16xf32> to vector<1x16xf32>
    %726 = vector.broadcast %725 : vector<1x16xf32> to vector<40x16xf32>
    %727 = arith.addf %723, %726 : vector<40x16xf32>
    %728 = arith.mulf %727, %727 : vector<40x16xf32>
    %729 = arith.mulf %727, %728 : vector<40x16xf32>
    %cst_387 = arith.constant 4.471500e-02 : f32
    %730 = vector.broadcast %cst_387 : f32 to vector<40x16xf32>
    %731 = arith.mulf %730, %729 : vector<40x16xf32>
    %732 = arith.addf %727, %731 : vector<40x16xf32>
    %cst_388 = arith.constant 0.797884583 : f32
    %733 = vector.broadcast %cst_388 : f32 to vector<40x16xf32>
    %734 = arith.mulf %733, %732 : vector<40x16xf32>
    %735 = math.tanh %734 : vector<40x16xf32>
    %cst_389 = arith.constant 1.000000e+00 : f32
    %736 = vector.broadcast %cst_389 : f32 to vector<40x16xf32>
    %737 = arith.addf %736, %735 : vector<40x16xf32>
    %cst_390 = arith.constant 5.000000e-01 : f32
    %738 = vector.broadcast %cst_390 : f32 to vector<40x16xf32>
    %739 = arith.mulf %738, %737 : vector<40x16xf32>
    %740 = arith.mulf %727, %739 : vector<40x16xf32>
    %c1_391 = arith.constant 1 : index
    %c0_392 = arith.constant 0 : index
    %c0_393 = arith.constant 0 : index
    %741 = vector.load %arg45[%c1_391, %c0_392, %c0_393] : memref<2x16x8xf32, #tpu.memory_space<vmem>>, vector<1x16x8xf32>
    %742 = vector.shape_cast %741 : vector<1x16x8xf32> to vector<16x8xf32>
    %cst_394 = arith.constant dense<0.000000e+00> : vector<40x8xf32>
    %743 = tpu.matmul %740, %742, %cst_394 {dimension_numbers = #tpu.dot_dimension_numbers<[1], [0], [0], [1], [0, 0, 1, 1], [], []>} : vector<40x16xf32>, vector<16x8xf32>, vector<40x8xf32> -> vector<40x8xf32>
    %c1_395 = arith.constant 1 : index
    %c0_396 = arith.constant 0 : index
    %c0_397 = arith.constant 0 : index
    %744 = vector.load %arg46[%c1_395, %c0_396, %c0_397] : memref<2x1x8xf32, #tpu.memory_space<vmem>>, vector<1x1x8xf32>
    %745 = vector.shape_cast %744 : vector<1x1x8xf32> to vector<1x8xf32>
    %746 = vector.broadcast %745 : vector<1x8xf32> to vector<40x8xf32>
    %747 = arith.addf %743, %746 : vector<40x8xf32>
    %748 = arith.addf %696, %747 : vector<40x8xf32>
    %c0_398 = arith.constant 0 : index
    %c0_399 = arith.constant 0 : index
    %749 = vector.load %arg29[%c0_398, %c0_399] : memref<1x8xf32, #tpu.memory_space<vmem>>, vector<1x8xf32>
    %c0_400 = arith.constant 0 : index
    %c0_401 = arith.constant 0 : index
    %750 = vector.load %arg30[%c0_400, %c0_401] : memref<1x8xf32, #tpu.memory_space<vmem>>, vector<1x8xf32>
    %cst_402 = arith.constant dense<0.000000e+00> : vector<40xf32>
    %751 = vector.multi_reduction <add>, %748, %cst_402 [1] : vector<40x8xf32> to vector<40xf32>
    %752 = vector.shape_cast %751 : vector<40xf32> to vector<40x1xf32>
    %cst_403 = arith.constant 8.000000e+00 : f32
    %753 = vector.broadcast %cst_403 : f32 to vector<40x1xf32>
    %754 = arith.divf %752, %753 : vector<40x1xf32>
    %755 = vector.broadcast %754 : vector<40x1xf32> to vector<40x8xf32>
    %756 = arith.subf %748, %755 : vector<40x8xf32>
    %757 = arith.mulf %756, %756 : vector<40x8xf32>
    %cst_404 = arith.constant dense<0.000000e+00> : vector<40xf32>
    %758 = vector.multi_reduction <add>, %757, %cst_404 [1] : vector<40x8xf32> to vector<40xf32>
    %759 = vector.shape_cast %758 : vector<40xf32> to vector<40x1xf32>
    %cst_405 = arith.constant 8.000000e+00 : f32
    %760 = vector.broadcast %cst_405 : f32 to vector<40x1xf32>
    %761 = arith.divf %759, %760 : vector<40x1xf32>
    %cst_406 = arith.constant 9.99999997E-7 : f32
    %762 = vector.broadcast %cst_406 : f32 to vector<40x1xf32>
    %763 = arith.addf %761, %762 : vector<40x1xf32>
    %764 = math.rsqrt %763 : vector<40x1xf32>
    %765 = vector.broadcast %764 : vector<40x1xf32> to vector<40x8xf32>
    %766 = arith.mulf %756, %765 : vector<40x8xf32>
    %767 = vector.broadcast %749 : vector<1x8xf32> to vector<40x8xf32>
    %768 = arith.mulf %766, %767 : vector<40x8xf32>
    %769 = vector.broadcast %750 : vector<1x8xf32> to vector<40x8xf32>
    %770 = arith.addf %768, %769 : vector<40x8xf32>
    %c0_407 = arith.constant 0 : index
    %c0_408 = arith.constant 0 : index
    %771 = vector.load %arg74[%c0_407, %c0_408] : memref<40x8xf32, #tpu.memory_space<vmem>>, vector<40x8xf32>
    tpu.vector_store %arg74[%c0_407, %c0_408], %770 {strides = array<i32>} : memref<40x8xf32, #tpu.memory_space<vmem>>, vector<40x8xf32>,
    %c0_409 = arith.constant 0 : index
    %c0_410 = arith.constant 0 : index
    %772 = vector.load %arg74[%c0_409, %c0_410] : memref<40x8xf32, #tpu.memory_space<vmem>>, vector<1x8xf32>
    %c0_411 = arith.constant 0 : index
    %c0_412 = arith.constant 0 : index
    %773 = vector.load %arg75[%c0_411, %c0_412] : memref<9x32xf32, #tpu.memory_space<vmem>>, vector<1x8xf32>
    tpu.vector_store %arg75[%c0_411, %c0_412], %772 {strides = array<i32>} : memref<9x32xf32, #tpu.memory_space<vmem>>, vector<1x8xf32>,
    %c1_413 = arith.constant 1 : index
    %c0_414 = arith.constant 0 : index
    %774 = vector.load %arg74[%c1_413, %c0_414] : memref<40x8xf32, #tpu.memory_space<vmem>>, vector<1x8xf32>
    %c0_415 = arith.constant 0 : index
    %c8_416 = arith.constant 8 : index
    %775 = vector.load %arg75[%c0_415, %c8_416] : memref<9x32xf32, #tpu.memory_space<vmem>>, vector<1x8xf32>
    tpu.vector_store %arg75[%c0_415, %c8_416], %774 {strides = array<i32>} : memref<9x32xf32, #tpu.memory_space<vmem>>, vector<1x8xf32>,
    %c2 = arith.constant 2 : index
    %c0_417 = arith.constant 0 : index
    %776 = vector.load %arg74[%c2, %c0_417] : memref<40x8xf32, #tpu.memory_space<vmem>>, vector<1x8xf32>
    %c0_418 = arith.constant 0 : index
    %c16_419 = arith.constant 16 : index
    %777 = vector.load %arg75[%c0_418, %c16_419] : memref<9x32xf32, #tpu.memory_space<vmem>>, vector<1x8xf32>
    tpu.vector_store %arg75[%c0_418, %c16_419], %776 {strides = array<i32>} : memref<9x32xf32, #tpu.memory_space<vmem>>, vector<1x8xf32>,
    %c3 = arith.constant 3 : index
    %c0_420 = arith.constant 0 : index
    %778 = vector.load %arg74[%c3, %c0_420] : memref<40x8xf32, #tpu.memory_space<vmem>>, vector<1x8xf32>
    %c0_421 = arith.constant 0 : index
    %c24_422 = arith.constant 24 : index
    %779 = vector.load %arg75[%c0_421, %c24_422] : memref<9x32xf32, #tpu.memory_space<vmem>>, vector<1x8xf32>
    tpu.vector_store %arg75[%c0_421, %c24_422], %778 {strides = array<i32>} : memref<9x32xf32, #tpu.memory_space<vmem>>, vector<1x8xf32>,
    %c32_423 = arith.constant 32 : index
    %c0_424 = arith.constant 0 : index
    %780 = vector.load %arg74[%c32_423, %c0_424] : memref<40x8xf32, #tpu.memory_space<vmem>>, vector<1x8xf32>
    %c0_425 = arith.constant 0 : index
    %c0_426 = arith.constant 0 : index
    %781 = vector.load %arg76[%c0_425, %c0_426] : memref<1x64xf32, #tpu.memory_space<vmem>>, vector<1x8xf32>
    tpu.vector_store %arg76[%c0_425, %c0_426], %780 {strides = array<i32>} : memref<1x64xf32, #tpu.memory_space<vmem>>, vector<1x8xf32>,
    %c4_427 = arith.constant 4 : index
    %c0_428 = arith.constant 0 : index
    %782 = vector.load %arg74[%c4_427, %c0_428] : memref<40x8xf32, #tpu.memory_space<vmem>>, vector<1x8xf32>
    %c1_429 = arith.constant 1 : index
    %c0_430 = arith.constant 0 : index
    %783 = vector.load %arg75[%c1_429, %c0_430] : memref<9x32xf32, #tpu.memory_space<vmem>>, vector<1x8xf32>
    tpu.vector_store %arg75[%c1_429, %c0_430], %782 {strides = array<i32>} : memref<9x32xf32, #tpu.memory_space<vmem>>, vector<1x8xf32>,
    %c5 = arith.constant 5 : index
    %c0_431 = arith.constant 0 : index
    %784 = vector.load %arg74[%c5, %c0_431] : memref<40x8xf32, #tpu.memory_space<vmem>>, vector<1x8xf32>
    %c1_432 = arith.constant 1 : index
    %c8_433 = arith.constant 8 : index
    %785 = vector.load %arg75[%c1_432, %c8_433] : memref<9x32xf32, #tpu.memory_space<vmem>>, vector<1x8xf32>
    tpu.vector_store %arg75[%c1_432, %c8_433], %784 {strides = array<i32>} : memref<9x32xf32, #tpu.memory_space<vmem>>, vector<1x8xf32>,
    %c6_434 = arith.constant 6 : index
    %c0_435 = arith.constant 0 : index
    %786 = vector.load %arg74[%c6_434, %c0_435] : memref<40x8xf32, #tpu.memory_space<vmem>>, vector<1x8xf32>
    %c1_436 = arith.constant 1 : index
    %c16_437 = arith.constant 16 : index
    %787 = vector.load %arg75[%c1_436, %c16_437] : memref<9x32xf32, #tpu.memory_space<vmem>>, vector<1x8xf32>
    tpu.vector_store %arg75[%c1_436, %c16_437], %786 {strides = array<i32>} : memref<9x32xf32, #tpu.memory_space<vmem>>, vector<1x8xf32>,
    %c7 = arith.constant 7 : index
    %c0_438 = arith.constant 0 : index
    %788 = vector.load %arg74[%c7, %c0_438] : memref<40x8xf32, #tpu.memory_space<vmem>>, vector<1x8xf32>
    %c1_439 = arith.constant 1 : index
    %c24_440 = arith.constant 24 : index
    %789 = vector.load %arg75[%c1_439, %c24_440] : memref<9x32xf32, #tpu.memory_space<vmem>>, vector<1x8xf32>
    tpu.vector_store %arg75[%c1_439, %c24_440], %788 {strides = array<i32>} : memref<9x32xf32, #tpu.memory_space<vmem>>, vector<1x8xf32>,
    %c33 = arith.constant 33 : index
    %c0_441 = arith.constant 0 : index
    %790 = vector.load %arg74[%c33, %c0_441] : memref<40x8xf32, #tpu.memory_space<vmem>>, vector<1x8xf32>
    %c0_442 = arith.constant 0 : index
    %c8_443 = arith.constant 8 : index
    %791 = vector.load %arg76[%c0_442, %c8_443] : memref<1x64xf32, #tpu.memory_space<vmem>>, vector<1x8xf32>
    tpu.vector_store %arg76[%c0_442, %c8_443], %790 {strides = array<i32>} : memref<1x64xf32, #tpu.memory_space<vmem>>, vector<1x8xf32>,
    %c8_444 = arith.constant 8 : index
    %c0_445 = arith.constant 0 : index
    %792 = vector.load %arg74[%c8_444, %c0_445] : memref<40x8xf32, #tpu.memory_space<vmem>>, vector<1x8xf32>
    %c2_446 = arith.constant 2 : index
    %c0_447 = arith.constant 0 : index
    %793 = vector.load %arg75[%c2_446, %c0_447] : memref<9x32xf32, #tpu.memory_space<vmem>>, vector<1x8xf32>
    tpu.vector_store %arg75[%c2_446, %c0_447], %792 {strides = array<i32>} : memref<9x32xf32, #tpu.memory_space<vmem>>, vector<1x8xf32>,
    %c9 = arith.constant 9 : index
    %c0_448 = arith.constant 0 : index
    %794 = vector.load %arg74[%c9, %c0_448] : memref<40x8xf32, #tpu.memory_space<vmem>>, vector<1x8xf32>
    %c2_449 = arith.constant 2 : index
    %c8_450 = arith.constant 8 : index
    %795 = vector.load %arg75[%c2_449, %c8_450] : memref<9x32xf32, #tpu.memory_space<vmem>>, vector<1x8xf32>
    tpu.vector_store %arg75[%c2_449, %c8_450], %794 {strides = array<i32>} : memref<9x32xf32, #tpu.memory_space<vmem>>, vector<1x8xf32>,
    %c10 = arith.constant 10 : index
    %c0_451 = arith.constant 0 : index
    %796 = vector.load %arg74[%c10, %c0_451] : memref<40x8xf32, #tpu.memory_space<vmem>>, vector<1x8xf32>
    %c2_452 = arith.constant 2 : index
    %c16_453 = arith.constant 16 : index
    %797 = vector.load %arg75[%c2_452, %c16_453] : memref<9x32xf32, #tpu.memory_space<vmem>>, vector<1x8xf32>
    tpu.vector_store %arg75[%c2_452, %c16_453], %796 {strides = array<i32>} : memref<9x32xf32, #tpu.memory_space<vmem>>, vector<1x8xf32>,
    %c11 = arith.constant 11 : index
    %c0_454 = arith.constant 0 : index
    %798 = vector.load %arg74[%c11, %c0_454] : memref<40x8xf32, #tpu.memory_space<vmem>>, vector<1x8xf32>
    %c2_455 = arith.constant 2 : index
    %c24_456 = arith.constant 24 : index
    %799 = vector.load %arg75[%c2_455, %c24_456] : memref<9x32xf32, #tpu.memory_space<vmem>>, vector<1x8xf32>
    tpu.vector_store %arg75[%c2_455, %c24_456], %798 {strides = array<i32>} : memref<9x32xf32, #tpu.memory_space<vmem>>, vector<1x8xf32>,
    %c34 = arith.constant 34 : index
    %c0_457 = arith.constant 0 : index
    %800 = vector.load %arg74[%c34, %c0_457] : memref<40x8xf32, #tpu.memory_space<vmem>>, vector<1x8xf32>
    %c0_458 = arith.constant 0 : index
    %c16_459 = arith.constant 16 : index
    %801 = vector.load %arg76[%c0_458, %c16_459] : memref<1x64xf32, #tpu.memory_space<vmem>>, vector<1x8xf32>
    tpu.vector_store %arg76[%c0_458, %c16_459], %800 {strides = array<i32>} : memref<1x64xf32, #tpu.memory_space<vmem>>, vector<1x8xf32>,
    %c12_460 = arith.constant 12 : index
    %c0_461 = arith.constant 0 : index
    %802 = vector.load %arg74[%c12_460, %c0_461] : memref<40x8xf32, #tpu.memory_space<vmem>>, vector<1x8xf32>
    %c3_462 = arith.constant 3 : index
    %c0_463 = arith.constant 0 : index
    %803 = vector.load %arg75[%c3_462, %c0_463] : memref<9x32xf32, #tpu.memory_space<vmem>>, vector<1x8xf32>
    tpu.vector_store %arg75[%c3_462, %c0_463], %802 {strides = array<i32>} : memref<9x32xf32, #tpu.memory_space<vmem>>, vector<1x8xf32>,
    %c13 = arith.constant 13 : index
    %c0_464 = arith.constant 0 : index
    %804 = vector.load %arg74[%c13, %c0_464] : memref<40x8xf32, #tpu.memory_space<vmem>>, vector<1x8xf32>
    %c3_465 = arith.constant 3 : index
    %c8_466 = arith.constant 8 : index
    %805 = vector.load %arg75[%c3_465, %c8_466] : memref<9x32xf32, #tpu.memory_space<vmem>>, vector<1x8xf32>
    tpu.vector_store %arg75[%c3_465, %c8_466], %804 {strides = array<i32>} : memref<9x32xf32, #tpu.memory_space<vmem>>, vector<1x8xf32>,
    %c14 = arith.constant 14 : index
    %c0_467 = arith.constant 0 : index
    %806 = vector.load %arg74[%c14, %c0_467] : memref<40x8xf32, #tpu.memory_space<vmem>>, vector<1x8xf32>
    %c3_468 = arith.constant 3 : index
    %c16_469 = arith.constant 16 : index
    %807 = vector.load %arg75[%c3_468, %c16_469] : memref<9x32xf32, #tpu.memory_space<vmem>>, vector<1x8xf32>
    tpu.vector_store %arg75[%c3_468, %c16_469], %806 {strides = array<i32>} : memref<9x32xf32, #tpu.memory_space<vmem>>, vector<1x8xf32>,
    %c15 = arith.constant 15 : index
    %c0_470 = arith.constant 0 : index
    %808 = vector.load %arg74[%c15, %c0_470] : memref<40x8xf32, #tpu.memory_space<vmem>>, vector<1x8xf32>
    %c3_471 = arith.constant 3 : index
    %c24_472 = arith.constant 24 : index
    %809 = vector.load %arg75[%c3_471, %c24_472] : memref<9x32xf32, #tpu.memory_space<vmem>>, vector<1x8xf32>
    tpu.vector_store %arg75[%c3_471, %c24_472], %808 {strides = array<i32>} : memref<9x32xf32, #tpu.memory_space<vmem>>, vector<1x8xf32>,
    %c35 = arith.constant 35 : index
    %c0_473 = arith.constant 0 : index
    %810 = vector.load %arg74[%c35, %c0_473] : memref<40x8xf32, #tpu.memory_space<vmem>>, vector<1x8xf32>
    %c0_474 = arith.constant 0 : index
    %c24_475 = arith.constant 24 : index
    %811 = vector.load %arg76[%c0_474, %c24_475] : memref<1x64xf32, #tpu.memory_space<vmem>>, vector<1x8xf32>
    tpu.vector_store %arg76[%c0_474, %c24_475], %810 {strides = array<i32>} : memref<1x64xf32, #tpu.memory_space<vmem>>, vector<1x8xf32>,
    %c16_476 = arith.constant 16 : index
    %c0_477 = arith.constant 0 : index
    %812 = vector.load %arg74[%c16_476, %c0_477] : memref<40x8xf32, #tpu.memory_space<vmem>>, vector<1x8xf32>
    %c4_478 = arith.constant 4 : index
    %c0_479 = arith.constant 0 : index
    %813 = vector.load %arg75[%c4_478, %c0_479] : memref<9x32xf32, #tpu.memory_space<vmem>>, vector<1x8xf32>
    tpu.vector_store %arg75[%c4_478, %c0_479], %812 {strides = array<i32>} : memref<9x32xf32, #tpu.memory_space<vmem>>, vector<1x8xf32>,
    %c17 = arith.constant 17 : index
    %c0_480 = arith.constant 0 : index
    %814 = vector.load %arg74[%c17, %c0_480] : memref<40x8xf32, #tpu.memory_space<vmem>>, vector<1x8xf32>
    %c4_481 = arith.constant 4 : index
    %c8_482 = arith.constant 8 : index
    %815 = vector.load %arg75[%c4_481, %c8_482] : memref<9x32xf32, #tpu.memory_space<vmem>>, vector<1x8xf32>
    tpu.vector_store %arg75[%c4_481, %c8_482], %814 {strides = array<i32>} : memref<9x32xf32, #tpu.memory_space<vmem>>, vector<1x8xf32>,
    %c18 = arith.constant 18 : index
    %c0_483 = arith.constant 0 : index
    %816 = vector.load %arg74[%c18, %c0_483] : memref<40x8xf32, #tpu.memory_space<vmem>>, vector<1x8xf32>
    %c4_484 = arith.constant 4 : index
    %c16_485 = arith.constant 16 : index
    %817 = vector.load %arg75[%c4_484, %c16_485] : memref<9x32xf32, #tpu.memory_space<vmem>>, vector<1x8xf32>
    tpu.vector_store %arg75[%c4_484, %c16_485], %816 {strides = array<i32>} : memref<9x32xf32, #tpu.memory_space<vmem>>, vector<1x8xf32>,
    %c19 = arith.constant 19 : index
    %c0_486 = arith.constant 0 : index
    %818 = vector.load %arg74[%c19, %c0_486] : memref<40x8xf32, #tpu.memory_space<vmem>>, vector<1x8xf32>
    %c4_487 = arith.constant 4 : index
    %c24_488 = arith.constant 24 : index
    %819 = vector.load %arg75[%c4_487, %c24_488] : memref<9x32xf32, #tpu.memory_space<vmem>>, vector<1x8xf32>
    tpu.vector_store %arg75[%c4_487, %c24_488], %818 {strides = array<i32>} : memref<9x32xf32, #tpu.memory_space<vmem>>, vector<1x8xf32>,
    %c36 = arith.constant 36 : index
    %c0_489 = arith.constant 0 : index
    %820 = vector.load %arg74[%c36, %c0_489] : memref<40x8xf32, #tpu.memory_space<vmem>>, vector<1x8xf32>
    %c0_490 = arith.constant 0 : index
    %c32_491 = arith.constant 32 : index
    %821 = vector.load %arg76[%c0_490, %c32_491] : memref<1x64xf32, #tpu.memory_space<vmem>>, vector<1x8xf32>
    tpu.vector_store %arg76[%c0_490, %c32_491], %820 {strides = array<i32>} : memref<1x64xf32, #tpu.memory_space<vmem>>, vector<1x8xf32>,
    %c20_492 = arith.constant 20 : index
    %c0_493 = arith.constant 0 : index
    %822 = vector.load %arg74[%c20_492, %c0_493] : memref<40x8xf32, #tpu.memory_space<vmem>>, vector<1x8xf32>
    %c5_494 = arith.constant 5 : index
    %c0_495 = arith.constant 0 : index
    %823 = vector.load %arg75[%c5_494, %c0_495] : memref<9x32xf32, #tpu.memory_space<vmem>>, vector<1x8xf32>
    tpu.vector_store %arg75[%c5_494, %c0_495], %822 {strides = array<i32>} : memref<9x32xf32, #tpu.memory_space<vmem>>, vector<1x8xf32>,
    %c21 = arith.constant 21 : index
    %c0_496 = arith.constant 0 : index
    %824 = vector.load %arg74[%c21, %c0_496] : memref<40x8xf32, #tpu.memory_space<vmem>>, vector<1x8xf32>
    %c5_497 = arith.constant 5 : index
    %c8_498 = arith.constant 8 : index
    %825 = vector.load %arg75[%c5_497, %c8_498] : memref<9x32xf32, #tpu.memory_space<vmem>>, vector<1x8xf32>
    tpu.vector_store %arg75[%c5_497, %c8_498], %824 {strides = array<i32>} : memref<9x32xf32, #tpu.memory_space<vmem>>, vector<1x8xf32>,
    %c22 = arith.constant 22 : index
    %c0_499 = arith.constant 0 : index
    %826 = vector.load %arg74[%c22, %c0_499] : memref<40x8xf32, #tpu.memory_space<vmem>>, vector<1x8xf32>
    %c5_500 = arith.constant 5 : index
    %c16_501 = arith.constant 16 : index
    %827 = vector.load %arg75[%c5_500, %c16_501] : memref<9x32xf32, #tpu.memory_space<vmem>>, vector<1x8xf32>
    tpu.vector_store %arg75[%c5_500, %c16_501], %826 {strides = array<i32>} : memref<9x32xf32, #tpu.memory_space<vmem>>, vector<1x8xf32>,
    %c23 = arith.constant 23 : index
    %c0_502 = arith.constant 0 : index
    %828 = vector.load %arg74[%c23, %c0_502] : memref<40x8xf32, #tpu.memory_space<vmem>>, vector<1x8xf32>
    %c5_503 = arith.constant 5 : index
    %c24_504 = arith.constant 24 : index
    %829 = vector.load %arg75[%c5_503, %c24_504] : memref<9x32xf32, #tpu.memory_space<vmem>>, vector<1x8xf32>
    tpu.vector_store %arg75[%c5_503, %c24_504], %828 {strides = array<i32>} : memref<9x32xf32, #tpu.memory_space<vmem>>, vector<1x8xf32>,
    %c37 = arith.constant 37 : index
    %c0_505 = arith.constant 0 : index
    %830 = vector.load %arg74[%c37, %c0_505] : memref<40x8xf32, #tpu.memory_space<vmem>>, vector<1x8xf32>
    %c0_506 = arith.constant 0 : index
    %c40 = arith.constant 40 : index
    %831 = vector.load %arg76[%c0_506, %c40] : memref<1x64xf32, #tpu.memory_space<vmem>>, vector<1x8xf32>
    tpu.vector_store %arg76[%c0_506, %c40], %830 {strides = array<i32>} : memref<1x64xf32, #tpu.memory_space<vmem>>, vector<1x8xf32>,
    %c24_507 = arith.constant 24 : index
    %c0_508 = arith.constant 0 : index
    %832 = vector.load %arg74[%c24_507, %c0_508] : memref<40x8xf32, #tpu.memory_space<vmem>>, vector<1x8xf32>
    %c6_509 = arith.constant 6 : index
    %c0_510 = arith.constant 0 : index
    %833 = vector.load %arg75[%c6_509, %c0_510] : memref<9x32xf32, #tpu.memory_space<vmem>>, vector<1x8xf32>
    tpu.vector_store %arg75[%c6_509, %c0_510], %832 {strides = array<i32>} : memref<9x32xf32, #tpu.memory_space<vmem>>, vector<1x8xf32>,
    %c25 = arith.constant 25 : index
    %c0_511 = arith.constant 0 : index
    %834 = vector.load %arg74[%c25, %c0_511] : memref<40x8xf32, #tpu.memory_space<vmem>>, vector<1x8xf32>
    %c6_512 = arith.constant 6 : index
    %c8_513 = arith.constant 8 : index
    %835 = vector.load %arg75[%c6_512, %c8_513] : memref<9x32xf32, #tpu.memory_space<vmem>>, vector<1x8xf32>
    tpu.vector_store %arg75[%c6_512, %c8_513], %834 {strides = array<i32>} : memref<9x32xf32, #tpu.memory_space<vmem>>, vector<1x8xf32>,
    %c26 = arith.constant 26 : index
    %c0_514 = arith.constant 0 : index
    %836 = vector.load %arg74[%c26, %c0_514] : memref<40x8xf32, #tpu.memory_space<vmem>>, vector<1x8xf32>
    %c6_515 = arith.constant 6 : index
    %c16_516 = arith.constant 16 : index
    %837 = vector.load %arg75[%c6_515, %c16_516] : memref<9x32xf32, #tpu.memory_space<vmem>>, vector<1x8xf32>
    tpu.vector_store %arg75[%c6_515, %c16_516], %836 {strides = array<i32>} : memref<9x32xf32, #tpu.memory_space<vmem>>, vector<1x8xf32>,
    %c27 = arith.constant 27 : index
    %c0_517 = arith.constant 0 : index
    %838 = vector.load %arg74[%c27, %c0_517] : memref<40x8xf32, #tpu.memory_space<vmem>>, vector<1x8xf32>
    %c6_518 = arith.constant 6 : index
    %c24_519 = arith.constant 24 : index
    %839 = vector.load %arg75[%c6_518, %c24_519] : memref<9x32xf32, #tpu.memory_space<vmem>>, vector<1x8xf32>
    tpu.vector_store %arg75[%c6_518, %c24_519], %838 {strides = array<i32>} : memref<9x32xf32, #tpu.memory_space<vmem>>, vector<1x8xf32>,
    %c38 = arith.constant 38 : index
    %c0_520 = arith.constant 0 : index
    %840 = vector.load %arg74[%c38, %c0_520] : memref<40x8xf32, #tpu.memory_space<vmem>>, vector<1x8xf32>
    %c0_521 = arith.constant 0 : index
    %c48 = arith.constant 48 : index
    %841 = vector.load %arg76[%c0_521, %c48] : memref<1x64xf32, #tpu.memory_space<vmem>>, vector<1x8xf32>
    tpu.vector_store %arg76[%c0_521, %c48], %840 {strides = array<i32>} : memref<1x64xf32, #tpu.memory_space<vmem>>, vector<1x8xf32>,
    %c28_522 = arith.constant 28 : index
    %c0_523 = arith.constant 0 : index
    %842 = vector.load %arg74[%c28_522, %c0_523] : memref<40x8xf32, #tpu.memory_space<vmem>>, vector<1x8xf32>
    %c7_524 = arith.constant 7 : index
    %c0_525 = arith.constant 0 : index
    %843 = vector.load %arg75[%c7_524, %c0_525] : memref<9x32xf32, #tpu.memory_space<vmem>>, vector<1x8xf32>
    tpu.vector_store %arg75[%c7_524, %c0_525], %842 {strides = array<i32>} : memref<9x32xf32, #tpu.memory_space<vmem>>, vector<1x8xf32>,
    %c29 = arith.constant 29 : index
    %c0_526 = arith.constant 0 : index
    %844 = vector.load %arg74[%c29, %c0_526] : memref<40x8xf32, #tpu.memory_space<vmem>>, vector<1x8xf32>
    %c7_527 = arith.constant 7 : index
    %c8_528 = arith.constant 8 : index
    %845 = vector.load %arg75[%c7_527, %c8_528] : memref<9x32xf32, #tpu.memory_space<vmem>>, vector<1x8xf32>
    tpu.vector_store %arg75[%c7_527, %c8_528], %844 {strides = array<i32>} : memref<9x32xf32, #tpu.memory_space<vmem>>, vector<1x8xf32>,
    %c30 = arith.constant 30 : index
    %c0_529 = arith.constant 0 : index
    %846 = vector.load %arg74[%c30, %c0_529] : memref<40x8xf32, #tpu.memory_space<vmem>>, vector<1x8xf32>
    %c7_530 = arith.constant 7 : index
    %c16_531 = arith.constant 16 : index
    %847 = vector.load %arg75[%c7_530, %c16_531] : memref<9x32xf32, #tpu.memory_space<vmem>>, vector<1x8xf32>
    tpu.vector_store %arg75[%c7_530, %c16_531], %846 {strides = array<i32>} : memref<9x32xf32, #tpu.memory_space<vmem>>, vector<1x8xf32>,
    %c31 = arith.constant 31 : index
    %c0_532 = arith.constant 0 : index
    %848 = vector.load %arg74[%c31, %c0_532] : memref<40x8xf32, #tpu.memory_space<vmem>>, vector<1x8xf32>
    %c7_533 = arith.constant 7 : index
    %c24_534 = arith.constant 24 : index
    %849 = vector.load %arg75[%c7_533, %c24_534] : memref<9x32xf32, #tpu.memory_space<vmem>>, vector<1x8xf32>
    tpu.vector_store %arg75[%c7_533, %c24_534], %848 {strides = array<i32>} : memref<9x32xf32, #tpu.memory_space<vmem>>, vector<1x8xf32>,
    %c39 = arith.constant 39 : index
    %c0_535 = arith.constant 0 : index
    %850 = vector.load %arg74[%c39, %c0_535] : memref<40x8xf32, #tpu.memory_space<vmem>>, vector<1x8xf32>
    %c0_536 = arith.constant 0 : index
    %c56 = arith.constant 56 : index
    %851 = vector.load %arg76[%c0_536, %c56] : memref<1x64xf32, #tpu.memory_space<vmem>>, vector<1x8xf32>
    tpu.vector_store %arg76[%c0_536, %c56], %850 {strides = array<i32>} : memref<1x64xf32, #tpu.memory_space<vmem>>, vector<1x8xf32>,
    %c0_537 = arith.constant 0 : index
    %c0_538 = arith.constant 0 : index
    %852 = vector.load %arg76[%c0_537, %c0_538] : memref<1x64xf32, #tpu.memory_space<vmem>>, vector<1x64xf32>
    %c0_539 = arith.constant 0 : index
    %c0_540 = arith.constant 0 : index
    %853 = vector.load %arg47[%c0_539, %c0_540] : memref<64x32xf32, #tpu.memory_space<vmem>>, vector<64x32xf32>
    %cst_541 = arith.constant dense<0.000000e+00> : vector<1x32xf32>
    %854 = tpu.matmul %852, %853, %cst_541 {dimension_numbers = #tpu.dot_dimension_numbers<[1], [0], [0], [1], [0, 0, 1, 1], [], []>} : vector<1x64xf32>, vector<64x32xf32>, vector<1x32xf32> -> vector<1x32xf32>
    %c0_542 = arith.constant 0 : index
    %c0_543 = arith.constant 0 : index
    %855 = vector.load %arg48[%c0_542, %c0_543] : memref<1x32xf32, #tpu.memory_space<vmem>>, vector<1x32xf32>
    %856 = arith.addf %854, %855 : vector<1x32xf32>
    %c8_544 = arith.constant 8 : index
    %c0_545 = arith.constant 0 : index
    %857 = vector.load %arg75[%c8_544, %c0_545] : memref<9x32xf32, #tpu.memory_space<vmem>>, vector<1x32xf32>
    tpu.vector_store %arg75[%c8_544, %c0_545], %856 {strides = array<i32>} : memref<9x32xf32, #tpu.memory_space<vmem>>, vector<1x32xf32>,
    %c0_546 = arith.constant 0 : index
    %c0_547 = arith.constant 0 : index
    %858 = vector.load %arg75[%c0_546, %c0_547] : memref<9x32xf32, #tpu.memory_space<vmem>>, vector<9x32xf32>
    %c0_548 = arith.constant 0 : index
    %c0_549 = arith.constant 0 : index
    %859 = vector.load %arg49[%c0_548, %c0_549] : memref<9x32xf32, #tpu.memory_space<vmem>>, vector<9x32xf32>
    %860 = arith.addf %858, %859 : vector<9x32xf32>
    %c0_550 = arith.constant 0 : index
    %c0_551 = arith.constant 0 : index
    %c0_552 = arith.constant 0 : index
    %861 = vector.load %arg52[%c0_550, %c0_551, %c0_552] : memref<2x1x32xf32, #tpu.memory_space<vmem>>, vector<1x1x32xf32>
    %862 = vector.shape_cast %861 : vector<1x1x32xf32> to vector<1x32xf32>
    %c0_553 = arith.constant 0 : index
    %c0_554 = arith.constant 0 : index
    %c0_555 = arith.constant 0 : index
    %863 = vector.load %arg53[%c0_553, %c0_554, %c0_555] : memref<2x1x32xf32, #tpu.memory_space<vmem>>, vector<1x1x32xf32>
    %864 = vector.shape_cast %863 : vector<1x1x32xf32> to vector<1x32xf32>
    %cst_556 = arith.constant dense<0.000000e+00> : vector<9xf32>
    %865 = vector.multi_reduction <add>, %860, %cst_556 [1] : vector<9x32xf32> to vector<9xf32>
    %866 = vector.shape_cast %865 : vector<9xf32> to vector<9x1xf32>
    %cst_557 = arith.constant 3.200000e+01 : f32
    %867 = vector.broadcast %cst_557 : f32 to vector<9x1xf32>
    %868 = arith.divf %866, %867 : vector<9x1xf32>
    %869 = vector.broadcast %868 : vector<9x1xf32> to vector<9x32xf32>
    %870 = arith.subf %860, %869 : vector<9x32xf32>
    %871 = arith.mulf %870, %870 : vector<9x32xf32>
    %cst_558 = arith.constant dense<0.000000e+00> : vector<9xf32>
    %872 = vector.multi_reduction <add>, %871, %cst_558 [1] : vector<9x32xf32> to vector<9xf32>
    %873 = vector.shape_cast %872 : vector<9xf32> to vector<9x1xf32>
    %cst_559 = arith.constant 3.200000e+01 : f32
    %874 = vector.broadcast %cst_559 : f32 to vector<9x1xf32>
    %875 = arith.divf %873, %874 : vector<9x1xf32>
    %cst_560 = arith.constant 9.99999997E-7 : f32
    %876 = vector.broadcast %cst_560 : f32 to vector<9x1xf32>
    %877 = arith.addf %875, %876 : vector<9x1xf32>
    %878 = math.rsqrt %877 : vector<9x1xf32>
    %879 = vector.broadcast %878 : vector<9x1xf32> to vector<9x32xf32>
    %880 = arith.mulf %870, %879 : vector<9x32xf32>
    %881 = vector.broadcast %862 : vector<1x32xf32> to vector<9x32xf32>
    %882 = arith.mulf %880, %881 : vector<9x32xf32>
    %883 = vector.broadcast %864 : vector<1x32xf32> to vector<9x32xf32>
    %884 = arith.addf %882, %883 : vector<9x32xf32>
    %c0_561 = arith.constant 0 : index
    %c0_562 = arith.constant 0 : index
    %c0_563 = arith.constant 0 : index
    %c0_564 = arith.constant 0 : index
    %885 = vector.load %arg54[%c0_561, %c0_562, %c0_563, %c0_564] : memref<2x2x32x16xf32, #tpu.memory_space<vmem>>, vector<1x2x32x16xf32>
    %886 = vector.shape_cast %885 : vector<1x2x32x16xf32> to vector<2x32x16xf32>
    %c0_565 = arith.constant 0 : index
    %c0_566 = arith.constant 0 : index
    %c0_567 = arith.constant 0 : index
    %c0_568 = arith.constant 0 : index
    %887 = vector.load %arg55[%c0_565, %c0_566, %c0_567, %c0_568] : memref<2x2x1x16xf32, #tpu.memory_space<vmem>>, vector<1x2x1x16xf32>
    %888 = vector.shape_cast %887 : vector<1x2x1x16xf32> to vector<2x1x16xf32>
    %c0_569 = arith.constant 0 : index
    %c0_570 = arith.constant 0 : index
    %c0_571 = arith.constant 0 : index
    %c0_572 = arith.constant 0 : index
    %889 = vector.load %arg56[%c0_569, %c0_570, %c0_571, %c0_572] : memref<2x2x32x16xf32, #tpu.memory_space<vmem>>, vector<1x2x32x16xf32>
    %890 = vector.shape_cast %889 : vector<1x2x32x16xf32> to vector<2x32x16xf32>
    %c0_573 = arith.constant 0 : index
    %c0_574 = arith.constant 0 : index
    %c0_575 = arith.constant 0 : index
    %c0_576 = arith.constant 0 : index
    %891 = vector.load %arg57[%c0_573, %c0_574, %c0_575, %c0_576] : memref<2x2x1x16xf32, #tpu.memory_space<vmem>>, vector<1x2x1x16xf32>
    %892 = vector.shape_cast %891 : vector<1x2x1x16xf32> to vector<2x1x16xf32>
    %c0_577 = arith.constant 0 : index
    %c0_578 = arith.constant 0 : index
    %c0_579 = arith.constant 0 : index
    %c0_580 = arith.constant 0 : index
    %893 = vector.load %arg58[%c0_577, %c0_578, %c0_579, %c0_580] : memref<2x2x32x16xf32, #tpu.memory_space<vmem>>, vector<1x2x32x16xf32>
    %894 = vector.shape_cast %893 : vector<1x2x32x16xf32> to vector<2x32x16xf32>
    %c0_581 = arith.constant 0 : index
    %c0_582 = arith.constant 0 : index
    %c0_583 = arith.constant 0 : index
    %c0_584 = arith.constant 0 : index
    %895 = vector.load %arg59[%c0_581, %c0_582, %c0_583, %c0_584] : memref<2x2x1x16xf32, #tpu.memory_space<vmem>>, vector<1x2x1x16xf32>
    %896 = vector.shape_cast %895 : vector<1x2x1x16xf32> to vector<2x1x16xf32>
    %c0_585 = arith.constant 0 : index
    %c0_586 = arith.constant 0 : index
    %c0_587 = arith.constant 0 : index
    %c0_588 = arith.constant 0 : index
    %897 = vector.load %arg60[%c0_585, %c0_586, %c0_587, %c0_588] : memref<2x2x16x32xf32, #tpu.memory_space<vmem>>, vector<1x2x16x32xf32>
    %898 = vector.shape_cast %897 : vector<1x2x16x32xf32> to vector<2x16x32xf32>
    %c0_589 = arith.constant 0 : index
    %c0_590 = arith.constant 0 : index
    %c0_591 = arith.constant 0 : index
    %899 = vector.load %arg61[%c0_589, %c0_590, %c0_591] : memref<2x1x32xf32, #tpu.memory_space<vmem>>, vector<1x1x32xf32>
    %900 = vector.shape_cast %899 : vector<1x1x32xf32> to vector<1x32xf32>
    %901 = vector.extract_strided_slice %886 {offsets = [0, 0, 0], sizes = [1, 32, 16], strides = [1, 1, 1]} : vector<2x32x16xf32> to vector<1x32x16xf32>
    %902 = vector.shape_cast %901 : vector<1x32x16xf32> to vector<32x16xf32>
    %cst_592 = arith.constant dense<0.000000e+00> : vector<9x16xf32>
    %903 = tpu.matmul %884, %902, %cst_592 {dimension_numbers = #tpu.dot_dimension_numbers<[1], [0], [0], [1], [0, 0, 1, 1], [], []>} : vector<9x32xf32>, vector<32x16xf32>, vector<9x16xf32> -> vector<9x16xf32>
    %904 = vector.extract_strided_slice %888 {offsets = [0, 0, 0], sizes = [1, 1, 16], strides = [1, 1, 1]} : vector<2x1x16xf32> to vector<1x1x16xf32>
    %905 = vector.shape_cast %904 : vector<1x1x16xf32> to vector<1x16xf32>
    %906 = vector.broadcast %905 : vector<1x16xf32> to vector<9x16xf32>
    %907 = arith.addf %903, %906 : vector<9x16xf32>
    %908 = vector.extract_strided_slice %890 {offsets = [0, 0, 0], sizes = [1, 32, 16], strides = [1, 1, 1]} : vector<2x32x16xf32> to vector<1x32x16xf32>
    %909 = vector.shape_cast %908 : vector<1x32x16xf32> to vector<32x16xf32>
    %cst_593 = arith.constant dense<0.000000e+00> : vector<7x16xf32>
    %910 = tpu.matmul %35, %909, %cst_593 {dimension_numbers = #tpu.dot_dimension_numbers<[1], [0], [0], [1], [0, 0, 1, 1], [], []>} : vector<7x32xf32>, vector<32x16xf32>, vector<7x16xf32> -> vector<7x16xf32>
    %911 = vector.extract_strided_slice %892 {offsets = [0, 0, 0], sizes = [1, 1, 16], strides = [1, 1, 1]} : vector<2x1x16xf32> to vector<1x1x16xf32>
    %912 = vector.shape_cast %911 : vector<1x1x16xf32> to vector<1x16xf32>
    %913 = vector.broadcast %912 : vector<1x16xf32> to vector<7x16xf32>
    %914 = arith.addf %910, %913 : vector<7x16xf32>
    %915 = vector.extract_strided_slice %894 {offsets = [0, 0, 0], sizes = [1, 32, 16], strides = [1, 1, 1]} : vector<2x32x16xf32> to vector<1x32x16xf32>
    %916 = vector.shape_cast %915 : vector<1x32x16xf32> to vector<32x16xf32>
    %cst_594 = arith.constant dense<0.000000e+00> : vector<7x16xf32>
    %917 = tpu.matmul %35, %916, %cst_594 {dimension_numbers = #tpu.dot_dimension_numbers<[1], [0], [0], [1], [0, 0, 1, 1], [], []>} : vector<7x32xf32>, vector<32x16xf32>, vector<7x16xf32> -> vector<7x16xf32>
    %918 = vector.extract_strided_slice %896 {offsets = [0, 0, 0], sizes = [1, 1, 16], strides = [1, 1, 1]} : vector<2x1x16xf32> to vector<1x1x16xf32>
    %919 = vector.shape_cast %918 : vector<1x1x16xf32> to vector<1x16xf32>
    %920 = vector.broadcast %919 : vector<1x16xf32> to vector<7x16xf32>
    %921 = arith.addf %917, %920 : vector<7x16xf32>
    %cst_595 = arith.constant dense<0.000000e+00> : vector<9x7xf32>
    %922 = tpu.matmul %907, %914, %cst_595 {dimension_numbers = #tpu.dot_dimension_numbers<[1], [1], [0], [0], [0, 0, 1, 0], [], []>} : vector<9x16xf32>, vector<7x16xf32>, vector<9x7xf32> -> vector<9x7xf32>
    %cst_596 = arith.constant dense<0xFF800000> : vector<9xf32>
    %923 = vector.multi_reduction <maximumf>, %922, %cst_596 [1] : vector<9x7xf32> to vector<9xf32>
    %924 = vector.shape_cast %923 : vector<9xf32> to vector<9x1xf32>
    %925 = vector.broadcast %924 : vector<9x1xf32> to vector<9x7xf32>
    %926 = arith.subf %922, %925 : vector<9x7xf32>
    %927 = math.exp %926 : vector<9x7xf32>
    %cst_597 = arith.constant dense<0.000000e+00> : vector<9xf32>
    %928 = vector.multi_reduction <add>, %927, %cst_597 [1] : vector<9x7xf32> to vector<9xf32>
    %929 = vector.shape_cast %928 : vector<9xf32> to vector<9x1xf32>
    %930 = vector.broadcast %929 : vector<9x1xf32> to vector<9x7xf32>
    %931 = arith.divf %927, %930 : vector<9x7xf32>
    %cst_598 = arith.constant dense<0.000000e+00> : vector<9x16xf32>
    %932 = tpu.matmul %931, %921, %cst_598 {dimension_numbers = #tpu.dot_dimension_numbers<[1], [0], [0], [1], [0, 0, 1, 1], [], []>} : vector<9x7xf32>, vector<7x16xf32>, vector<9x16xf32> -> vector<9x16xf32>
    %933 = vector.extract_strided_slice %898 {offsets = [0, 0, 0], sizes = [1, 16, 32], strides = [1, 1, 1]} : vector<2x16x32xf32> to vector<1x16x32xf32>
    %934 = vector.shape_cast %933 : vector<1x16x32xf32> to vector<16x32xf32>
    %cst_599 = arith.constant dense<0.000000e+00> : vector<9x32xf32>
    %935 = tpu.matmul %932, %934, %cst_599 {dimension_numbers = #tpu.dot_dimension_numbers<[1], [0], [0], [1], [0, 0, 1, 1], [], []>} : vector<9x16xf32>, vector<16x32xf32>, vector<9x32xf32> -> vector<9x32xf32>
    %936 = vector.extract_strided_slice %886 {offsets = [1, 0, 0], sizes = [1, 32, 16], strides = [1, 1, 1]} : vector<2x32x16xf32> to vector<1x32x16xf32>
    %937 = vector.shape_cast %936 : vector<1x32x16xf32> to vector<32x16xf32>
    %cst_600 = arith.constant dense<0.000000e+00> : vector<9x16xf32>
    %938 = tpu.matmul %884, %937, %cst_600 {dimension_numbers = #tpu.dot_dimension_numbers<[1], [0], [0], [1], [0, 0, 1, 1], [], []>} : vector<9x32xf32>, vector<32x16xf32>, vector<9x16xf32> -> vector<9x16xf32>
    %939 = vector.extract_strided_slice %888 {offsets = [1, 0, 0], sizes = [1, 1, 16], strides = [1, 1, 1]} : vector<2x1x16xf32> to vector<1x1x16xf32>
    %940 = vector.shape_cast %939 : vector<1x1x16xf32> to vector<1x16xf32>
    %941 = vector.broadcast %940 : vector<1x16xf32> to vector<9x16xf32>
    %942 = arith.addf %938, %941 : vector<9x16xf32>
    %943 = vector.extract_strided_slice %890 {offsets = [1, 0, 0], sizes = [1, 32, 16], strides = [1, 1, 1]} : vector<2x32x16xf32> to vector<1x32x16xf32>
    %944 = vector.shape_cast %943 : vector<1x32x16xf32> to vector<32x16xf32>
    %cst_601 = arith.constant dense<0.000000e+00> : vector<7x16xf32>
    %945 = tpu.matmul %35, %944, %cst_601 {dimension_numbers = #tpu.dot_dimension_numbers<[1], [0], [0], [1], [0, 0, 1, 1], [], []>} : vector<7x32xf32>, vector<32x16xf32>, vector<7x16xf32> -> vector<7x16xf32>
    %946 = vector.extract_strided_slice %892 {offsets = [1, 0, 0], sizes = [1, 1, 16], strides = [1, 1, 1]} : vector<2x1x16xf32> to vector<1x1x16xf32>
    %947 = vector.shape_cast %946 : vector<1x1x16xf32> to vector<1x16xf32>
    %948 = vector.broadcast %947 : vector<1x16xf32> to vector<7x16xf32>
    %949 = arith.addf %945, %948 : vector<7x16xf32>
    %950 = vector.extract_strided_slice %894 {offsets = [1, 0, 0], sizes = [1, 32, 16], strides = [1, 1, 1]} : vector<2x32x16xf32> to vector<1x32x16xf32>
    %951 = vector.shape_cast %950 : vector<1x32x16xf32> to vector<32x16xf32>
    %cst_602 = arith.constant dense<0.000000e+00> : vector<7x16xf32>
    %952 = tpu.matmul %35, %951, %cst_602 {dimension_numbers = #tpu.dot_dimension_numbers<[1], [0], [0], [1], [0, 0, 1, 1], [], []>} : vector<7x32xf32>, vector<32x16xf32>, vector<7x16xf32> -> vector<7x16xf32>
    %953 = vector.extract_strided_slice %896 {offsets = [1, 0, 0], sizes = [1, 1, 16], strides = [1, 1, 1]} : vector<2x1x16xf32> to vector<1x1x16xf32>
    %954 = vector.shape_cast %953 : vector<1x1x16xf32> to vector<1x16xf32>
    %955 = vector.broadcast %954 : vector<1x16xf32> to vector<7x16xf32>
    %956 = arith.addf %952, %955 : vector<7x16xf32>
    %cst_603 = arith.constant dense<0.000000e+00> : vector<9x7xf32>
    %957 = tpu.matmul %942, %949, %cst_603 {dimension_numbers = #tpu.dot_dimension_numbers<[1], [1], [0], [0], [0, 0, 1, 0], [], []>} : vector<9x16xf32>, vector<7x16xf32>, vector<9x7xf32> -> vector<9x7xf32>
    %cst_604 = arith.constant dense<0xFF800000> : vector<9xf32>
    %958 = vector.multi_reduction <maximumf>, %957, %cst_604 [1] : vector<9x7xf32> to vector<9xf32>
    %959 = vector.shape_cast %958 : vector<9xf32> to vector<9x1xf32>
    %960 = vector.broadcast %959 : vector<9x1xf32> to vector<9x7xf32>
    %961 = arith.subf %957, %960 : vector<9x7xf32>
    %962 = math.exp %961 : vector<9x7xf32>
    %cst_605 = arith.constant dense<0.000000e+00> : vector<9xf32>
    %963 = vector.multi_reduction <add>, %962, %cst_605 [1] : vector<9x7xf32> to vector<9xf32>
    %964 = vector.shape_cast %963 : vector<9xf32> to vector<9x1xf32>
    %965 = vector.broadcast %964 : vector<9x1xf32> to vector<9x7xf32>
    %966 = arith.divf %962, %965 : vector<9x7xf32>
    %cst_606 = arith.constant dense<0.000000e+00> : vector<9x16xf32>
    %967 = tpu.matmul %966, %956, %cst_606 {dimension_numbers = #tpu.dot_dimension_numbers<[1], [0], [0], [1], [0, 0, 1, 1], [], []>} : vector<9x7xf32>, vector<7x16xf32>, vector<9x16xf32> -> vector<9x16xf32>
    %968 = vector.extract_strided_slice %898 {offsets = [1, 0, 0], sizes = [1, 16, 32], strides = [1, 1, 1]} : vector<2x16x32xf32> to vector<1x16x32xf32>
    %969 = vector.shape_cast %968 : vector<1x16x32xf32> to vector<16x32xf32>
    %cst_607 = arith.constant dense<0.000000e+00> : vector<9x32xf32>
    %970 = tpu.matmul %967, %969, %cst_607 {dimension_numbers = #tpu.dot_dimension_numbers<[1], [0], [0], [1], [0, 0, 1, 1], [], []>} : vector<9x16xf32>, vector<16x32xf32>, vector<9x32xf32> -> vector<9x32xf32>
    %971 = arith.addf %935, %970 : vector<9x32xf32>
    %972 = vector.broadcast %900 : vector<1x32xf32> to vector<9x32xf32>
    %973 = arith.addf %971, %972 : vector<9x32xf32>
    %974 = arith.addf %860, %973 : vector<9x32xf32>
    %c0_608 = arith.constant 0 : index
    %c0_609 = arith.constant 0 : index
    %c0_610 = arith.constant 0 : index
    %975 = vector.load %arg62[%c0_608, %c0_609, %c0_610] : memref<2x1x32xf32, #tpu.memory_space<vmem>>, vector<1x1x32xf32>
    %976 = vector.shape_cast %975 : vector<1x1x32xf32> to vector<1x32xf32>
    %c0_611 = arith.constant 0 : index
    %c0_612 = arith.constant 0 : index
    %c0_613 = arith.constant 0 : index
    %977 = vector.load %arg63[%c0_611, %c0_612, %c0_613] : memref<2x1x32xf32, #tpu.memory_space<vmem>>, vector<1x1x32xf32>
    %978 = vector.shape_cast %977 : vector<1x1x32xf32> to vector<1x32xf32>
    %cst_614 = arith.constant dense<0.000000e+00> : vector<9xf32>
    %979 = vector.multi_reduction <add>, %974, %cst_614 [1] : vector<9x32xf32> to vector<9xf32>
    %980 = vector.shape_cast %979 : vector<9xf32> to vector<9x1xf32>
    %cst_615 = arith.constant 3.200000e+01 : f32
    %981 = vector.broadcast %cst_615 : f32 to vector<9x1xf32>
    %982 = arith.divf %980, %981 : vector<9x1xf32>
    %983 = vector.broadcast %982 : vector<9x1xf32> to vector<9x32xf32>
    %984 = arith.subf %974, %983 : vector<9x32xf32>
    %985 = arith.mulf %984, %984 : vector<9x32xf32>
    %cst_616 = arith.constant dense<0.000000e+00> : vector<9xf32>
    %986 = vector.multi_reduction <add>, %985, %cst_616 [1] : vector<9x32xf32> to vector<9xf32>
    %987 = vector.shape_cast %986 : vector<9xf32> to vector<9x1xf32>
    %cst_617 = arith.constant 3.200000e+01 : f32
    %988 = vector.broadcast %cst_617 : f32 to vector<9x1xf32>
    %989 = arith.divf %987, %988 : vector<9x1xf32>
    %cst_618 = arith.constant 9.99999997E-7 : f32
    %990 = vector.broadcast %cst_618 : f32 to vector<9x1xf32>
    %991 = arith.addf %989, %990 : vector<9x1xf32>
    %992 = math.rsqrt %991 : vector<9x1xf32>
    %993 = vector.broadcast %992 : vector<9x1xf32> to vector<9x32xf32>
    %994 = arith.mulf %984, %993 : vector<9x32xf32>
    %995 = vector.broadcast %976 : vector<1x32xf32> to vector<9x32xf32>
    %996 = arith.mulf %994, %995 : vector<9x32xf32>
    %997 = vector.broadcast %978 : vector<1x32xf32> to vector<9x32xf32>
    %998 = arith.addf %996, %997 : vector<9x32xf32>
    %c0_619 = arith.constant 0 : index
    %c0_620 = arith.constant 0 : index
    %c0_621 = arith.constant 0 : index
    %999 = vector.load %arg64[%c0_619, %c0_620, %c0_621] : memref<2x32x64xf32, #tpu.memory_space<vmem>>, vector<1x32x64xf32>
    %1000 = vector.shape_cast %999 : vector<1x32x64xf32> to vector<32x64xf32>
    %cst_622 = arith.constant dense<0.000000e+00> : vector<9x64xf32>
    %1001 = tpu.matmul %998, %1000, %cst_622 {dimension_numbers = #tpu.dot_dimension_numbers<[1], [0], [0], [1], [0, 0, 1, 1], [], []>} : vector<9x32xf32>, vector<32x64xf32>, vector<9x64xf32> -> vector<9x64xf32>
    %c0_623 = arith.constant 0 : index
    %c0_624 = arith.constant 0 : index
    %c0_625 = arith.constant 0 : index
    %1002 = vector.load %arg65[%c0_623, %c0_624, %c0_625] : memref<2x1x64xf32, #tpu.memory_space<vmem>>, vector<1x1x64xf32>
    %1003 = vector.shape_cast %1002 : vector<1x1x64xf32> to vector<1x64xf32>
    %1004 = vector.broadcast %1003 : vector<1x64xf32> to vector<9x64xf32>
    %1005 = arith.addf %1001, %1004 : vector<9x64xf32>
    %1006 = arith.mulf %1005, %1005 : vector<9x64xf32>
    %1007 = arith.mulf %1005, %1006 : vector<9x64xf32>
    %cst_626 = arith.constant 4.471500e-02 : f32
    %1008 = vector.broadcast %cst_626 : f32 to vector<9x64xf32>
    %1009 = arith.mulf %1008, %1007 : vector<9x64xf32>
    %1010 = arith.addf %1005, %1009 : vector<9x64xf32>
    %cst_627 = arith.constant 0.797884583 : f32
    %1011 = vector.broadcast %cst_627 : f32 to vector<9x64xf32>
    %1012 = arith.mulf %1011, %1010 : vector<9x64xf32>
    %1013 = math.tanh %1012 : vector<9x64xf32>
    %cst_628 = arith.constant 1.000000e+00 : f32
    %1014 = vector.broadcast %cst_628 : f32 to vector<9x64xf32>
    %1015 = arith.addf %1014, %1013 : vector<9x64xf32>
    %cst_629 = arith.constant 5.000000e-01 : f32
    %1016 = vector.broadcast %cst_629 : f32 to vector<9x64xf32>
    %1017 = arith.mulf %1016, %1015 : vector<9x64xf32>
    %1018 = arith.mulf %1005, %1017 : vector<9x64xf32>
    %c0_630 = arith.constant 0 : index
    %c0_631 = arith.constant 0 : index
    %c0_632 = arith.constant 0 : index
    %1019 = vector.load %arg66[%c0_630, %c0_631, %c0_632] : memref<2x64x32xf32, #tpu.memory_space<vmem>>, vector<1x64x32xf32>
    %1020 = vector.shape_cast %1019 : vector<1x64x32xf32> to vector<64x32xf32>
    %cst_633 = arith.constant dense<0.000000e+00> : vector<9x32xf32>
    %1021 = tpu.matmul %1018, %1020, %cst_633 {dimension_numbers = #tpu.dot_dimension_numbers<[1], [0], [0], [1], [0, 0, 1, 1], [], []>} : vector<9x64xf32>, vector<64x32xf32>, vector<9x32xf32> -> vector<9x32xf32>
    %c0_634 = arith.constant 0 : index
    %c0_635 = arith.constant 0 : index
    %c0_636 = arith.constant 0 : index
    %1022 = vector.load %arg67[%c0_634, %c0_635, %c0_636] : memref<2x1x32xf32, #tpu.memory_space<vmem>>, vector<1x1x32xf32>
    %1023 = vector.shape_cast %1022 : vector<1x1x32xf32> to vector<1x32xf32>
    %1024 = vector.broadcast %1023 : vector<1x32xf32> to vector<9x32xf32>
    %1025 = arith.addf %1021, %1024 : vector<9x32xf32>
    %1026 = arith.addf %974, %1025 : vector<9x32xf32>
    %c1_637 = arith.constant 1 : index
    %c0_638 = arith.constant 0 : index
    %c0_639 = arith.constant 0 : index
    %1027 = vector.load %arg52[%c1_637, %c0_638, %c0_639] : memref<2x1x32xf32, #tpu.memory_space<vmem>>, vector<1x1x32xf32>
    %1028 = vector.shape_cast %1027 : vector<1x1x32xf32> to vector<1x32xf32>
    %c1_640 = arith.constant 1 : index
    %c0_641 = arith.constant 0 : index
    %c0_642 = arith.constant 0 : index
    %1029 = vector.load %arg53[%c1_640, %c0_641, %c0_642] : memref<2x1x32xf32, #tpu.memory_space<vmem>>, vector<1x1x32xf32>
    %1030 = vector.shape_cast %1029 : vector<1x1x32xf32> to vector<1x32xf32>
    %cst_643 = arith.constant dense<0.000000e+00> : vector<9xf32>
    %1031 = vector.multi_reduction <add>, %1026, %cst_643 [1] : vector<9x32xf32> to vector<9xf32>
    %1032 = vector.shape_cast %1031 : vector<9xf32> to vector<9x1xf32>
    %cst_644 = arith.constant 3.200000e+01 : f32
    %1033 = vector.broadcast %cst_644 : f32 to vector<9x1xf32>
    %1034 = arith.divf %1032, %1033 : vector<9x1xf32>
    %1035 = vector.broadcast %1034 : vector<9x1xf32> to vector<9x32xf32>
    %1036 = arith.subf %1026, %1035 : vector<9x32xf32>
    %1037 = arith.mulf %1036, %1036 : vector<9x32xf32>
    %cst_645 = arith.constant dense<0.000000e+00> : vector<9xf32>
    %1038 = vector.multi_reduction <add>, %1037, %cst_645 [1] : vector<9x32xf32> to vector<9xf32>
    %1039 = vector.shape_cast %1038 : vector<9xf32> to vector<9x1xf32>
    %cst_646 = arith.constant 3.200000e+01 : f32
    %1040 = vector.broadcast %cst_646 : f32 to vector<9x1xf32>
    %1041 = arith.divf %1039, %1040 : vector<9x1xf32>
    %cst_647 = arith.constant 9.99999997E-7 : f32
    %1042 = vector.broadcast %cst_647 : f32 to vector<9x1xf32>
    %1043 = arith.addf %1041, %1042 : vector<9x1xf32>
    %1044 = math.rsqrt %1043 : vector<9x1xf32>
    %1045 = vector.broadcast %1044 : vector<9x1xf32> to vector<9x32xf32>
    %1046 = arith.mulf %1036, %1045 : vector<9x32xf32>
    %1047 = vector.broadcast %1028 : vector<1x32xf32> to vector<9x32xf32>
    %1048 = arith.mulf %1046, %1047 : vector<9x32xf32>
    %1049 = vector.broadcast %1030 : vector<1x32xf32> to vector<9x32xf32>
    %1050 = arith.addf %1048, %1049 : vector<9x32xf32>
    %c1_648 = arith.constant 1 : index
    %c0_649 = arith.constant 0 : index
    %c0_650 = arith.constant 0 : index
    %c0_651 = arith.constant 0 : index
    %1051 = vector.load %arg54[%c1_648, %c0_649, %c0_650, %c0_651] : memref<2x2x32x16xf32, #tpu.memory_space<vmem>>, vector<1x2x32x16xf32>
    %1052 = vector.shape_cast %1051 : vector<1x2x32x16xf32> to vector<2x32x16xf32>
    %c1_652 = arith.constant 1 : index
    %c0_653 = arith.constant 0 : index
    %c0_654 = arith.constant 0 : index
    %c0_655 = arith.constant 0 : index
    %1053 = vector.load %arg55[%c1_652, %c0_653, %c0_654, %c0_655] : memref<2x2x1x16xf32, #tpu.memory_space<vmem>>, vector<1x2x1x16xf32>
    %1054 = vector.shape_cast %1053 : vector<1x2x1x16xf32> to vector<2x1x16xf32>
    %c1_656 = arith.constant 1 : index
    %c0_657 = arith.constant 0 : index
    %c0_658 = arith.constant 0 : index
    %c0_659 = arith.constant 0 : index
    %1055 = vector.load %arg56[%c1_656, %c0_657, %c0_658, %c0_659] : memref<2x2x32x16xf32, #tpu.memory_space<vmem>>, vector<1x2x32x16xf32>
    %1056 = vector.shape_cast %1055 : vector<1x2x32x16xf32> to vector<2x32x16xf32>
    %c1_660 = arith.constant 1 : index
    %c0_661 = arith.constant 0 : index
    %c0_662 = arith.constant 0 : index
    %c0_663 = arith.constant 0 : index
    %1057 = vector.load %arg57[%c1_660, %c0_661, %c0_662, %c0_663] : memref<2x2x1x16xf32, #tpu.memory_space<vmem>>, vector<1x2x1x16xf32>
    %1058 = vector.shape_cast %1057 : vector<1x2x1x16xf32> to vector<2x1x16xf32>
    %c1_664 = arith.constant 1 : index
    %c0_665 = arith.constant 0 : index
    %c0_666 = arith.constant 0 : index
    %c0_667 = arith.constant 0 : index
    %1059 = vector.load %arg58[%c1_664, %c0_665, %c0_666, %c0_667] : memref<2x2x32x16xf32, #tpu.memory_space<vmem>>, vector<1x2x32x16xf32>
    %1060 = vector.shape_cast %1059 : vector<1x2x32x16xf32> to vector<2x32x16xf32>
    %c1_668 = arith.constant 1 : index
    %c0_669 = arith.constant 0 : index
    %c0_670 = arith.constant 0 : index
    %c0_671 = arith.constant 0 : index
    %1061 = vector.load %arg59[%c1_668, %c0_669, %c0_670, %c0_671] : memref<2x2x1x16xf32, #tpu.memory_space<vmem>>, vector<1x2x1x16xf32>
    %1062 = vector.shape_cast %1061 : vector<1x2x1x16xf32> to vector<2x1x16xf32>
    %c1_672 = arith.constant 1 : index
    %c0_673 = arith.constant 0 : index
    %c0_674 = arith.constant 0 : index
    %c0_675 = arith.constant 0 : index
    %1063 = vector.load %arg60[%c1_672, %c0_673, %c0_674, %c0_675] : memref<2x2x16x32xf32, #tpu.memory_space<vmem>>, vector<1x2x16x32xf32>
    %1064 = vector.shape_cast %1063 : vector<1x2x16x32xf32> to vector<2x16x32xf32>
    %c1_676 = arith.constant 1 : index
    %c0_677 = arith.constant 0 : index
    %c0_678 = arith.constant 0 : index
    %1065 = vector.load %arg61[%c1_676, %c0_677, %c0_678] : memref<2x1x32xf32, #tpu.memory_space<vmem>>, vector<1x1x32xf32>
    %1066 = vector.shape_cast %1065 : vector<1x1x32xf32> to vector<1x32xf32>
    %1067 = vector.extract_strided_slice %1052 {offsets = [0, 0, 0], sizes = [1, 32, 16], strides = [1, 1, 1]} : vector<2x32x16xf32> to vector<1x32x16xf32>
    %1068 = vector.shape_cast %1067 : vector<1x32x16xf32> to vector<32x16xf32>
    %cst_679 = arith.constant dense<0.000000e+00> : vector<9x16xf32>
    %1069 = tpu.matmul %1050, %1068, %cst_679 {dimension_numbers = #tpu.dot_dimension_numbers<[1], [0], [0], [1], [0, 0, 1, 1], [], []>} : vector<9x32xf32>, vector<32x16xf32>, vector<9x16xf32> -> vector<9x16xf32>
    %1070 = vector.extract_strided_slice %1054 {offsets = [0, 0, 0], sizes = [1, 1, 16], strides = [1, 1, 1]} : vector<2x1x16xf32> to vector<1x1x16xf32>
    %1071 = vector.shape_cast %1070 : vector<1x1x16xf32> to vector<1x16xf32>
    %1072 = vector.broadcast %1071 : vector<1x16xf32> to vector<9x16xf32>
    %1073 = arith.addf %1069, %1072 : vector<9x16xf32>
    %1074 = vector.extract_strided_slice %1056 {offsets = [0, 0, 0], sizes = [1, 32, 16], strides = [1, 1, 1]} : vector<2x32x16xf32> to vector<1x32x16xf32>
    %1075 = vector.shape_cast %1074 : vector<1x32x16xf32> to vector<32x16xf32>
    %cst_680 = arith.constant dense<0.000000e+00> : vector<7x16xf32>
    %1076 = tpu.matmul %201, %1075, %cst_680 {dimension_numbers = #tpu.dot_dimension_numbers<[1], [0], [0], [1], [0, 0, 1, 1], [], []>} : vector<7x32xf32>, vector<32x16xf32>, vector<7x16xf32> -> vector<7x16xf32>
    %1077 = vector.extract_strided_slice %1058 {offsets = [0, 0, 0], sizes = [1, 1, 16], strides = [1, 1, 1]} : vector<2x1x16xf32> to vector<1x1x16xf32>
    %1078 = vector.shape_cast %1077 : vector<1x1x16xf32> to vector<1x16xf32>
    %1079 = vector.broadcast %1078 : vector<1x16xf32> to vector<7x16xf32>
    %1080 = arith.addf %1076, %1079 : vector<7x16xf32>
    %1081 = vector.extract_strided_slice %1060 {offsets = [0, 0, 0], sizes = [1, 32, 16], strides = [1, 1, 1]} : vector<2x32x16xf32> to vector<1x32x16xf32>
    %1082 = vector.shape_cast %1081 : vector<1x32x16xf32> to vector<32x16xf32>
    %cst_681 = arith.constant dense<0.000000e+00> : vector<7x16xf32>
    %1083 = tpu.matmul %201, %1082, %cst_681 {dimension_numbers = #tpu.dot_dimension_numbers<[1], [0], [0], [1], [0, 0, 1, 1], [], []>} : vector<7x32xf32>, vector<32x16xf32>, vector<7x16xf32> -> vector<7x16xf32>
    %1084 = vector.extract_strided_slice %1062 {offsets = [0, 0, 0], sizes = [1, 1, 16], strides = [1, 1, 1]} : vector<2x1x16xf32> to vector<1x1x16xf32>
    %1085 = vector.shape_cast %1084 : vector<1x1x16xf32> to vector<1x16xf32>
    %1086 = vector.broadcast %1085 : vector<1x16xf32> to vector<7x16xf32>
    %1087 = arith.addf %1083, %1086 : vector<7x16xf32>
    %cst_682 = arith.constant dense<0.000000e+00> : vector<9x7xf32>
    %1088 = tpu.matmul %1073, %1080, %cst_682 {dimension_numbers = #tpu.dot_dimension_numbers<[1], [1], [0], [0], [0, 0, 1, 0], [], []>} : vector<9x16xf32>, vector<7x16xf32>, vector<9x7xf32> -> vector<9x7xf32>
    %cst_683 = arith.constant dense<0xFF800000> : vector<9xf32>
    %1089 = vector.multi_reduction <maximumf>, %1088, %cst_683 [1] : vector<9x7xf32> to vector<9xf32>
    %1090 = vector.shape_cast %1089 : vector<9xf32> to vector<9x1xf32>
    %1091 = vector.broadcast %1090 : vector<9x1xf32> to vector<9x7xf32>
    %1092 = arith.subf %1088, %1091 : vector<9x7xf32>
    %1093 = math.exp %1092 : vector<9x7xf32>
    %cst_684 = arith.constant dense<0.000000e+00> : vector<9xf32>
    %1094 = vector.multi_reduction <add>, %1093, %cst_684 [1] : vector<9x7xf32> to vector<9xf32>
    %1095 = vector.shape_cast %1094 : vector<9xf32> to vector<9x1xf32>
    %1096 = vector.broadcast %1095 : vector<9x1xf32> to vector<9x7xf32>
    %1097 = arith.divf %1093, %1096 : vector<9x7xf32>
    %cst_685 = arith.constant dense<0.000000e+00> : vector<9x16xf32>
    %1098 = tpu.matmul %1097, %1087, %cst_685 {dimension_numbers = #tpu.dot_dimension_numbers<[1], [0], [0], [1], [0, 0, 1, 1], [], []>} : vector<9x7xf32>, vector<7x16xf32>, vector<9x16xf32> -> vector<9x16xf32>
    %1099 = vector.extract_strided_slice %1064 {offsets = [0, 0, 0], sizes = [1, 16, 32], strides = [1, 1, 1]} : vector<2x16x32xf32> to vector<1x16x32xf32>
    %1100 = vector.shape_cast %1099 : vector<1x16x32xf32> to vector<16x32xf32>
    %cst_686 = arith.constant dense<0.000000e+00> : vector<9x32xf32>
    %1101 = tpu.matmul %1098, %1100, %cst_686 {dimension_numbers = #tpu.dot_dimension_numbers<[1], [0], [0], [1], [0, 0, 1, 1], [], []>} : vector<9x16xf32>, vector<16x32xf32>, vector<9x32xf32> -> vector<9x32xf32>
    %1102 = vector.extract_strided_slice %1052 {offsets = [1, 0, 0], sizes = [1, 32, 16], strides = [1, 1, 1]} : vector<2x32x16xf32> to vector<1x32x16xf32>
    %1103 = vector.shape_cast %1102 : vector<1x32x16xf32> to vector<32x16xf32>
    %cst_687 = arith.constant dense<0.000000e+00> : vector<9x16xf32>
    %1104 = tpu.matmul %1050, %1103, %cst_687 {dimension_numbers = #tpu.dot_dimension_numbers<[1], [0], [0], [1], [0, 0, 1, 1], [], []>} : vector<9x32xf32>, vector<32x16xf32>, vector<9x16xf32> -> vector<9x16xf32>
    %1105 = vector.extract_strided_slice %1054 {offsets = [1, 0, 0], sizes = [1, 1, 16], strides = [1, 1, 1]} : vector<2x1x16xf32> to vector<1x1x16xf32>
    %1106 = vector.shape_cast %1105 : vector<1x1x16xf32> to vector<1x16xf32>
    %1107 = vector.broadcast %1106 : vector<1x16xf32> to vector<9x16xf32>
    %1108 = arith.addf %1104, %1107 : vector<9x16xf32>
    %1109 = vector.extract_strided_slice %1056 {offsets = [1, 0, 0], sizes = [1, 32, 16], strides = [1, 1, 1]} : vector<2x32x16xf32> to vector<1x32x16xf32>
    %1110 = vector.shape_cast %1109 : vector<1x32x16xf32> to vector<32x16xf32>
    %cst_688 = arith.constant dense<0.000000e+00> : vector<7x16xf32>
    %1111 = tpu.matmul %201, %1110, %cst_688 {dimension_numbers = #tpu.dot_dimension_numbers<[1], [0], [0], [1], [0, 0, 1, 1], [], []>} : vector<7x32xf32>, vector<32x16xf32>, vector<7x16xf32> -> vector<7x16xf32>
    %1112 = vector.extract_strided_slice %1058 {offsets = [1, 0, 0], sizes = [1, 1, 16], strides = [1, 1, 1]} : vector<2x1x16xf32> to vector<1x1x16xf32>
    %1113 = vector.shape_cast %1112 : vector<1x1x16xf32> to vector<1x16xf32>
    %1114 = vector.broadcast %1113 : vector<1x16xf32> to vector<7x16xf32>
    %1115 = arith.addf %1111, %1114 : vector<7x16xf32>
    %1116 = vector.extract_strided_slice %1060 {offsets = [1, 0, 0], sizes = [1, 32, 16], strides = [1, 1, 1]} : vector<2x32x16xf32> to vector<1x32x16xf32>
    %1117 = vector.shape_cast %1116 : vector<1x32x16xf32> to vector<32x16xf32>
    %cst_689 = arith.constant dense<0.000000e+00> : vector<7x16xf32>
    %1118 = tpu.matmul %201, %1117, %cst_689 {dimension_numbers = #tpu.dot_dimension_numbers<[1], [0], [0], [1], [0, 0, 1, 1], [], []>} : vector<7x32xf32>, vector<32x16xf32>, vector<7x16xf32> -> vector<7x16xf32>
    %1119 = vector.extract_strided_slice %1062 {offsets = [1, 0, 0], sizes = [1, 1, 16], strides = [1, 1, 1]} : vector<2x1x16xf32> to vector<1x1x16xf32>
    %1120 = vector.shape_cast %1119 : vector<1x1x16xf32> to vector<1x16xf32>
    %1121 = vector.broadcast %1120 : vector<1x16xf32> to vector<7x16xf32>
    %1122 = arith.addf %1118, %1121 : vector<7x16xf32>
    %cst_690 = arith.constant dense<0.000000e+00> : vector<9x7xf32>
    %1123 = tpu.matmul %1108, %1115, %cst_690 {dimension_numbers = #tpu.dot_dimension_numbers<[1], [1], [0], [0], [0, 0, 1, 0], [], []>} : vector<9x16xf32>, vector<7x16xf32>, vector<9x7xf32> -> vector<9x7xf32>
    %cst_691 = arith.constant dense<0xFF800000> : vector<9xf32>
    %1124 = vector.multi_reduction <maximumf>, %1123, %cst_691 [1] : vector<9x7xf32> to vector<9xf32>
    %1125 = vector.shape_cast %1124 : vector<9xf32> to vector<9x1xf32>
    %1126 = vector.broadcast %1125 : vector<9x1xf32> to vector<9x7xf32>
    %1127 = arith.subf %1123, %1126 : vector<9x7xf32>
    %1128 = math.exp %1127 : vector<9x7xf32>
    %cst_692 = arith.constant dense<0.000000e+00> : vector<9xf32>
    %1129 = vector.multi_reduction <add>, %1128, %cst_692 [1] : vector<9x7xf32> to vector<9xf32>
    %1130 = vector.shape_cast %1129 : vector<9xf32> to vector<9x1xf32>
    %1131 = vector.broadcast %1130 : vector<9x1xf32> to vector<9x7xf32>
    %1132 = arith.divf %1128, %1131 : vector<9x7xf32>
    %cst_693 = arith.constant dense<0.000000e+00> : vector<9x16xf32>
    %1133 = tpu.matmul %1132, %1122, %cst_693 {dimension_numbers = #tpu.dot_dimension_numbers<[1], [0], [0], [1], [0, 0, 1, 1], [], []>} : vector<9x7xf32>, vector<7x16xf32>, vector<9x16xf32> -> vector<9x16xf32>
    %1134 = vector.extract_strided_slice %1064 {offsets = [1, 0, 0], sizes = [1, 16, 32], strides = [1, 1, 1]} : vector<2x16x32xf32> to vector<1x16x32xf32>
    %1135 = vector.shape_cast %1134 : vector<1x16x32xf32> to vector<16x32xf32>
    %cst_694 = arith.constant dense<0.000000e+00> : vector<9x32xf32>
    %1136 = tpu.matmul %1133, %1135, %cst_694 {dimension_numbers = #tpu.dot_dimension_numbers<[1], [0], [0], [1], [0, 0, 1, 1], [], []>} : vector<9x16xf32>, vector<16x32xf32>, vector<9x32xf32> -> vector<9x32xf32>
    %1137 = arith.addf %1101, %1136 : vector<9x32xf32>
    %1138 = vector.broadcast %1066 : vector<1x32xf32> to vector<9x32xf32>
    %1139 = arith.addf %1137, %1138 : vector<9x32xf32>
    %1140 = arith.addf %1026, %1139 : vector<9x32xf32>
    %c1_695 = arith.constant 1 : index
    %c0_696 = arith.constant 0 : index
    %c0_697 = arith.constant 0 : index
    %1141 = vector.load %arg62[%c1_695, %c0_696, %c0_697] : memref<2x1x32xf32, #tpu.memory_space<vmem>>, vector<1x1x32xf32>
    %1142 = vector.shape_cast %1141 : vector<1x1x32xf32> to vector<1x32xf32>
    %c1_698 = arith.constant 1 : index
    %c0_699 = arith.constant 0 : index
    %c0_700 = arith.constant 0 : index
    %1143 = vector.load %arg63[%c1_698, %c0_699, %c0_700] : memref<2x1x32xf32, #tpu.memory_space<vmem>>, vector<1x1x32xf32>
    %1144 = vector.shape_cast %1143 : vector<1x1x32xf32> to vector<1x32xf32>
    %cst_701 = arith.constant dense<0.000000e+00> : vector<9xf32>
    %1145 = vector.multi_reduction <add>, %1140, %cst_701 [1] : vector<9x32xf32> to vector<9xf32>
    %1146 = vector.shape_cast %1145 : vector<9xf32> to vector<9x1xf32>
    %cst_702 = arith.constant 3.200000e+01 : f32
    %1147 = vector.broadcast %cst_702 : f32 to vector<9x1xf32>
    %1148 = arith.divf %1146, %1147 : vector<9x1xf32>
    %1149 = vector.broadcast %1148 : vector<9x1xf32> to vector<9x32xf32>
    %1150 = arith.subf %1140, %1149 : vector<9x32xf32>
    %1151 = arith.mulf %1150, %1150 : vector<9x32xf32>
    %cst_703 = arith.constant dense<0.000000e+00> : vector<9xf32>
    %1152 = vector.multi_reduction <add>, %1151, %cst_703 [1] : vector<9x32xf32> to vector<9xf32>
    %1153 = vector.shape_cast %1152 : vector<9xf32> to vector<9x1xf32>
    %cst_704 = arith.constant 3.200000e+01 : f32
    %1154 = vector.broadcast %cst_704 : f32 to vector<9x1xf32>
    %1155 = arith.divf %1153, %1154 : vector<9x1xf32>
    %cst_705 = arith.constant 9.99999997E-7 : f32
    %1156 = vector.broadcast %cst_705 : f32 to vector<9x1xf32>
    %1157 = arith.addf %1155, %1156 : vector<9x1xf32>
    %1158 = math.rsqrt %1157 : vector<9x1xf32>
    %1159 = vector.broadcast %1158 : vector<9x1xf32> to vector<9x32xf32>
    %1160 = arith.mulf %1150, %1159 : vector<9x32xf32>
    %1161 = vector.broadcast %1142 : vector<1x32xf32> to vector<9x32xf32>
    %1162 = arith.mulf %1160, %1161 : vector<9x32xf32>
    %1163 = vector.broadcast %1144 : vector<1x32xf32> to vector<9x32xf32>
    %1164 = arith.addf %1162, %1163 : vector<9x32xf32>
    %c1_706 = arith.constant 1 : index
    %c0_707 = arith.constant 0 : index
    %c0_708 = arith.constant 0 : index
    %1165 = vector.load %arg64[%c1_706, %c0_707, %c0_708] : memref<2x32x64xf32, #tpu.memory_space<vmem>>, vector<1x32x64xf32>
    %1166 = vector.shape_cast %1165 : vector<1x32x64xf32> to vector<32x64xf32>
    %cst_709 = arith.constant dense<0.000000e+00> : vector<9x64xf32>
    %1167 = tpu.matmul %1164, %1166, %cst_709 {dimension_numbers = #tpu.dot_dimension_numbers<[1], [0], [0], [1], [0, 0, 1, 1], [], []>} : vector<9x32xf32>, vector<32x64xf32>, vector<9x64xf32> -> vector<9x64xf32>
    %c1_710 = arith.constant 1 : index
    %c0_711 = arith.constant 0 : index
    %c0_712 = arith.constant 0 : index
    %1168 = vector.load %arg65[%c1_710, %c0_711, %c0_712] : memref<2x1x64xf32, #tpu.memory_space<vmem>>, vector<1x1x64xf32>
    %1169 = vector.shape_cast %1168 : vector<1x1x64xf32> to vector<1x64xf32>
    %1170 = vector.broadcast %1169 : vector<1x64xf32> to vector<9x64xf32>
    %1171 = arith.addf %1167, %1170 : vector<9x64xf32>
    %1172 = arith.mulf %1171, %1171 : vector<9x64xf32>
    %1173 = arith.mulf %1171, %1172 : vector<9x64xf32>
    %cst_713 = arith.constant 4.471500e-02 : f32
    %1174 = vector.broadcast %cst_713 : f32 to vector<9x64xf32>
    %1175 = arith.mulf %1174, %1173 : vector<9x64xf32>
    %1176 = arith.addf %1171, %1175 : vector<9x64xf32>
    %cst_714 = arith.constant 0.797884583 : f32
    %1177 = vector.broadcast %cst_714 : f32 to vector<9x64xf32>
    %1178 = arith.mulf %1177, %1176 : vector<9x64xf32>
    %1179 = math.tanh %1178 : vector<9x64xf32>
    %cst_715 = arith.constant 1.000000e+00 : f32
    %1180 = vector.broadcast %cst_715 : f32 to vector<9x64xf32>
    %1181 = arith.addf %1180, %1179 : vector<9x64xf32>
    %cst_716 = arith.constant 5.000000e-01 : f32
    %1182 = vector.broadcast %cst_716 : f32 to vector<9x64xf32>
    %1183 = arith.mulf %1182, %1181 : vector<9x64xf32>
    %1184 = arith.mulf %1171, %1183 : vector<9x64xf32>
    %c1_717 = arith.constant 1 : index
    %c0_718 = arith.constant 0 : index
    %c0_719 = arith.constant 0 : index
    %1185 = vector.load %arg66[%c1_717, %c0_718, %c0_719] : memref<2x64x32xf32, #tpu.memory_space<vmem>>, vector<1x64x32xf32>
    %1186 = vector.shape_cast %1185 : vector<1x64x32xf32> to vector<64x32xf32>
    %cst_720 = arith.constant dense<0.000000e+00> : vector<9x32xf32>
    %1187 = tpu.matmul %1184, %1186, %cst_720 {dimension_numbers = #tpu.dot_dimension_numbers<[1], [0], [0], [1], [0, 0, 1, 1], [], []>} : vector<9x64xf32>, vector<64x32xf32>, vector<9x32xf32> -> vector<9x32xf32>
    %c1_721 = arith.constant 1 : index
    %c0_722 = arith.constant 0 : index
    %c0_723 = arith.constant 0 : index
    %1188 = vector.load %arg67[%c1_721, %c0_722, %c0_723] : memref<2x1x32xf32, #tpu.memory_space<vmem>>, vector<1x1x32xf32>
    %1189 = vector.shape_cast %1188 : vector<1x1x32xf32> to vector<1x32xf32>
    %1190 = vector.broadcast %1189 : vector<1x32xf32> to vector<9x32xf32>
    %1191 = arith.addf %1187, %1190 : vector<9x32xf32>
    %1192 = arith.addf %1140, %1191 : vector<9x32xf32>
    %1193 = vector.extract_strided_slice %1192 {offsets = [8, 0], sizes = [1, 32], strides = [1, 1]} : vector<9x32xf32> to vector<1x32xf32>
    %c0_724 = arith.constant 0 : index
    %c0_725 = arith.constant 0 : index
    %1194 = vector.load %arg50[%c0_724, %c0_725] : memref<1x32xf32, #tpu.memory_space<vmem>>, vector<1x32xf32>
    %c0_726 = arith.constant 0 : index
    %c0_727 = arith.constant 0 : index
    %1195 = vector.load %arg51[%c0_726, %c0_727] : memref<1x32xf32, #tpu.memory_space<vmem>>, vector<1x32xf32>
    %cst_728 = arith.constant dense<0.000000e+00> : vector<1xf32>
    %1196 = vector.multi_reduction <add>, %1193, %cst_728 [1] : vector<1x32xf32> to vector<1xf32>
    %1197 = vector.shape_cast %1196 : vector<1xf32> to vector<1x1xf32>
    %cst_729 = arith.constant 3.200000e+01 : f32
    %1198 = vector.broadcast %cst_729 : f32 to vector<1x1xf32>
    %1199 = arith.divf %1197, %1198 : vector<1x1xf32>
    %1200 = vector.broadcast %1199 : vector<1x1xf32> to vector<1x32xf32>
    %1201 = arith.subf %1193, %1200 : vector<1x32xf32>
    %1202 = arith.mulf %1201, %1201 : vector<1x32xf32>
    %cst_730 = arith.constant dense<0.000000e+00> : vector<1xf32>
    %1203 = vector.multi_reduction <add>, %1202, %cst_730 [1] : vector<1x32xf32> to vector<1xf32>
    %1204 = vector.shape_cast %1203 : vector<1xf32> to vector<1x1xf32>
    %cst_731 = arith.constant 3.200000e+01 : f32
    %1205 = vector.broadcast %cst_731 : f32 to vector<1x1xf32>
    %1206 = arith.divf %1204, %1205 : vector<1x1xf32>
    %cst_732 = arith.constant 9.99999997E-7 : f32
    %1207 = vector.broadcast %cst_732 : f32 to vector<1x1xf32>
    %1208 = arith.addf %1206, %1207 : vector<1x1xf32>
    %1209 = math.rsqrt %1208 : vector<1x1xf32>
    %1210 = vector.broadcast %1209 : vector<1x1xf32> to vector<1x32xf32>
    %1211 = arith.mulf %1201, %1210 : vector<1x32xf32>
    %1212 = arith.mulf %1211, %1194 : vector<1x32xf32>
    %1213 = arith.addf %1212, %1195 : vector<1x32xf32>
    %1214 = arith.addf %1213, %364 : vector<1x32xf32>
    %c0_733 = arith.constant 0 : index
    %c0_734 = arith.constant 0 : index
    %1215 = vector.load %arg68[%c0_733, %c0_734] : memref<1x32xf32, #tpu.memory_space<vmem>>, vector<1x32xf32>
    %c0_735 = arith.constant 0 : index
    %c0_736 = arith.constant 0 : index
    %1216 = vector.load %arg69[%c0_735, %c0_736] : memref<1x32xf32, #tpu.memory_space<vmem>>, vector<1x32xf32>
    %cst_737 = arith.constant dense<0.000000e+00> : vector<1xf32>
    %1217 = vector.multi_reduction <add>, %1214, %cst_737 [1] : vector<1x32xf32> to vector<1xf32>
    %1218 = vector.shape_cast %1217 : vector<1xf32> to vector<1x1xf32>
    %cst_738 = arith.constant 3.200000e+01 : f32
    %1219 = vector.broadcast %cst_738 : f32 to vector<1x1xf32>
    %1220 = arith.divf %1218, %1219 : vector<1x1xf32>
    %1221 = vector.broadcast %1220 : vector<1x1xf32> to vector<1x32xf32>
    %1222 = arith.subf %1214, %1221 : vector<1x32xf32>
    %1223 = arith.mulf %1222, %1222 : vector<1x32xf32>
    %cst_739 = arith.constant dense<0.000000e+00> : vector<1xf32>
    %1224 = vector.multi_reduction <add>, %1223, %cst_739 [1] : vector<1x32xf32> to vector<1xf32>
    %1225 = vector.shape_cast %1224 : vector<1xf32> to vector<1x1xf32>
    %cst_740 = arith.constant 3.200000e+01 : f32
    %1226 = vector.broadcast %cst_740 : f32 to vector<1x1xf32>
    %1227 = arith.divf %1225, %1226 : vector<1x1xf32>
    %cst_741 = arith.constant 9.99999974E-6 : f32
    %1228 = vector.broadcast %cst_741 : f32 to vector<1x1xf32>
    %1229 = arith.addf %1227, %1228 : vector<1x1xf32>
    %1230 = math.rsqrt %1229 : vector<1x1xf32>
    %1231 = vector.broadcast %1230 : vector<1x1xf32> to vector<1x32xf32>
    %1232 = arith.mulf %1222, %1231 : vector<1x32xf32>
    %1233 = arith.mulf %1232, %1215 : vector<1x32xf32>
    %1234 = arith.addf %1233, %1216 : vector<1x32xf32>
    %c0_742 = arith.constant 0 : index
    %c0_743 = arith.constant 0 : index
    %1235 = vector.load %arg70[%c0_742, %c0_743] : memref<32x6xf32, #tpu.memory_space<vmem>>, vector<32x6xf32>
    %cst_744 = arith.constant dense<0.000000e+00> : vector<1x6xf32>
    %1236 = tpu.matmul %1234, %1235, %cst_744 {dimension_numbers = #tpu.dot_dimension_numbers<[1], [0], [0], [1], [0, 0, 1, 1], [], []>} : vector<1x32xf32>, vector<32x6xf32>, vector<1x6xf32> -> vector<1x6xf32>
    %c0_745 = arith.constant 0 : index
    %c0_746 = arith.constant 0 : index
    %1237 = vector.load %arg71[%c0_745, %c0_746] : memref<1x6xf32, #tpu.memory_space<vmem>>, vector<1x6xf32>
    %1238 = arith.addf %1236, %1237 : vector<1x6xf32>
    %cst_747 = arith.constant dense<0xFF800000> : vector<1xf32>
    %1239 = vector.multi_reduction <maximumf>, %1238, %cst_747 [1] : vector<1x6xf32> to vector<1xf32>
    %1240 = vector.shape_cast %1239 : vector<1xf32> to vector<1x1xf32>
    %1241 = vector.broadcast %1240 : vector<1x1xf32> to vector<1x6xf32>
    %1242 = arith.subf %1238, %1241 : vector<1x6xf32>
    %1243 = math.exp %1242 : vector<1x6xf32>
    %cst_748 = arith.constant dense<0.000000e+00> : vector<1xf32>
    %1244 = vector.multi_reduction <add>, %1243, %cst_748 [1] : vector<1x6xf32> to vector<1xf32>
    %1245 = vector.shape_cast %1244 : vector<1xf32> to vector<1x1xf32>
    %1246 = math.log %1245 : vector<1x1xf32>
    %1247 = vector.broadcast %1246 : vector<1x1xf32> to vector<1x6xf32>
    %1248 = arith.subf %1242, %1247 : vector<1x6xf32>
    %c0_749 = arith.constant 0 : index
    %c0_750 = arith.constant 0 : index
    %c0_751 = arith.constant 0 : index
    %1249 = vector.load %arg72[%c0_749, %c0_750, %c0_751] : memref<1x1x6xf32, #tpu.memory_space<vmem>>, vector<1x1x6xf32>
    %1250 = vector.shape_cast %1249 : vector<1x1x6xf32> to vector<1x6xf32>
    %1251 = vector.shape_cast %1248 : vector<1x6xf32> to vector<1x1x6xf32>
    tpu.vector_store %arg72[%c0_749, %c0_750, %c0_751], %1251 {strides = array<i32>} : memref<1x1x6xf32, #tpu.memory_space<vmem>>, vector<1x1x6xf32>,
    return
  }
  func.func @transform_0(%arg0: i32) -> (i32, i32, i32, i32) {
    %c0_i32 = arith.constant 0 : i32
    %c0_i32_0 = arith.constant 0 : i32
    %c0_i32_1 = arith.constant 0 : i32
    %c0_i32_2 = arith.constant 0 : i32
    return %arg0, %c0_i32, %c0_i32_0, %c0_i32_1 : i32, i32, i32, i32
  }
  func.func @transform_1(%arg0: i32) -> (i32, i32) {
    %c0_i32 = arith.constant 0 : i32
    %c0_i32_0 = arith.constant 0 : i32
    %c0_i32_1 = arith.constant 0 : i32
    return %c0_i32, %c0_i32_0 : i32, i32
  }
  func.func @transform_2(%arg0: i32) -> (i32, i32) {
    %c0_i32 = arith.constant 0 : i32
    %c0_i32_0 = arith.constant 0 : i32
    %c0_i32_1 = arith.constant 0 : i32
    return %c0_i32, %c0_i32_0 : i32, i32
  }
  func.func @transform_3(%arg0: i32) -> (i32, i32) {
    %c0_i32 = arith.constant 0 : i32
    %c0_i32_0 = arith.constant 0 : i32
    %c0_i32_1 = arith.constant 0 : i32
    return %c0_i32, %c0_i32_0 : i32, i32
  }
  func.func @transform_4(%arg0: i32) -> (i32, i32) {
    %c0_i32 = arith.constant 0 : i32
    %c0_i32_0 = arith.constant 0 : i32
    %c0_i32_1 = arith.constant 0 : i32
    return %c0_i32, %c0_i32_0 : i32, i32
  }
  func.func @transform_5(%arg0: i32) -> (i32, i32) {
    %c0_i32 = arith.constant 0 : i32
    %c0_i32_0 = arith.constant 0 : i32
    %c0_i32_1 = arith.constant 0 : i32
    return %c0_i32, %c0_i32_0 : i32, i32
  }
  func.func @transform_6(%arg0: i32) -> (i32, i32) {
    %c0_i32 = arith.constant 0 : i32
    %c0_i32_0 = arith.constant 0 : i32
    %c0_i32_1 = arith.constant 0 : i32
    return %c0_i32, %c0_i32_0 : i32, i32
  }
  func.func @transform_7(%arg0: i32) -> (i32, i32) {
    %c0_i32 = arith.constant 0 : i32
    %c0_i32_0 = arith.constant 0 : i32
    %c0_i32_1 = arith.constant 0 : i32
    return %c0_i32, %c0_i32_0 : i32, i32
  }
  func.func @transform_8(%arg0: i32) -> (i32, i32, i32) {
    %c0_i32 = arith.constant 0 : i32
    %c0_i32_0 = arith.constant 0 : i32
    %c0_i32_1 = arith.constant 0 : i32
    %c0_i32_2 = arith.constant 0 : i32
    return %c0_i32, %c0_i32_0, %c0_i32_1 : i32, i32, i32
  }
  func.func @transform_9(%arg0: i32) -> (i32, i32, i32) {
    %c0_i32 = arith.constant 0 : i32
    %c0_i32_0 = arith.constant 0 : i32
    %c0_i32_1 = arith.constant 0 : i32
    %c0_i32_2 = arith.constant 0 : i32
    return %c0_i32, %c0_i32_0, %c0_i32_1 : i32, i32, i32
  }
  func.func @transform_10(%arg0: i32) -> (i32, i32, i32, i32) {
    %c0_i32 = arith.constant 0 : i32
    %c0_i32_0 = arith.constant 0 : i32
    %c0_i32_1 = arith.constant 0 : i32
    %c0_i32_2 = arith.constant 0 : i32
    %c0_i32_3 = arith.constant 0 : i32
    return %c0_i32, %c0_i32_0, %c0_i32_1, %c0_i32_2 : i32, i32, i32, i32
  }
  func.func @transform_11(%arg0: i32) -> (i32, i32, i32, i32) {
    %c0_i32 = arith.constant 0 : i32
    %c0_i32_0 = arith.constant 0 : i32
    %c0_i32_1 = arith.constant 0 : i32
    %c0_i32_2 = arith.constant 0 : i32
    %c0_i32_3 = arith.constant 0 : i32
    return %c0_i32, %c0_i32_0, %c0_i32_1, %c0_i32_2 : i32, i32, i32, i32
  }
  func.func @transform_12(%arg0: i32) -> (i32, i32, i32, i32) {
    %c0_i32 = arith.constant 0 : i32
    %c0_i32_0 = arith.constant 0 : i32
    %c0_i32_1 = arith.constant 0 : i32
    %c0_i32_2 = arith.constant 0 : i32
    %c0_i32_3 = arith.constant 0 : i32
    return %c0_i32, %c0_i32_0, %c0_i32_1, %c0_i32_2 : i32, i32, i32, i32
  }
  func.func @transform_13(%arg0: i32) -> (i32, i32, i32, i32) {
    %c0_i32 = arith.constant 0 : i32
    %c0_i32_0 = arith.constant 0 : i32
    %c0_i32_1 = arith.constant 0 : i32
    %c0_i32_2 = arith.constant 0 : i32
    %c0_i32_3 = arith.constant 0 : i32
    return %c0_i32, %c0_i32_0, %c0_i32_1, %c0_i32_2 : i32, i32, i32, i32
  }
  func.func @transform_14(%arg0: i32) -> (i32, i32, i32, i32) {
    %c0_i32 = arith.constant 0 : i32
    %c0_i32_0 = arith.constant 0 : i32
    %c0_i32_1 = arith.constant 0 : i32
    %c0_i32_2 = arith.constant 0 : i32
    %c0_i32_3 = arith.constant 0 : i32
    return %c0_i32, %c0_i32_0, %c0_i32_1, %c0_i32_2 : i32, i32, i32, i32
  }
  func.func @transform_15(%arg0: i32) -> (i32, i32, i32, i32) {
    %c0_i32 = arith.constant 0 : i32
    %c0_i32_0 = arith.constant 0 : i32
    %c0_i32_1 = arith.constant 0 : i32
    %c0_i32_2 = arith.constant 0 : i32
    %c0_i32_3 = arith.constant 0 : i32
    return %c0_i32, %c0_i32_0, %c0_i32_1, %c0_i32_2 : i32, i32, i32, i32
  }
  func.func @transform_16(%arg0: i32) -> (i32, i32, i32, i32) {
    %c0_i32 = arith.constant 0 : i32
    %c0_i32_0 = arith.constant 0 : i32
    %c0_i32_1 = arith.constant 0 : i32
    %c0_i32_2 = arith.constant 0 : i32
    %c0_i32_3 = arith.constant 0 : i32
    return %c0_i32, %c0_i32_0, %c0_i32_1, %c0_i32_2 : i32, i32, i32, i32
  }
  func.func @transform_17(%arg0: i32) -> (i32, i32, i32) {
    %c0_i32 = arith.constant 0 : i32
    %c0_i32_0 = arith.constant 0 : i32
    %c0_i32_1 = arith.constant 0 : i32
    %c0_i32_2 = arith.constant 0 : i32
    return %c0_i32, %c0_i32_0, %c0_i32_1 : i32, i32, i32
  }
  func.func @transform_18(%arg0: i32) -> (i32, i32, i32) {
    %c0_i32 = arith.constant 0 : i32
    %c0_i32_0 = arith.constant 0 : i32
    %c0_i32_1 = arith.constant 0 : i32
    %c0_i32_2 = arith.constant 0 : i32
    return %c0_i32, %c0_i32_0, %c0_i32_1 : i32, i32, i32
  }
  func.func @transform_19(%arg0: i32) -> (i32, i32, i32) {
    %c0_i32 = arith.constant 0 : i32
    %c0_i32_0 = arith.constant 0 : i32
    %c0_i32_1 = arith.constant 0 : i32
    %c0_i32_2 = arith.constant 0 : i32
    return %c0_i32, %c0_i32_0, %c0_i32_1 : i32, i32, i32
  }
  func.func @transform_20(%arg0: i32) -> (i32, i32, i32) {
    %c0_i32 = arith.constant 0 : i32
    %c0_i32_0 = arith.constant 0 : i32
    %c0_i32_1 = arith.constant 0 : i32
    %c0_i32_2 = arith.constant 0 : i32
    return %c0_i32, %c0_i32_0, %c0_i32_1 : i32, i32, i32
  }
  func.func @transform_21(%arg0: i32) -> (i32, i32, i32) {
    %c0_i32 = arith.constant 0 : i32
    %c0_i32_0 = arith.constant 0 : i32
    %c0_i32_1 = arith.constant 0 : i32
    %c0_i32_2 = arith.constant 0 : i32
    return %c0_i32, %c0_i32_0, %c0_i32_1 : i32, i32, i32
  }
  func.func @transform_22(%arg0: i32) -> (i32, i32, i32) {
    %c0_i32 = arith.constant 0 : i32
    %c0_i32_0 = arith.constant 0 : i32
    %c0_i32_1 = arith.constant 0 : i32
    %c0_i32_2 = arith.constant 0 : i32
    return %c0_i32, %c0_i32_0, %c0_i32_1 : i32, i32, i32
  }
  func.func @transform_23(%arg0: i32) -> (i32, i32, i32) {
    %c0_i32 = arith.constant 0 : i32
    %c0_i32_0 = arith.constant 0 : i32
    %c0_i32_1 = arith.constant 0 : i32
    %c0_i32_2 = arith.constant 0 : i32
    return %c0_i32, %c0_i32_0, %c0_i32_1 : i32, i32, i32
  }
  func.func @transform_24(%arg0: i32) -> (i32, i32) {
    %c0_i32 = arith.constant 0 : i32
    %c0_i32_0 = arith.constant 0 : i32
    %c0_i32_1 = arith.constant 0 : i32
    return %c0_i32, %c0_i32_0 : i32, i32
  }
  func.func @transform_25(%arg0: i32) -> (i32, i32) {
    %c0_i32 = arith.constant 0 : i32
    %c0_i32_0 = arith.constant 0 : i32
    %c0_i32_1 = arith.constant 0 : i32
    return %c0_i32, %c0_i32_0 : i32, i32
  }
  func.func @transform_26(%arg0: i32) -> (i32, i32) {
    %c0_i32 = arith.constant 0 : i32
    %c0_i32_0 = arith.constant 0 : i32
    %c0_i32_1 = arith.constant 0 : i32
    return %c0_i32, %c0_i32_0 : i32, i32
  }
  func.func @transform_27(%arg0: i32) -> (i32, i32) {
    %c0_i32 = arith.constant 0 : i32
    %c0_i32_0 = arith.constant 0 : i32
    %c0_i32_1 = arith.constant 0 : i32
    return %c0_i32, %c0_i32_0 : i32, i32
  }
  func.func @transform_28(%arg0: i32) -> (i32, i32) {
    %c0_i32 = arith.constant 0 : i32
    %c0_i32_0 = arith.constant 0 : i32
    %c0_i32_1 = arith.constant 0 : i32
    return %c0_i32, %c0_i32_0 : i32, i32
  }
  func.func @transform_29(%arg0: i32) -> (i32, i32) {
    %c0_i32 = arith.constant 0 : i32
    %c0_i32_0 = arith.constant 0 : i32
    %c0_i32_1 = arith.constant 0 : i32
    return %c0_i32, %c0_i32_0 : i32, i32
  }
  func.func @transform_30(%arg0: i32) -> (i32, i32, i32) {
    %c0_i32 = arith.constant 0 : i32
    %c0_i32_0 = arith.constant 0 : i32
    %c0_i32_1 = arith.constant 0 : i32
    %c0_i32_2 = arith.constant 0 : i32
    return %c0_i32, %c0_i32_0, %c0_i32_1 : i32, i32, i32
  }
  func.func @transform_31(%arg0: i32) -> (i32, i32, i32) {
    %c0_i32 = arith.constant 0 : i32
    %c0_i32_0 = arith.constant 0 : i32
    %c0_i32_1 = arith.constant 0 : i32
    %c0_i32_2 = arith.constant 0 : i32
    return %c0_i32, %c0_i32_0, %c0_i32_1 : i32, i32, i32
  }
  func.func @transform_32(%arg0: i32) -> (i32, i32, i32, i32) {
    %c0_i32 = arith.constant 0 : i32
    %c0_i32_0 = arith.constant 0 : i32
    %c0_i32_1 = arith.constant 0 : i32
    %c0_i32_2 = arith.constant 0 : i32
    %c0_i32_3 = arith.constant 0 : i32
    return %c0_i32, %c0_i32_0, %c0_i32_1, %c0_i32_2 : i32, i32, i32, i32
  }
  func.func @transform_33(%arg0: i32) -> (i32, i32, i32, i32) {
    %c0_i32 = arith.constant 0 : i32
    %c0_i32_0 = arith.constant 0 : i32
    %c0_i32_1 = arith.constant 0 : i32
    %c0_i32_2 = arith.constant 0 : i32
    %c0_i32_3 = arith.constant 0 : i32
    return %c0_i32, %c0_i32_0, %c0_i32_1, %c0_i32_2 : i32, i32, i32, i32
  }
  func.func @transform_34(%arg0: i32) -> (i32, i32, i32, i32) {
    %c0_i32 = arith.constant 0 : i32
    %c0_i32_0 = arith.constant 0 : i32
    %c0_i32_1 = arith.constant 0 : i32
    %c0_i32_2 = arith.constant 0 : i32
    %c0_i32_3 = arith.constant 0 : i32
    return %c0_i32, %c0_i32_0, %c0_i32_1, %c0_i32_2 : i32, i32, i32, i32
  }
  func.func @transform_35(%arg0: i32) -> (i32, i32, i32, i32) {
    %c0_i32 = arith.constant 0 : i32
    %c0_i32_0 = arith.constant 0 : i32
    %c0_i32_1 = arith.constant 0 : i32
    %c0_i32_2 = arith.constant 0 : i32
    %c0_i32_3 = arith.constant 0 : i32
    return %c0_i32, %c0_i32_0, %c0_i32_1, %c0_i32_2 : i32, i32, i32, i32
  }
  func.func @transform_36(%arg0: i32) -> (i32, i32, i32, i32) {
    %c0_i32 = arith.constant 0 : i32
    %c0_i32_0 = arith.constant 0 : i32
    %c0_i32_1 = arith.constant 0 : i32
    %c0_i32_2 = arith.constant 0 : i32
    %c0_i32_3 = arith.constant 0 : i32
    return %c0_i32, %c0_i32_0, %c0_i32_1, %c0_i32_2 : i32, i32, i32, i32
  }
  func.func @transform_37(%arg0: i32) -> (i32, i32, i32, i32) {
    %c0_i32 = arith.constant 0 : i32
    %c0_i32_0 = arith.constant 0 : i32
    %c0_i32_1 = arith.constant 0 : i32
    %c0_i32_2 = arith.constant 0 : i32
    %c0_i32_3 = arith.constant 0 : i32
    return %c0_i32, %c0_i32_0, %c0_i32_1, %c0_i32_2 : i32, i32, i32, i32
  }
  func.func @transform_38(%arg0: i32) -> (i32, i32, i32, i32) {
    %c0_i32 = arith.constant 0 : i32
    %c0_i32_0 = arith.constant 0 : i32
    %c0_i32_1 = arith.constant 0 : i32
    %c0_i32_2 = arith.constant 0 : i32
    %c0_i32_3 = arith.constant 0 : i32
    return %c0_i32, %c0_i32_0, %c0_i32_1, %c0_i32_2 : i32, i32, i32, i32
  }
  func.func @transform_39(%arg0: i32) -> (i32, i32, i32) {
    %c0_i32 = arith.constant 0 : i32
    %c0_i32_0 = arith.constant 0 : i32
    %c0_i32_1 = arith.constant 0 : i32
    %c0_i32_2 = arith.constant 0 : i32
    return %c0_i32, %c0_i32_0, %c0_i32_1 : i32, i32, i32
  }
  func.func @transform_40(%arg0: i32) -> (i32, i32, i32) {
    %c0_i32 = arith.constant 0 : i32
    %c0_i32_0 = arith.constant 0 : i32
    %c0_i32_1 = arith.constant 0 : i32
    %c0_i32_2 = arith.constant 0 : i32
    return %c0_i32, %c0_i32_0, %c0_i32_1 : i32, i32, i32
  }
  func.func @transform_41(%arg0: i32) -> (i32, i32, i32) {
    %c0_i32 = arith.constant 0 : i32
    %c0_i32_0 = arith.constant 0 : i32
    %c0_i32_1 = arith.constant 0 : i32
    %c0_i32_2 = arith.constant 0 : i32
    return %c0_i32, %c0_i32_0, %c0_i32_1 : i32, i32, i32
  }
  func.func @transform_42(%arg0: i32) -> (i32, i32, i32) {
    %c0_i32 = arith.constant 0 : i32
    %c0_i32_0 = arith.constant 0 : i32
    %c0_i32_1 = arith.constant 0 : i32
    %c0_i32_2 = arith.constant 0 : i32
    return %c0_i32, %c0_i32_0, %c0_i32_1 : i32, i32, i32
  }
  func.func @transform_43(%arg0: i32) -> (i32, i32, i32) {
    %c0_i32 = arith.constant 0 : i32
    %c0_i32_0 = arith.constant 0 : i32
    %c0_i32_1 = arith.constant 0 : i32
    %c0_i32_2 = arith.constant 0 : i32
    return %c0_i32, %c0_i32_0, %c0_i32_1 : i32, i32, i32
  }
  func.func @transform_44(%arg0: i32) -> (i32, i32, i32) {
    %c0_i32 = arith.constant 0 : i32
    %c0_i32_0 = arith.constant 0 : i32
    %c0_i32_1 = arith.constant 0 : i32
    %c0_i32_2 = arith.constant 0 : i32
    return %c0_i32, %c0_i32_0, %c0_i32_1 : i32, i32, i32
  }
  func.func @transform_45(%arg0: i32) -> (i32, i32, i32) {
    %c0_i32 = arith.constant 0 : i32
    %c0_i32_0 = arith.constant 0 : i32
    %c0_i32_1 = arith.constant 0 : i32
    %c0_i32_2 = arith.constant 0 : i32
    return %c0_i32, %c0_i32_0, %c0_i32_1 : i32, i32, i32
  }
  func.func @transform_46(%arg0: i32) -> (i32, i32) {
    %c0_i32 = arith.constant 0 : i32
    %c0_i32_0 = arith.constant 0 : i32
    %c0_i32_1 = arith.constant 0 : i32
    return %c0_i32, %c0_i32_0 : i32, i32
  }
  func.func @transform_47(%arg0: i32) -> (i32, i32) {
    %c0_i32 = arith.constant 0 : i32
    %c0_i32_0 = arith.constant 0 : i32
    %c0_i32_1 = arith.constant 0 : i32
    return %c0_i32, %c0_i32_0 : i32, i32
  }
  func.func @transform_48(%arg0: i32) -> (i32, i32) {
    %c0_i32 = arith.constant 0 : i32
    %c0_i32_0 = arith.constant 0 : i32
    %c0_i32_1 = arith.constant 0 : i32
    return %c0_i32, %c0_i32_0 : i32, i32
  }
  func.func @transform_49(%arg0: i32) -> (i32, i32) {
    %c0_i32 = arith.constant 0 : i32
    %c0_i32_0 = arith.constant 0 : i32
    %c0_i32_1 = arith.constant 0 : i32
    return %c0_i32, %c0_i32_0 : i32, i32
  }
  func.func @transform_50(%arg0: i32) -> (i32, i32) {
    %c0_i32 = arith.constant 0 : i32
    %c0_i32_0 = arith.constant 0 : i32
    %c0_i32_1 = arith.constant 0 : i32
    return %c0_i32, %c0_i32_0 : i32, i32
  }
  func.func @transform_51(%arg0: i32) -> (i32, i32, i32) {
    %c0_i32 = arith.constant 0 : i32
    %c0_i32_0 = arith.constant 0 : i32
    %c0_i32_1 = arith.constant 0 : i32
    %c0_i32_2 = arith.constant 0 : i32
    return %c0_i32, %c0_i32_0, %c0_i32_1 : i32, i32, i32
  }
  func.func @transform_52(%arg0: i32) -> (i32, i32, i32) {
    %c0_i32 = arith.constant 0 : i32
    %c0_i32_0 = arith.constant 0 : i32
    %c0_i32_1 = arith.constant 0 : i32
    %c0_i32_2 = arith.constant 0 : i32
    return %c0_i32, %c0_i32_0, %c0_i32_1 : i32, i32, i32
  }
  func.func @transform_53(%arg0: i32) -> (i32, i32, i32, i32) {
    %c0_i32 = arith.constant 0 : i32
    %c0_i32_0 = arith.constant 0 : i32
    %c0_i32_1 = arith.constant 0 : i32
    %c0_i32_2 = arith.constant 0 : i32
    %c0_i32_3 = arith.constant 0 : i32
    return %c0_i32, %c0_i32_0, %c0_i32_1, %c0_i32_2 : i32, i32, i32, i32
  }
  func.func @transform_54(%arg0: i32) -> (i32, i32, i32, i32) {
    %c0_i32 = arith.constant 0 : i32
    %c0_i32_0 = arith.constant 0 : i32
    %c0_i32_1 = arith.constant 0 : i32
    %c0_i32_2 = arith.constant 0 : i32
    %c0_i32_3 = arith.constant 0 : i32
    return %c0_i32, %c0_i32_0, %c0_i32_1, %c0_i32_2 : i32, i32, i32, i32
  }
  func.func @transform_55(%arg0: i32) -> (i32, i32, i32, i32) {
    %c0_i32 = arith.constant 0 : i32
    %c0_i32_0 = arith.constant 0 : i32
    %c0_i32_1 = arith.constant 0 : i32
    %c0_i32_2 = arith.constant 0 : i32
    %c0_i32_3 = arith.constant 0 : i32
    return %c0_i32, %c0_i32_0, %c0_i32_1, %c0_i32_2 : i32, i32, i32, i32
  }
  func.func @transform_56(%arg0: i32) -> (i32, i32, i32, i32) {
    %c0_i32 = arith.constant 0 : i32
    %c0_i32_0 = arith.constant 0 : i32
    %c0_i32_1 = arith.constant 0 : i32
    %c0_i32_2 = arith.constant 0 : i32
    %c0_i32_3 = arith.constant 0 : i32
    return %c0_i32, %c0_i32_0, %c0_i32_1, %c0_i32_2 : i32, i32, i32, i32
  }
  func.func @transform_57(%arg0: i32) -> (i32, i32, i32, i32) {
    %c0_i32 = arith.constant 0 : i32
    %c0_i32_0 = arith.constant 0 : i32
    %c0_i32_1 = arith.constant 0 : i32
    %c0_i32_2 = arith.constant 0 : i32
    %c0_i32_3 = arith.constant 0 : i32
    return %c0_i32, %c0_i32_0, %c0_i32_1, %c0_i32_2 : i32, i32, i32, i32
  }
  func.func @transform_58(%arg0: i32) -> (i32, i32, i32, i32) {
    %c0_i32 = arith.constant 0 : i32
    %c0_i32_0 = arith.constant 0 : i32
    %c0_i32_1 = arith.constant 0 : i32
    %c0_i32_2 = arith.constant 0 : i32
    %c0_i32_3 = arith.constant 0 : i32
    return %c0_i32, %c0_i32_0, %c0_i32_1, %c0_i32_2 : i32, i32, i32, i32
  }
  func.func @transform_59(%arg0: i32) -> (i32, i32, i32, i32) {
    %c0_i32 = arith.constant 0 : i32
    %c0_i32_0 = arith.constant 0 : i32
    %c0_i32_1 = arith.constant 0 : i32
    %c0_i32_2 = arith.constant 0 : i32
    %c0_i32_3 = arith.constant 0 : i32
    return %c0_i32, %c0_i32_0, %c0_i32_1, %c0_i32_2 : i32, i32, i32, i32
  }
  func.func @transform_60(%arg0: i32) -> (i32, i32, i32) {
    %c0_i32 = arith.constant 0 : i32
    %c0_i32_0 = arith.constant 0 : i32
    %c0_i32_1 = arith.constant 0 : i32
    %c0_i32_2 = arith.constant 0 : i32
    return %c0_i32, %c0_i32_0, %c0_i32_1 : i32, i32, i32
  }
  func.func @transform_61(%arg0: i32) -> (i32, i32, i32) {
    %c0_i32 = arith.constant 0 : i32
    %c0_i32_0 = arith.constant 0 : i32
    %c0_i32_1 = arith.constant 0 : i32
    %c0_i32_2 = arith.constant 0 : i32
    return %c0_i32, %c0_i32_0, %c0_i32_1 : i32, i32, i32
  }
  func.func @transform_62(%arg0: i32) -> (i32, i32, i32) {
    %c0_i32 = arith.constant 0 : i32
    %c0_i32_0 = arith.constant 0 : i32
    %c0_i32_1 = arith.constant 0 : i32
    %c0_i32_2 = arith.constant 0 : i32
    return %c0_i32, %c0_i32_0, %c0_i32_1 : i32, i32, i32
  }
  func.func @transform_63(%arg0: i32) -> (i32, i32, i32) {
    %c0_i32 = arith.constant 0 : i32
    %c0_i32_0 = arith.constant 0 : i32
    %c0_i32_1 = arith.constant 0 : i32
    %c0_i32_2 = arith.constant 0 : i32
    return %c0_i32, %c0_i32_0, %c0_i32_1 : i32, i32, i32
  }
  func.func @transform_64(%arg0: i32) -> (i32, i32, i32) {
    %c0_i32 = arith.constant 0 : i32
    %c0_i32_0 = arith.constant 0 : i32
    %c0_i32_1 = arith.constant 0 : i32
    %c0_i32_2 = arith.constant 0 : i32
    return %c0_i32, %c0_i32_0, %c0_i32_1 : i32, i32, i32
  }
  func.func @transform_65(%arg0: i32) -> (i32, i32, i32) {
    %c0_i32 = arith.constant 0 : i32
    %c0_i32_0 = arith.constant 0 : i32
    %c0_i32_1 = arith.constant 0 : i32
    %c0_i32_2 = arith.constant 0 : i32
    return %c0_i32, %c0_i32_0, %c0_i32_1 : i32, i32, i32
  }
  func.func @transform_66(%arg0: i32) -> (i32, i32, i32) {
    %c0_i32 = arith.constant 0 : i32
    %c0_i32_0 = arith.constant 0 : i32
    %c0_i32_1 = arith.constant 0 : i32
    %c0_i32_2 = arith.constant 0 : i32
    return %c0_i32, %c0_i32_0, %c0_i32_1 : i32, i32, i32
  }
  func.func @transform_67(%arg0: i32) -> (i32, i32) {
    %c0_i32 = arith.constant 0 : i32
    %c0_i32_0 = arith.constant 0 : i32
    %c0_i32_1 = arith.constant 0 : i32
    return %c0_i32, %c0_i32_0 : i32, i32
  }
  func.func @transform_68(%arg0: i32) -> (i32, i32) {
    %c0_i32 = arith.constant 0 : i32
    %c0_i32_0 = arith.constant 0 : i32
    %c0_i32_1 = arith.constant 0 : i32
    return %c0_i32, %c0_i32_0 : i32, i32
  }
  func.func @transform_69(%arg0: i32) -> (i32, i32) {
    %c0_i32 = arith.constant 0 : i32
    %c0_i32_0 = arith.constant 0 : i32
    %c0_i32_1 = arith.constant 0 : i32
    return %c0_i32, %c0_i32_0 : i32, i32
  }
  func.func @transform_70(%arg0: i32) -> (i32, i32) {
    %c0_i32 = arith.constant 0 : i32
    %c0_i32_0 = arith.constant 0 : i32
    %c0_i32_1 = arith.constant 0 : i32
    return %c0_i32, %c0_i32_0 : i32, i32
  }
  func.func @transform_71(%arg0: i32) -> (i32, i32, i32) {
    %c0_i32 = arith.constant 0 : i32
    %c0_i32_0 = arith.constant 0 : i32
    %c0_i32_1 = arith.constant 0 : i32
    return %arg0, %c0_i32, %c0_i32_0 : i32, i32, i32
  }
}

</mosaic_0001>

<bundles_post_ra>
// kernel: forward.1
= control target key start
LH: loop header
LB: loop body
LE: loop exit
PB: predicated region body
PF: predicated region fallthrough
CT: control target
= control target key end

     0   :  { %s16081_s6 = smov 1   ;;  %s16082_s10 = smov 2   ;;  %s18592_s0 = inlined_call_operand.smem [shape: u32[72], index: -1, kind: input, shape index: {}] }
   0x1   :  { %s16189_s5 = sld [smem:[%s18592_s0]]   ;;  %s16083_s14 = smov 3  }
   0x2   :  { %s16194_s9 = sld [smem:[%s18592_s0 + %s16081_s6]]   ;;  %s16084_s18 = smov 4  }
   0x3   :  { %s16199_s13 = sld [smem:[%s18592_s0 + %s16082_s10]]   ;;  %s16085_s22 = smov 5  }
   0x4   :  { %s16204_s17 = sld [smem:[%s18592_s0 + %s16083_s14]]   ;;  %s16086_s26 = smov 7  }
   0x5   :  { %s16209_s21 = sld [smem:[%s18592_s0 + %s16084_s18]]   ;;  %s16087_s30 = smov 8  }
   0x6   :  { %s16214_s25 = sld [smem:[%s18592_s0 + %s16085_s22]]   ;;  %s16088_s4 = smov 9  }
   0x7   :  { %18688 = sst [smem:[#allocation47_spill]] %s16189_s5  ;;  %s16089_s10 = smov 10  }
   0x8   :  { %18689 = sst [smem:[#allocation48_spill]] %s16194_s9  ;;  %s16090_s15 = smov 11  }
   0x9   :  { %18690 = sst [smem:[#allocation49_spill]] %s16199_s13  ;;  %s16091_s20 = smov 12  }
   0xa   :  { %18691 = sst [smem:[#allocation50_spill]] %s16204_s17  ;;  %s16093_s1 = smov 14  }
   0xb   :  { %18692 = sst [smem:[#allocation51_spill]] %s16209_s21  ;;  %s16094_s7 = smov 15  }
   0xc   :  { %s16219_s29 = sld [smem:[%s18592_s0 + %s16086_s26]]   ;;  %s16092_s26 = smov 13  }
   0xd   :  { %s16224_s3 = sld [smem:[%s18592_s0 + %s16087_s30]]   ;;  %s16096_s22 = smov 17  }
   0xe   :  { %s16229_s8 = sld [smem:[%s18592_s0 + %s16088_s4]]   ;;  %s16097_s28 = smov 18  }
   0xf   :  { %s16234_s14 = sld [smem:[%s18592_s0 + %s16089_s10]]  }
  0x10   :  { %s16239_s19 = sld [smem:[%s18592_s0 + %s16090_s15]]   ;;  %s16095_s15 = smov 16  }
  0x11   :  { %s16244_s24 = sld [smem:[%s18592_s0 + %s16091_s20]]  }
  0x12   :  { %s16249_s30 = sld [smem:[%s18592_s0 + %s16092_s26]]  }
  0x13   :  { %18693 = sst [smem:[#allocation52_spill]] %s16224_s3 }
  0x14   :  { %18694 = sst [smem:[#allocation53_spill]] %s16229_s8 }
  0x15   :  { %18695 = sst [smem:[#allocation54_spill]] %s16234_s14 }
  0x16   :  { %18696 = sst [smem:[#allocation55_spill]] %s16239_s19 }
  0x17   :  { %18697 = sst [smem:[#allocation56_spill]] %s16244_s24 }
  0x18   :  { %18698 = sst [smem:[#allocation57_spill]] %s16249_s30 }
  0x19   :  { %s16254_s6 = sld [smem:[%s18592_s0 + %s16093_s1]]  }
  0x1a   :  { %s16259_s12 = sld [smem:[%s18592_s0 + %s16094_s7]]   ;;  %s16098_s7 = smov 19  }
  0x1b   :  { %s16264_s20 = sld [smem:[%s18592_s0 + %s16095_s15]]   ;;  %s16099_s15 = smov 20  }
  0x1c   :  { %s16269_s27 = sld [smem:[%s18592_s0 + %s16096_s22]]   ;;  %s16100_s22 = smov 21  }
  0x1d   :  { %s16274_s4 = sld [smem:[%s18592_s0 + %s16097_s28]]   ;;  %s16101_s28 = smov 22  }
  0x1f   :  { %18699 = sst [smem:[#allocation58_spill]] %s16254_s6 }
  0x20   :  { %18700 = sst [smem:[#allocation59_spill]] %s16259_s12 }
  0x21   :  { %18701 = sst [smem:[#allocation60_spill]] %s16264_s20 }
  0x22   :  { %18702 = sst [smem:[#allocation61_spill]] %s16269_s27 }
  0x23   :  { %18703 = sst [smem:[#allocation62_spill]] %s16274_s4 }
  0x24   :  { %s16279_s12 = sld [smem:[%s18592_s0 + %s16098_s7]]   ;;  %s16102_s7 = smov 23  }
  0x25   :  { %s16284_s20 = sld [smem:[%s18592_s0 + %s16099_s15]]   ;;  %s16103_s15 = smov 24  }
  0x26   :  { %s16289_s27 = sld [smem:[%s18592_s0 + %s16100_s22]]   ;;  %s16104_s22 = smov 25  }
  0x27   :  { %s16294_s4 = sld [smem:[%s18592_s0 + %s16101_s28]]   ;;  %s16105_s28 = smov 26  }
  0x2a   :  { %18704 = sst [smem:[#allocation63_spill]] %s16279_s12 }
  0x2b   :  { %18705 = sst [smem:[#allocation64_spill]] %s16284_s20 }
  0x2c   :  { %18706 = sst [smem:[#allocation65_spill]] %s16289_s27 }
  0x2d   :  { %18707 = sst [smem:[#allocation66_spill]] %s16294_s4 }
  0x2e   :  { %s16299_s12 = sld [smem:[%s18592_s0 + %s16102_s7]]   ;;  %s16106_s7 = smov 27  }
  0x2f   :  { %s16304_s20 = sld [smem:[%s18592_s0 + %s16103_s15]]   ;;  %s16107_s15 = smov 28  }
  0x30   :  { %s16309_s27 = sld [smem:[%s18592_s0 + %s16104_s22]]   ;;  %s16108_s22 = smov 29  }
  0x31   :  { %s16314_s4 = sld [smem:[%s18592_s0 + %s16105_s28]]   ;;  %s16109_s28 = smov 30  }
  0x32   :  { %s16334_s19 = sld [smem:[%s18592_s0 + %s16109_s28]]   ;;  %s16113_s28 = smov 34  }
  0x34   :  { %18708 = sst [smem:[#allocation67_spill]] %s16299_s12 }
  0x35   :  { %18709 = sst [smem:[#allocation68_spill]] %s16304_s20 }
  0x36   :  { %18710 = sst [smem:[#allocation69_spill]] %s16309_s27 }
  0x37   :  { %18711 = sst [smem:[#allocation70_spill]] %s16314_s4 }
  0x38   :  { %s16319_s12 = sld [smem:[%s18592_s0 + %s16106_s7]]   ;;  %s16110_s7 = smov 31  }
  0x39   :  { %s16324_s20 = sld [smem:[%s18592_s0 + %s16107_s15]]   ;;  %s16111_s15 = smov 32  }
  0x3a   :  { %s16329_s27 = sld [smem:[%s18592_s0 + %s16108_s22]]   ;;  %s16112_s22 = smov 33  }
  0x3b   :  { %18714 = sst [smem:[#allocation73_spill]] %s16334_s19 }
  0x3c   :  { %s16344_s30 = sld [smem:[%s18592_s0 + %s16111_s15]]   ;;  %s16115_s15 = smov 36  }
  0x3d   :  { %s16349_s6 = sld [smem:[%s18592_s0 + %s16112_s22]]   ;;  %s16116_s22 = smov 37  }
  0x3e   :  { %18712 = sst [smem:[#allocation71_spill]] %s16319_s12 }
  0x3f   :  { %18713 = sst [smem:[#allocation72_spill]] %s16324_s20 }
  0x40   :  { %s16339_s12 = sld [smem:[%s18592_s0 + %s16110_s7]]   ;;  %s16114_s7 = smov 35  }
  0x41   :  { %s16354_s19 = sld [smem:[%s18592_s0 + %s16113_s28]]   ;;  %s16117_s28 = smov 38  }
  0x42   :  { %18716 = sst [smem:[#allocation75_spill]] %s16344_s30 }
  0x43   :  { %18717 = sst [smem:[#allocation76_spill]] %s16349_s6 }
  0x44   :  { %s16364_s30 = sld [smem:[%s18592_s0 + %s16115_s15]]   ;;  %s16119_s15 = smov 40  }
  0x45   :  { %s16369_s6 = sld [smem:[%s18592_s0 + %s16116_s22]]   ;;  %s16120_s22 = smov 41  }
  0x46   :  { %18715 = sst [smem:[#allocation74_spill]] %s16339_s12 }
  0x47   :  { %18718 = sst [smem:[#allocation77_spill]] %s16354_s19 }
  0x48   :  { %s16359_s12 = sld [smem:[%s18592_s0 + %s16114_s7]]   ;;  %s16118_s7 = smov 39  }
  0x49   :  { %s16374_s19 = sld [smem:[%s18592_s0 + %s16117_s28]]   ;;  %s16121_s28 = smov 42  }
  0x4a   :  { %18720 = sst [smem:[#allocation79_spill]] %s16364_s30 }
  0x4b   :  { %18721 = sst [smem:[#allocation80_spill]] %s16369_s6 }
  0x4c   :  { %s16384_s30 = sld [smem:[%s18592_s0 + %s16119_s15]]   ;;  %s16123_s15 = smov 44  }
  0x4d   :  { %s16389_s6 = sld [smem:[%s18592_s0 + %s16120_s22]]   ;;  %s16124_s22 = smov 45  }
  0x4e   :  { %18719 = sst [smem:[#allocation78_spill]] %s16359_s12 }
  0x4f   :  { %18722 = sst [smem:[#allocation81_spill]] %s16374_s19 }
  0x50   :  { %s16379_s12 = sld [smem:[%s18592_s0 + %s16118_s7]]   ;;  %s16122_s7 = smov 43  }
  0x51   :  { %s16394_s19 = sld [smem:[%s18592_s0 + %s16121_s28]]   ;;  %s16125_s28 = smov 46  }
  0x52   :  { %18724 = sst [smem:[#allocation83_spill]] %s16384_s30 }
  0x53   :  { %18725 = sst [smem:[#allocation84_spill]] %s16389_s6 }
  0x54   :  { %s16404_s30 = sld [smem:[%s18592_s0 + %s16123_s15]]   ;;  %s16127_s15 = smov 48  }
  0x55   :  { %s16409_s6 = sld [smem:[%s18592_s0 + %s16124_s22]]   ;;  %s16128_s22 = smov 49  }
  0x56   :  { %18723 = sst [smem:[#allocation82_spill]] %s16379_s12 }
  0x57   :  { %18726 = sst [smem:[#allocation85_spill]] %s16394_s19 }
  0x58   :  { %s16399_s12 = sld [smem:[%s18592_s0 + %s16122_s7]]   ;;  %s16126_s7 = smov 47  }
  0x59   :  { %s16414_s19 = sld [smem:[%s18592_s0 + %s16125_s28]]   ;;  %s16129_s28 = smov 50  }
  0x5a   :  { %18728 = sst [smem:[#allocation87_spill]] %s16404_s30 }
  0x5b   :  { %18729 = sst [smem:[#allocation88_spill]] %s16409_s6 }
  0x5c   :  { %s16424_s30 = sld [smem:[%s18592_s0 + %s16127_s15]]   ;;  %s16131_s15 = smov 52  }
  0x5d   :  { %s16429_s6 = sld [smem:[%s18592_s0 + %s16128_s22]]   ;;  %s16132_s22 = smov 53  }
  0x5e   :  { %18727 = sst [smem:[#allocation86_spill]] %s16399_s12 }
  0x5f   :  { %18730 = sst [smem:[#allocation89_spill]] %s16414_s19 }
  0x60   :  { %s16419_s12 = sld [smem:[%s18592_s0 + %s16126_s7]]   ;;  %s16130_s7 = smov 51  }
  0x61   :  { %s16434_s19 = sld [smem:[%s18592_s0 + %s16129_s28]]   ;;  %s16133_s28 = smov 54  }
  0x62   :  { %18732 = sst [smem:[#allocation91_spill]] %s16424_s30 }
  0x63   :  { %18733 = sst [smem:[#allocation92_spill]] %s16429_s6 }
  0x64   :  { %s16439_s8 = sld [smem:[%s18592_s0 + %s16130_s7]]   ;;  %s16134_s7 = smov 55  }
  0x65   :  { %s16444_s30 = sld [smem:[%s18592_s0 + %s16131_s15]]   ;;  %s16135_s15 = smov 56  }
  0x66   :  { %18731 = sst [smem:[#allocation90_spill]] %s16419_s12 }
  0x67   :  { %18734 = sst [smem:[#allocation93_spill]] %s16434_s19 }
  0x68   :  { %s16449_s3 = sld [smem:[%s18592_s0 + %s16132_s22]]   ;;  %s16136_s22 = smov 57  }
  0x69   :  { %s16454_s24 = sld [smem:[%s18592_s0 + %s16133_s28]]   ;;  %s16137_s28 = smov 58  }
  0x6a   :  { %18735 = sst [smem:[#allocation94_spill]] %s16439_s8 }
  0x6b   :  { %18736 = sst [smem:[#allocation95_spill]] %s16444_s30 }
  0x6c   :  { %s16459_s8 = sld [smem:[%s18592_s0 + %s16134_s7]]   ;;  %s16138_s7 = smov 59  }
  0x6d   :  { %s16464_s30 = sld [smem:[%s18592_s0 + %s16135_s15]]   ;;  %s16139_s15 = smov 60  }
  0x6e   :  { %18737 = sst [smem:[#allocation96_spill]] %s16449_s3 }
  0x6f   :  { %18738 = sst [smem:[#allocation97_spill]] %s16454_s24 }
  0x70   :  { %s16469_s3 = sld [smem:[%s18592_s0 + %s16136_s22]]   ;;  %s16140_s22 = smov 61  }
  0x71   :  { %s16474_s24 = sld [smem:[%s18592_s0 + %s16137_s28]]   ;;  %s16141_s28 = smov 62  }
  0x72   :  { %18739 = sst [smem:[#allocation98_spill]] %s16459_s8 }
  0x73   :  { %18740 = sst [smem:[#allocation99_spill]] %s16464_s30 }
  0x74   :  { %s16479_s8 = sld [smem:[%s18592_s0 + %s16138_s7]]   ;;  %s16142_s7 = smov 63  }
  0x75   :  { %s16484_s30 = sld [smem:[%s18592_s0 + %s16139_s15]]   ;;  %s16143_s15 = smov 64  }
  0x76   :  { %18741 = sst [smem:[#allocation100_spill]] %s16469_s3 }
  0x77   :  { %18742 = sst [smem:[#allocation101_spill]] %s16474_s24 }
  0x78   :  { %s16489_s3 = sld [smem:[%s18592_s0 + %s16140_s22]]   ;;  %s16144_s22 = smov 65  }
  0x79   :  { %s16494_s24 = sld [smem:[%s18592_s0 + %s16141_s28]]   ;;  %s16145_s28 = smov 66  }
  0x7a   :  { %18743 = sst [smem:[#allocation102_spill]] %s16479_s8 }
  0x7b   :  { %s16499_s8 = sld [smem:[%s18592_s0 + %s16142_s7]]   ;;  %s16146_s7 = smov 67  }
  0x7c   :  { %s16504_s14 = sld [smem:[%s18592_s0 + %s16143_s15]]   ;;  %s16147_s15 = smov 68  }
  0x7d   :  { %s16509_s13 = sld [smem:[%s18592_s0 + %s16144_s22]]   ;;  %s16148_s22 = smov 69  }
  0x7e   :  { %18744 = sst [smem:[#allocation103_spill]] %s16489_s3 }
  0x7f   :  { %18745 = sst [smem:[#allocation104_spill]] %s16494_s24 }
  0x80   :  { %s16514_s9 = sld [smem:[%s18592_s0 + %s16145_s28]]   ;;  %s16149_s28 = smov 70  }
  0x81   :  { %18746 = sst [smem:[#allocation105_spill]] %s16499_s8 }
  0x82   :  { %18747 = sst [smem:[#allocation106_spill]] %s16504_s14 }
  0x83   :  { %18748 = sst [smem:[#allocation107_spill]] %s16509_s13 }
  0x84   :  { %s16519_s8 = sld [smem:[%s18592_s0 + %s16146_s7]]   ;;  %s16150_s7 = smov 71  }
  0x85   :  { %s16524_s5 = sld [smem:[%s18592_s0 + %s16147_s15]]  }
  0x86   :  { %18749 = sst [smem:[#allocation108_spill]] %s16514_s9 }
  0x87   :  { %s16529_s13 = sld [smem:[%s18592_s0 + %s16148_s22]]  }
  0x88   :  { %s16534_s9 = sld [smem:[%s18592_s0 + %s16149_s28]]  }
  0x89   :  { %s16539_s24 = sld [smem:[%s18592_s0 + %s16150_s7]]  }
  0x8a   :  { %18750 = sst [smem:[#allocation109_spill]] %s16519_s8 }
  0x8b   :  { %18751 = sst [smem:[#allocation110_spill]] %s16524_s5 }
  0x8e   :  { %18752 = sst [smem:[#allocation111_spill]] %s16534_s9 }
  0x8f   :  { %148 = vsyncpa [#allocation7], 0 }
  0x90   :  { %149 = vsyncpa [#allocation10], 0 }
  0x91   :  { %150 = vsyncpa [#allocation13], 0 }
  0x92   :  { %151 = vsyncpa [#allocation16], 0 }
  0x93   :  { %152 = vsyncpa [#allocation19], 0 }
  0x94   :  { %153 = vsyncpa [#allocation22], 0 }
  0x95   :  { %154 = vsyncpa [#allocation25], 0 }
  0x96   :  { %155 = vsyncpa [#allocation28], 0 }
  0x97   :  { %156 = vsyncpa [#allocation31], 0 }
  0x98   :  { %157 = vsyncpa [#allocation34], 0 }
  0x99   :  { %158 = vsyncpa [#allocation8], 0 }
  0x9a   :  { %160 = vsyncpa [#allocation8 + $0x1], 0  ;;  %s16541_s15 = smov 0   ;;  %s16543_s16 = smov 0  }
  0x9b   :  { %s16545_s18 = smov 0   ;;  %s16547_s0 = smov 0  }
  0x9c LB: > { %18753 = sst [smem:[#allocation112_spill]] %s16067_s15  ;;  %s16562_s22 = sadd.s32 4294967295, %s16079_s0   ;;  %s16079_s0 = sphi %s16547_s0, %s18893_s0   ;;  %s16075_s18 = sphi %s16545_s18, %s18895_s18   ;;  %s16071_s16 = sphi %s16543_s16, %s18897_s16   ;;  %s16067_s15 = sphi %s16541_s15, %s18896_s15  }
  0x9d   : > { %18754 = sst [smem:[#allocation113_spill]] %s16075_s18  ;;  %s12801_s23 = sadd.s32 4294967294, %s16079_s0  }
  0x9e   : > { %18755 = sst [smem:[#allocation114_spill]] %s16079_s0  ;;  %s16566_s26 = sadd.s32 1, %s16079_s0  }
  0x9f   : > { %18756 = sst [smem:[#allocation115_spill]] %s16566_s26  ;;  %s1669_s28 = sadd.s32 1, %s16075_s18 }
  0xa0   : > { %s1666_s1 = ssub.s32 %s16079_s0, %s16566_s26  ;;  %p1679_p0 = scmp.ne.s32.totalorder %s16075_s18, %s16071_s16 }
  0xa1   : > { %p1667_p1 = scmp.eq.s32.totalorder %s1666_s1, 0  ;;  %p1680_p2 = scmp.eq.s32.totalorder %s16562_s22, 1 }
  0xa2   : > { %p1685_p3 = scmp.ne.s32.totalorder %s16071_s16, %s16067_s15  ;;  %p1686_p4 = scmp.eq.s32.totalorder %s12801_s23, 1 }
  0xa3   : > { %s16577_s2 = scalar_select %p1667_p1, %s16075_s18, %s1669_s28  }
  0xa4   : > { %p16579_p5 = por %p1680_p2, %p1679_p0  ;;  %p16583_p6 = por %p1686_p4, %p1685_p3 }
  0xa5   : > { %18757 = sst [smem:[#allocation116_spill]] %s16577_s2  ;;  %p12802_p7 = scmp.ge.s32.totalorder %s16079_s0, 1 }
  0xa6   : > { %s18758_s7 = scalar_select %p16579_p5, 1, 0 }
  0xa7   : > { %s18759_s10 = scalar_select %p16583_p6, 1, 0 }
  0xa8   : > { %p1693_p8 = scmp.lt.s32.totalorder %s16079_s0, 3  ;;  %p18644_p9 = scmp.eq.s32.totalorder %s16562_s22, 0 }
  0xa9   : > { %18760 = sst [smem:[#allocation117_spill]] %s18759_s10  ;;  %s16151_s1 = smov [#allocation9]  }
  0xaa   : > { %p16590_p10 = pnand %p12802_p7, %p1693_p8  ;;  %s1723_s23 = sshll.u32 %s16151_s1, 4  ;;  %s1724_s23 = int_to_ptr.vmem [resolvable:$true] %s1723_s23 }
  0xab   : > { %s16152_s28 = smov [#allocation12]   ;;  %s16153_s26 = smov [#allocation15]  }
  0xac   : > { %s18761_s11 = scalar_select %p16590_p10, 1, 0 }
  0xad   : > { %p15030_p11 = pneg %p16590_p10  ;;  %s1748_s2 = sshll.u32 %s16152_s28, 4  ;;  %s1749_s2 = int_to_ptr.vmem [resolvable:$true] %s1748_s2 }
  0xae   : > { %s1827_s10 = sshll.u32 %s16153_s26, 4  ;;  %s15522_s1 = scalar_lea.vmem %s1724_s23, 16  ;;  %s16602_s10 = int_to_ptr.vmem [resolvable:$true] %s1827_s10 }
  0xaf   : > { %p16598_p12 = pnand %p18644_p9, %p15030_p11  ;;  %p15523_p0 = scmp.ne.s32.totalorder %s1724_s23, %s15522_s1 }
  0xb0   : > { %s15529_s28 = scalar_lea.vmem %s1724_s23, 32  ;;  %p15530_p3 = scmp.lt.s32.totalorder %s1724_s23, %s1724_s23 }
  0xb1   : > { %p16606_p13 = pneg %p16598_p12  ;;  %p15531_p4 = scmp.lt.s32.totalorder %s15529_s28, %s15522_s1 }
  0xb3   : > { %p15525_p1 = pnand %p15523_p0, %p16606_p13  ;;  %p15532_p7 = por %p15531_p4, %p15530_p3 }
  0xb5   : > { %p15526_p2 = pneg %p15525_p1 }
  0xb7   : > { %p15533_p8 = pnand %p15532_p7, %p15526_p2 }
  0xb9   : > { %15536 = shalt.err (!%p15533_p8)
}
  0xba   : > { %s18764_s21 = sld [smem:[#allocation51_spill]]  ;;  %s15548_s26 = scalar_lea.vmem %s1749_s2, 16 }
  0xbb   : > { %p15549_p11 = scmp.ne.s32.totalorder %s1749_s2, %s15548_s26  ;;  %s15555_s0 = scalar_lea.vmem %s1749_s2, 32 }
  0xbc   : > { %p15556_p5 = scmp.lt.s32.totalorder %s1749_s2, %s1749_s2  ;;  %p15557_p0 = scmp.lt.s32.totalorder %s15555_s0, %s15548_s26 }
  0xbd   : > { %p15551_p9 = pnand %p15549_p11, %p16606_p13 }
  0xbe   : > { %p15558_p1 = por %p15557_p0, %p15556_p5 }
  0xbf   : > { %p15552_p6 = pneg %p15551_p9 }
  0xc0   : > { %15036 = dma.hbm_to_vmem [thread:$0]  (!%p16598_p12), %s18764_s21, 16, %s1724_s23, [#allocation10]  }
  0xc1   : > { %p15559_p10 = pnand %p15558_p1, %p15552_p6 }
  0xc3   : > { %15562 = shalt.err (!%p15559_p10)
}
  0xc4   : > { %15042 = dma.hbm_to_vmem [thread:$0]  (!%p16598_p12), %s16219_s29, 16, %s1749_s2, [#allocation13]  }
  0xc5   : > { %s15574_s23 = scalar_lea.vmem %s16602_s10, 16  ;;  %s15581_s1 = scalar_lea.vmem %s16602_s10, 32 }
  0xc6   : > { %p15575_p2 = scmp.ne.s32.totalorder %s16602_s10, %s15574_s23  ;;  %p15582_p4 = scmp.lt.s32.totalorder %s16602_s10, %s16602_s10 }
  0xc7   : > { %p15583_p5 = scmp.lt.s32.totalorder %s15581_s1, %s15574_s23 }
  0xc8   : > { %p15577_p3 = pnand %p15575_p2, %p16606_p13 }
  0xc9   : > { %p15584_p6 = por %p15583_p5, %p15582_p4 }
  0xca   : > { %p15578_p9 = pneg %p15577_p3 }
  0xcc   : > { %p15585_p10 = pnand %p15584_p6, %p15578_p9 }
  0xce   : > { %15588 = shalt.err (!%p15585_p10)
}
  0xcf   : > { %s18765_s20 = sld [smem:[#allocation72_spill]]  ;;  %s16154_s0 = smov [#allocation18]  }
  0xd0   : > { %s1900_s2 = sshll.u32 %s16154_s0, 4  ;;  %s16155_s28 = smov [#allocation21]   ;;  %s1901_s2 = int_to_ptr.vmem [resolvable:$true] %s1900_s2 }
  0xd1   : > { %s1925_s26 = sshll.u32 %s16155_s28, 4  ;;  %s15600_s21 = scalar_lea.vmem %s1901_s2, 16  ;;  %s1926_s26 = int_to_ptr.vmem [resolvable:$true] %s1925_s26 }
  0xd2   : > { %p15601_p7 = scmp.ne.s32.totalorder %s1901_s2, %s15600_s21  ;;  %s15607_s23 = scalar_lea.vmem %s1901_s2, 32 }
  0xd3   : > { %p15608_p0 = scmp.lt.s32.totalorder %s1901_s2, %s1901_s2  ;;  %p15609_p1 = scmp.lt.s32.totalorder %s15607_s23, %s15600_s21 }
  0xd4   : > { %p15603_p8 = pnand %p15601_p7, %p16606_p13 }
  0xd5   : > { %15048 = dma.hbm_to_vmem [thread:$0]  (!%p16598_p12), %s18765_s20, 16, %s16602_s10, [#allocation16]  }
  0xd6   : > { %p15604_p11 = pneg %p15603_p8  ;;  %p15610_p2 = por %p15609_p1, %p15608_p0 }
  0xd8   : > { %p15611_p3 = pnand %p15610_p2, %p15604_p11 }
  0xda   : > { %15614 = shalt.err (!%p15611_p3)
}
  0xdb   : > { %s18766_s12 = sld [smem:[#allocation90_spill]]  ;;  %s15626_s10 = scalar_lea.vmem %s1926_s26, 16 }
  0xdc   : > { %p15627_p9 = scmp.ne.s32.totalorder %s1926_s26, %s15626_s10  ;;  %s15633_s1 = scalar_lea.vmem %s1926_s26, 32 }
  0xdd   : > { %p15634_p6 = scmp.lt.s32.totalorder %s1926_s26, %s1926_s26  ;;  %p15635_p10 = scmp.lt.s32.totalorder %s15633_s1, %s15626_s10 }
  0xde   : > { %p15629_p4 = pnand %p15627_p9, %p16606_p13 }
  0xdf   : > { %p15636_p7 = por %p15635_p10, %p15634_p6 }
  0xe0   : > { %p15630_p5 = pneg %p15629_p4 }
  0xe1   : > { %15054 = dma.hbm_to_vmem [thread:$0]  (!%p16598_p12), %s18766_s12, 16, %s1901_s2, [#allocation19]  }
  0xe2   : > { %p15637_p8 = pnand %p15636_p7, %p15630_p5 }
  0xe4   : > { %15640 = shalt.err (!%p15637_p8)
}
  0xe5   : > { %s18767_s19 = sld [smem:[#allocation93_spill]]  ;;  %s16156_s21 = smov [#allocation24]  }
  0xe6   : > { %s1975_s0 = sshll.u32 %s16156_s21, 4  ;;  %s16157_s2 = smov [#allocation27]   ;;  %s1976_s0 = int_to_ptr.vmem [resolvable:$true] %s1975_s0 }
  0xe7   : > { %s2004_s28 = sshll.u32 %s16157_s2, 4  ;;  %s15652_s23 = scalar_lea.vmem %s1976_s0, 32  ;;  %s2005_s28 = int_to_ptr.vmem [resolvable:$true] %s2004_s28 }
  0xe8   : > { %p15653_p11 = scmp.ne.s32.totalorder %s1976_s0, %s15652_s23  ;;  %p15660_p2 = scmp.lt.s32.totalorder %s1976_s0, %s1976_s0 }
  0xe9   : > { %p15661_p3 = scmp.lt.s32.totalorder %s15652_s23, %s15652_s23 }
  0xea   : > { %p15655_p0 = pnand %p15653_p11, %p16606_p13 }
  0xeb   : > { %15060 = dma.hbm_to_vmem [thread:$0]  (!%p16598_p12), %s18767_s19, 16, %s1926_s26, [#allocation22]  }
  0xec   : > { %p15656_p1 = pneg %p15655_p0  ;;  %p15662_p9 = por %p15661_p3, %p15660_p2 }
  0xee   : > { %p15663_p4 = pnand %p15662_p9, %p15656_p1 }
  0xf0   : > { %15666 = shalt.err (!%p15663_p4)
}
  0xf1   : > { %s18648_s10 = smov 16   ;;  %s18768_s3 = sld [smem:[#allocation103_spill]] }
  0xf2   : > { %s18650_s26 = smov 1   ;;  %s15678_s1 = scalar_lea.vmem %s2005_s28, 32 }
  0xf3   : > { %p15679_p5 = scmp.ne.s32.totalorder %s2005_s28, %s15678_s1  ;;  %p15686_p7 = scmp.lt.s32.totalorder %s2005_s28, %s2005_s28 }
  0xf4   : > { %p15687_p8 = scmp.lt.s32.totalorder %s15678_s1, %s15678_s1 }
  0xf5   : > { %p15681_p6 = pnand %p15679_p5, %p16606_p13 }
  0xf6   : > { %p15688_p11 = por %p15687_p8, %p15686_p7 }
  0xf7   : > { %15066 = dma.hbm_to_vmem [thread:$0]  (!%p16598_p12), %s18768_s3, 32, %s1976_s0, [#allocation25], %s18648_s10, %s18648_s10, %s18650_s26  }
  0xf8   : > { %p15682_p10 = pneg %p15681_p6 }
  0xfa   : > { %p15689_p0 = pnand %p15688_p11, %p15682_p10 }
  0xfc   : > { %15692 = shalt.err (!%p15689_p0)
}
  0xfd   : > { %s18769_s14 = sld [smem:[#allocation106_spill]]  ;;  %s16160_s21 = smov [#allocation30]  }
  0xfe   : > { %s2034_s0 = sshll.u32 %s16160_s21, 4  ;;  %s16161_s2 = smov [#allocation6]   ;;  %s2035_s0 = int_to_ptr.vmem [resolvable:$true] %s2034_s0 }
  0xff   : > { %s1712_s23 = sshll.u32 %s16161_s2, 4  ;;  %s15704_s3 = scalar_lea.vmem %s2035_s0, 16  ;;  %s1713_s23 = int_to_ptr.vmem [resolvable:$true] %s1712_s23 }
 0x100   : > { %p15705_p1 = scmp.ne.s32.totalorder %s2035_s0, %s15704_s3  ;;  %s15711_s1 = scalar_lea.vmem %s2035_s0, 32 }
 0x101   : > { %p15712_p9 = scmp.lt.s32.totalorder %s2035_s0, %s2035_s0  ;;  %p15713_p4 = scmp.lt.s32.totalorder %s15711_s1, %s15704_s3 }
 0x102   : > { %p15707_p2 = pnand %p15705_p1, %p16606_p13 }
 0x103   : > { %15072 = dma.hbm_to_vmem [thread:$0]  (!%p16598_p12), %s18769_s14, 32, %s2005_s28, [#allocation28], %s18648_s10, %s18648_s10, %s18650_s26  }
 0x104   : > { %p15708_p3 = pneg %p15707_p2  ;;  %p15714_p5 = por %p15713_p4, %p15712_p9 }
 0x106   : > { %p15715_p6 = pnand %p15714_p5, %p15708_p3 }
 0x108   : > { %15718 = shalt.err (!%p15715_p6)
}
 0x109   : > { %s18770_s8 = sld [smem:[#allocation109_spill]]  ;;  %s15730_s28 = scalar_lea.vmem %s1713_s23, 16 }
 0x10a   : > { %p15731_p10 = scmp.ne.s32.totalorder %s1713_s23, %s15730_s28  ;;  %s15737_s21 = scalar_lea.vmem %s1713_s23, 32 }
 0x10b   : > { %p15738_p11 = scmp.lt.s32.totalorder %s1713_s23, %s1713_s23  ;;  %p15739_p0 = scmp.lt.s32.totalorder %s15737_s21, %s15730_s28 }
 0x10c   : > { %p15733_p7 = pnand %p15731_p10, %p16606_p13 }
 0x10d   : > { %p15740_p1 = por %p15739_p0, %p15738_p11 }
 0x10e   : > { %p15734_p8 = pneg %p15733_p7 }
 0x10f   : > { %15078 = dma.hbm_to_vmem [thread:$0]  (!%p16598_p12), %s18770_s8, 16, %s2035_s0, [#allocation31]  }
 0x110   : > { %p15741_p2 = pnand %p15740_p1, %p15734_p8 }
 0x112   : > { %15744 = shalt.err (!%p15741_p2)
}
 0x113   : > { %s18771_s17 = sld [smem:[#allocation50_spill]]  ;;  %s16162_s3 = smov [#allocation11]  }
 0x114   : > { %s1734_s2 = sshll.u32 %s16162_s3, 4  ;;  %s16163_s0 = smov [#allocation14]   ;;  %s1735_s2 = int_to_ptr.vmem [resolvable:$true] %s1734_s2 }
 0x115   : > { %s1813_s1 = sshll.u32 %s16163_s0, 4  ;;  %s15756_s10 = scalar_lea.vmem %s1735_s2, 16  ;;  %s1814_s1 = int_to_ptr.vmem [resolvable:$true] %s1813_s1 }
 0x116   : > { %p15757_p3 = scmp.ne.s32.totalorder %s1735_s2, %s15756_s10  ;;  %s15763_s26 = scalar_lea.vmem %s1735_s2, 32 }
 0x117   : > { %p15764_p5 = scmp.lt.s32.totalorder %s1735_s2, %s1735_s2  ;;  %p15765_p6 = scmp.lt.s32.totalorder %s15763_s26, %s15756_s10 }
 0x118   : > { %p15759_p9 = pnand %p15757_p3, %p16606_p13 }
 0x119   : > { %15033 = dma.hbm_to_vmem [thread:$0]  (!%p16598_p12), %s18771_s17, 16, %s1713_s23, [#allocation7]  }
 0x11a   : > { %p15760_p4 = pneg %p15759_p9  ;;  %p15766_p10 = por %p15765_p6, %p15764_p5 }
 0x11c   : > { %p15767_p7 = pnand %p15766_p10, %p15760_p4 }
 0x11e   : > { %15770 = shalt.err (!%p15767_p7)
}
 0x11f   : > { %15039 = dma.hbm_to_vmem [thread:$0]  (!%p16598_p12), %s16214_s25, 16, %s1735_s2, [#allocation10]  }
 0x120   : > { %s15782_s23 = scalar_lea.vmem %s1814_s1, 16  ;;  %s15789_s28 = scalar_lea.vmem %s1814_s1, 32 }
 0x121   : > { %p15783_p8 = scmp.ne.s32.totalorder %s1814_s1, %s15782_s23  ;;  %p15790_p1 = scmp.lt.s32.totalorder %s1814_s1, %s1814_s1 }
 0x122   : > { %p15791_p2 = scmp.lt.s32.totalorder %s15789_s28, %s15782_s23 }
 0x123   : > { %p15785_p11 = pnand %p15783_p8, %p16606_p13 }
 0x124   : > { %p15792_p3 = por %p15791_p2, %p15790_p1 }
 0x125   : > { %p15786_p0 = pneg %p15785_p11 }
 0x127   : > { %p15793_p9 = pnand %p15792_p3, %p15786_p0 }
 0x129   : > { %15796 = shalt.err (!%p15793_p9)
}
 0x12a   : > { %s18772_s4 = sld [smem:[#allocation70_spill]]  ;;  %s16164_s10 = smov [#allocation17]  }
 0x12b   : > { %s1838_s26 = sshll.u32 %s16164_s10, 4  ;;  %s16165_s21 = smov [#allocation20]   ;;  %s1839_s26 = int_to_ptr.vmem [resolvable:$true] %s1838_s26 }
 0x12c   : > { %s1914_s3 = sshll.u32 %s16165_s21, 4  ;;  %s15808_s2 = scalar_lea.vmem %s1839_s26, 16  ;;  %s1915_s3 = int_to_ptr.vmem [resolvable:$true] %s1914_s3 }
 0x12d   : > { %p15809_p4 = scmp.ne.s32.totalorder %s1839_s26, %s15808_s2  ;;  %s15815_s0 = scalar_lea.vmem %s1839_s26, 32 }
 0x12e   : > { %p15816_p10 = scmp.lt.s32.totalorder %s1839_s26, %s1839_s26  ;;  %p15817_p7 = scmp.lt.s32.totalorder %s15815_s0, %s15808_s2 }
 0x12f   : > { %p15811_p5 = pnand %p15809_p4, %p16606_p13 }
 0x130   : > { %15045 = dma.hbm_to_vmem [thread:$0]  (!%p16598_p12), %s18772_s4, 16, %s1814_s1, [#allocation13]  }
 0x131   : > { %p15812_p6 = pneg %p15811_p5  ;;  %p15818_p8 = por %p15817_p7, %p15816_p10 }
 0x133   : > { %p15819_p11 = pnand %p15818_p8, %p15812_p6 }
 0x135   : > { %15822 = shalt.err (!%p15819_p11)
}
 0x136   : > { %15051 = dma.hbm_to_vmem [thread:$0]  (!%p16598_p12), %s16329_s27, 16, %s1839_s26, [#allocation16]  }
 0x137   : > { %s15834_s1 = scalar_lea.vmem %s1915_s3, 16  ;;  %s15841_s23 = scalar_lea.vmem %s1915_s3, 32 }
 0x138   : > { %p15835_p0 = scmp.ne.s32.totalorder %s1915_s3, %s15834_s1  ;;  %p15842_p3 = scmp.lt.s32.totalorder %s1915_s3, %s1915_s3 }
 0x139   : > { %p15843_p9 = scmp.lt.s32.totalorder %s15841_s23, %s15834_s1 }
 0x13a   : > { %p15837_p1 = pnand %p15835_p0, %p16606_p13 }
 0x13b   : > { %p15844_p4 = por %p15843_p9, %p15842_p3 }
 0x13c   : > { %p15838_p2 = pneg %p15837_p1 }
 0x13e   : > { %p15845_p5 = pnand %p15844_p4, %p15838_p2 }
 0x140   : > { %15848 = shalt.err (!%p15845_p5)
}
 0x141   : > { %s18773_s6 = sld [smem:[#allocation92_spill]]  ;;  %s16166_s28 = smov [#allocation23]  }
 0x142   : > { %s1962_s10 = sshll.u32 %s16166_s28, 4  ;;  %s16167_s26 = smov [#allocation26]   ;;  %s1963_s10 = int_to_ptr.vmem [resolvable:$true] %s1962_s10 }
 0x143   : > { %s1988_s21 = sshll.u32 %s16167_s26, 4  ;;  %s15860_s2 = scalar_lea.vmem %s1963_s10, 32  ;;  %s1989_s21 = int_to_ptr.vmem [resolvable:$true] %s1988_s21 }
 0x144   : > { %p15861_p6 = scmp.ne.s32.totalorder %s1963_s10, %s15860_s2  ;;  %p15868_p8 = scmp.lt.s32.totalorder %s1963_s10, %s1963_s10 }
 0x145   : > { %p15869_p11 = scmp.lt.s32.totalorder %s15860_s2, %s15860_s2 }
 0x146   : > { %p15863_p10 = pnand %p15861_p6, %p16606_p13 }
 0x147   : > { %15057 = dma.hbm_to_vmem [thread:$0]  (!%p16598_p12), %s18773_s6, 16, %s1915_s3, [#allocation19]  }
 0x148   : > { %p15864_p7 = pneg %p15863_p10  ;;  %p15870_p0 = por %p15869_p11, %p15868_p8 }
 0x14a   : > { %p15871_p1 = pnand %p15870_p0, %p15864_p7 }
 0x14c   : > { %15874 = shalt.err (!%p15871_p1)
}
 0x14d   : > { %s18774_s0 = smov 1   ;;  %s18775_s1 = smov 16  }
 0x14e   : > { %15063 = dma.hbm_to_vmem [thread:$0]  (!%p16598_p12), %s16484_s30, 32, %s1963_s10, [#allocation22], %s18775_s1, %s18775_s1, %s18774_s0  }
 0x14f   : > { %s15886_s3 = scalar_lea.vmem %s1989_s21, 32  ;;  %p15894_p4 = scmp.lt.s32.totalorder %s1989_s21, %s1989_s21 }
 0x150   : > { %p15887_p2 = scmp.ne.s32.totalorder %s1989_s21, %s15886_s3  ;;  %p15895_p5 = scmp.lt.s32.totalorder %s15886_s3, %s15886_s3 }
 0x152   : > { %p15889_p3 = pnand %p15887_p2, %p16606_p13  ;;  %p15896_p6 = por %p15895_p5, %p15894_p4 }
 0x154   : > { %p15890_p9 = pneg %p15889_p3 }
 0x156   : > { %p15897_p10 = pnand %p15896_p6, %p15890_p9 }
 0x158   : > { %15900 = shalt.err (!%p15897_p10)
}
 0x159   : > { %s18776_s23 = sld [smem:[#allocation104_spill]]  ;;  %s16168_s28 = smov [#allocation29]  }
 0x15a   : > { %s2020_s10 = sshll.u32 %s16168_s28, 4  ;;  %s16169_s26 = smov [#allocation32]   ;;  %s2021_s10 = int_to_ptr.vmem [resolvable:$true] %s2020_s10 }
 0x15b   : > { %s2045_s2 = sshll.u32 %s16169_s26, 4  ;;  %s15912_s4 = scalar_lea.vmem %s2021_s10, 32  ;;  %s2046_s2 = int_to_ptr.vmem [resolvable:$true] %s2045_s2 }
 0x15c   : > { %p15913_p7 = scmp.ne.s32.totalorder %s2021_s10, %s15912_s4  ;;  %p15920_p0 = scmp.lt.s32.totalorder %s2021_s10, %s2021_s10 }
 0x15d   : > { %p15921_p1 = scmp.lt.s32.totalorder %s15912_s4, %s15912_s4 }
 0x15e   : > { %p15915_p8 = pnand %p15913_p7, %p16606_p13 }
 0x15f   : > { %15069 = dma.hbm_to_vmem [thread:$0]  (!%p16598_p12), %s18776_s23, 32, %s1989_s21, [#allocation25], %s18775_s1, %s18775_s1, %s18774_s0  }
 0x160   : > { %p15916_p11 = pneg %p15915_p8  ;;  %p15922_p2 = por %p15921_p1, %p15920_p0 }
 0x162   : > { %p15923_p3 = pnand %p15922_p2, %p15916_p11 }
 0x164   : > { %15926 = shalt.err (!%p15923_p3)
}
 0x165   : > { %s18777_s21 = sld [smem:[#allocation108_spill]]  ;;  %s15938_s3 = scalar_lea.vmem %s2046_s2, 16 }
 0x166   : > { %p15939_p9 = scmp.ne.s32.totalorder %s2046_s2, %s15938_s3  ;;  %s15945_s23 = scalar_lea.vmem %s2046_s2, 32 }
 0x167   : > { %p15946_p6 = scmp.lt.s32.totalorder %s2046_s2, %s2046_s2  ;;  %p15947_p10 = scmp.lt.s32.totalorder %s15945_s23, %s15938_s3 }
 0x168   : > { %p15941_p4 = pnand %p15939_p9, %p16606_p13 }
 0x169   : > { %p15948_p7 = por %p15947_p10, %p15946_p6 }
 0x16a   : > { %p15942_p5 = pneg %p15941_p4 }
 0x16b   : > { %15075 = dma.hbm_to_vmem [thread:$0]  (!%p16598_p12), %s18777_s21, 32, %s2021_s10, [#allocation28], %s18775_s1, %s18775_s1, %s18774_s0  }
 0x16c   : > { %p15949_p8 = pnand %p15948_p7, %p15942_p5 }
 0x16e   : > { %15952 = shalt.err (!%p15949_p8)
}
 0x16f   : > { %s18778_s5 = sld [smem:[#allocation110_spill]]  ;;  %s16170_s4 = smov [#allocation33]  }
 0x170   : > { %s2059_s28 = sshll.u32 %s16170_s4, 4  ;;  %s2060_s28 = int_to_ptr.vmem [resolvable:$true] %s2059_s28 }
 0x171   : > { %s15964_s0 = scalar_lea.vmem %s2060_s28, 16  ;;  %s15971_s1 = scalar_lea.vmem %s2060_s28, 32 }
 0x172   : > { %p15965_p11 = scmp.ne.s32.totalorder %s2060_s28, %s15964_s0  ;;  %p15972_p2 = scmp.lt.s32.totalorder %s2060_s28, %s2060_s28 }
 0x173   : > { %p15973_p3 = scmp.lt.s32.totalorder %s15971_s1, %s15964_s0 }
 0x174   : > { %p15967_p0 = pnand %p15965_p11, %p16606_p13 }
 0x175   : > { %15081 = dma.hbm_to_vmem [thread:$0]  (!%p16598_p12), %s18778_s5, 16, %s2046_s2, [#allocation31]  }
 0x176   : > { %p15968_p1 = pneg %p15967_p0  ;;  %p15974_p9 = por %p15973_p3, %p15972_p2 }
 0x178   : > { %p15975_p4 = pnand %p15974_p9, %p15968_p1 }
 0x17a   : > { %15978 = shalt.err (!%p15975_p4)
}
 0x17b   : > { %s18779_s9 = sld [smem:[#allocation111_spill]]  ;;  %p18780_p5 = scmp.ne.s32.totalorder %s18761_s11, 0 }
 0x17c   : > { %p18781_p6 = scmp.eq.s32.totalorder (!%p18780_p5), %s16562_s22, 0 }
 0x17d   : > { %2080 = sbr.rel (%p18780_p5) target bundleno = 19951 (0x4def), region = 304 }
 0x181   : > { %15084 = dma.hbm_to_vmem [thread:$0]  (!%p16598_p12), %s18779_s9, 16, %s2060_s28, [#allocation34]  }
 0x182   : > { %16022 = dma.done.wait (%p18781_p6), [#allocation7], 16   ;;  %p18782_p10 = pmov %p18781_p6 }
 0x183   : > { %p18783_p13 = pmov %p18781_p6 }
 0x184   : > { %16024 = vsyncadd (%p18782_p10), [#allocation7], 4294967280 }
 0x185   : > { %16026 = dma.done.wait (%p18783_p13), [#allocation10], 32   ;;  %p18784_p7 = pmov %p18781_p6 }
 0x186   : > { %p18785_p8 = pmov %p18781_p6 }
 0x187   : > { %16028 = vsyncadd (%p18784_p7), [#allocation10], 4294967264 }
 0x188   : > { %16030 = dma.done.wait (%p18785_p8), [#allocation13], 32   ;;  %p18786_p12 = pmov %p18781_p6 }
 0x189   : > { %p18787_p11 = pmov %p18781_p6 }
 0x18a   : > { %16032 = vsyncadd (%p18786_p12), [#allocation13], 4294967264 }
 0x18b   : > { %16034 = dma.done.wait (%p18787_p11), [#allocation16], 32   ;;  %p18788_p0 = pmov %p18781_p6 }
 0x18d   : > { %16036 = vsyncadd (%p18788_p0), [#allocation16], 4294967264  ;;  %p18789_p1 = pmov %p18788_p0 }
 0x18e   : > { %p18790_p2 = pmov %p18788_p0 }
 0x18f   : > { %16038 = dma.done.wait (%p18789_p1), [#allocation19], 32  }
 0x190   : > { %16040 = vsyncadd (%p18790_p2), [#allocation19], 4294967264  ;;  %p18791_p3 = pmov %p18788_p0 }
 0x191   : > { %p18792_p9 = pmov %p18788_p0 }
 0x192   : > { %16042 = dma.done.wait (%p18791_p3), [#allocation22], 48  }
 0x193   : > { %16044 = vsyncadd (%p18792_p9), [#allocation22], 4294967248  ;;  %p18793_p4 = pmov %p18788_p0 }
 0x194   : > { %p18794_p5 = pmov %p18788_p0 }
 0x195   : > { %16046 = dma.done.wait (%p18793_p4), [#allocation25], 64  }
 0x196   : > { %16048 = vsyncadd (%p18794_p5), [#allocation25], 4294967232  ;;  %p18795_p6 = pmov %p18788_p0 }
 0x197   : > { %p18796_p10 = pmov %p18788_p0 }
 0x198   : > { %16050 = dma.done.wait (%p18795_p6), [#allocation28], 64  }
 0x199   : > { %16052 = vsyncadd (%p18796_p10), [#allocation28], 4294967232  ;;  %p18797_p13 = pmov %p18788_p0 }
 0x19a   : > { %p18798_p7 = pmov %p18788_p0 }
 0x19b   : > { %16054 = dma.done.wait (%p18797_p13), [#allocation31], 32  }
 0x19c   : > { %16056 = vsyncadd (%p18798_p7), [#allocation31], 4294967264  ;;  %p18799_p8 = pmov %p18788_p0 }
 0x19d   : > { %p18800_p12 = pmov %p18788_p0 }
 0x19e   : > { %16058 = dma.done.wait (%p18799_p8), [#allocation34], 16  }
 0x19f   : > { %16060 = vsyncadd (%p18800_p12), [#allocation34], 4294967280  ;;  %s18801_s15 = sld [smem:[#allocation47_spill]]  ;;  %p2307_p11 = scmp.lt.s32.totalorder %s16562_s22, 1  ;;  %v16171_v0 = vmov 0.0   ;;  %vm16172_vm0 = vmmov 0  }
 0x1a0   : > { %s18802_s18 = sld [smem:[#allocation48_spill]]  ;;  %13817 = vmatprep.subr.mxu0 %v16171_v0  ;;  %13819 = vmatprep.mubr.msk.f32.mxu0 %vm16172_vm0, %v16171_v0  ;;  %vm2333_vm1 = vcmask 1042432   ;;  %vm2326_vm2 = vcmask 1041408   ;;  %vm2330_vm3 = vcmask 23552   ;;  %v2409_v7 = vld [vmem:[#allocation6] sm:$0x1] }
 0x1a1   : > { %s2308_s11 = scalar_select %p2307_p11, %s16562_s22, 1  ;;  %13822 = vmatprep.subr.mxu1 %v16171_v0  ;;  %13830 = vmatprep.mubr.msk.f32.mxu1 %vm16172_vm0, %v16171_v0  ;;  %vm2410_vm4 = vcmask 253952   ;;  %vm2407_vm5 = vcmask 259072   ;;  %vm2415_vm6 = vcmask 260096   ;;  %vm2485_vm7 = vcmask 261120  }
 0x1a2   : > { %s18803_s2 = sld [smem:[#allocation49_spill]]  ;;  %2411 = vst.msk [vmem:[#allocation2 + $0x6] sm:$0x1] %vm2410_vm4, %v2409_v7  ;;  %vm2711_vm8 = vcmask 130048   ;;  %vm2804_vm9 = vcmask 1046528   ;;  %vm2788_vm10 = vcmask 55296  }
 0x1a3   : > { %s13330_s10 = sshll.u32 %s2308_s11, 8  ;;  %s18804_s21 = sld [smem:[#allocation54_spill]]  ;;  %vm2800_vm11 = vcmask 56320   ;;  %vm3560_vm12 = vcmask 523264   ;;  %vm4973_vm13 = vcmask 60416   ;;  %vm5500_vm14 = vcmask 64512  }
 0x1a4   : > { %s18805_s3 = sld [smem:[#allocation56_spill]]  ;;  %vm5920_vm15 = vcmask 31744   ;;  %p18888_p1 = scmp.ne.s32.totalorder %s18758_s7, 0 }
 0x1a5   : > { %s16772_s26 = scalar_lea.vmem %s18801_s15, %s13330_s10  ;;  %s18806_s23 = sld [smem:[#allocation52_spill]] }
 0x1a6   : > { %v2322_v1 = vld [vmem:[%s18802_s18] sm:$0x7]  ;;  %v2313_v2 = vld [vmem:[%s16772_s26 + $0x10] sm:$0xff]  ;;  %v2314_v3 = vld [vmem:[%s16772_s26 + $0x18] sm:$0xf]  ;;  %s18807_s4 = sld [smem:[#allocation53_spill]] }
 0x1a7   : > { %13818 = vmatpush3.msk.msra.mxu0 %vm2333_vm1, %v2322_v1  ;;  %v2327_v4 = vrot.slane %v2313_v2, 6  ;;  %v2328_v5 = vrot.slane %v2314_v3, 6  ;;  %s18808_s28 = sld [smem:[#allocation58_spill]] }
 0x1a8   : > { %13833 = vmatprep.subr.mxu0 %v16171_v0  ;;  %v2323_v8 = vld [vmem:[%s18803_s2] sm:$0x3f]  ;;  %s18809_s0 = sld [smem:[#allocation57_spill]] }
 0x1a9   : > { %v2329_v6 = vsel %vm2326_vm2, %v2327_v4, %v2328_v5  ;;  %v2447_v19 = vld [vmem:[%s18804_s21 + $0x18] sm:$0xff]  ;;  %v2446_v21 = vld [vmem:[%s18804_s21 + $0x10] sm:$0xff]  ;;  %v2445_v23 = vld [vmem:[%s18804_s21 + $0x8] sm:$0xff]  ;;  %s18811_s15 = sld [smem:[#allocation55_spill]]  ;;  %vm6785_vm2 = vcmask 1043456  }
 0x1aa   : > { %13820 = vmatmul.mubr.msk.f32.vlgmr.msra.gmra.mxu0 %vm2330_vm3, %v2329_v6  ;;  %13823 = vmatpush3.msra.mxu1 %v2447_v19  ;;  %v2457_v20 = vld [vmem:[%s18805_s3 + $0x18] sm:$0xff]  ;;  %v2456_v22 = vld [vmem:[%s18805_s3 + $0x10] sm:$0xff]  ;;  %v2455_v24 = vld [vmem:[%s18805_s3 + $0x8] sm:$0xff]  ;;  %s18813_s18 = sld [smem:[#allocation59_spill]] }
 0x1ab   : > { %13841 = vmatprep.mubr.msk.f32.mxu0 %vm16172_vm0, %v16171_v0  ;;  %13824 = vmatprep.subr.mxu1 %v16171_v0  ;;  %v2444_v25 = vld [vmem:[%s18804_s21] sm:$0xff]  ;;  %v2451_v40 = vld [vmem:[%s18804_s21 + $0x38] sm:$0xff]  ;;  %v2450_v41 = vld [vmem:[%s18804_s21 + $0x30] sm:$0xff]  ;;  %s18815_s2 = sld [smem:[#allocation60_spill]] }
 0x1ac   : > { %13834 = vmatpush3.msra.mxu0 %v2457_v20  ;;  %13825 = vmatpush3.msra.mxu1 %v2446_v21  ;;  %v2454_v26 = vld [vmem:[%s18805_s3] sm:$0xff]  ;;  %v2449_v42 = vld [vmem:[%s18804_s21 + $0x28] sm:$0xff]  ;;  %s18824_s12 = sld [smem:[#allocation66_spill]] }
 0x1ad   : > { %13835 = vmatprep.subr.mxu0 %v16171_v0  ;;  %13826 = vmatprep.subr.mxu1 %v16171_v0  ;;  %v12845_v31 = vld [vmem:[%s18806_s23] ss:$0 sm:$0xff]  ;;  %v2467_v36 = vld [vmem:[%s18808_s28 + $0x18] sm:$0xff]  ;;  %v2466_v37 = vld [vmem:[%s18808_s28 + $0x10] sm:$0xff] }
 0x1ae   : > { %13836 = vmatpush3.msra.mxu0 %v2456_v22  ;;  %13827 = vmatpush3.msra.mxu1 %v2445_v23  ;;  %v12846_v33 = vld [vmem:[%s18807_s4] ss:$0 sm:$0xff]  ;;  %v2465_v38 = vld [vmem:[%s18808_s28 + $0x8] sm:$0xff]  ;;  %v2471_v44 = vld [vmem:[%s18808_s28 + $0x38] sm:$0xff]  ;;  %s18810_s1 = smov %s18809_s0 }
 0x1af   : > { %13837 = vmatprep.subr.mxu0 %v16171_v0  ;;  %13828 = vmatprep.subr.mxu1 %v16171_v0  ;;  %v2464_v39 = vld [vmem:[%s18808_s28] sm:$0xff]  ;;  %v2470_v45 = vld [vmem:[%s18808_s28 + $0x30] sm:$0xff]  ;;  %s18812_s11 = smov %s18811_s15  ;;  %v2469_v46 = vld [vmem:[%s18808_s28 + $0x28] sm:$0xff] }
 0x1b0   : > { %13838 = vmatpush3.msra.mxu0 %v2455_v24  ;;  %13829 = vmatpush3.msra.mxu1 %v2444_v25  ;;  %v2448_v43 = vld [vmem:[%s18804_s21 + $0x20] sm:$0xff]  ;;  %s18814_s10 = smov %s18813_s18 }
 0x1b1   : > { %13839 = vmatprep.subr.mxu0 %v16171_v0  ;;  %13844 = vmatprep.subr.mxu1 %v16171_v0  ;;  %v2468_v47 = vld [vmem:[%s18808_s28 + $0x20] sm:$0xff] }
 0x1b2   : > { %13840 = vmatpush3.msra.mxu0 %v2454_v26  ;;  %v12849_v48 = vld [vmem:[%s18809_s0] ss:$0 sm:$0xff]  ;;  %v12859_v19 = vld [vmem:[%s18810_s1 + $0x1] ss:$0 sm:$0xff]  ;;  %s18816_s0 = sld [smem:[#allocation61_spill]] }
 0x1b3   : > { %13855 = vmatprep.subr.mxu0 %v16171_v0  ;;  %v12847_v51 = vld [vmem:[%s18811_s15] ss:$0 sm:$0xff]  ;;  %v12857_v21 = vld [vmem:[%s18812_s11 + $0x1] ss:$0 sm:$0xff]  ;;  %s18818_s15 = sld [smem:[#allocation64_spill]] }
 0x1b4   : > { %v12851_v56 = vld [vmem:[%s18813_s18] ss:$0 sm:$0xff]  ;;  %v12861_v23 = vld [vmem:[%s18814_s10 + $0x1] ss:$0 sm:$0xff]  ;;  %s18820_s18 = sld [smem:[#allocation62_spill]] }
 0x1b8   : > { %s18817_s5 = smov %s18816_s0 }
 0x1b9   : > { %s18819_s6 = smov %s18818_s15 }
 0x1ba   : > { %s18821_s8 = smov %s18820_s18 }
 0x26a   : > { %v2403_v9 = vpop.f32.mrf.mxu0 }
 0x26b   : > { %v2404_v10 = vadd.f32 %v2403_v9, %v2323_v8 }
 0x26c   : > { %v13821_v11 = vpop.f32.mrf.mxu0 }
 0x26d   : > { %2408 = vst.msk [vmem:[#allocation2] sm:$0x3f] %vm2407_vm5, %v2404_v10  ;;  %vm9340_vm5 = vcmask 122944  }
 0x274   : > { %v16784_v12 = vld [vmem:[#allocation2] sm:$0x7f] }
 0x275   : > { %v2416_v13 = vsel %vm2415_vm6, %v16784_v12, 0.0 }
 0x276   : > { %2417 = vadd.xlane.f32.xlu0 %v2416_v13  ;;  %v2461_v13 = vld [vmem:[%s18805_s3 + $0x38] sm:$0xff] }
 0x2ff   : > { %v2418_v14 = vpop.xlane.xlu0 %2417 }
 0x300   : > { %v2420_v15 = vmul.f32 0.03125, %v2418_v14  ;;  %v2460_v14 = vld [vmem:[%s18805_s3 + $0x30] sm:$0xff] }
 0x302   : > { %v2421_v16 = vsub.f32 %v16784_v12, %v2420_v15  ;;  %v2459_v15 = vld [vmem:[%s18805_s3 + $0x28] sm:$0xff] }
 0x304   : > { %v2422_v17 = vmul.f32 %v2421_v16, %v2421_v16 }
 0x306   : > { %v2423_v18 = vsel %vm2415_vm6, %v2422_v17, 0.0 }
 0x307   : > { %2424 = vadd.xlane.f32.xlu0 %v2423_v18 }
 0x390   : > { %v2425_v27 = vpop.xlane.xlu0 %2424 }
 0x391   : > { %v2426_v28 = vmul.f32 0.03125, %v2425_v27 }
 0x393   : > { %v2427_v29 = vadd.f32 1e-06, %v2426_v28 }
 0x395   : > { %15257 = vrsqrt.f32 %v2427_v29 }
 0x3a2   : > { %v15258_v30 = vpop.eup %15257 }
 0x3a3   : > { %v2429_v32 = vmul.f32 %v15258_v30, %v2421_v16  ;;  %v2458_v16 = vld [vmem:[%s18805_s3 + $0x20] sm:$0xff] }
 0x3a5   : > { %v2436_v34 = vmul.f32 %v12845_v31, %v2429_v32 }
 0x3a7   : > { %v16808_v35 = vadd.f32 %v12846_v33, %v2436_v34 }
 0x3a9   : > { %13831 = vmatmul.mubr.msk.f32.vlgmr.msra.gmra.mxu1 %vm2485_vm7, %v16808_v35  ;;  %13842 = vmatmul.mubr.msk.f32.vlgmr.msra.gmra.mxu0 %vm2485_vm7, %v16808_v35 }
 0x3aa   : > { %13845 = vmatpush3.msra.mxu1 %v2467_v36  ;;  %13852 = vmatprep.mubr.msk.f32.mxu1 %vm16172_vm0, %v16171_v0  ;;  %v2477_v36 = vld [vmem:[%s18815_s2 + $0x18] sm:$0xff] }
 0x3ab   : > { %13846 = vmatprep.subr.mxu1 %v16171_v0  ;;  %13857 = vmatprep.mubr.msk.f32.mxu0 %vm16172_vm0, %v16171_v0 }
 0x3ac   : > { %13847 = vmatpush3.msra.mxu1 %v2466_v37 }
 0x3ad   : > { %13848 = vmatprep.subr.mxu1 %v16171_v0 }
 0x3ae   : > { %13849 = vmatpush3.msra.mxu1 %v2465_v38 }
 0x3af   : > { %13850 = vmatprep.subr.mxu1 %v16171_v0 }
 0x3b0   : > { %13851 = vmatpush3.msra.mxu1 %v2464_v39 }
 0x3b1   : > { %13853 = vmatmul.mubr.msk.f32.vlgmr.msra.gmra.mxu1 %vm2485_vm7, %v16808_v35  ;;  %13865 = vmatprep.subr.mxu1 %v16171_v0 }
 0x3b2   : > { %13866 = vmatpush3.msra.mxu1 %v2451_v40  ;;  %13873 = vmatprep.mubr.msk.f32.mxu1 %vm16172_vm0, %v16171_v0  ;;  %v2475_v40 = vld [vmem:[%s18815_s2 + $0x8] sm:$0xff] }
 0x3b3   : > { %13867 = vmatprep.subr.mxu1 %v16171_v0 }
 0x3b4   : > { %13868 = vmatpush3.msra.mxu1 %v2450_v41  ;;  %v2474_v41 = vld [vmem:[%s18815_s2] sm:$0xff] }
 0x3b5   : > { %13869 = vmatprep.subr.mxu1 %v16171_v0 }
 0x3b6   : > { %13870 = vmatpush3.msra.mxu1 %v2449_v42  ;;  %v2476_v42 = vld [vmem:[%s18815_s2 + $0x10] sm:$0xff] }
 0x3b7   : > { %13871 = vmatprep.subr.mxu1 %v16171_v0 }
 0x3b8   : > { %13872 = vmatpush3.msra.mxu1 %v2448_v43 }
 0x3b9   : > { %13874 = vmatmul.mubr.msk.f32.vlgmr.msra.gmra.mxu1 %vm2485_vm7, %v16808_v35  ;;  %13887 = vmatprep.subr.mxu1 %v16171_v0 }
 0x3ba   : > { %13888 = vmatpush3.msra.mxu1 %v2471_v44  ;;  %13895 = vmatprep.mubr.msk.f32.mxu1 %vm16172_vm0, %v16171_v0 }
 0x3bb   : > { %13889 = vmatprep.subr.mxu1 %v16171_v0 }
 0x3bc   : > { %13890 = vmatpush3.msra.mxu1 %v2470_v45 }
 0x3bd   : > { %13891 = vmatprep.subr.mxu1 %v16171_v0 }
 0x3be   : > { %13892 = vmatpush3.msra.mxu1 %v2469_v46 }
 0x3bf   : > { %13893 = vmatprep.subr.mxu1 %v16171_v0 }
 0x3c0   : > { %13894 = vmatpush3.msra.mxu1 %v2468_v47  ;;  %v12869_v47 = vld [vmem:[%s18816_s0] ss:$0 sm:$0xff]  ;;  %s18822_s0 = sld [smem:[#allocation63_spill]] }
 0x3c1   : > { %13896 = vmatmul.mubr.msk.f32.vlgmr.msra.gmra.mxu1 %vm2485_vm7, %v16808_v35  ;;  %13908 = vmatprep.subr.mxu1 %v16171_v0 }
 0x3c2   : > { %13912 = vmatprep.mubr.msk.f32.mxu1 %vm16172_vm0, %v16171_v0  ;;  %13909 = vmatpush3.msra.mxu1 %v2477_v36 }
 0x3c3   : > { %13910 = vmatprep.subr.mxu1 %v16171_v0 }
 0x3c4   : > { %13911 = vmatpush3.msra.mxu1 %v2476_v42  ;;  %v12883_v42 = vld [vmem:[%s18804_s21 + $0x58] sm:$0xff] }
 0x3c5   : > { %13922 = vmatprep.subr.mxu1 %v16171_v0 }
 0x3c6   : > { %s18823_s9 = smov %s18822_s0 }
 0x469   : > { %v2555_v49 = vpop.f32.mrf.mxu1  ;;  %v2631_v50 = vpop.f32.mrf.mxu0 }
 0x46a   : > { %v2632_v52 = vadd.f32 %v12849_v48, %v2631_v50  ;;  %v2556_v55 = vadd.f32 %v12847_v51, %v2555_v49 }
 0x46b   : > { %v13832_v53 = vpop.f32.mrf.mxu1  ;;  %v13843_v54 = vpop.f32.mrf.mxu0 }
 0x46c   : > { %13856 = vmatpush3.xpose.msk.msra.mxu0 %vm2711_vm8, %v2632_v52 }
 0x46d   : > { %13860 = vmatprep.subr.mxu0 %v16171_v0 }
 0x46f   : > { %13858 = vmatmul.mubr.msk.f32.vlgmr.msra.gmra.mxu0 %vm2711_vm8, %v2556_v55 }
 0x470   : > { %13862 = vmatprep.mubr.msk.f32.mxu0 %vm16172_vm0, %v16171_v0 }
 0x471   : > { %v2707_v57 = vpop.f32.mrf.mxu1 }
 0x472   : > { %v2708_v58 = vadd.f32 %v12851_v56, %v2707_v57 }
 0x473   : > { %v13854_v59 = vpop.f32.mrf.mxu1 }
 0x474   : > { %13861 = vmatpush3.msk.msra.mxu0 %vm2804_vm9, %v2708_v58  ;;  %v3455_v59 = vld [vmem:[%s18818_s15 + $0x18] sm:$0xff]  ;;  %s18825_s15 = sld [smem:[#allocation65_spill]] }
 0x475   : > { %13876 = vmatprep.subr.mxu0 %v16171_v0 }
 0x479   : > { %v2950_v60 = vpop.f32.mrf.mxu1 }
 0x47a   : > { %v2951_v25 = vadd.f32 %v12857_v21, %v2950_v60  ;;  %v3454_v60 = vld [vmem:[%s18819_s6 + $0x10] sm:$0xff]  ;;  %s18826_s14 = smov %s18825_s15 }
 0x47b   : > { %v13875_v61 = vpop.f32.mrf.mxu1 }
 0x47c   : > { %v3452_v61 = vld [vmem:[%s18819_s6] sm:$0xff] }
 0x481   : > { %v3102_v62 = vpop.f32.mrf.mxu1 }
 0x482   : > { %v3103_v26 = vadd.f32 %v12861_v23, %v3102_v62 }
 0x483   : > { %v13897_v63 = vpop.f32.mrf.mxu1 }
 0x52f   : > { %v2784_v1 = vpop.f32.mrf.mxu0 }
 0x530   : > { %v2789_v2 = vsel %vm2788_vm10, %v2784_v1, -inf }
 0x531   : > { %2790 = vmax.xlane.f32.xlu1 %v2789_v2  ;;  %v13859_v3 = vpop.f32.mrf.mxu0 }
 0x532   : > { %v12870_v3 = vld [vmem:[%s18820_s18] ss:$0 sm:$0xff]  ;;  %s18827_s18 = sld [smem:[#allocation67_spill]] }
 0x538   : > { %s18828_s17 = smov %s18827_s18 }
 0x5ba   : > { %v2791_v4 = vpop.xlane.xlu1 %2790 }
 0x5bb   : > { %v2792_v5 = vsub.f32 %v2784_v1, %v2791_v4 }
 0x5bd   : > { %v2793_v6 = vmul.f32 1.442695, %v2792_v5  ;;  %v12871_v5 = vld [vmem:[%s18822_s0] ss:$0 sm:$0xff]  ;;  %s18829_s0 = sld [smem:[#allocation68_spill]] }
 0x5bf   : > { %15259 = vpow2.f32 %v2793_v6 }
 0x5cc   : > { %v15260_v7 = vpop.eup %15259 }
 0x5cd   : > { %v2795_v8 = vsel %vm2788_vm10, %v15260_v7, 0.0 }
 0x5ce   : > { %2796 = vadd.xlane.f32.xlu1 %v2795_v8  ;;  %v3552_v8 = vld [vmem:[%s18824_s12 + $0x38] sm:$0xff] }
 0x657   : > { %v2797_v9 = vpop.xlane.xlu1 %2796 }
 0x658   : > { %15261 = vrcp.f32 %v2797_v9  ;;  %v3551_v9 = vld [vmem:[%s18824_s12 + $0x30] sm:$0xff] }
 0x665   : > { %v15262_v10 = vpop.eup %15261 }
 0x666   : > { %v2799_v11 = vmul.f32 %v15262_v10, %v15260_v7  ;;  %v3550_v10 = vld [vmem:[%s18824_s12 + $0x28] sm:$0xff] }
 0x668   : > { %13863 = vmatmul.mubr.msk.f32.vlgmr.msra.gmra.mxu0 %vm2800_vm11, %v2799_v11  ;;  %v3549_v11 = vld [vmem:[%s18824_s12 + $0x20] sm:$0xff] }
 0x669   : > { %13877 = vmatpush3.msra.mxu0 %v2461_v13  ;;  %13884 = vmatprep.mubr.msk.f32.mxu0 %vm16172_vm0, %v16171_v0  ;;  %v3548_v13 = vld [vmem:[%s18824_s12 + $0x18] sm:$0xff] }
 0x66a   : > { %13878 = vmatprep.subr.mxu0 %v16171_v0 }
 0x66b   : > { %13879 = vmatpush3.msra.mxu0 %v2460_v14  ;;  %v3547_v14 = vld [vmem:[%s18824_s12 + $0x10] sm:$0xff] }
 0x66c   : > { %13880 = vmatprep.subr.mxu0 %v16171_v0 }
 0x66d   : > { %13881 = vmatpush3.msra.mxu0 %v2459_v15  ;;  %v3546_v15 = vld [vmem:[%s18824_s12 + $0x8] sm:$0xff] }
 0x66e   : > { %13882 = vmatprep.subr.mxu0 %v16171_v0 }
 0x66f   : > { %13883 = vmatpush3.msra.mxu0 %v2458_v16  ;;  %v3545_v16 = vld [vmem:[%s18824_s12] sm:$0xff] }
 0x670   : > { %13885 = vmatmul.mubr.msk.f32.vlgmr.msra.gmra.mxu0 %vm2485_vm7, %v16808_v35  ;;  %13898 = vmatprep.subr.mxu0 %v16171_v0 }
 0x671   : > { %13900 = vmatprep.mubr.msk.f32.mxu0 %vm16172_vm0, %v16171_v0 }
 0x728   : > { %v2874_v17 = vpop.f32.mrf.mxu0 }
 0x72a   : > { %v13864_v18 = vpop.f32.mrf.mxu0 }
 0x730   : > { %v3026_v20 = vpop.f32.mrf.mxu0 }
 0x731   : > { %v3027_v22 = vadd.f32 %v12859_v19, %v3026_v20 }
 0x732   : > { %v13886_v24 = vpop.f32.mrf.mxu0 }
 0x733   : > { %13899 = vmatpush3.xpose.msk.msra.mxu0 %vm2711_vm8, %v3027_v22 }
 0x734   : > { %13903 = vmatprep.subr.mxu0 %v16171_v0 }
 0x736   : > { %13901 = vmatmul.mubr.msk.f32.vlgmr.msra.gmra.mxu0 %vm2711_vm8, %v2951_v25 }
 0x737   : > { %13904 = vmatpush3.msk.msra.mxu0 %vm2804_vm9, %v3103_v26  ;;  %13905 = vmatprep.mubr.msk.f32.mxu0 %vm16172_vm0, %v16171_v0 }
 0x738   : > { %13915 = vmatprep.subr.mxu0 %v16171_v0 }
 0x7f6   : > { %v3178_v27 = vpop.f32.mrf.mxu0 }
 0x7f7   : > { %v3182_v28 = vsel %vm2788_vm10, %v3178_v27, -inf }
 0x7f8   : > { %3183 = vmax.xlane.f32.xlu0 %v3182_v28  ;;  %v13902_v29 = vpop.f32.mrf.mxu0 }
 0x881   : > { %v3184_v30 = vpop.xlane.xlu0 %3183 }
 0x882   : > { %v3185_v31 = vsub.f32 %v3178_v27, %v3184_v30  ;;  %v12874_v30 = vld [vmem:[%s18827_s18] ss:$0 sm:$0xff]  ;;  %s18832_s18 = sld [smem:[#allocation77_spill]] }
 0x884   : > { %v3186_v32 = vmul.f32 1.442695, %v3185_v31 }
 0x886   : > { %15263 = vpow2.f32 %v3186_v32 }
 0x893   : > { %v15264_v33 = vpop.eup %15263 }
 0x894   : > { %v3188_v34 = vsel %vm2788_vm10, %v15264_v33, 0.0 }
 0x895   : > { %3189 = vadd.xlane.f32.xlu1 %v3188_v34 }
 0x91e   : > { %v3190_v37 = vpop.xlane.xlu1 %3189 }
 0x91f   : > { %15265 = vrcp.f32 %v3190_v37 }
 0x92c   : > { %v15266_v38 = vpop.eup %15265 }
 0x92d   : > { %v3192_v39 = vmul.f32 %v15266_v38, %v15264_v33 }
 0x92f   : > { %13906 = vmatmul.mubr.msk.f32.vlgmr.msra.gmra.mxu0 %vm2800_vm11, %v3192_v39 }
 0x930   : > { %13916 = vmatpush3.msra.mxu0 %v2475_v40  ;;  %13919 = vmatprep.mubr.msk.f32.mxu0 %vm16172_vm0, %v16171_v0 }
 0x931   : > { %13917 = vmatprep.subr.mxu0 %v16171_v0 }
 0x932   : > { %13918 = vmatpush3.msra.mxu0 %v2474_v41 }
 0x933   : > { %13920 = vmatmul.mubr.msk.f32.vlgmr.msra.gmra.mxu0 %vm2711_vm8, %v2874_v17  ;;  %13933 = vmatprep.subr.mxu0 %v16171_v0  ;;  %v12872_v17 = vld [vmem:[%s18825_s15] ss:$0 sm:$0xff]  ;;  %s18830_s15 = sld [smem:[#allocation69_spill]] }
 0x934   : > { %13949 = vmatprep.mubr.msk.f32.mxu0 %vm16172_vm0, %v16171_v0  ;;  %13934 = vmatpush3.msra.mxu0 %v3552_v8 }
 0x935   : > { %13935 = vmatprep.subr.mxu0 %v16171_v0 }
 0x936   : > { %13936 = vmatpush3.msra.mxu0 %v3551_v9 }
 0x937   : > { %13937 = vmatprep.subr.mxu0 %v16171_v0 }
 0x938   : > { %13938 = vmatpush3.msra.mxu0 %v3550_v10 }
 0x939   : > { %13939 = vmatprep.subr.mxu0 %v16171_v0 }
 0x93a   : > { %13940 = vmatpush3.msra.mxu0 %v3549_v11  ;;  %v12887_v11 = vld [vmem:[%s18804_s21 + $0x78] sm:$0xff] }
 0x93b   : > { %13941 = vmatprep.subr.mxu0 %v16171_v0 }
 0x93c   : > { %13942 = vmatpush3.msra.mxu0 %v3548_v13  ;;  %v12886_v13 = vld [vmem:[%s18804_s21 + $0x70] sm:$0xff] }
 0x93d   : > { %13943 = vmatprep.subr.mxu0 %v16171_v0 }
 0x93e   : > { %13944 = vmatpush3.msra.mxu0 %v3547_v14  ;;  %v12885_v14 = vld [vmem:[%s18804_s21 + $0x68] sm:$0xff] }
 0x93f   : > { %13945 = vmatprep.subr.mxu0 %v16171_v0 }
 0x940   : > { %13946 = vmatpush3.msra.mxu0 %v3546_v15  ;;  %v12884_v15 = vld [vmem:[%s18804_s21 + $0x60] sm:$0xff] }
 0x941   : > { %13947 = vmatprep.subr.mxu0 %v16171_v0 }
 0x942   : > { %13948 = vmatpush3.msra.mxu0 %v3545_v16  ;;  %v12907_v16 = vld [vmem:[%s18808_s28 + $0x78] sm:$0xff] }
 0x943   : > { %13974 = vmatprep.subr.mxu0 %v16171_v0 }
 0x9ef   : > { %v3265_v43 = vpop.f32.mrf.mxu0 }
 0x9f0   : > { %13913 = vmatmul.mubr.msk.f32.vlgmr.msra.gmra.mxu1 %vm2711_vm8, %v3265_v43  ;;  %v12903_v43 = vld [vmem:[%s18808_s28 + $0x58] sm:$0xff] }
 0x9f1   : > { %v13907_v44 = vpop.f32.mrf.mxu0  ;;  %13930 = vmatprep.mubr.msk.f32.mxu1 %vm16172_vm0, %v16171_v0  ;;  %13923 = vmatpush3.msra.mxu1 %v3455_v59  ;;  %v12893_v59 = vld [vmem:[%s18805_s3 + $0x58] sm:$0xff] }
 0x9f2   : > { %13924 = vmatprep.subr.mxu1 %v16171_v0  ;;  %v12882_v44 = vld [vmem:[%s18804_s21 + $0x50] sm:$0xff] }
 0x9f3   : > { %v3411_v45 = vpop.f32.mrf.mxu0  ;;  %13925 = vmatpush3.msra.mxu1 %v3454_v60  ;;  %v12892_v60 = vld [vmem:[%s18805_s3 + $0x50] sm:$0xff] }
 0x9f4   : > { %13926 = vmatprep.subr.mxu1 %v16171_v0 }
 0x9f5   : > { %v13921_v46 = vpop.f32.mrf.mxu0 }
 0x9f6   : > { %v12881_v46 = vld [vmem:[%s18804_s21 + $0x48] sm:$0xff] }
 0xab0   : > { %v3338_v48 = vpop.f32.mrf.mxu1 }
 0xab1   : > { %v3412_v49 = vadd.f32 %v3411_v45, %v3338_v48  ;;  %v12902_v45 = vld [vmem:[%s18808_s28 + $0x50] sm:$0xff]  ;;  %v12880_v48 = vld [vmem:[%s18804_s21 + $0x40] sm:$0xff] }
 0xab2   : > { %v13914_v50 = vpop.f32.mrf.mxu1 }
 0xab3   : > { %v3421_v51 = vadd.f32 %v12869_v47, %v3412_v49  ;;  %v12901_v47 = vld [vmem:[%s18808_s28 + $0x48] sm:$0xff]  ;;  %v12900_v49 = vld [vmem:[%s18808_s28 + $0x40] sm:$0xff] }
 0xab5   : > { %v16912_v52 = vadd.f32 %v3421_v51, %v16784_v12  ;;  %v3453_v12 = vld [vmem:[%s18819_s6 + $0x8] sm:$0xff] }
 0xab6   : > { %13927 = vmatpush3.msra.mxu1 %v3453_v12  ;;  %v12891_v12 = vld [vmem:[%s18805_s3 + $0x48] sm:$0xff] }
 0xab7   : > { %v3425_v53 = vsel %vm2415_vm6, %v16912_v52, 0.0  ;;  %13928 = vmatprep.subr.mxu1 %v16171_v0 }
 0xab8   : > { %3426 = vadd.xlane.f32.xlu0 %v3425_v53  ;;  %13929 = vmatpush3.msra.mxu1 %v3452_v61  ;;  %v12890_v61 = vld [vmem:[%s18805_s3 + $0x40] sm:$0xff] }
 0xab9   : > { %13952 = vmatprep.subr.mxu1 %v16171_v0 }
 0xb41   : > { %v3427_v54 = vpop.xlane.xlu0 %3426 }
 0xb42   : > { %v3428_v55 = vmul.f32 0.03125, %v3427_v54  ;;  %v12878_v54 = vld [vmem:[%s18806_s23 + $0x1] ss:$0 sm:$0xff] }
 0xb44   : > { %v3429_v56 = vsub.f32 %v16912_v52, %v3428_v55 }
 0xb46   : > { %v3430_v57 = vmul.f32 %v3429_v56, %v3429_v56 }
 0xb48   : > { %v3431_v58 = vsel %vm2415_vm6, %v3430_v57, 0.0 }
 0xb49   : > { %3432 = vadd.xlane.f32.xlu1 %v3431_v58 }
 0xbd2   : > { %v3433_v62 = vpop.xlane.xlu1 %3432 }
 0xbd3   : > { %v3434_v63 = vmul.f32 0.03125, %v3433_v62  ;;  %v12919_v62 = vld [vmem:[%s18814_s10 + $0x2] ss:$0 sm:$0xff] }
 0xbd5   : > { %v3435_v1 = vadd.f32 1e-06, %v3434_v63 }
 0xbd7   : > { %15267 = vrsqrt.f32 %v3435_v1 }
 0xbe4   : > { %v15268_v2 = vpop.eup %15267 }
 0xbe5   : > { %v3437_v4 = vmul.f32 %v15268_v2, %v3429_v56  ;;  %v12879_v56 = vld [vmem:[%s18807_s4 + $0x1] ss:$0 sm:$0xff] }
 0xbe7   : > { %v3444_v6 = vmul.f32 %v12870_v3, %v3437_v4 }
 0xbe9   : > { %v3451_v7 = vadd.f32 %v12871_v5, %v3444_v6  ;;  %v12917_v5 = vld [vmem:[%s18810_s1 + $0x2] ss:$0 sm:$0xff] }
 0xbeb   : > { %13931 = vmatmul.mubr.msk.f32.vlgmr.msra.gmra.mxu1 %vm2485_vm7, %v3451_v7  ;;  %v12915_v7 = vld [vmem:[%s18812_s11 + $0x2] ss:$0 sm:$0xff] }
 0xbec   : > { %13960 = vmatprep.mubr.msk.f32.mxu1 %vm16172_vm0, %v16171_v0  ;;  %13953 = vmatpush3.msra.mxu1 %v12883_v42 }
 0xbed   : > { %13954 = vmatprep.subr.mxu1 %v16171_v0 }
 0xbee   : > { %13955 = vmatpush3.msra.mxu1 %v12882_v44 }
 0xbef   : > { %13956 = vmatprep.subr.mxu1 %v16171_v0 }
 0xbf0   : > { %13957 = vmatpush3.msra.mxu1 %v12881_v46 }
 0xbf1   : > { %13958 = vmatprep.subr.mxu1 %v16171_v0 }
 0xbf2   : > { %13959 = vmatpush3.msra.mxu1 %v12880_v48 }
 0xbf3   : > { %13963 = vmatprep.subr.mxu1 %v16171_v0 }
 0xcab   : > { %v3532_v18 = vpop.f32.mrf.mxu1 }
 0xcac   : > { %v3533_v19 = vadd.f32 %v12872_v17, %v3532_v18  ;;  %v12906_v17 = vld [vmem:[%s18808_s28 + $0x70] sm:$0xff]  ;;  %v12905_v18 = vld [vmem:[%s18808_s28 + $0x68] sm:$0xff] }
 0xcad   : > { %v13932_v20 = vpop.f32.mrf.mxu1 }
 0xcae   : > { %v3536_v21 = vmul.f32 %v3533_v19, %v3533_v19 }
 0xcb0   : > { %v3537_v22 = vmul.f32 %v3536_v21, %v3533_v19 }
 0xcb2   : > { %v3538_v23 = vmul.f32 0.044715, %v3537_v22 }
 0xcb4   : > { %v3539_v24 = vadd.f32 %v3538_v23, %v3533_v19 }
 0xcb6   : > { %v3540_v25 = vmul.f32 0.7978846, %v3539_v24 }
 0xcb8   : > { %15269 = vtanh.f32 %v3540_v25 }
 0xcc5   : > { %v15270_v26 = vpop.eup %15269 }
 0xcc6   : > { %v3542_v27 = vadd.f32 1.0, %v15270_v26 }
 0xcc8   : > { %v3543_v28 = vmul.f32 0.5, %v3542_v27 }
 0xcca   : > { %v3544_v29 = vmul.f32 %v3543_v28, %v3533_v19  ;;  %v12904_v19 = vld [vmem:[%s18808_s28 + $0x60] sm:$0xff] }
 0xccc   : > { %13950 = vmatmul.mubr.msk.f32.vlgmr.msra.gmra.mxu0 %vm3560_vm12, %v3544_v29 }
 0xccd   : > { %13982 = vmatprep.mubr.msk.f32.mxu0 %vm16172_vm0, %v16171_v0  ;;  %13975 = vmatpush3.msra.mxu0 %v12903_v43  ;;  %v12927_v43 = vld [vmem:[%s18810_s1 + $0x3] ss:$0 sm:$0xff]  ;;  %s18833_s1 = smov %s18832_s18 }
 0xcce   : > { %13976 = vmatprep.subr.mxu0 %v16171_v0 }
 0xccf   : > { %13977 = vmatpush3.msra.mxu0 %v12902_v45  ;;  %v12925_v45 = vld [vmem:[%s18812_s11 + $0x3] ss:$0 sm:$0xff] }
 0xcd0   : > { %13978 = vmatprep.subr.mxu0 %v16171_v0 }
 0xcd1   : > { %13979 = vmatpush3.msra.mxu0 %v12901_v47  ;;  %v12929_v47 = vld [vmem:[%s18814_s10 + $0x3] ss:$0 sm:$0xff] }
 0xcd2   : > { %13980 = vmatprep.subr.mxu0 %v16171_v0 }
 0xcd3   : > { %13981 = vmatpush3.msra.mxu0 %v12900_v49 }
 0xcd4   : > { %13990 = vmatprep.subr.mxu0 %v16171_v0 }
 0xd8c   : > { %v3630_v31 = vpop.f32.mrf.mxu0 }
 0xd8d   : > { %v3631_v32 = vadd.f32 %v12874_v30, %v3630_v31 }
 0xd8e   : > { %v13951_v33 = vpop.f32.mrf.mxu0 }
 0xd8f   : > { %v16953_v34 = vadd.f32 %v3631_v32, %v16912_v52 }
 0xd91   : > { %v3639_v36 = vsel %vm2415_vm6, %v16953_v34, 0.0 }
 0xd92   : > { %3640 = vadd.xlane.f32.xlu0 %v3639_v36 }
 0xe1b   : > { %v3641_v37 = vpop.xlane.xlu0 %3640 }
 0xe1c   : > { %v3642_v38 = vmul.f32 0.03125, %v3641_v37  ;;  %v12897_v37 = vld [vmem:[%s18805_s3 + $0x78] sm:$0xff] }
 0xe1e   : > { %v3643_v39 = vsub.f32 %v16953_v34, %v3642_v38  ;;  %v12896_v38 = vld [vmem:[%s18805_s3 + $0x70] sm:$0xff] }
 0xe20   : > { %v3644_v40 = vmul.f32 %v3643_v39, %v3643_v39 }
 0xe22   : > { %v3645_v41 = vsel %vm2415_vm6, %v3644_v40, 0.0  ;;  %v12894_v40 = vld [vmem:[%s18805_s3 + $0x60] sm:$0xff] }
 0xe23   : > { %3646 = vadd.xlane.f32.xlu1 %v3645_v41 }
 0xeac   : > { %v3647_v50 = vpop.xlane.xlu1 %3646 }
 0xead   : > { %v3648_v51 = vmul.f32 0.03125, %v3647_v50 }
 0xeaf   : > { %v3649_v52 = vadd.f32 1e-06, %v3648_v51 }
 0xeb1   : > { %15271 = vrsqrt.f32 %v3649_v52 }
 0xebe   : > { %v15272_v53 = vpop.eup %15271 }
 0xebf   : > { %v3651_v55 = vmul.f32 %v15272_v53, %v3643_v39  ;;  %v12895_v39 = vld [vmem:[%s18805_s3 + $0x68] sm:$0xff] }
 0xec1   : > { %v3658_v57 = vmul.f32 %v12878_v54, %v3651_v55 }
 0xec3   : > { %v16977_v58 = vadd.f32 %v12879_v56, %v3658_v57 }
 0xec5   : > { %13961 = vmatmul.mubr.msk.f32.vlgmr.msra.gmra.mxu1 %vm2485_vm7, %v16977_v58  ;;  %13983 = vmatmul.mubr.msk.f32.vlgmr.msra.gmra.mxu0 %vm2485_vm7, %v16977_v58 }
 0xec6   : > { %13964 = vmatpush3.msra.mxu1 %v12893_v59  ;;  %13971 = vmatprep.mubr.msk.f32.mxu1 %vm16172_vm0, %v16171_v0 }
 0xec7   : > { %13965 = vmatprep.subr.mxu1 %v16171_v0  ;;  %13992 = vmatprep.mubr.msk.f32.mxu0 %vm16172_vm0, %v16171_v0 }
 0xec8   : > { %13966 = vmatpush3.msra.mxu1 %v12892_v60  ;;  %v12913_v60 = vld [vmem:[%s18815_s2 + $0x38] sm:$0xff] }
 0xec9   : > { %13967 = vmatprep.subr.mxu1 %v16171_v0 }
 0xeca   : > { %13968 = vmatpush3.msra.mxu1 %v12891_v12 }
 0xecb   : > { %13969 = vmatprep.subr.mxu1 %v16171_v0 }
 0xecc   : > { %13970 = vmatpush3.msra.mxu1 %v12890_v61 }
 0xecd   : > { %13972 = vmatmul.mubr.msk.f32.vlgmr.msra.gmra.mxu1 %vm2485_vm7, %v16977_v58  ;;  %13985 = vmatprep.subr.mxu1 %v16171_v0 }
 0xece   : > { %13987 = vmatprep.mubr.msk.f32.mxu1 %vm16172_vm0, %v16171_v0 }
 0xf85   : > { %v3784_v63 = vpop.f32.mrf.mxu1  ;;  %v3936_v1 = vpop.f32.mrf.mxu0 }
 0xf86   : > { %v3937_v2 = vadd.f32 %v12919_v62, %v3936_v1  ;;  %v3785_v10 = vadd.f32 %v12915_v7, %v3784_v63  ;;  %v12911_v63 = vld [vmem:[%s18815_s2 + $0x28] sm:$0xff]  ;;  %v12910_v1 = vld [vmem:[%s18815_s2 + $0x20] sm:$0xff] }
 0xf87   : > { %v13962_v3 = vpop.f32.mrf.mxu1  ;;  %v13984_v4 = vpop.f32.mrf.mxu0  ;;  %v12937_v7 = vld [vmem:[%s18817_s5 + $0x1] ss:$0 sm:$0xff] }
 0xf88   : > { %13991 = vmatpush3.msk.msra.mxu0 %vm2804_vm9, %v3937_v2  ;;  %v12912_v2 = vld [vmem:[%s18815_s2 + $0x30] sm:$0xff] }
 0xf89   : > { %14006 = vmatprep.subr.mxu0 %v16171_v0 }
 0xf8d   : > { %v3860_v6 = vpop.f32.mrf.mxu1 }
 0xf8e   : > { %v3861_v8 = vadd.f32 %v12917_v5, %v3860_v6 }
 0xf8f   : > { %v13973_v9 = vpop.f32.mrf.mxu1 }
 0xf90   : > { %13986 = vmatpush3.xpose.msk.msra.mxu1 %vm2711_vm8, %v3861_v8 }
 0xf91   : > { %13995 = vmatprep.subr.mxu1 %v16171_v0 }
 0xf93   : > { %13988 = vmatmul.mubr.msk.f32.vlgmr.msra.gmra.mxu1 %vm2711_vm8, %v3785_v10 }
 0xf94   : > { %13996 = vmatpush3.msra.mxu1 %v12887_v11  ;;  %14003 = vmatprep.mubr.msk.f32.mxu1 %vm16172_vm0, %v16171_v0 }
 0xf95   : > { %13997 = vmatprep.subr.mxu1 %v16171_v0 }
 0xf96   : > { %13998 = vmatpush3.msra.mxu1 %v12886_v13 }
 0xf97   : > { %13999 = vmatprep.subr.mxu1 %v16171_v0 }
 0xf98   : > { %14000 = vmatpush3.msra.mxu1 %v12885_v14 }
 0xf99   : > { %14001 = vmatprep.subr.mxu1 %v16171_v0 }
 0xf9a   : > { %14002 = vmatpush3.msra.mxu1 %v12884_v15 }
 0xf9b   : > { %14004 = vmatmul.mubr.msk.f32.vlgmr.msra.gmra.mxu1 %vm2485_vm7, %v16977_v58  ;;  %14017 = vmatprep.subr.mxu1 %v16171_v0 }
 0xf9c   : > { %14018 = vmatpush3.msra.mxu1 %v12907_v16  ;;  %14025 = vmatprep.mubr.msk.f32.mxu1 %vm16172_vm0, %v16171_v0 }
 0xf9d   : > { %14019 = vmatprep.subr.mxu1 %v16171_v0 }
 0xf9e   : > { %14020 = vmatpush3.msra.mxu1 %v12906_v17 }
 0xf9f   : > { %14021 = vmatprep.subr.mxu1 %v16171_v0 }
 0xfa0   : > { %14022 = vmatpush3.msra.mxu1 %v12905_v18 }
 0xfa1   : > { %14023 = vmatprep.subr.mxu1 %v16171_v0 }
 0xfa2   : > { %14024 = vmatpush3.msra.mxu1 %v12904_v19 }
 0xfa3   : > { %14026 = vmatmul.mubr.msk.f32.vlgmr.msra.gmra.mxu1 %vm2485_vm7, %v16977_v58  ;;  %14038 = vmatprep.subr.mxu1 %v16171_v0 }
 0xfa4   : > { %14042 = vmatprep.mubr.msk.f32.mxu1 %vm16172_vm0, %v16171_v0  ;;  %14039 = vmatpush3.msra.mxu1 %v12913_v60 }
 0xfa5   : > { %14040 = vmatprep.subr.mxu1 %v16171_v0 }
 0xfa6   : > { %14041 = vmatpush3.msra.mxu1 %v12912_v2 }
 0xfa7   : > { %14052 = vmatprep.subr.mxu1 %v16171_v0 }
0x1053   : > { %v4012_v20 = vpop.f32.mrf.mxu1 }
0x1054   : > { %v4016_v21 = vsel %vm2788_vm10, %v4012_v20, -inf }
0x1055   : > { %4017 = vmax.xlane.f32.xlu0 %v4016_v21  ;;  %v13989_v22 = vpop.f32.mrf.mxu1  ;;  %v12944_v21 = vld [vmem:[%s18819_s6 + $0x30] sm:$0xff] }
0x1056   : > { %v12942_v22 = vld [vmem:[%s18819_s6 + $0x20] sm:$0xff] }
0x105b   : > { %v4175_v23 = vpop.f32.mrf.mxu1 }
0x105c   : > { %v4176_v49 = vadd.f32 %v12925_v45, %v4175_v23  ;;  %v2316_v45 = vld [vmem:[%s16772_s26 + $0x40] sm:$0xff] }
0x105d   : > { %v14005_v24 = vpop.f32.mrf.mxu1 }
0x1063   : > { %v4327_v25 = vpop.f32.mrf.mxu1 }
0x1064   : > { %v4328_v50 = vadd.f32 %v12929_v47, %v4327_v25  ;;  %v2320_v47 = vld [vmem:[%s16772_s26 + $0xc0] sm:$0xff] }
0x1065   : > { %v14027_v26 = vpop.f32.mrf.mxu1 }
0x10de   : > { %v4018_v27 = vpop.xlane.xlu0 %4017 }
0x10df   : > { %v4019_v28 = vsub.f32 %v4012_v20, %v4018_v27  ;;  %v12945_v20 = vld [vmem:[%s18819_s6 + $0x38] sm:$0xff]  ;;  %v12940_v27 = vld [vmem:[%s18821_s8 + $0x1] ss:$0 sm:$0xff] }
0x10e1   : > { %v4020_v29 = vmul.f32 1.442695, %v4019_v28 }
0x10e3   : > { %15273 = vpow2.f32 %v4020_v29  ;;  %v12941_v29 = vld [vmem:[%s18823_s9 + $0x1] ss:$0 sm:$0xff] }
0x10f0   : > { %v15274_v30 = vpop.eup %15273 }
0x10f1   : > { %v4022_v31 = vsel %vm2788_vm10, %v15274_v30, 0.0 }
0x10f2   : > { %4023 = vadd.xlane.f32.xlu1 %v4022_v31 }
0x117b   : > { %v4024_v32 = vpop.xlane.xlu1 %4023 }
0x117c   : > { %15275 = vrcp.f32 %v4024_v32  ;;  %v17098_v32 = vld [vmem:[%s18829_s0] sm:$0x7]  ;;  %s18834_s0 = sld [smem:[#allocation73_spill]] }
0x1182   : > { %s18835_s2 = smov %s18834_s0 }
0x1189   : > { %v15276_v33 = vpop.eup %15275 }
0x118a   : > { %v4026_v36 = vmul.f32 %v15276_v33, %v15274_v30  ;;  %v2312_v33 = vld [vmem:[%s16772_s26] sm:$0xff] }
0x118c   : > { %13993 = vmatmul.mubr.msk.f32.vlgmr.msra.gmra.mxu0 %vm2800_vm11, %v4026_v36  ;;  %v2315_v36 = vld [vmem:[%s16772_s26 + $0x20] sm:$0xff] }
0x118d   : > { %14007 = vmatpush3.msra.mxu0 %v12897_v37  ;;  %14014 = vmatprep.mubr.msk.f32.mxu0 %vm16172_vm0, %v16171_v0  ;;  %v12956_v37 = vld [vmem:[%s18824_s12 + $0x78] sm:$0xff] }
0x118e   : > { %14008 = vmatprep.subr.mxu0 %v16171_v0 }
0x118f   : > { %14009 = vmatpush3.msra.mxu0 %v12896_v38  ;;  %v12955_v38 = vld [vmem:[%s18824_s12 + $0x70] sm:$0xff] }
0x1190   : > { %14010 = vmatprep.subr.mxu0 %v16171_v0 }
0x1191   : > { %14011 = vmatpush3.msra.mxu0 %v12895_v39  ;;  %v12954_v39 = vld [vmem:[%s18824_s12 + $0x68] sm:$0xff] }
0x1192   : > { %14012 = vmatprep.subr.mxu0 %v16171_v0 }
0x1193   : > { %14013 = vmatpush3.msra.mxu0 %v12894_v40  ;;  %v12953_v40 = vld [vmem:[%s18824_s12 + $0x60] sm:$0xff] }
0x1194   : > { %14015 = vmatmul.mubr.msk.f32.vlgmr.msra.gmra.mxu0 %vm2485_vm7, %v16977_v58  ;;  %14028 = vmatprep.subr.mxu0 %v16171_v0 }
0x1195   : > { %14030 = vmatprep.mubr.msk.f32.mxu0 %vm16172_vm0, %v16171_v0 }
0x124c   : > { %v4099_v41 = vpop.f32.mrf.mxu0 }
0x124e   : > { %v13994_v42 = vpop.f32.mrf.mxu0 }
0x124f   : > { %v12951_v42 = vld [vmem:[%s18824_s12 + $0x50] sm:$0xff] }
0x1254   : > { %v4251_v44 = vpop.f32.mrf.mxu0 }
0x1255   : > { %v4252_v46 = vadd.f32 %v12927_v43, %v4251_v44  ;;  %v12950_v43 = vld [vmem:[%s18824_s12 + $0x48] sm:$0xff]  ;;  %v12949_v44 = vld [vmem:[%s18824_s12 + $0x40] sm:$0xff] }
0x1256   : > { %v14016_v48 = vpop.f32.mrf.mxu0 }
0x1257   : > { %14029 = vmatpush3.xpose.msk.msra.mxu0 %vm2711_vm8, %v4252_v46  ;;  %v2318_v46 = vld [vmem:[%s16772_s26 + $0x80] sm:$0xff] }
0x1258   : > { %14033 = vmatprep.subr.mxu0 %v16171_v0  ;;  %v12947_v48 = vld [vmem:[%s18826_s14 + $0x1] ss:$0 sm:$0xff] }
0x125a   : > { %14031 = vmatmul.mubr.msk.f32.vlgmr.msra.gmra.mxu0 %vm2711_vm8, %v4176_v49 }
0x125b   : > { %14034 = vmatpush3.msk.msra.mxu0 %vm2804_vm9, %v4328_v50  ;;  %14035 = vmatprep.mubr.msk.f32.mxu0 %vm16172_vm0, %v16171_v0 }
0x125c   : > { %14045 = vmatprep.subr.mxu0 %v16171_v0 }
0x131a   : > { %v4403_v51 = vpop.f32.mrf.mxu0 }
0x131b   : > { %v4407_v52 = vsel %vm2788_vm10, %v4403_v51, -inf }
0x131c   : > { %4408 = vmax.xlane.f32.xlu0 %v4407_v52  ;;  %v14032_v53 = vpop.f32.mrf.mxu0  ;;  %v17156_v52 = vld [vmem:[%s18830_s15] sm:$0xf]  ;;  %s18836_s15 = sld [smem:[#allocation74_spill]] }
0x1322   : > { %s18837_s3 = smov %s18836_s15 }
0x13a5   : > { %v4409_v54 = vpop.xlane.xlu0 %4408 }
0x13a6   : > { %v4410_v55 = vsub.f32 %v4403_v51, %v4409_v54 }
0x13a8   : > { %v4411_v56 = vmul.f32 1.442695, %v4410_v55 }
0x13aa   : > { %15277 = vpow2.f32 %v4411_v56 }
0x13b7   : > { %v15278_v57 = vpop.eup %15277 }
0x13b8   : > { %v4413_v59 = vsel %vm2788_vm10, %v15278_v57, 0.0  ;;  %vm9354_vm10 = vcmask 254144  }
0x13b9   : > { %4414 = vadd.xlane.f32.xlu1 %v4413_v59 }
0x1442   : > { %v4415_v12 = vpop.xlane.xlu1 %4414 }
0x1443   : > { %15279 = vrcp.f32 %v4415_v12 }
0x1450   : > { %v15280_v61 = vpop.eup %15279 }
0x1451   : > { %v4417_v62 = vmul.f32 %v15280_v61, %v15278_v57 }
0x1453   : > { %14036 = vmatmul.mubr.msk.f32.vlgmr.msra.gmra.mxu0 %vm2800_vm11, %v4417_v62 }
0x1454   : > { %14046 = vmatpush3.msra.mxu0 %v12911_v63  ;;  %14049 = vmatprep.mubr.msk.f32.mxu0 %vm16172_vm0, %v16171_v0 }
0x1455   : > { %14047 = vmatprep.subr.mxu0 %v16171_v0 }
0x1456   : > { %14048 = vmatpush3.msra.mxu0 %v12910_v1 }
0x1457   : > { %14050 = vmatmul.mubr.msk.f32.vlgmr.msra.gmra.mxu0 %vm2711_vm8, %v4099_v41  ;;  %14063 = vmatprep.subr.mxu0 %v16171_v0  ;;  %v12952_v41 = vld [vmem:[%s18824_s12 + $0x58] sm:$0xff] }
0x1458   : > { %14079 = vmatprep.mubr.msk.f32.mxu0 %vm16172_vm0, %v16171_v0  ;;  %14064 = vmatpush3.msra.mxu0 %v12956_v37 }
0x1459   : > { %14065 = vmatprep.subr.mxu0 %v16171_v0 }
0x145a   : > { %14066 = vmatpush3.msra.mxu0 %v12955_v38 }
0x145b   : > { %14067 = vmatprep.subr.mxu0 %v16171_v0 }
0x145c   : > { %14068 = vmatpush3.msra.mxu0 %v12954_v39 }
0x145d   : > { %14069 = vmatprep.subr.mxu0 %v16171_v0 }
0x145e   : > { %14070 = vmatpush3.msra.mxu0 %v12953_v40 }
0x145f   : > { %14071 = vmatprep.subr.mxu0 %v16171_v0 }
0x1460   : > { %14072 = vmatpush3.msra.mxu0 %v12952_v41 }
0x1461   : > { %14073 = vmatprep.subr.mxu0 %v16171_v0 }
0x1462   : > { %14074 = vmatpush3.msra.mxu0 %v12951_v42 }
0x1463   : > { %14075 = vmatprep.subr.mxu0 %v16171_v0 }
0x1464   : > { %14076 = vmatpush3.msra.mxu0 %v12950_v43 }
0x1465   : > { %14077 = vmatprep.subr.mxu0 %v16171_v0 }
0x1466   : > { %14078 = vmatpush3.msra.mxu0 %v12949_v44 }
0x1467   : > { %14097 = vmatprep.subr.mxu0 %v16171_v0 }
0x1513   : > { %v4490_v3 = vpop.f32.mrf.mxu0 }
0x1514   : > { %14043 = vmatmul.mubr.msk.f32.vlgmr.msra.gmra.mxu1 %vm2711_vm8, %v4490_v3 }
0x1515   : > { %v14037_v4 = vpop.f32.mrf.mxu0  ;;  %14060 = vmatprep.mubr.msk.f32.mxu1 %vm16172_vm0, %v16171_v0  ;;  %14053 = vmatpush3.msra.mxu1 %v12945_v20 }
0x1516   : > { %14054 = vmatprep.subr.mxu1 %v16171_v0 }
0x1517   : > { %v4636_v5 = vpop.f32.mrf.mxu0  ;;  %14055 = vmatpush3.msra.mxu1 %v12944_v21  ;;  %v12978_v21 = vld [vmem:[#allocation14] ss:$0 sm:$0xff] }
0x1518   : > { %14056 = vmatprep.subr.mxu1 %v16171_v0  ;;  %5501 = vst.msk [vmem:[#allocation3 + $0x20] sm:$0xff] %vm5500_vm14, %v12978_v21 }
0x1519   : > { %v14051_v6 = vpop.f32.mrf.mxu0 }
0x151f   : > { %v5506_v39 = vld [vmem:[#allocation3 + $0x20] sm:$0xff] }
0x1520   : > { %v5526_v42 = vsel %vm5500_vm14, %v5506_v39, 0.0 }
0x15d4   : > { %v4563_v8 = vpop.f32.mrf.mxu1 }
0x15d5   : > { %v4637_v9 = vadd.f32 %v4636_v5, %v4563_v8  ;;  %v2319_v8 = vld [vmem:[%s16772_s26 + $0xa0] sm:$0xff] }
0x15d6   : > { %v14044_v10 = vpop.f32.mrf.mxu1 }
0x15d7   : > { %v4646_v11 = vadd.f32 %v12937_v7, %v4637_v9  ;;  %v2317_v7 = vld [vmem:[%s16772_s26 + $0x60] sm:$0xff] }
0x15d8   : > { %v2321_v9 = vld [vmem:[%s16772_s26 + $0xe0] sm:$0xff]  ;;  %s18831_s26 = sld [smem:[#allocation75_spill]] }
0x15d9   : > { %v17081_v13 = vadd.f32 %v4646_v11, %v16953_v34  ;;  %v12943_v34 = vld [vmem:[%s18819_s6 + $0x28] sm:$0xff] }
0x15da   : > { %14057 = vmatpush3.msra.mxu1 %v12943_v34 }
0x15db   : > { %v4652_v14 = vsel %vm2415_vm6, %v17081_v13, 0.0  ;;  %14058 = vmatprep.subr.mxu1 %v16171_v0 }
0x15dc   : > { %4653 = vadd.xlane.f32.xlu0 %v4652_v14  ;;  %14059 = vmatpush3.msra.mxu1 %v12942_v22 }
0x15dd   : > { %14082 = vmatprep.subr.mxu1 %v16171_v0 }
0x1665   : > { %v4654_v15 = vpop.xlane.xlu0 %4653 }
0x1666   : > { %v4655_v16 = vmul.f32 0.03125, %v4654_v15 }
0x1668   : > { %v4656_v17 = vsub.f32 %v17081_v13, %v4655_v16 }
0x166a   : > { %v4657_v18 = vmul.f32 %v4656_v17, %v4656_v17 }
0x166c   : > { %v4658_v19 = vsel %vm2415_vm6, %v4657_v18, 0.0  ;;  %vm9347_vm6 = vcmask 188544  }
0x166d   : > { %4659 = vadd.xlane.f32.xlu1 %v4658_v19 }
0x16f6   : > { %v4660_v23 = vpop.xlane.xlu1 %4659 }
0x16f7   : > { %v4661_v24 = vmul.f32 0.03125, %v4660_v23 }
0x16f9   : > { %v4662_v25 = vadd.f32 1e-06, %v4661_v24 }
0x16fb   : > { %15281 = vrsqrt.f32 %v4662_v25 }
0x1708   : > { %v15282_v26 = vpop.eup %15281 }
0x1709   : > { %v4664_v28 = vmul.f32 %v15282_v26, %v4656_v17 }
0x170b   : > { %v4671_v30 = vmul.f32 %v12940_v27, %v4664_v28 }
0x170d   : > { %v4678_v31 = vadd.f32 %v12941_v29, %v4671_v30 }
0x170f   : > { %14061 = vmatmul.mubr.msk.f32.vlgmr.msra.gmra.mxu1 %vm2485_vm7, %v4678_v31 }
0x1710   : > { %14083 = vmatpush3.msk.msra.mxu1 %vm2333_vm1, %v17098_v32  ;;  %14084 = vmatprep.mubr.msk.f32.mxu1 %vm16172_vm0, %v16171_v0 }
0x1711   : > { %14087 = vmatprep.subr.mxu1 %v16171_v0 }
0x1713   : > { %14085 = vmatmul.mubr.msk.f32.vlgmr.msra.gmra.mxu1 %vm2330_vm3, %v2312_v33 }
0x1714   : > { %14088 = vmatpush3.msk.msra.mxu1 %vm2333_vm1, %v17098_v32  ;;  %14089 = vmatprep.mubr.msk.f32.mxu1 %vm16172_vm0, %v16171_v0 }
0x1715   : > { %14092 = vmatprep.subr.mxu1 %v16171_v0 }
0x1717   : > { %14090 = vmatmul.mubr.msk.f32.vlgmr.msra.gmra.mxu1 %vm2330_vm3, %v2315_v36 }
0x1718   : > { %14093 = vmatpush3.msk.msra.mxu1 %vm2333_vm1, %v17098_v32  ;;  %14094 = vmatprep.mubr.msk.f32.mxu1 %vm16172_vm0, %v16171_v0 }
0x1719   : > { %14102 = vmatprep.subr.mxu1 %v16171_v0 }
0x171b   : > { %14095 = vmatmul.mubr.msk.f32.vlgmr.msra.gmra.mxu1 %vm2330_vm3, %v2316_v45 }
0x171c   : > { %14103 = vmatpush3.msk.msra.mxu1 %vm2333_vm1, %v17098_v32  ;;  %14104 = vmatprep.mubr.msk.f32.mxu1 %vm16172_vm0, %v16171_v0 }
0x171d   : > { %14112 = vmatprep.subr.mxu1 %v16171_v0 }
0x171f   : > { %14105 = vmatmul.mubr.msk.f32.vlgmr.msra.gmra.mxu1 %vm2330_vm3, %v2318_v46 }
0x1720   : > { %14113 = vmatpush3.msk.msra.mxu1 %vm2333_vm1, %v17098_v32  ;;  %14114 = vmatprep.mubr.msk.f32.mxu1 %vm16172_vm0, %v16171_v0 }
0x1721   : > { %14122 = vmatprep.subr.mxu1 %v16171_v0 }
0x1723   : > { %14115 = vmatmul.mubr.msk.f32.vlgmr.msra.gmra.mxu1 %vm2330_vm3, %v2320_v47  ;;  %v5602_v47 = vld [vmem:[%s18831_s26] sm:$0xff] }
0x1724   : > { %14124 = vmatprep.mubr.msk.f32.mxu1 %vm16172_vm0, %v16171_v0  ;;  %14123 = vmatpush3.msra.mxu1 %v5602_v47 }
0x1725   : > { %14156 = vmatprep.subr.mxu1 %v16171_v0 }
0x17cf   : > { %v4761_v49 = vpop.f32.mrf.mxu1 }
0x17d0   : > { %v4762_v50 = vadd.f32 %v12947_v48, %v4761_v49  ;;  %v5606_v48 = vld [vmem:[%s18832_s18] sm:$0xff]  ;;  %s18838_s18 = sld [smem:[#allocation79_spill]] }
0x17d1   : > { %v14062_v51 = vpop.f32.mrf.mxu1 }
0x17d2   : > { %v4765_v53 = vmul.f32 %v4762_v50, %v4762_v50 }
0x17d3   : > { %v4969_v54 = vpop.f32.mrf.mxu1 }
0x17d4   : > { %v4766_v55 = vmul.f32 %v4765_v53, %v4762_v50  ;;  %v4970_v56 = vadd.f32 %v4969_v54, %v17156_v52 }
0x17d5   : > { %v14086_v57 = vpop.f32.mrf.mxu1 }
0x17d6   : > { %v4767_v59 = vmul.f32 0.044715, %v4766_v55  ;;  %4974 = vst.msk [vmem:[#allocation3] sm:$0xf] %vm4973_vm13, %v4970_v56  ;;  %s18839_s4 = smov %s18838_s18 }
0x17d7   : > { %v5044_v60 = vpop.f32.mrf.mxu1 }
0x17d8   : > { %v4768_v12 = vadd.f32 %v4767_v59, %v4762_v50  ;;  %v5045_v61 = vadd.f32 %v5044_v60, %v17156_v52 }
0x17d9   : > { %v14091_v62 = vpop.f32.mrf.mxu1 }
0x17da   : > { %v4769_v63 = vmul.f32 0.7978846, %v4768_v12  ;;  %5048 = vst.msk [vmem:[#allocation3 + $0x4] sm:$0xf] %vm4973_vm13, %v5045_v61 }
0x17db   : > { %v5118_v10 = vpop.f32.mrf.mxu1 }
0x17dc   : > { %15283 = vtanh.f32 %v4769_v63  ;;  %v5119_v11 = vadd.f32 %v5118_v10, %v17156_v52  ;;  %v12979_v10 = vld [vmem:[%s18834_s0] ss:$0 sm:$0xff]  ;;  %s18840_s0 = sld [smem:[#allocation78_spill]] }
0x17dd   : > { %v14096_v14 = vpop.f32.mrf.mxu1 }
0x17de   : > { %5122 = vst.msk [vmem:[#allocation3 + $0x8] sm:$0xf] %vm4973_vm13, %v5119_v11  ;;  %v12980_v14 = vld [vmem:[%s18836_s15] ss:$0 sm:$0xff]  ;;  %s18842_s15 = sld [smem:[#allocation76_spill]] }
0x17df   : > { %v5266_v15 = vpop.f32.mrf.mxu1 }
0x17e0   : > { %v5267_v16 = vadd.f32 %v5266_v15, %v17156_v52 }
0x17e1   : > { %v5502_v1 = vld [vmem:[#allocation3] sm:$0xff]  ;;  %v14106_v17 = vpop.f32.mrf.mxu1 }
0x17e2   : > { %v5514_v2 = vsel %vm5500_vm14, %v5502_v1, 0.0  ;;  %5270 = vst.msk [vmem:[#allocation3 + $0x10] sm:$0xf] %vm4973_vm13, %v5267_v16  ;;  %v5610_v17 = vld [vmem:[%s18838_s18] sm:$0xff]  ;;  %s18841_s5 = smov %s18840_s0  ;;  %s18844_s18 = sld [smem:[#allocation80_spill]] }
0x17e3   : > { %5515 = vadd.xlane.f32.xlu0 %v5514_v2  ;;  %v5414_v18 = vpop.f32.mrf.mxu1 }
0x17e4   : > { %v5415_v19 = vadd.f32 %v5414_v18, %v17156_v52  ;;  %s18843_s6 = smov %s18842_s15 }
0x17e5   : > { %v14116_v20 = vpop.f32.mrf.mxu1 }
0x17e6   : > { %5418 = vst.msk [vmem:[#allocation3 + $0x18] sm:$0xf] %vm4973_vm13, %v5415_v19 }
0x17e8   : > { %s18845_s8 = smov %s18844_s18 }
0x17e9   : > { %v15284_v3 = vpop.eup %15283 }
0x17ea   : > { %v4771_v4 = vadd.f32 1.0, %v15284_v3 }
0x17ec   : > { %v4772_v5 = vmul.f32 0.5, %v4771_v4 }
0x17ee   : > { %v4773_v6 = vmul.f32 %v4772_v5, %v4762_v50 }
0x17f0   : > { %14080 = vmatmul.mubr.msk.f32.vlgmr.msra.gmra.mxu0 %vm3560_vm12, %v4773_v6 }
0x17f1   : > { %14098 = vmatpush3.msk.msra.mxu0 %vm2333_vm1, %v17098_v32  ;;  %14099 = vmatprep.mubr.msk.f32.mxu0 %vm16172_vm0, %v16171_v0 }
0x17f2   : > { %14107 = vmatprep.subr.mxu0 %v16171_v0 }
0x17f4   : > { %14100 = vmatmul.mubr.msk.f32.vlgmr.msra.gmra.mxu0 %vm2330_vm3, %v2317_v7 }
0x17f5   : > { %14108 = vmatpush3.msk.msra.mxu0 %vm2333_vm1, %v17098_v32  ;;  %14109 = vmatprep.mubr.msk.f32.mxu0 %vm16172_vm0, %v16171_v0 }
0x17f6   : > { %14117 = vmatprep.subr.mxu0 %v16171_v0 }
0x17f8   : > { %14110 = vmatmul.mubr.msk.f32.vlgmr.msra.gmra.mxu0 %vm2330_vm3, %v2319_v8 }
0x17f9   : > { %14118 = vmatpush3.msk.msra.mxu0 %vm2333_vm1, %v17098_v32  ;;  %14119 = vmatprep.mubr.msk.f32.mxu0 %vm16172_vm0, %v16171_v0  ;;  %vm6041_vm1 = vcmask 326656  }
0x17fa   : > { %14139 = vmatprep.subr.mxu0 %v16171_v0 }
0x17fc   : > { %14120 = vmatmul.mubr.msk.f32.vlgmr.msra.gmra.mxu0 %vm2330_vm3, %v2321_v9  ;;  %vm9333_vm3 = vcmask 57344  }
0x17fd   : > { %14141 = vmatprep.mubr.msk.f32.mxu0 %vm16172_vm0, %v16171_v0  ;;  %14140 = vmatpush3.msra.mxu0 %v5606_v48 }
0x17fe   : > { %14173 = vmatprep.subr.mxu0 %v16171_v0 }
0x186c   : > { %v5516_v29 = vpop.xlane.xlu0 %5515 }
0x186d   : > { %v5530_v36 = vmul.f32 0.125, %v5516_v29 }
0x186f   : > { %v5535_v40 = vsub.f32 %v5502_v1, %v5530_v36 }
0x1871   : > { %v5540_v45 = vmul.f32 %v5535_v40, %v5535_v40 }
0x1873   : > { %v5545_v46 = vsel %vm5500_vm14, %v5540_v45, 0.0 }
0x18b0   : > { %v17194_v34 = vpop.f32.mrf.mxu0 }
0x18b2   : > { %v14081_v22 = vpop.f32.mrf.mxu0 }
0x18b4   : > { %v5192_v23 = vpop.f32.mrf.mxu0 }
0x18b5   : > { %v5193_v24 = vadd.f32 %v5192_v23, %v17156_v52 }
0x18b6   : > { %v14101_v25 = vpop.f32.mrf.mxu0 }
0x18b7   : > { %5196 = vst.msk [vmem:[#allocation3 + $0xc] sm:$0xf] %vm4973_vm13, %v5193_v24 }
0x18b8   : > { %v5340_v26 = vpop.f32.mrf.mxu0 }
0x18b9   : > { %v5341_v27 = vadd.f32 %v5340_v26, %v17156_v52 }
0x18ba   : > { %v14111_v28 = vpop.f32.mrf.mxu0 }
0x18bb   : > { %5344 = vst.msk [vmem:[#allocation3 + $0x14] sm:$0xf] %vm4973_vm13, %v5341_v27 }
0x18bc   : > { %v5488_v30 = vpop.f32.mrf.mxu0 }
0x18bd   : > { %v5489_v31 = vadd.f32 %v5488_v30, %v17156_v52 }
0x18be   : > { %v14121_v32 = vpop.f32.mrf.mxu0  ;;  %v5503_v33 = vld [vmem:[#allocation3 + $0x8] sm:$0xff] }
0x18bf   : > { %5492 = vst.msk [vmem:[#allocation3 + $0x1c] sm:$0xf] %vm4973_vm13, %v5489_v31  ;;  %v5517_v37 = vsel %vm5500_vm14, %v5503_v33, 0.0  ;;  %vm9461_vm13 = vcmask 319744  }
0x18c0   : > { %5518 = vadd.xlane.f32.xlu1 %v5517_v37 }
0x18c2   : > { %v5504_v38 = vld [vmem:[#allocation3 + $0x10] sm:$0xff] }
0x18c3   : > { %v5520_v41 = vsel %vm5500_vm14, %v5504_v38, 0.0 }
0x18c4   : > { %5521 = vadd.xlane.f32.xlu0 %v5520_v41 }
0x18c6   : > { %v5505_v43 = vld [vmem:[#allocation3 + $0x18] sm:$0xff] }
0x18c7   : > { %v5523_v44 = vsel %vm5500_vm14, %v5505_v43, 0.0 }
0x18c8   : > { %5527 = vadd.xlane.f32.xlu0 %v5526_v42  ;;  %5524 = vadd.xlane.f32.xlu1 %v5523_v44 }
0x18cc   : > { %5546 = vadd.xlane.f32.xlu1 %v5545_v46 }
0x1949   : > { %v5519_v49 = vpop.xlane.xlu1 %5518 }
0x194a   : > { %v5531_v50 = vmul.f32 0.125, %v5519_v49 }
0x194c   : > { %v5536_v51 = vsub.f32 %v5503_v33, %v5531_v50 }
0x194d   : > { %v5522_v52 = vpop.xlane.xlu0 %5521 }
0x194e   : > { %v5532_v53 = vmul.f32 0.125, %v5522_v52  ;;  %v5541_v54 = vmul.f32 %v5536_v51, %v5536_v51 }
0x1950   : > { %v5537_v55 = vsub.f32 %v5504_v38, %v5532_v53  ;;  %v5548_v56 = vsel %vm5500_vm14, %v5541_v54, 0.0 }
0x1951   : > { %5549 = vadd.xlane.f32.xlu0 %v5548_v56  ;;  %v5528_v57 = vpop.xlane.xlu0 %5527  ;;  %v5525_v59 = vpop.xlane.xlu1 %5524 }
0x1952   : > { %v5534_v60 = vmul.f32 0.125, %v5528_v57  ;;  %v5533_v12 = vmul.f32 0.125, %v5525_v59  ;;  %v5542_v61 = vmul.f32 %v5537_v55, %v5537_v55 }
0x1954   : > { %v5539_v62 = vsub.f32 %v5506_v39, %v5534_v60  ;;  %v5538_v63 = vsub.f32 %v5505_v43, %v5533_v12  ;;  %v5551_v1 = vsel %vm5500_vm14, %v5542_v61, 0.0 }
0x1955   : > { %5552 = vadd.xlane.f32.xlu1 %v5551_v1  ;;  %v5547_v2 = vpop.xlane.xlu1 %5546  ;;  %v12987_v1 = vld [vmem:[%s18840_s0] ss:$0 sm:$0xff]  ;;  %s18846_s0 = sld [smem:[#allocation71_spill]] }
0x1956   : > { %v5560_v3 = vmul.f32 0.125, %v5547_v2  ;;  %v5544_v4 = vmul.f32 %v5539_v62, %v5539_v62  ;;  %v5543_v5 = vmul.f32 %v5538_v63, %v5538_v63 }
0x1958   : > { %v5565_v6 = vadd.f32 1e-06, %v5560_v3  ;;  %v5557_v7 = vsel %vm5500_vm14, %v5544_v4, 0.0  ;;  %v5554_v8 = vsel %vm5500_vm14, %v5543_v5, 0.0 }
0x1959   : > { %5558 = vadd.xlane.f32.xlu1 %v5557_v7  ;;  %5555 = vadd.xlane.f32.xlu0 %v5554_v8 }
0x195a   : > { %15285 = vrsqrt.f32 %v5565_v6 }
0x195b   : > { %s18847_s9 = smov %s18846_s0 }
0x1967   : > { %v15286_v9 = vpop.eup %15285 }
0x1968   : > { %v5575_v11 = vmul.f32 %v15286_v9, %v5535_v40 }
0x196a   : > { %v5586_v15 = vmul.f32 %v12979_v10, %v5575_v11 }
0x196c   : > { %v17217_v16 = vadd.f32 %v12980_v14, %v5586_v15 }
0x196e   : > { %14125 = vmatmul.mubr.msk.f32.vlgmr.msra.gmra.mxu1 %vm5500_vm14, %v17217_v16  ;;  %14142 = vmatmul.mubr.msk.f32.vlgmr.msra.gmra.mxu0 %vm5500_vm14, %v17217_v16 }
0x196f   : > { %14127 = vmatprep.mubr.msk.f32.mxu1 %vm16172_vm0, %v16171_v0  ;;  %14144 = vmatprep.mubr.msk.f32.mxu0 %vm16172_vm0, %v16171_v0 }
0x1970   : > { %14157 = vmatpush3.msra.mxu1 %v5610_v17 }
0x1971   : > { %14198 = vmatprep.subr.mxu1 %v16171_v0 }
0x19da   : > { %v5550_v18 = vpop.xlane.xlu0 %5549 }
0x19db   : > { %v5561_v19 = vmul.f32 0.125, %v5550_v18 }
0x19dd   : > { %v5566_v20 = vadd.f32 1e-06, %v5561_v19 }
0x19de   : > { %v5553_v21 = vpop.xlane.xlu1 %5552 }
0x19df   : > { %15287 = vrsqrt.f32 %v5566_v20  ;;  %v5562_v22 = vmul.f32 0.125, %v5553_v21  ;;  %v12981_v20 = vld [vmem:[%s18842_s15] ss:$0 sm:$0xff]  ;;  %s18848_s15 = sld [smem:[#allocation81_spill]] }
0x19e1   : > { %v5567_v23 = vadd.f32 1e-06, %v5562_v22 }
0x19e2   : > { %v5556_v24 = vpop.xlane.xlu0 %5555  ;;  %v5559_v25 = vpop.xlane.xlu1 %5558 }
0x19e3   : > { %15289 = vrsqrt.f32 %v5567_v23  ;;  %v5563_v26 = vmul.f32 0.125, %v5556_v24  ;;  %v5564_v27 = vmul.f32 0.125, %v5559_v25  ;;  %v12993_v24 = vld [vmem:[%s18844_s18] ss:$0 sm:$0xff]  ;;  %s18850_s18 = sld [smem:[#allocation82_spill]] }
0x19e5   : > { %v5568_v28 = vadd.f32 1e-06, %v5563_v26  ;;  %v5569_v29 = vadd.f32 1e-06, %v5564_v27  ;;  %v5603_v27 = vld [vmem:[%s18831_s26 + $0x8] sm:$0xff]  ;;  %s18849_s10 = smov %s18848_s15 }
0x19e7   : > { %15291 = vrsqrt.f32 %v5568_v28 }
0x19e8   : > { %15293 = vrsqrt.f32 %v5569_v29 }
0x19e9   : > { %s18851_s11 = smov %s18850_s18 }
0x19ec   : > { %v15288_v30 = vpop.eup %15287 }
0x19ed   : > { %v5576_v31 = vmul.f32 %v15288_v30, %v5536_v51 }
0x19ef   : > { %v5587_v32 = vmul.f32 %v12979_v10, %v5576_v31 }
0x19f0   : > { %v15290_v33 = vpop.eup %15289 }
0x19f1   : > { %v5577_v36 = vmul.f32 %v15290_v33, %v5537_v55  ;;  %v17229_v37 = vadd.f32 %v12980_v14, %v5587_v32 }
0x19f3   : > { %v5588_v38 = vmul.f32 %v12979_v10, %v5577_v36  ;;  %14128 = vmatmul.mubr.msk.f32.gmra.mxu1 %vm5500_vm14, %v17229_v37  ;;  %14145 = vmatmul.mubr.msk.f32.gmra.mxu0 %vm5500_vm14, %v17229_v37 }
0x19f4   : > { %v15292_v39 = vpop.eup %15291  ;;  %14130 = vmatprep.mubr.msk.f32.mxu1 %vm16172_vm0, %v16171_v0  ;;  %14147 = vmatprep.mubr.msk.f32.mxu0 %vm16172_vm0, %v16171_v0 }
0x19f5   : > { %v15294_v40 = vpop.eup %15293  ;;  %v5578_v41 = vmul.f32 %v15292_v39, %v5538_v63  ;;  %v17239_v42 = vadd.f32 %v12980_v14, %v5588_v38 }
0x19f6   : > { %v5579_v43 = vmul.f32 %v15294_v40, %v5539_v62  ;;  %v5611_v40 = vld [vmem:[%s18839_s4 + $0x8] sm:$0xff] }
0x19f7   : > { %v5589_v44 = vmul.f32 %v12979_v10, %v5578_v41  ;;  %14131 = vmatmul.mubr.msk.f32.gmra.mxu1 %vm5500_vm14, %v17239_v42  ;;  %14148 = vmatmul.mubr.msk.f32.gmra.mxu0 %vm5500_vm14, %v17239_v42  ;;  %v17370_v41 = vld [vmem:[%s18846_s0] sm:$0xff]  ;;  %s18852_s0 = sld [smem:[#allocation85_spill]] }
0x19f8   : > { %14133 = vmatprep.mubr.msk.f32.mxu1 %vm16172_vm0, %v16171_v0  ;;  %14150 = vmatprep.mubr.msk.f32.mxu0 %vm16172_vm0, %v16171_v0  ;;  %v5590_v45 = vmul.f32 %v12979_v10, %v5579_v43 }
0x19f9   : > { %v17249_v46 = vadd.f32 %v12980_v14, %v5589_v44 }
0x19fa   : > { %v17259_v47 = vadd.f32 %v12980_v14, %v5590_v45 }
0x19fb   : > { %14134 = vmatmul.mubr.msk.f32.gmra.mxu1 %vm5500_vm14, %v17249_v46  ;;  %14151 = vmatmul.mubr.msk.f32.gmra.mxu0 %vm5500_vm14, %v17249_v46 }
0x19fc   : > { %14136 = vmatprep.mubr.msk.f32.mxu1 %vm16172_vm0, %v16171_v0  ;;  %14153 = vmatprep.mubr.msk.f32.mxu0 %vm16172_vm0, %v16171_v0 }
0x19fd   : > { %s18853_s12 = smov %s18852_s0 }
0x19ff   : > { %14137 = vmatmul.mubr.msk.f32.gmra.mxu1 %vm5500_vm14, %v17259_v47  ;;  %14154 = vmatmul.mubr.msk.f32.gmra.mxu0 %vm5500_vm14, %v17259_v47 }
0x1a00   : > { %14158 = vmatprep.mubr.msk.f32.mxu1 %vm16172_vm0, %v16171_v0  ;;  %14183 = vmatprep.mubr.msk.f32.mxu0 %vm16172_vm0, %v16171_v0 }
0x1a03   : > { %14159 = vmatmul.mubr.msk.f32.vlgmr.msra.gmra.mxu1 %vm5500_vm14, %v17217_v16 }
0x1a04   : > { %14161 = vmatprep.mubr.msk.f32.mxu1 %vm16172_vm0, %v16171_v0 }
0x1a07   : > { %14162 = vmatmul.mubr.msk.f32.gmra.mxu1 %vm5500_vm14, %v17229_v37 }
0x1a08   : > { %14164 = vmatprep.mubr.msk.f32.mxu1 %vm16172_vm0, %v16171_v0 }
0x1a0b   : > { %14165 = vmatmul.mubr.msk.f32.gmra.mxu1 %vm5500_vm14, %v17239_v42 }
0x1a0c   : > { %14167 = vmatprep.mubr.msk.f32.mxu1 %vm16172_vm0, %v16171_v0 }
0x1a0f   : > { %14168 = vmatmul.mubr.msk.f32.gmra.mxu1 %vm5500_vm14, %v17249_v46 }
0x1a10   : > { %14170 = vmatprep.mubr.msk.f32.mxu1 %vm16172_vm0, %v16171_v0 }
0x1a13   : > { %14171 = vmatmul.mubr.msk.f32.gmra.mxu1 %vm5500_vm14, %v17259_v47 }
0x1a14   : > { %14208 = vmatprep.mubr.msk.f32.mxu1 %vm16172_vm0, %v16171_v0 }
0x1a2e   : > { %v5704_v48 = vpop.f32.mrf.mxu1  ;;  %v5800_v49 = vpop.f32.mrf.mxu0 }
0x1a2f   : > { %v5801_v21 = vadd.f32 %v12987_v1, %v5800_v49  ;;  %v5705_v23 = vadd.f32 %v12981_v20, %v5704_v48  ;;  %v17376_v48 = vld [vmem:[%s18847_s9 + $0x8] sm:$0xff] }
0x1a30   : > { %v14126_v50 = vpop.f32.mrf.mxu1  ;;  %v14143_v51 = vpop.f32.mrf.mxu0 }
0x1ab3   : > { %v5709_v52 = vpop.f32.mrf.mxu1  ;;  %v5805_v53 = vpop.f32.mrf.mxu0 }
0x1ab4   : > { %v5806_v17 = vadd.f32 %v12987_v1, %v5805_v53  ;;  %v5710_v30 = vadd.f32 %v12981_v20, %v5709_v52  ;;  %v17384_v53 = vld [vmem:[%s18847_s9 + $0x10] sm:$0xff] }
0x1ab5   : > { %v14129_v54 = vpop.f32.mrf.mxu1  ;;  %v14146_v55 = vpop.f32.mrf.mxu0 }
0x1ab7   : > { %v5714_v56 = vpop.f32.mrf.mxu1  ;;  %v5810_v57 = vpop.f32.mrf.mxu0 }
0x1ab8   : > { %v5811_v11 = vadd.f32 %v12987_v1, %v5810_v57  ;;  %v5715_v33 = vadd.f32 %v12981_v20, %v5714_v56 }
0x1ab9   : > { %v14132_v59 = vpop.f32.mrf.mxu1  ;;  %v14149_v60 = vpop.f32.mrf.mxu0 }
0x1aba   : > { %v17390_v59 = vld [vmem:[%s18847_s9 + $0x18] sm:$0xff] }
0x1abb   : > { %v17289_v12 = vpop.f32.mrf.mxu1  ;;  %v5815_v61 = vpop.f32.mrf.mxu0 }
0x1abc   : > { %v5816_v8 = vadd.f32 %v12987_v1, %v5815_v61  ;;  %v5720_v38 = vadd.f32 %v12981_v20, %v17289_v12 }
0x1abd   : > { %v14135_v62 = vpop.f32.mrf.mxu1  ;;  %v14152_v63 = vpop.f32.mrf.mxu0 }
0x1abe   : > { %v17395_v63 = vld [vmem:[%s18847_s9 + $0x20] sm:$0xff] }
0x1abf   : > { %v5724_v2 = vpop.f32.mrf.mxu1  ;;  %v5820_v3 = vpop.f32.mrf.mxu0 }
0x1ac0   : > { %v5821_v4 = vadd.f32 %v12987_v1, %v5820_v3  ;;  %v5725_v39 = vadd.f32 %v12981_v20, %v5724_v2 }
0x1ac1   : > { %v14138_v5 = vpop.f32.mrf.mxu1  ;;  %v14155_v6 = vpop.f32.mrf.mxu0 }
0x1ac2   : > { %14174 = vmatpush3.xpose.msk.msra.mxu0 %vm5920_vm15, %v5821_v4 }
0x1ac3   : > { %v5896_v7 = vpop.f32.mrf.mxu1  ;;  %14175 = vmatprep.subr.mxu0 %v16171_v0 }
0x1ac4   : > { %v5897_v36 = vadd.f32 %v12993_v24, %v5896_v7 }
0x1ac5   : > { %v14160_v9 = vpop.f32.mrf.mxu1 }
0x1ac6   : > { %14176 = vmatpush3.xpose.msk.msra.mxu0 %vm5920_vm15, %v5816_v8 }
0x1ac7   : > { %v5901_v10 = vpop.f32.mrf.mxu1  ;;  %14177 = vmatprep.subr.mxu0 %v16171_v0 }
0x1ac8   : > { %v5902_v32 = vadd.f32 %v12993_v24, %v5901_v10 }
0x1ac9   : > { %v14163_v14 = vpop.f32.mrf.mxu1 }
0x1aca   : > { %14178 = vmatpush3.xpose.msk.msra.mxu0 %vm5920_vm15, %v5811_v11 }
0x1acb   : > { %v5906_v15 = vpop.f32.mrf.mxu1  ;;  %14179 = vmatprep.subr.mxu0 %v16171_v0 }
0x1acc   : > { %v5907_v31 = vadd.f32 %v12993_v24, %v5906_v15 }
0x1acd   : > { %v14166_v18 = vpop.f32.mrf.mxu1 }
0x1ace   : > { %14180 = vmatpush3.xpose.msk.msra.mxu0 %vm5920_vm15, %v5806_v17 }
0x1acf   : > { %v5911_v19 = vpop.f32.mrf.mxu1  ;;  %14181 = vmatprep.subr.mxu0 %v16171_v0 }
0x1ad0   : > { %v5912_v29 = vadd.f32 %v12993_v24, %v5911_v19 }
0x1ad1   : > { %v14169_v22 = vpop.f32.mrf.mxu1 }
0x1ad2   : > { %14182 = vmatpush3.xpose.msk.msra.mxu0 %vm5920_vm15, %v5801_v21 }
0x1ad3   : > { %v5916_v25 = vpop.f32.mrf.mxu1  ;;  %14223 = vmatprep.subr.mxu0 %v16171_v0 }
0x1ad4   : > { %v5917_v26 = vadd.f32 %v12993_v24, %v5916_v25 }
0x1ad5   : > { %v14172_v28 = vpop.f32.mrf.mxu1  ;;  %14184 = vmatmul.mubr.msk.f32.vlgmr.msra.gmra.mxu0 %vm5920_vm15, %v5705_v23 }
0x1ad6   : > { %14199 = vmatpush3.msra.mxu1 %v5917_v26  ;;  %14186 = vmatprep.mubr.msk.f32.mxu0 %vm16172_vm0, %v16171_v0 }
0x1ad7   : > { %14200 = vmatprep.subr.mxu1 %v16171_v0  ;;  %14224 = vmatpush3.msra.mxu0 %v5603_v27  ;;  %v13026_v27 = vld [vmem:[%s18845_s8 + $0x1] ss:$0 sm:$0xff] }
0x1ad8   : > { %14201 = vmatpush3.msra.mxu1 %v5912_v29  ;;  %14257 = vmatprep.subr.mxu0 %v16171_v0 }
0x1ad9   : > { %14187 = vmatmul.mubr.msk.f32.gmra.mxu0 %vm5920_vm15, %v5710_v30  ;;  %14202 = vmatprep.subr.mxu1 %v16171_v0 }
0x1ada   : > { %14203 = vmatpush3.msra.mxu1 %v5907_v31  ;;  %14189 = vmatprep.mubr.msk.f32.mxu0 %vm16172_vm0, %v16171_v0 }
0x1adb   : > { %14204 = vmatprep.subr.mxu1 %v16171_v0 }
0x1adc   : > { %14205 = vmatpush3.msra.mxu1 %v5902_v32 }
0x1add   : > { %14190 = vmatmul.mubr.msk.f32.gmra.mxu0 %vm5920_vm15, %v5715_v33  ;;  %14206 = vmatprep.subr.mxu1 %v16171_v0 }
0x1ade   : > { %14207 = vmatpush3.msra.mxu1 %v5897_v36  ;;  %14192 = vmatprep.mubr.msk.f32.mxu0 %vm16172_vm0, %v16171_v0 }
0x1adf   : > { %14240 = vmatprep.subr.mxu1 %v16171_v0 }
0x1ae1   : > { %14193 = vmatmul.mubr.msk.f32.gmra.mxu0 %vm5920_vm15, %v5720_v38 }
0x1ae2   : > { %14195 = vmatprep.mubr.msk.f32.mxu0 %vm16172_vm0, %v16171_v0 }
0x1ae5   : > { %14196 = vmatmul.mubr.msk.f32.gmra.mxu0 %vm5920_vm15, %v5725_v39 }
0x1ae6   : > { %14225 = vmatprep.mubr.msk.f32.mxu0 %vm16172_vm0, %v16171_v0 }
0x1ae9   : > { %14226 = vmatmul.mubr.msk.f32.vlgmr.msra.gmra.mxu0 %vm5500_vm14, %v17217_v16 }
0x1aea   : > { %14228 = vmatprep.mubr.msk.f32.mxu0 %vm16172_vm0, %v16171_v0  ;;  %14258 = vmatpush3.msra.mxu0 %v5611_v40 }
0x1aeb   : > { %14299 = vmatprep.subr.mxu0 %v16171_v0 }
0x1aed   : > { %14229 = vmatmul.mubr.msk.f32.gmra.mxu0 %vm5500_vm14, %v17229_v37 }
0x1aee   : > { %14231 = vmatprep.mubr.msk.f32.mxu0 %vm16172_vm0, %v16171_v0 }
0x1af1   : > { %14232 = vmatmul.mubr.msk.f32.gmra.mxu0 %vm5500_vm14, %v17239_v42 }
0x1af2   : > { %14234 = vmatprep.mubr.msk.f32.mxu0 %vm16172_vm0, %v16171_v0 }
0x1af5   : > { %14235 = vmatmul.mubr.msk.f32.gmra.mxu0 %vm5500_vm14, %v17249_v46 }
0x1af6   : > { %14237 = vmatprep.mubr.msk.f32.mxu0 %vm16172_vm0, %v16171_v0 }
0x1af9   : > { %14238 = vmatmul.mubr.msk.f32.gmra.mxu0 %vm5500_vm14, %v17259_v47 }
0x1afa   : > { %14259 = vmatprep.mubr.msk.f32.mxu0 %vm16172_vm0, %v16171_v0 }
0x1afd   : > { %14260 = vmatmul.mubr.msk.f32.vlgmr.msra.gmra.mxu0 %vm5500_vm14, %v17217_v16 }
0x1afe   : > { %14262 = vmatprep.mubr.msk.f32.mxu0 %vm16172_vm0, %v16171_v0 }
0x1b01   : > { %14263 = vmatmul.mubr.msk.f32.gmra.mxu0 %vm5500_vm14, %v17229_v37 }
0x1b02   : > { %14265 = vmatprep.mubr.msk.f32.mxu0 %vm16172_vm0, %v16171_v0 }
0x1b05   : > { %14266 = vmatmul.mubr.msk.f32.gmra.mxu0 %vm5500_vm14, %v17239_v42 }
0x1b06   : > { %14268 = vmatprep.mubr.msk.f32.mxu0 %vm16172_vm0, %v16171_v0 }
0x1b09   : > { %14269 = vmatmul.mubr.msk.f32.gmra.mxu0 %vm5500_vm14, %v17249_v46 }
0x1b0a   : > { %14271 = vmatprep.mubr.msk.f32.mxu0 %vm16172_vm0, %v16171_v0 }
0x1b0d   : > { %14272 = vmatmul.mubr.msk.f32.gmra.mxu0 %vm5500_vm14, %v17259_v47 }
0x1b0e   : > { %14309 = vmatprep.mubr.msk.f32.mxu0 %vm16172_vm0, %v16171_v0 }
0x1b95   : > { %v6017_v43 = vpop.f32.mrf.mxu0 }
0x1b96   : > { %v17373_v44 = vadd.f32 %v6017_v43, %v17370_v41 }
0x1b97   : > { %v14185_v45 = vpop.f32.mrf.mxu0 }
0x1b98   : > { %v6042_v49 = vsel %vm6041_vm1, %v17373_v44, -inf }
0x1b99   : > { %6043 = vmax.xlane.f32.xlu0 %v6042_v49  ;;  %v6022_v50 = vpop.f32.mrf.mxu0 }
0x1b9a   : > { %v17381_v51 = vadd.f32 %v6022_v50, %v17376_v48 }
0x1b9b   : > { %v14188_v52 = vpop.f32.mrf.mxu0 }
0x1b9c   : > { %v6045_v54 = vsel %vm6041_vm1, %v17381_v51, -inf }
0x1b9d   : > { %6046 = vmax.xlane.f32.xlu1 %v6045_v54  ;;  %v6027_v55 = vpop.f32.mrf.mxu0 }
0x1b9e   : > { %v6028_v56 = vadd.f32 %v6027_v55, %v17384_v53 }
0x1b9f   : > { %v14191_v57 = vpop.f32.mrf.mxu0 }
0x1ba0   : > { %v6048_v60 = vsel %vm6041_vm1, %v6028_v56, -inf }
0x1ba1   : > { %6049 = vmax.xlane.f32.xlu0 %v6048_v60  ;;  %v6032_v12 = vpop.f32.mrf.mxu0 }
0x1ba2   : > { %v6033_v61 = vadd.f32 %v6032_v12, %v17390_v59 }
0x1ba3   : > { %v14194_v62 = vpop.f32.mrf.mxu0 }
0x1ba4   : > { %v6051_v1 = vsel %vm6041_vm1, %v6033_v61, -inf }
0x1ba5   : > { %6052 = vmax.xlane.f32.xlu1 %v6051_v1  ;;  %v6037_v2 = vpop.f32.mrf.mxu0 }
0x1ba6   : > { %v6038_v3 = vadd.f32 %v6037_v2, %v17395_v63 }
0x1ba7   : > { %v14197_v4 = vpop.f32.mrf.mxu0 }
0x1ba8   : > { %v6054_v5 = vsel %vm6041_vm1, %v6038_v3, -inf }
0x1ba9   : > { %6055 = vmax.xlane.f32.xlu0 %v6054_v5  ;;  %v17400_v6 = vpop.f32.mrf.mxu0 }
0x1bab   : > { %v14227_v7 = vpop.f32.mrf.mxu0 }
0x1bad   : > { %v17402_v8 = vpop.f32.mrf.mxu0 }
0x1baf   : > { %v14230_v9 = vpop.f32.mrf.mxu0 }
0x1bb1   : > { %v17404_v10 = vpop.f32.mrf.mxu0 }
0x1bb3   : > { %v14233_v11 = vpop.f32.mrf.mxu0 }
0x1bb5   : > { %v17406_v14 = vpop.f32.mrf.mxu0 }
0x1bb7   : > { %v14236_v15 = vpop.f32.mrf.mxu0 }
0x1bb9   : > { %v17408_v17 = vpop.f32.mrf.mxu0 }
0x1bbb   : > { %v14239_v18 = vpop.f32.mrf.mxu0 }
0x1bbd   : > { %v6466_v19 = vpop.f32.mrf.mxu0 }
0x1bbe   : > { %v6467_v36 = vadd.f32 %v13026_v27, %v6466_v19 }
0x1bbf   : > { %v14261_v20 = vpop.f32.mrf.mxu0 }
0x1bc1   : > { %v6471_v21 = vpop.f32.mrf.mxu0 }
0x1bc2   : > { %v6472_v33 = vadd.f32 %v13026_v27, %v6471_v21 }
0x1bc3   : > { %v14264_v22 = vpop.f32.mrf.mxu0 }
0x1bc4   : > { %v5607_v22 = vld [vmem:[%s18833_s1 + $0x8] sm:$0xff] }
0x1bc5   : > { %v6476_v23 = vpop.f32.mrf.mxu0 }
0x1bc6   : > { %v6477_v32 = vadd.f32 %v13026_v27, %v6476_v23 }
0x1bc7   : > { %v14267_v24 = vpop.f32.mrf.mxu0 }
0x1bc9   : > { %v6481_v25 = vpop.f32.mrf.mxu0 }
0x1bca   : > { %v6482_v31 = vadd.f32 %v13026_v27, %v6481_v25 }
0x1bcb   : > { %v14270_v26 = vpop.f32.mrf.mxu0 }
0x1bcd   : > { %v6486_v28 = vpop.f32.mrf.mxu0 }
0x1bce   : > { %v6487_v29 = vadd.f32 %v13026_v27, %v6486_v28 }
0x1bcf   : > { %v14273_v30 = vpop.f32.mrf.mxu0 }
0x1bd0   : > { %14300 = vmatpush3.msra.mxu0 %v6487_v29 }
0x1bd1   : > { %14301 = vmatprep.subr.mxu0 %v16171_v0 }
0x1bd2   : > { %14302 = vmatpush3.msra.mxu0 %v6482_v31 }
0x1bd3   : > { %14303 = vmatprep.subr.mxu0 %v16171_v0 }
0x1bd4   : > { %14304 = vmatpush3.msra.mxu0 %v6477_v32 }
0x1bd5   : > { %14305 = vmatprep.subr.mxu0 %v16171_v0 }
0x1bd6   : > { %14306 = vmatpush3.msra.mxu0 %v6472_v33 }
0x1bd7   : > { %14307 = vmatprep.subr.mxu0 %v16171_v0 }
0x1bd8   : > { %14308 = vmatpush3.msra.mxu0 %v6467_v36 }
0x1bd9   : > { %14341 = vmatprep.subr.mxu0 %v16171_v0 }
0x1c22   : > { %v6044_v38 = vpop.xlane.xlu0 %6043 }
0x1c23   : > { %v6057_v39 = vsub.f32 %v17373_v44, %v6044_v38 }
0x1c25   : > { %v6062_v40 = vmul.f32 1.442695, %v6057_v39 }
0x1c26   : > { %v6047_v43 = vpop.xlane.xlu1 %6046 }
0x1c27   : > { %15295 = vpow2.f32 %v6062_v40  ;;  %v6058_v45 = vsub.f32 %v17381_v51, %v6047_v43 }
0x1c29   : > { %v6064_v49 = vmul.f32 1.442695, %v6058_v45 }
0x1c2a   : > { %v6050_v50 = vpop.xlane.xlu0 %6049 }
0x1c2b   : > { %15297 = vpow2.f32 %v6064_v49  ;;  %v6059_v52 = vsub.f32 %v6028_v56, %v6050_v50 }
0x1c2d   : > { %v6066_v54 = vmul.f32 1.442695, %v6059_v52 }
0x1c2e   : > { %v6053_v55 = vpop.xlane.xlu1 %6052 }
0x1c2f   : > { %15299 = vpow2.f32 %v6066_v54  ;;  %v6060_v57 = vsub.f32 %v6033_v61, %v6053_v55 }
0x1c31   : > { %v6068_v60 = vmul.f32 1.442695, %v6060_v57  ;;  %v13020_v57 = vld [vmem:[%s18841_s5 + $0x1] ss:$0 sm:$0xff] }
0x1c32   : > { %v6056_v12 = vpop.xlane.xlu0 %6055 }
0x1c33   : > { %15301 = vpow2.f32 %v6068_v60  ;;  %v6061_v62 = vsub.f32 %v6038_v3, %v6056_v12 }
0x1c34   : > { %v15296_v1 = vpop.eup %15295 }
0x1c35   : > { %v6070_v2 = vmul.f32 1.442695, %v6061_v62  ;;  %v6072_v44 = vsel %vm6041_vm1, %v15296_v1, 0.0 }
0x1c36   : > { %6073 = vadd.xlane.f32.xlu1 %v6072_v44 }
0x1c37   : > { %15303 = vpow2.f32 %v6070_v2 }
0x1c38   : > { %v15298_v4 = vpop.eup %15297 }
0x1c39   : > { %v6075_v51 = vsel %vm6041_vm1, %v15298_v4, 0.0 }
0x1c3a   : > { %6076 = vadd.xlane.f32.xlu0 %v6075_v51 }
0x1c3c   : > { %v15300_v5 = vpop.eup %15299 }
0x1c3d   : > { %v6078_v56 = vsel %vm6041_vm1, %v15300_v5, 0.0 }
0x1c3e   : > { %6079 = vadd.xlane.f32.xlu1 %v6078_v56 }
0x1c40   : > { %v15302_v7 = vpop.eup %15301 }
0x1c41   : > { %v6081_v61 = vsel %vm6041_vm1, %v15302_v7, 0.0 }
0x1c42   : > { %6082 = vadd.xlane.f32.xlu0 %v6081_v61 }
0x1c44   : > { %v15304_v3 = vpop.eup %15303 }
0x1c45   : > { %v6084_v9 = vsel %vm6041_vm1, %v15304_v3, 0.0 }
0x1c46   : > { %6085 = vadd.xlane.f32.xlu1 %v6084_v9 }
0x1cbf   : > { %v6074_v11 = vpop.xlane.xlu1 %6073 }
0x1cc0   : > { %15305 = vrcp.f32 %v6074_v11 }
0x1cc3   : > { %v6077_v15 = vpop.xlane.xlu0 %6076 }
0x1cc4   : > { %15307 = vrcp.f32 %v6077_v15 }
0x1cc7   : > { %v6080_v18 = vpop.xlane.xlu1 %6079 }
0x1cc8   : > { %15309 = vrcp.f32 %v6080_v18 }
0x1ccb   : > { %v6083_v19 = vpop.xlane.xlu0 %6082 }
0x1ccc   : > { %15311 = vrcp.f32 %v6083_v19 }
0x1ccd   : > { %v15306_v20 = vpop.eup %15305 }
0x1cce   : > { %v6088_v21 = vmul.f32 %v15306_v20, %v15296_v1 }
0x1ccf   : > { %v6086_v23 = vpop.xlane.xlu1 %6085 }
0x1cd0   : > { %15313 = vrcp.f32 %v6086_v23  ;;  %14209 = vmatmul.mubr.msk.f32.vlgmr.msra.gmra.mxu1 %vm6041_vm1, %v6088_v21 }
0x1cd1   : > { %v15308_v24 = vpop.eup %15307  ;;  %14241 = vmatpush3.msra.mxu1 %v5607_v22  ;;  %14211 = vmatprep.mubr.msk.f32.mxu1 %vm16172_vm0, %v16171_v0 }
0x1cd2   : > { %v6090_v25 = vmul.f32 %v15308_v24, %v15298_v4  ;;  %14274 = vmatprep.subr.mxu1 %v16171_v0  ;;  %v13014_v4 = vld [vmem:[%s18843_s6 + $0x1] ss:$0 sm:$0xff] }
0x1cd3   : > { %v6280_v56 = vadd.f32 %v13014_v4, %v17402_v8  ;;  %v6295_v8 = vadd.f32 %v13014_v4, %v17408_v17 }
0x1cd4   : > { %14212 = vmatmul.mubr.msk.f32.gmra.mxu1 %vm6041_vm1, %v6090_v25 }
0x1cd5   : > { %v15310_v26 = vpop.eup %15309  ;;  %14214 = vmatprep.mubr.msk.f32.mxu1 %vm16172_vm0, %v16171_v0 }
0x1cd6   : > { %v6092_v27 = vmul.f32 %v15310_v26, %v15300_v5  ;;  %v6275_v5 = vadd.f32 %v13014_v4, %v17400_v6  ;;  %v6290_v6 = vadd.f32 %v13014_v4, %v17406_v14 }
0x1cd8   : > { %14215 = vmatmul.mubr.msk.f32.gmra.mxu1 %vm6041_vm1, %v6092_v27 }
0x1cd9   : > { %v15312_v28 = vpop.eup %15311  ;;  %14217 = vmatprep.mubr.msk.f32.mxu1 %vm16172_vm0, %v16171_v0 }
0x1cda   : > { %v6094_v29 = vmul.f32 %v15312_v28, %v15302_v7  ;;  %v6285_v7 = vadd.f32 %v13014_v4, %v17404_v10 }
0x1cdc   : > { %14218 = vmatmul.mubr.msk.f32.gmra.mxu1 %vm6041_vm1, %v6094_v29 }
0x1cdd   : > { %v15314_v30 = vpop.eup %15313  ;;  %14220 = vmatprep.mubr.msk.f32.mxu1 %vm16172_vm0, %v16171_v0 }
0x1cde   : > { %v6096_v31 = vmul.f32 %v15314_v30, %v15304_v3 }
0x1ce0   : > { %14221 = vmatmul.mubr.msk.f32.gmra.mxu1 %vm6041_vm1, %v6096_v31 }
0x1ce1   : > { %14242 = vmatprep.mubr.msk.f32.mxu1 %vm16172_vm0, %v16171_v0 }
0x1ce4   : > { %14243 = vmatmul.mubr.msk.f32.vlgmr.msra.gmra.mxu1 %vm5500_vm14, %v17217_v16 }
0x1ce5   : > { %14245 = vmatprep.mubr.msk.f32.mxu1 %vm16172_vm0, %v16171_v0 }
0x1ce8   : > { %14246 = vmatmul.mubr.msk.f32.gmra.mxu1 %vm5500_vm14, %v17229_v37 }
0x1ce9   : > { %14248 = vmatprep.mubr.msk.f32.mxu1 %vm16172_vm0, %v16171_v0 }
0x1cec   : > { %14249 = vmatmul.mubr.msk.f32.gmra.mxu1 %vm5500_vm14, %v17239_v42 }
0x1ced   : > { %14251 = vmatprep.mubr.msk.f32.mxu1 %vm16172_vm0, %v16171_v0 }
0x1cf0   : > { %14252 = vmatmul.mubr.msk.f32.gmra.mxu1 %vm5500_vm14, %v17249_v46 }
0x1cf1   : > { %14254 = vmatprep.mubr.msk.f32.mxu1 %vm16172_vm0, %v16171_v0 }
0x1cf4   : > { %14255 = vmatmul.mubr.msk.f32.gmra.mxu1 %vm5500_vm14, %v17259_v47 }
0x1cf5   : > { %14284 = vmatprep.mubr.msk.f32.mxu1 %vm16172_vm0, %v16171_v0 }
0x1d90   : > { %v17460_v16 = vpop.f32.mrf.mxu1 }
0x1d92   : > { %v14210_v37 = vpop.f32.mrf.mxu1 }
0x1d94   : > { %v17462_v32 = vpop.f32.mrf.mxu1 }
0x1d96   : > { %v14213_v42 = vpop.f32.mrf.mxu1 }
0x1d98   : > { %v17464_v33 = vpop.f32.mrf.mxu1 }
0x1d9a   : > { %v14216_v36 = vpop.f32.mrf.mxu1 }
0x1d9c   : > { %v17466_v46 = vpop.f32.mrf.mxu1 }
0x1d9e   : > { %v14219_v38 = vpop.f32.mrf.mxu1 }
0x1da0   : > { %v17468_v39 = vpop.f32.mrf.mxu1 }
0x1da2   : > { %v14222_v40 = vpop.f32.mrf.mxu1 }
0x1da4   : > { %v6370_v47 = vpop.f32.mrf.mxu1 }
0x1da5   : > { %v6371_v51 = vadd.f32 %v13020_v57, %v6370_v47 }
0x1da6   : > { %v14244_v43 = vpop.f32.mrf.mxu1 }
0x1da8   : > { %v6375_v45 = vpop.f32.mrf.mxu1 }
0x1da9   : > { %v6376_v44 = vadd.f32 %v13020_v57, %v6375_v45 }
0x1daa   : > { %v14247_v49 = vpop.f32.mrf.mxu1 }
0x1dac   : > { %v6380_v50 = vpop.f32.mrf.mxu1 }
0x1dad   : > { %v6381_v2 = vadd.f32 %v13020_v57, %v6380_v50 }
0x1dae   : > { %v14250_v52 = vpop.f32.mrf.mxu1 }
0x1db0   : > { %v6385_v54 = vpop.f32.mrf.mxu1 }
0x1db1   : > { %v6386_v1 = vadd.f32 %v13020_v57, %v6385_v54 }
0x1db2   : > { %v14253_v55 = vpop.f32.mrf.mxu1 }
0x1db4   : > { %v6390_v60 = vpop.f32.mrf.mxu1 }
0x1db5   : > { %v6391_v12 = vadd.f32 %v13020_v57, %v6390_v60 }
0x1db6   : > { %v14256_v62 = vpop.f32.mrf.mxu1 }
0x1db7   : > { %14275 = vmatpush3.xpose.msk.msra.mxu1 %vm5920_vm15, %v6391_v12 }
0x1db8   : > { %14276 = vmatprep.subr.mxu1 %v16171_v0 }
0x1dbb   : > { %14277 = vmatpush3.xpose.msk.msra.mxu1 %vm5920_vm15, %v6386_v1 }
0x1dbc   : > { %14278 = vmatprep.subr.mxu1 %v16171_v0 }
0x1dbf   : > { %14279 = vmatpush3.xpose.msk.msra.mxu1 %vm5920_vm15, %v6381_v2  ;;  %v5615_v2 = vld [vmem:[%s18848_s15 + $0x4] sm:$0xf]  ;;  %s18854_s15 = sld [smem:[#allocation83_spill]] }
0x1dc0   : > { %14280 = vmatprep.subr.mxu1 %v16171_v0 }
0x1dc3   : > { %14281 = vmatpush3.xpose.msk.msra.mxu1 %vm5920_vm15, %v6376_v44 }
0x1dc4   : > { %14282 = vmatprep.subr.mxu1 %v16171_v0 }
0x1dc5   : > { %s18855_s14 = smov %s18854_s15 }
0x1dc7   : > { %14283 = vmatpush3.xpose.msk.msra.mxu1 %vm5920_vm15, %v6371_v51 }
0x1dc8   : > { %14324 = vmatprep.subr.mxu1 %v16171_v0 }
0x1dca   : > { %14285 = vmatmul.mubr.msk.f32.vlgmr.msra.gmra.mxu1 %vm5920_vm15, %v6275_v5 }
0x1dcb   : > { %14287 = vmatprep.mubr.msk.f32.mxu1 %vm16172_vm0, %v16171_v0  ;;  %14325 = vmatpush3.msk.msra.mxu1 %vm6785_vm2, %v5615_v2 }
0x1dcc   : > { %14358 = vmatprep.subr.mxu1 %v16171_v0 }
0x1dce   : > { %14288 = vmatmul.mubr.msk.f32.gmra.mxu1 %vm5920_vm15, %v6280_v56 }
0x1dcf   : > { %14290 = vmatprep.mubr.msk.f32.mxu1 %vm16172_vm0, %v16171_v0 }
0x1dd2   : > { %14291 = vmatmul.mubr.msk.f32.gmra.mxu1 %vm5920_vm15, %v6285_v7 }
0x1dd3   : > { %14293 = vmatprep.mubr.msk.f32.mxu1 %vm16172_vm0, %v16171_v0 }
0x1dd6   : > { %14294 = vmatmul.mubr.msk.f32.gmra.mxu1 %vm5920_vm15, %v6290_v6  ;;  %v5614_v6 = vld [vmem:[%s18849_s10] sm:$0xf] }
0x1dd7   : > { %14296 = vmatprep.mubr.msk.f32.mxu1 %vm16172_vm0, %v16171_v0 }
0x1dda   : > { %14297 = vmatmul.mubr.msk.f32.gmra.mxu1 %vm5920_vm15, %v6295_v8 }
0x1ddb   : > { %14326 = vmatprep.mubr.msk.f32.mxu1 %vm16172_vm0, %v16171_v0 }
0x1e8a   : > { %v6586_v10 = vpop.f32.mrf.mxu1 }
0x1e8b   : > { %v6587_v61 = vadd.f32 %v6586_v10, %v17370_v41 }
0x1e8c   : > { %v14286_v3 = vpop.f32.mrf.mxu1 }
0x1e8d   : > { %v6610_v9 = vsel %vm6041_vm1, %v6587_v61, -inf }
0x1e8e   : > { %6611 = vmax.xlane.f32.xlu0 %v6610_v9  ;;  %v6591_v14 = vpop.f32.mrf.mxu1 }
0x1e8f   : > { %v6592_v11 = vadd.f32 %v6591_v14, %v17376_v48 }
0x1e90   : > { %v14289_v15 = vpop.f32.mrf.mxu1 }
0x1e91   : > { %v6613_v18 = vsel %vm6041_vm1, %v6592_v11, -inf }
0x1e92   : > { %6614 = vmax.xlane.f32.xlu1 %v6613_v18  ;;  %v6596_v17 = vpop.f32.mrf.mxu1 }
0x1e93   : > { %v6597_v19 = vadd.f32 %v6596_v17, %v17384_v53 }
0x1e94   : > { %v14292_v20 = vpop.f32.mrf.mxu1 }
0x1e95   : > { %v6616_v21 = vsel %vm6041_vm1, %v6597_v19, -inf }
0x1e96   : > { %6617 = vmax.xlane.f32.xlu0 %v6616_v21  ;;  %v6601_v22 = vpop.f32.mrf.mxu1 }
0x1e97   : > { %v6602_v41 = vadd.f32 %v6601_v22, %v17390_v59 }
0x1e98   : > { %v14295_v23 = vpop.f32.mrf.mxu1 }
0x1e99   : > { %v6619_v24 = vsel %vm6041_vm1, %v6602_v41, -inf }
0x1e9a   : > { %6620 = vmax.xlane.f32.xlu1 %v6619_v24  ;;  %v6606_v25 = vpop.f32.mrf.mxu1 }
0x1e9b   : > { %v6607_v48 = vadd.f32 %v6606_v25, %v17395_v63 }
0x1e9c   : > { %v14298_v26 = vpop.f32.mrf.mxu1 }
0x1e9d   : > { %v6622_v27 = vsel %vm6041_vm1, %v6607_v48, -inf }
0x1e9e   : > { %6623 = vmax.xlane.f32.xlu0 %v6622_v27 }
0x1f17   : > { %v6612_v28 = vpop.xlane.xlu0 %6611 }
0x1f18   : > { %v6625_v53 = vsub.f32 %v6587_v61, %v6612_v28 }
0x1f1a   : > { %v6630_v29 = vmul.f32 1.442695, %v6625_v53 }
0x1f1b   : > { %v6615_v30 = vpop.xlane.xlu1 %6614 }
0x1f1c   : > { %15315 = vpow2.f32 %v6630_v29  ;;  %v6626_v31 = vsub.f32 %v6592_v11, %v6615_v30  ;;  %v13059_v30 = vld [vmem:[%s18850_s18] ss:$0 sm:$0xff]  ;;  %s18856_s18 = sld [smem:[#allocation84_spill]] }
0x1f1e   : > { %v6632_v37 = vmul.f32 1.442695, %v6626_v31 }
0x1f1f   : > { %v6618_v42 = vpop.xlane.xlu0 %6617 }
0x1f20   : > { %15317 = vpow2.f32 %v6632_v37  ;;  %v6627_v59 = vsub.f32 %v6597_v19, %v6618_v42 }
0x1f22   : > { %v6634_v36 = vmul.f32 1.442695, %v6627_v59  ;;  %s18857_s19 = smov %s18856_s18 }
0x1f23   : > { %v6621_v38 = vpop.xlane.xlu1 %6620 }
0x1f24   : > { %15319 = vpow2.f32 %v6634_v36  ;;  %v6628_v40 = vsub.f32 %v6602_v41, %v6621_v38  ;;  %v15501_v38 = vld [vmem:[#allocation3] sm:$0xff] }
0x1f26   : > { %v6636_v47 = vmul.f32 1.442695, %v6628_v40 }
0x1f27   : > { %v6624_v63 = vpop.xlane.xlu0 %6623 }
0x1f28   : > { %15321 = vpow2.f32 %v6636_v47  ;;  %v6629_v43 = vsub.f32 %v6607_v48, %v6624_v63 }
0x1f29   : > { %v15316_v45 = vpop.eup %15315 }
0x1f2a   : > { %v6638_v49 = vmul.f32 1.442695, %v6629_v43  ;;  %v6640_v50 = vsel %vm6041_vm1, %v15316_v45, 0.0 }
0x1f2b   : > { %6641 = vadd.xlane.f32.xlu1 %v6640_v50  ;;  %v15502_v50 = vld [vmem:[#allocation3 + $0x8] sm:$0xff] }
0x1f2c   : > { %15323 = vpow2.f32 %v6638_v49 }
0x1f2d   : > { %v15318_v52 = vpop.eup %15317 }
0x1f2e   : > { %v6643_v54 = vsel %vm6041_vm1, %v15318_v52, 0.0 }
0x1f2f   : > { %6644 = vadd.xlane.f32.xlu0 %v6643_v54 }
0x1f31   : > { %v15320_v55 = vpop.eup %15319 }
0x1f32   : > { %v6646_v57 = vsel %vm6041_vm1, %v15320_v55, 0.0 }
0x1f33   : > { %6647 = vadd.xlane.f32.xlu1 %v6646_v57 }
0x1f35   : > { %v15322_v60 = vpop.eup %15321 }
0x1f36   : > { %v6649_v12 = vsel %vm6041_vm1, %v15322_v60, 0.0 }
0x1f37   : > { %6650 = vadd.xlane.f32.xlu0 %v6649_v12 }
0x1f39   : > { %v15324_v62 = vpop.eup %15323 }
0x1f3a   : > { %v6652_v1 = vsel %vm6041_vm1, %v15324_v62, 0.0 }
0x1f3b   : > { %6653 = vadd.xlane.f32.xlu1 %v6652_v1 }
0x1fb4   : > { %v6642_v44 = vpop.xlane.xlu1 %6641 }
0x1fb5   : > { %15325 = vrcp.f32 %v6642_v44 }
0x1fb8   : > { %v6645_v4 = vpop.xlane.xlu0 %6644 }
0x1fb9   : > { %15327 = vrcp.f32 %v6645_v4 }
0x1fbc   : > { %v6648_v51 = vpop.xlane.xlu1 %6647 }
0x1fbd   : > { %15329 = vrcp.f32 %v6648_v51 }
0x1fc0   : > { %v6651_v5 = vpop.xlane.xlu0 %6650 }
0x1fc1   : > { %15331 = vrcp.f32 %v6651_v5 }
0x1fc2   : > { %v15326_v56 = vpop.eup %15325 }
0x1fc3   : > { %v6656_v7 = vmul.f32 %v15326_v56, %v15316_v45  ;;  %v15504_v56 = vld [vmem:[#allocation3 + $0x18] sm:$0xff] }
0x1fc4   : > { %v6654_v8 = vpop.xlane.xlu1 %6653 }
0x1fc5   : > { %15333 = vrcp.f32 %v6654_v8  ;;  %14310 = vmatmul.mubr.msk.f32.vlgmr.msra.gmra.mxu0 %vm6041_vm1, %v6656_v7 }
0x1fc6   : > { %v15328_v10 = vpop.eup %15327  ;;  %14312 = vmatprep.mubr.msk.f32.mxu0 %vm16172_vm0, %v16171_v0  ;;  %14342 = vmatpush3.msk.msra.mxu0 %vm6785_vm2, %v5614_v6 }
0x1fc7   : > { %v6658_v61 = vmul.f32 %v15328_v10, %v15318_v52  ;;  %14375 = vmatprep.subr.mxu0 %v16171_v0 }
0x1fc9   : > { %14313 = vmatmul.mubr.msk.f32.gmra.mxu0 %vm6041_vm1, %v6658_v61 }
0x1fca   : > { %v15330_v3 = vpop.eup %15329  ;;  %14315 = vmatprep.mubr.msk.f32.mxu0 %vm16172_vm0, %v16171_v0 }
0x1fcb   : > { %v6660_v9 = vmul.f32 %v15330_v3, %v15320_v55  ;;  %v15505_v3 = vld [vmem:[#allocation3 + $0x20] sm:$0xff] }
0x1fcd   : > { %14316 = vmatmul.mubr.msk.f32.gmra.mxu0 %vm6041_vm1, %v6660_v9 }
0x1fce   : > { %v15332_v14 = vpop.eup %15331  ;;  %14318 = vmatprep.mubr.msk.f32.mxu0 %vm16172_vm0, %v16171_v0 }
0x1fcf   : > { %v6662_v11 = vmul.f32 %v15332_v14, %v15322_v60 }
0x1fd1   : > { %14319 = vmatmul.mubr.msk.f32.gmra.mxu0 %vm6041_vm1, %v6662_v11 }
0x1fd2   : > { %v15334_v15 = vpop.eup %15333  ;;  %14321 = vmatprep.mubr.msk.f32.mxu0 %vm16172_vm0, %v16171_v0 }
0x1fd3   : > { %v6664_v18 = vmul.f32 %v15334_v15, %v15324_v62  ;;  %v15503_v62 = vld [vmem:[#allocation3 + $0x10] sm:$0xff] }
0x1fd5   : > { %14322 = vmatmul.mubr.msk.f32.gmra.mxu0 %vm6041_vm1, %v6664_v18 }
0x1fd6   : > { %14343 = vmatprep.mubr.msk.f32.mxu0 %vm16172_vm0, %v16171_v0 }
0x1fd9   : > { %14344 = vmatmul.mubr.msk.f32.vlgmr.msra.gmra.mxu0 %vm5920_vm15, %v17460_v16 }
0x1fda   : > { %14346 = vmatprep.mubr.msk.f32.mxu0 %vm16172_vm0, %v16171_v0 }
0x1fdd   : > { %14347 = vmatmul.mubr.msk.f32.gmra.mxu0 %vm5920_vm15, %v17462_v32 }
0x1fde   : > { %14349 = vmatprep.mubr.msk.f32.mxu0 %vm16172_vm0, %v16171_v0 }
0x1fe1   : > { %14350 = vmatmul.mubr.msk.f32.gmra.mxu0 %vm5920_vm15, %v17464_v33 }
0x1fe2   : > { %14352 = vmatprep.mubr.msk.f32.mxu0 %vm16172_vm0, %v16171_v0 }
0x1fe5   : > { %14353 = vmatmul.mubr.msk.f32.gmra.mxu0 %vm5920_vm15, %v17466_v46 }
0x1fe6   : > { %14355 = vmatprep.mubr.msk.f32.mxu0 %vm16172_vm0, %v16171_v0 }
0x1fe9   : > { %14356 = vmatmul.mubr.msk.f32.gmra.mxu0 %vm5920_vm15, %v17468_v39 }
0x1fea   : > { %14379 = vmatprep.mubr.msk.f32.mxu0 %vm16172_vm0, %v16171_v0 }
0x2085   : > { %v6746_v16 = vpop.f32.mrf.mxu0 }
0x2086   : > { %14327 = vmatmul.mubr.msk.f32.vlgmr.msra.gmra.mxu1 %vm5920_vm15, %v6746_v16 }
0x2087   : > { %v14311_v32 = vpop.f32.mrf.mxu0  ;;  %14329 = vmatprep.mubr.msk.f32.mxu1 %vm16172_vm0, %v16171_v0 }
0x2089   : > { %v6751_v33 = vpop.f32.mrf.mxu0 }
0x208a   : > { %14330 = vmatmul.mubr.msk.f32.gmra.mxu1 %vm5920_vm15, %v6751_v33 }
0x208b   : > { %v14314_v46 = vpop.f32.mrf.mxu0  ;;  %14332 = vmatprep.mubr.msk.f32.mxu1 %vm16172_vm0, %v16171_v0 }
0x208d   : > { %v6756_v17 = vpop.f32.mrf.mxu0 }
0x208e   : > { %14333 = vmatmul.mubr.msk.f32.gmra.mxu1 %vm5920_vm15, %v6756_v17 }
0x208f   : > { %v14317_v39 = vpop.f32.mrf.mxu0  ;;  %14335 = vmatprep.mubr.msk.f32.mxu1 %vm16172_vm0, %v16171_v0 }
0x2091   : > { %v6761_v19 = vpop.f32.mrf.mxu0 }
0x2092   : > { %14336 = vmatmul.mubr.msk.f32.gmra.mxu1 %vm5920_vm15, %v6761_v19 }
0x2093   : > { %v14320_v20 = vpop.f32.mrf.mxu0  ;;  %14338 = vmatprep.mubr.msk.f32.mxu1 %vm16172_vm0, %v16171_v0 }
0x2095   : > { %v6766_v21 = vpop.f32.mrf.mxu0 }
0x2096   : > { %14339 = vmatmul.mubr.msk.f32.gmra.mxu1 %vm5920_vm15, %v6766_v21 }
0x2097   : > { %v14323_v22 = vpop.f32.mrf.mxu0  ;;  %14360 = vmatprep.mubr.msk.f32.mxu1 %vm16172_vm0, %v16171_v0 }
0x2099   : > { %v6963_v41 = vpop.f32.mrf.mxu0 }
0x209b   : > { %v14345_v23 = vpop.f32.mrf.mxu0 }
0x209d   : > { %v6968_v24 = vpop.f32.mrf.mxu0 }
0x209f   : > { %v14348_v25 = vpop.f32.mrf.mxu0 }
0x20a1   : > { %v6973_v48 = vpop.f32.mrf.mxu0 }
0x20a3   : > { %v14351_v26 = vpop.f32.mrf.mxu0 }
0x20a5   : > { %v6978_v27 = vpop.f32.mrf.mxu0 }
0x20a7   : > { %v14354_v28 = vpop.f32.mrf.mxu0 }
0x20a9   : > { %v6983_v53 = vpop.f32.mrf.mxu0 }
0x20ab   : > { %v14357_v29 = vpop.f32.mrf.mxu0 }
0x2146   : > { %v6855_v31 = vpop.f32.mrf.mxu1 }
0x2147   : > { %v6964_v37 = vadd.f32 %v6963_v41, %v6855_v31 }
0x2148   : > { %v14328_v42 = vpop.f32.mrf.mxu1 }
0x2149   : > { %v6993_v59 = vadd.f32 %v13059_v30, %v6964_v37  ;;  %v7092_v37 = vld [vmem:[%s18852_s0] sm:$0xff]  ;;  %s18858_s0 = sld [smem:[#allocation87_spill]] }
0x214a   : > { %v6860_v36 = vpop.f32.mrf.mxu1  ;;  %14359 = vmatpush3.msra.mxu1 %v7092_v37 }
0x214b   : > { %v17574_v40 = vadd.f32 %v15501_v38, %v6993_v59  ;;  %v6969_v47 = vadd.f32 %v6968_v24, %v6860_v36  ;;  %14394 = vmatprep.subr.mxu1 %v16171_v0 }
0x214c   : > { %v14331_v63 = vpop.f32.mrf.mxu1 }
0x214d   : > { %v6994_v43 = vadd.f32 %v13059_v30, %v6969_v47  ;;  %v7005_v45 = vsel %vm5500_vm14, %v17574_v40, 0.0 }
0x214e   : > { %7006 = vadd.xlane.f32.xlu0 %v7005_v45  ;;  %v6865_v49 = vpop.f32.mrf.mxu1 }
0x214f   : > { %v17578_v52 = vadd.f32 %v15502_v50, %v6994_v43  ;;  %v6974_v54 = vadd.f32 %v6973_v48, %v6865_v49  ;;  %s18859_s20 = smov %s18858_s0 }
0x2150   : > { %v14334_v55 = vpop.f32.mrf.mxu1 }
0x2151   : > { %v6995_v57 = vadd.f32 %v13059_v30, %v6974_v54  ;;  %v7008_v60 = vsel %vm5500_vm14, %v17578_v52, 0.0 }
0x2152   : > { %7009 = vadd.xlane.f32.xlu1 %v7008_v60  ;;  %v6870_v12 = vpop.f32.mrf.mxu1 }
0x2153   : > { %v17582_v1 = vadd.f32 %v15503_v62, %v6995_v57  ;;  %v6979_v2 = vadd.f32 %v6978_v27, %v6870_v12  ;;  %v13060_v62 = vld [vmem:[%s18854_s15] ss:$0 sm:$0xff]  ;;  %s18860_s15 = sld [smem:[#allocation86_spill]] }
0x2154   : > { %v14337_v44 = vpop.f32.mrf.mxu1 }
0x2155   : > { %v6996_v4 = vadd.f32 %v13059_v30, %v6979_v2  ;;  %v7011_v51 = vsel %vm5500_vm14, %v17582_v1, 0.0 }
0x2156   : > { %7012 = vadd.xlane.f32.xlu0 %v7011_v51  ;;  %v6875_v5 = vpop.f32.mrf.mxu1 }
0x2157   : > { %v17586_v7 = vadd.f32 %v15504_v56, %v6996_v4  ;;  %v6984_v6 = vadd.f32 %v6983_v53, %v6875_v5  ;;  %v13061_v4 = vld [vmem:[%s18856_s18] ss:$0 sm:$0xff]  ;;  %s18862_s18 = sld [smem:[#allocation88_spill]] }
0x2158   : > { %v14340_v8 = vpop.f32.mrf.mxu1 }
0x2159   : > { %v6997_v10 = vadd.f32 %v13059_v30, %v6984_v6  ;;  %v7014_v61 = vsel %vm5500_vm14, %v17586_v7, 0.0  ;;  %s18861_s21 = smov %s18860_s15 }
0x215a   : > { %7015 = vadd.xlane.f32.xlu1 %v7014_v61 }
0x215b   : > { %v17590_v9 = vadd.f32 %v15505_v3, %v6997_v10 }
0x215d   : > { %v7017_v14 = vsel %vm5500_vm14, %v17590_v9, 0.0  ;;  %s18863_s23 = smov %s18862_s18 }
0x215e   : > { %7018 = vadd.xlane.f32.xlu0 %v7017_v14 }
0x21d7   : > { %v7007_v11 = vpop.xlane.xlu0 %7006 }
0x21d8   : > { %v7020_v15 = vmul.f32 0.125, %v7007_v11 }
0x21da   : > { %v7025_v18 = vsub.f32 %v17574_v40, %v7020_v15 }
0x21db   : > { %v7010_v16 = vpop.xlane.xlu1 %7009 }
0x21dc   : > { %v7021_v32 = vmul.f32 0.125, %v7010_v16  ;;  %v7030_v33 = vmul.f32 %v7025_v18, %v7025_v18 }
0x21de   : > { %v7026_v46 = vsub.f32 %v17578_v52, %v7021_v32  ;;  %v7035_v17 = vsel %vm5500_vm14, %v7030_v33, 0.0 }
0x21df   : > { %v7013_v39 = vpop.xlane.xlu0 %7012  ;;  %7036 = vadd.xlane.f32.xlu1 %v7035_v17 }
0x21e0   : > { %v7022_v19 = vmul.f32 0.125, %v7013_v39  ;;  %v7031_v20 = vmul.f32 %v7026_v46, %v7026_v46 }
0x21e2   : > { %v7027_v21 = vsub.f32 %v17582_v1, %v7022_v19  ;;  %v7038_v22 = vsel %vm5500_vm14, %v7031_v20, 0.0  ;;  %v7251_v19 = vld [vmem:[%s18858_s0 + $0x8] sm:$0xff]  ;;  %v7250_v20 = vld [vmem:[%s18859_s20] sm:$0xff]  ;;  %s18669_s0 = smov 16  }
0x21e3   : > { %v7016_v41 = vpop.xlane.xlu1 %7015  ;;  %7039 = vadd.xlane.f32.xlu0 %v7038_v22  ;;  %14376 = vmatpush3.msra.mxu0 %v7251_v19 }
0x21e4   : > { %v7023_v23 = vmul.f32 0.125, %v7016_v41  ;;  %v7032_v24 = vmul.f32 %v7027_v21, %v7027_v21  ;;  %14377 = vmatprep.subr.mxu0 %v16171_v0 }
0x21e5   : > { %14378 = vmatpush3.msra.mxu0 %v7250_v20 }
0x21e6   : > { %v7028_v25 = vsub.f32 %v17586_v7, %v7023_v23  ;;  %v7041_v48 = vsel %vm5500_vm14, %v7032_v24, 0.0  ;;  %14411 = vmatprep.subr.mxu0 %v16171_v0 }
0x21e7   : > { %7042 = vadd.xlane.f32.xlu1 %v7041_v48  ;;  %v7019_v26 = vpop.xlane.xlu0 %7018 }
0x21e8   : > { %v7024_v27 = vmul.f32 0.125, %v7019_v26  ;;  %v7033_v28 = vmul.f32 %v7028_v25, %v7028_v25 }
0x21ea   : > { %v7029_v53 = vsub.f32 %v17590_v9, %v7024_v27  ;;  %v7044_v29 = vsel %vm5500_vm14, %v7033_v28, 0.0 }
0x21eb   : > { %7045 = vadd.xlane.f32.xlu0 %v7044_v29 }
0x21ec   : > { %v7034_v30 = vmul.f32 %v7029_v53, %v7029_v53 }
0x21ee   : > { %v7047_v31 = vsel %vm5500_vm14, %v7034_v30, 0.0 }
0x21ef   : > { %7048 = vadd.xlane.f32.xlu1 %v7047_v31 }
0x2268   : > { %v7037_v42 = vpop.xlane.xlu1 %7036 }
0x2269   : > { %v7050_v59 = vmul.f32 0.125, %v7037_v42 }
0x226b   : > { %v7055_v36 = vadd.f32 1e-06, %v7050_v59 }
0x226c   : > { %v7040_v38 = vpop.xlane.xlu0 %7039 }
0x226d   : > { %15335 = vrsqrt.f32 %v7055_v36  ;;  %v7051_v47 = vmul.f32 0.125, %v7040_v38 }
0x226f   : > { %v7056_v63 = vadd.f32 1e-06, %v7051_v47 }
0x2270   : > { %v7043_v43 = vpop.xlane.xlu1 %7042 }
0x2271   : > { %15337 = vrsqrt.f32 %v7056_v63  ;;  %v7052_v45 = vmul.f32 0.125, %v7043_v43 }
0x2273   : > { %v7057_v49 = vadd.f32 1e-06, %v7052_v45 }
0x2274   : > { %v7046_v50 = vpop.xlane.xlu0 %7045 }
0x2275   : > { %15339 = vrsqrt.f32 %v7057_v49  ;;  %v7053_v54 = vmul.f32 0.125, %v7046_v50 }
0x2277   : > { %v7058_v55 = vadd.f32 1e-06, %v7053_v54 }
0x2278   : > { %v7049_v57 = vpop.xlane.xlu1 %7048 }
0x2279   : > { %15341 = vrsqrt.f32 %v7058_v55  ;;  %v7054_v60 = vmul.f32 0.125, %v7049_v57 }
0x227a   : > { %v15336_v12 = vpop.eup %15335 }
0x227b   : > { %v7065_v2 = vmul.f32 %v15336_v12, %v7025_v18  ;;  %v7059_v44 = vadd.f32 1e-06, %v7054_v60 }
0x227d   : > { %v7076_v51 = vmul.f32 %v13060_v62, %v7065_v2  ;;  %15343 = vrsqrt.f32 %v7059_v44 }
0x227e   : > { %v15338_v5 = vpop.eup %15337 }
0x227f   : > { %v7087_v56 = vadd.f32 %v13061_v4, %v7076_v51  ;;  %v7066_v6 = vmul.f32 %v15338_v5, %v7026_v46 }
0x2281   : > { %14361 = vmatmul.mubr.msk.f32.vlgmr.msra.gmra.mxu1 %vm5500_vm14, %v7087_v56  ;;  %v7077_v8 = vmul.f32 %v13060_v62, %v7066_v6 }
0x2282   : > { %v15340_v10 = vpop.eup %15339  ;;  %14363 = vmatprep.mubr.msk.f32.mxu1 %vm16172_vm0, %v16171_v0 }
0x2283   : > { %v7088_v61 = vadd.f32 %v13061_v4, %v7077_v8  ;;  %v7067_v3 = vmul.f32 %v15340_v10, %v7027_v21  ;;  %v13062_v21 = vld [vmem:[%s18860_s15] ss:$0 sm:$0xff]  ;;  %s16174_s15 = smov 8  }
0x2285   : > { %14364 = vmatmul.mubr.msk.f32.gmra.mxu1 %vm5500_vm14, %v7088_v61  ;;  %v7078_v14 = vmul.f32 %v13060_v62, %v7067_v3 }
0x2286   : > { %v15342_v11 = vpop.eup %15341  ;;  %14366 = vmatprep.mubr.msk.f32.mxu1 %vm16172_vm0, %v16171_v0 }
0x2287   : > { %v7089_v15 = vadd.f32 %v13061_v4, %v7078_v14  ;;  %v7068_v18 = vmul.f32 %v15342_v11, %v7028_v25 }
0x2289   : > { %14367 = vmatmul.mubr.msk.f32.gmra.mxu1 %vm5500_vm14, %v7089_v15  ;;  %v7079_v16 = vmul.f32 %v13060_v62, %v7068_v18 }
0x228a   : > { %v15344_v32 = vpop.eup %15343  ;;  %14369 = vmatprep.mubr.msk.f32.mxu1 %vm16172_vm0, %v16171_v0 }
0x228b   : > { %v7090_v33 = vadd.f32 %v13061_v4, %v7079_v16  ;;  %v7069_v46 = vmul.f32 %v15344_v32, %v7029_v53 }
0x228d   : > { %14370 = vmatmul.mubr.msk.f32.gmra.mxu1 %vm5500_vm14, %v7090_v33  ;;  %v7080_v17 = vmul.f32 %v13060_v62, %v7069_v46 }
0x228e   : > { %14372 = vmatprep.mubr.msk.f32.mxu1 %vm16172_vm0, %v16171_v0 }
0x228f   : > { %v7091_v39 = vadd.f32 %v13061_v4, %v7080_v17 }
0x2291   : > { %14373 = vmatmul.mubr.msk.f32.gmra.mxu1 %vm5500_vm14, %v7091_v39 }
0x2292   : > { %14396 = vmatprep.mubr.msk.f32.mxu1 %vm16172_vm0, %v16171_v0 }
0x2341   : > { %v7181_v22 = vpop.f32.mrf.mxu1 }
0x2342   : > { %v7182_v41 = vadd.f32 %v13062_v21, %v7181_v22 }
0x2343   : > { %v14362_v23 = vpop.f32.mrf.mxu1 }
0x2344   : > { %v7205_v24 = vmul.f32 %v7182_v41, %v7182_v41 }
0x2345   : > { %v7186_v25 = vpop.f32.mrf.mxu1 }
0x2346   : > { %v7210_v48 = vmul.f32 %v7205_v24, %v7182_v41  ;;  %v7187_v26 = vadd.f32 %v13062_v21, %v7186_v25 }
0x2347   : > { %v14365_v27 = vpop.f32.mrf.mxu1 }
0x2348   : > { %v7215_v28 = vmul.f32 0.044715, %v7210_v48  ;;  %v7206_v53 = vmul.f32 %v7187_v26, %v7187_v26 }
0x2349   : > { %v7191_v29 = vpop.f32.mrf.mxu1 }
0x234a   : > { %v7220_v30 = vadd.f32 %v7215_v28, %v7182_v41  ;;  %v7211_v31 = vmul.f32 %v7206_v53, %v7187_v26  ;;  %v7192_v37 = vadd.f32 %v13062_v21, %v7191_v29 }
0x234b   : > { %v14368_v42 = vpop.f32.mrf.mxu1 }
0x234c   : > { %v7225_v59 = vmul.f32 0.7978846, %v7220_v30  ;;  %v7216_v36 = vmul.f32 0.044715, %v7211_v31  ;;  %v7207_v38 = vmul.f32 %v7192_v37, %v7192_v37 }
0x234d   : > { %v7196_v47 = vpop.f32.mrf.mxu1 }
0x234e   : > { %15345 = vtanh.f32 %v7225_v59  ;;  %v7221_v63 = vadd.f32 %v7216_v36, %v7187_v26  ;;  %v7212_v43 = vmul.f32 %v7207_v38, %v7192_v37  ;;  %v7197_v45 = vadd.f32 %v13062_v21, %v7196_v47 }
0x234f   : > { %v14371_v49 = vpop.f32.mrf.mxu1 }
0x2350   : > { %v7226_v50 = vmul.f32 0.7978846, %v7221_v63  ;;  %v7217_v54 = vmul.f32 0.044715, %v7212_v43  ;;  %v7208_v55 = vmul.f32 %v7197_v45, %v7197_v45 }
0x2351   : > { %v7201_v57 = vpop.f32.mrf.mxu1 }
0x2352   : > { %15347 = vtanh.f32 %v7226_v50  ;;  %v7222_v60 = vadd.f32 %v7217_v54, %v7192_v37  ;;  %v7213_v12 = vmul.f32 %v7208_v55, %v7197_v45  ;;  %v7202_v62 = vadd.f32 %v13062_v21, %v7201_v57 }
0x2353   : > { %v14374_v2 = vpop.f32.mrf.mxu1 }
0x2354   : > { %v7227_v44 = vmul.f32 0.7978846, %v7222_v60  ;;  %v7218_v4 = vmul.f32 0.044715, %v7213_v12  ;;  %v7209_v51 = vmul.f32 %v7202_v62, %v7202_v62 }
0x2356   : > { %15349 = vtanh.f32 %v7227_v44  ;;  %v7223_v5 = vadd.f32 %v7218_v4, %v7197_v45  ;;  %v7214_v56 = vmul.f32 %v7209_v51, %v7202_v62 }
0x2358   : > { %v7228_v6 = vmul.f32 0.7978846, %v7223_v5  ;;  %v7219_v8 = vmul.f32 0.044715, %v7214_v56 }
0x235a   : > { %15351 = vtanh.f32 %v7228_v6  ;;  %v7224_v10 = vadd.f32 %v7219_v8, %v7202_v62 }
0x235b   : > { %v15346_v61 = vpop.eup %15345 }
0x235c   : > { %v7235_v3 = vadd.f32 1.0, %v15346_v61  ;;  %v7229_v14 = vmul.f32 0.7978846, %v7224_v10 }
0x235e   : > { %v7240_v11 = vmul.f32 0.5, %v7235_v3  ;;  %15353 = vtanh.f32 %v7229_v14 }
0x235f   : > { %v15348_v15 = vpop.eup %15347 }
0x2360   : > { %v7245_v18 = vmul.f32 %v7240_v11, %v7182_v41  ;;  %v7236_v16 = vadd.f32 1.0, %v15348_v15 }
0x2362   : > { %14380 = vmatmul.mubr.msk.f32.vlgmr.msra.gmra.mxu0 %vm2711_vm8, %v7245_v18  ;;  %v7241_v32 = vmul.f32 0.5, %v7236_v16 }
0x2363   : > { %v15350_v33 = vpop.eup %15349  ;;  %14382 = vmatprep.mubr.msk.f32.mxu0 %vm16172_vm0, %v16171_v0 }
0x2364   : > { %v7246_v46 = vmul.f32 %v7241_v32, %v7187_v26  ;;  %v7237_v17 = vadd.f32 1.0, %v15350_v33  ;;  %v13068_v26 = vld [vmem:[%s18862_s18] ss:$0 sm:$0xff]  ;;  %s16175_s18 = smov 24  }
0x2366   : > { %14383 = vmatmul.mubr.msk.f32.gmra.mxu0 %vm2711_vm8, %v7246_v46  ;;  %v7242_v39 = vmul.f32 0.5, %v7237_v17 }
0x2367   : > { %v15352_v19 = vpop.eup %15351  ;;  %14385 = vmatprep.mubr.msk.f32.mxu0 %vm16172_vm0, %v16171_v0 }
0x2368   : > { %v7247_v20 = vmul.f32 %v7242_v39, %v7192_v37  ;;  %v7238_v21 = vadd.f32 1.0, %v15352_v19 }
0x236a   : > { %14386 = vmatmul.mubr.msk.f32.gmra.mxu0 %vm2711_vm8, %v7247_v20  ;;  %v7243_v22 = vmul.f32 0.5, %v7238_v21  ;;  %v13082_v20 = vld [vmem:[%s18833_s1 + $0x10] sm:$0xff] }
0x236b   : > { %v15354_v41 = vpop.eup %15353  ;;  %14388 = vmatprep.mubr.msk.f32.mxu0 %vm16172_vm0, %v16171_v0  ;;  %v13078_v21 = vld [vmem:[%s18831_s26 + $0x10] sm:$0xff]  ;;  %14412 = vmatpush3.msra.mxu0 %v13082_v20 }
0x236c   : > { %v7248_v23 = vmul.f32 %v7243_v22, %v7197_v45  ;;  %v7239_v24 = vadd.f32 1.0, %v15354_v41  ;;  %14395 = vmatpush3.msra.mxu1 %v13078_v21  ;;  %14445 = vmatprep.subr.mxu0 %v16171_v0 }
0x236d   : > { %14428 = vmatprep.subr.mxu1 %v16171_v0 }
0x236e   : > { %14389 = vmatmul.mubr.msk.f32.gmra.mxu0 %vm2711_vm8, %v7248_v23  ;;  %v7244_v25 = vmul.f32 0.5, %v7239_v24 }
0x236f   : > { %14391 = vmatprep.mubr.msk.f32.mxu0 %vm16172_vm0, %v16171_v0 }
0x2370   : > { %v7249_v48 = vmul.f32 %v7244_v25, %v7202_v62 }
0x2372   : > { %14392 = vmatmul.mubr.msk.f32.gmra.mxu0 %vm2711_vm8, %v7249_v48 }
0x2373   : > { %14413 = vmatprep.mubr.msk.f32.mxu0 %vm16172_vm0, %v16171_v0 }
0x2422   : > { %v7340_v27 = vpop.f32.mrf.mxu0 }
0x2423   : > { %v7341_v28 = vadd.f32 %v13068_v26, %v7340_v27 }
0x2424   : > { %v14381_v53 = vpop.f32.mrf.mxu0 }
0x2425   : > { %v17645_v29 = vadd.f32 %v7341_v28, %v17574_v40 }
0x2426   : > { %v7345_v30 = vpop.f32.mrf.mxu0 }
0x2427   : > { %v7346_v31 = vadd.f32 %v13068_v26, %v7345_v30  ;;  %v7373_v37 = vsel %vm5500_vm14, %v17645_v29, 0.0 }
0x2428   : > { %7374 = vadd.xlane.f32.xlu0 %v7373_v37  ;;  %v14384_v42 = vpop.f32.mrf.mxu0 }
0x2429   : > { %v17650_v59 = vadd.f32 %v7346_v31, %v17578_v52 }
0x242a   : > { %v7350_v36 = vpop.f32.mrf.mxu0 }
0x242b   : > { %v7351_v38 = vadd.f32 %v13068_v26, %v7350_v36  ;;  %v7376_v47 = vsel %vm5500_vm14, %v17650_v59, 0.0 }
0x242c   : > { %7377 = vadd.xlane.f32.xlu1 %v7376_v47  ;;  %v14387_v63 = vpop.f32.mrf.mxu0 }
0x242d   : > { %v17655_v40 = vadd.f32 %v7351_v38, %v17582_v1  ;;  %v13076_v38 = vld [vmem:[%s18835_s2 + $0x1] ss:$0 sm:$0xff]  ;;  %s16176_s2 = smov 40  }
0x242e   : > { %v7355_v43 = vpop.f32.mrf.mxu0 }
0x242f   : > { %v7356_v45 = vadd.f32 %v13068_v26, %v7355_v43  ;;  %v7379_v49 = vsel %vm5500_vm14, %v17655_v40, 0.0  ;;  %v13077_v43 = vld [vmem:[%s18837_s3 + $0x1] ss:$0 sm:$0xff]  ;;  %s16177_s3 = smov 32  }
0x2430   : > { %7380 = vadd.xlane.f32.xlu0 %v7379_v49  ;;  %v14390_v50 = vpop.f32.mrf.mxu0 }
0x2431   : > { %v17660_v52 = vadd.f32 %v7356_v45, %v17586_v7 }
0x2432   : > { %v7360_v54 = vpop.f32.mrf.mxu0 }
0x2433   : > { %v7361_v55 = vadd.f32 %v13068_v26, %v7360_v54  ;;  %v7382_v57 = vsel %vm5500_vm14, %v17660_v52, 0.0 }
0x2434   : > { %7383 = vadd.xlane.f32.xlu1 %v7382_v57  ;;  %v14393_v60 = vpop.f32.mrf.mxu0 }
0x2435   : > { %v17665_v1 = vadd.f32 %v7361_v55, %v17590_v9  ;;  %v13086_v55 = vld [vmem:[%s18839_s4 + $0x10] sm:$0xff] }
0x2437   : > { %v7385_v12 = vsel %vm5500_vm14, %v17665_v1, 0.0 }
0x2438   : > { %7386 = vadd.xlane.f32.xlu0 %v7385_v12 }
0x24b1   : > { %v7375_v62 = vpop.xlane.xlu0 %7374 }
0x24b2   : > { %v7388_v2 = vmul.f32 0.125, %v7375_v62 }
0x24b4   : > { %v7393_v44 = vsub.f32 %v17645_v29, %v7388_v2 }
0x24b5   : > { %v7378_v7 = vpop.xlane.xlu1 %7377 }
0x24b6   : > { %v7389_v4 = vmul.f32 0.125, %v7378_v7  ;;  %v7398_v51 = vmul.f32 %v7393_v44, %v7393_v44 }
0x24b8   : > { %v7394_v5 = vsub.f32 %v17650_v59, %v7389_v4  ;;  %v7403_v56 = vsel %vm5500_vm14, %v7398_v51, 0.0 }
0x24b9   : > { %v7381_v6 = vpop.xlane.xlu0 %7380  ;;  %7404 = vadd.xlane.f32.xlu1 %v7403_v56 }
0x24ba   : > { %v7390_v8 = vmul.f32 0.125, %v7381_v6  ;;  %v7399_v9 = vmul.f32 %v7394_v5, %v7394_v5 }
0x24bc   : > { %v7395_v10 = vsub.f32 %v17655_v40, %v7390_v8  ;;  %v7406_v61 = vsel %vm5500_vm14, %v7399_v9, 0.0 }
0x24bd   : > { %v7384_v3 = vpop.xlane.xlu1 %7383  ;;  %7407 = vadd.xlane.f32.xlu0 %v7406_v61 }
0x24be   : > { %v7391_v14 = vmul.f32 0.125, %v7384_v3  ;;  %v7400_v11 = vmul.f32 %v7395_v10, %v7395_v10 }
0x24c0   : > { %v17675_v15 = vsub.f32 %v17660_v52, %v7391_v14  ;;  %v7409_v18 = vsel %vm5500_vm14, %v7400_v11, 0.0 }
0x24c1   : > { %7410 = vadd.xlane.f32.xlu1 %v7409_v18  ;;  %v7387_v16 = vpop.xlane.xlu0 %7386 }
0x24c2   : > { %v7392_v32 = vmul.f32 0.125, %v7387_v16  ;;  %v7401_v33 = vmul.f32 %v17675_v15, %v17675_v15 }
0x24c4   : > { %v17681_v46 = vsub.f32 %v17665_v1, %v7392_v32  ;;  %v7412_v17 = vsel %vm5500_vm14, %v7401_v33, 0.0 }
0x24c5   : > { %7413 = vadd.xlane.f32.xlu0 %v7412_v17 }
0x24c6   : > { %v7402_v39 = vmul.f32 %v17681_v46, %v17681_v46 }
0x24c8   : > { %v7415_v19 = vsel %vm5500_vm14, %v7402_v39, 0.0 }
0x24c9   : > { %7416 = vadd.xlane.f32.xlu1 %v7415_v19 }
0x2542   : > { %v7405_v22 = vpop.xlane.xlu1 %7404 }
0x2543   : > { %v7418_v41 = vmul.f32 0.125, %v7405_v22  ;;  %v13099_v22 = vld [vmem:[%s18841_s5 + $0x2] ss:$0 sm:$0xff] }
0x2545   : > { %v7423_v23 = vadd.f32 1e-06, %v7418_v41 }
0x2546   : > { %v7408_v24 = vpop.xlane.xlu0 %7407 }
0x2547   : > { %15355 = vrsqrt.f32 %v7423_v23  ;;  %v7419_v25 = vmul.f32 0.125, %v7408_v24 }
0x2549   : > { %v7424_v48 = vadd.f32 1e-06, %v7419_v25 }
0x254a   : > { %v7411_v26 = vpop.xlane.xlu1 %7410 }
0x254b   : > { %15357 = vrsqrt.f32 %v7424_v48  ;;  %v7420_v27 = vmul.f32 0.125, %v7411_v26 }
0x254d   : > { %v7425_v28 = vadd.f32 1e-06, %v7420_v27 }
0x254e   : > { %v7414_v53 = vpop.xlane.xlu0 %7413 }
0x254f   : > { %15359 = vrsqrt.f32 %v7425_v28  ;;  %v7421_v30 = vmul.f32 0.125, %v7414_v53 }
0x2551   : > { %v7426_v31 = vadd.f32 1e-06, %v7421_v30 }
0x2552   : > { %v7417_v37 = vpop.xlane.xlu1 %7416 }
0x2553   : > { %15361 = vrsqrt.f32 %v7426_v31  ;;  %v7422_v42 = vmul.f32 0.125, %v7417_v37 }
0x2554   : > { %v15356_v36 = vpop.eup %15355 }
0x2555   : > { %v7433_v47 = vmul.f32 %v15356_v36, %v7393_v44  ;;  %v7427_v63 = vadd.f32 1e-06, %v7422_v42 }
0x2557   : > { %v7444_v45 = vmul.f32 %v13076_v38, %v7433_v47  ;;  %15363 = vrsqrt.f32 %v7427_v63  ;;  %v13093_v47 = vld [vmem:[%s18843_s6 + $0x2] ss:$0 sm:$0xff] }
0x2558   : > { %v15358_v49 = vpop.eup %15357 }
0x2559   : > { %v7434_v50 = vmul.f32 %v15358_v49, %v7394_v5  ;;  %v17693_v54 = vadd.f32 %v13077_v43, %v7444_v45  ;;  %v13105_v49 = vld [vmem:[%s18845_s8 + $0x2] ss:$0 sm:$0xff] }
0x255b   : > { %v7445_v57 = vmul.f32 %v13076_v38, %v7434_v50  ;;  %14397 = vmatmul.mubr.msk.f32.vlgmr.msra.gmra.mxu1 %vm5500_vm14, %v17693_v54  ;;  %14414 = vmatmul.mubr.msk.f32.vlgmr.msra.gmra.mxu0 %vm5500_vm14, %v17693_v54 }
0x255c   : > { %v15360_v60 = vpop.eup %15359  ;;  %14399 = vmatprep.mubr.msk.f32.mxu1 %vm16172_vm0, %v16171_v0  ;;  %14416 = vmatprep.mubr.msk.f32.mxu0 %vm16172_vm0, %v16171_v0 }
0x255d   : > { %v7435_v12 = vmul.f32 %v15360_v60, %v7395_v10  ;;  %v17704_v62 = vadd.f32 %v13077_v43, %v7445_v57  ;;  %14429 = vmatpush3.msra.mxu1 %v13086_v55  ;;  %v13079_v57 = vld [vmem:[%s18831_s26 + $0x18] sm:$0xff] }
0x255e   : > { %14470 = vmatprep.subr.mxu1 %v16171_v0 }
0x255f   : > { %v7446_v2 = vmul.f32 %v13076_v38, %v7435_v12  ;;  %14400 = vmatmul.mubr.msk.f32.gmra.mxu1 %vm5500_vm14, %v17704_v62  ;;  %14417 = vmatmul.mubr.msk.f32.gmra.mxu0 %vm5500_vm14, %v17704_v62 }
0x2560   : > { %v15362_v44 = vpop.eup %15361  ;;  %14402 = vmatprep.mubr.msk.f32.mxu1 %vm16172_vm0, %v16171_v0  ;;  %14419 = vmatprep.mubr.msk.f32.mxu0 %vm16172_vm0, %v16171_v0 }
0x2561   : > { %v7436_v7 = vmul.f32 %v15362_v44, %v17675_v15  ;;  %v17716_v4 = vadd.f32 %v13077_v43, %v7446_v2 }
0x2563   : > { %v7447_v51 = vmul.f32 %v13076_v38, %v7436_v7  ;;  %14403 = vmatmul.mubr.msk.f32.gmra.mxu1 %vm5500_vm14, %v17716_v4  ;;  %14420 = vmatmul.mubr.msk.f32.gmra.mxu0 %vm5500_vm14, %v17716_v4 }
0x2564   : > { %v15364_v5 = vpop.eup %15363  ;;  %14405 = vmatprep.mubr.msk.f32.mxu1 %vm16172_vm0, %v16171_v0  ;;  %14422 = vmatprep.mubr.msk.f32.mxu0 %vm16172_vm0, %v16171_v0 }
0x2565   : > { %v7437_v56 = vmul.f32 %v15364_v5, %v17681_v46  ;;  %v17727_v6 = vadd.f32 %v13077_v43, %v7447_v51 }
0x2567   : > { %v7448_v8 = vmul.f32 %v13076_v38, %v7437_v56  ;;  %14406 = vmatmul.mubr.msk.f32.gmra.mxu1 %vm5500_vm14, %v17727_v6  ;;  %14423 = vmatmul.mubr.msk.f32.gmra.mxu0 %vm5500_vm14, %v17727_v6 }
0x2568   : > { %14408 = vmatprep.mubr.msk.f32.mxu1 %vm16172_vm0, %v16171_v0  ;;  %14425 = vmatprep.mubr.msk.f32.mxu0 %vm16172_vm0, %v16171_v0 }
0x2569   : > { %v17737_v9 = vadd.f32 %v13077_v43, %v7448_v8 }
0x256b   : > { %14409 = vmatmul.mubr.msk.f32.gmra.mxu1 %vm5500_vm14, %v17737_v9  ;;  %14426 = vmatmul.mubr.msk.f32.gmra.mxu0 %vm5500_vm14, %v17737_v9 }
0x256c   : > { %14430 = vmatprep.mubr.msk.f32.mxu1 %vm16172_vm0, %v16171_v0  ;;  %14455 = vmatprep.mubr.msk.f32.mxu0 %vm16172_vm0, %v16171_v0 }
0x256f   : > { %14431 = vmatmul.mubr.msk.f32.vlgmr.msra.gmra.mxu1 %vm5500_vm14, %v17693_v54 }
0x2570   : > { %14433 = vmatprep.mubr.msk.f32.mxu1 %vm16172_vm0, %v16171_v0 }
0x2573   : > { %14434 = vmatmul.mubr.msk.f32.gmra.mxu1 %vm5500_vm14, %v17704_v62 }
0x2574   : > { %14436 = vmatprep.mubr.msk.f32.mxu1 %vm16172_vm0, %v16171_v0 }
0x2577   : > { %14437 = vmatmul.mubr.msk.f32.gmra.mxu1 %vm5500_vm14, %v17716_v4 }
0x2578   : > { %14439 = vmatprep.mubr.msk.f32.mxu1 %vm16172_vm0, %v16171_v0 }
0x257b   : > { %14440 = vmatmul.mubr.msk.f32.gmra.mxu1 %vm5500_vm14, %v17727_v6 }
0x257c   : > { %14442 = vmatprep.mubr.msk.f32.mxu1 %vm16172_vm0, %v16171_v0 }
0x257f   : > { %14443 = vmatmul.mubr.msk.f32.gmra.mxu1 %vm5500_vm14, %v17737_v9 }
0x2580   : > { %14480 = vmatprep.mubr.msk.f32.mxu1 %vm16172_vm0, %v16171_v0 }
0x261b   : > { %v7570_v10 = vpop.f32.mrf.mxu1  ;;  %v7666_v61 = vpop.f32.mrf.mxu0 }
0x261c   : > { %v7667_v63 = vadd.f32 %v13099_v22, %v7666_v61  ;;  %v7571_v45 = vadd.f32 %v13093_v47, %v7570_v10  ;;  %v13087_v10 = vld [vmem:[%s18839_s4 + $0x18] sm:$0xff] }
0x261d   : > { %v14398_v3 = vpop.f32.mrf.mxu1  ;;  %v14415_v14 = vpop.f32.mrf.mxu0 }
0x261e   : > { %v17845_v3 = vld [vmem:[%s18847_s9] sm:$0xff] }
0x261f   : > { %v7575_v11 = vpop.f32.mrf.mxu1  ;;  %v7671_v15 = vpop.f32.mrf.mxu0 }
0x2620   : > { %v7672_v42 = vadd.f32 %v13099_v22, %v7671_v15  ;;  %v7576_v2 = vadd.f32 %v13093_v47, %v7575_v11 }
0x2621   : > { %v14401_v18 = vpop.f32.mrf.mxu1  ;;  %v14418_v16 = vpop.f32.mrf.mxu0 }
0x2622   : > { %v17853_v16 = vld [vmem:[%s18847_s9 + $0x8] sm:$0xff] }
0x2623   : > { %v7580_v32 = vpop.f32.mrf.mxu1  ;;  %v7676_v33 = vpop.f32.mrf.mxu0 }
0x2624   : > { %v7677_v30 = vadd.f32 %v13099_v22, %v7676_v33  ;;  %v7581_v51 = vadd.f32 %v13093_v47, %v7580_v32 }
0x2625   : > { %v14404_v46 = vpop.f32.mrf.mxu1  ;;  %v14421_v17 = vpop.f32.mrf.mxu0 }
0x2627   : > { %v7585_v39 = vpop.f32.mrf.mxu1  ;;  %v7681_v19 = vpop.f32.mrf.mxu0 }
0x2628   : > { %v7682_v27 = vadd.f32 %v13099_v22, %v7681_v19  ;;  %v7586_v56 = vadd.f32 %v13093_v47, %v7585_v39  ;;  %v17861_v39 = vld [vmem:[%s18847_s9 + $0x10] sm:$0xff] }
0x2629   : > { %v14407_v20 = vpop.f32.mrf.mxu1  ;;  %v14424_v21 = vpop.f32.mrf.mxu0 }
0x262b   : > { %v7590_v41 = vpop.f32.mrf.mxu1  ;;  %v7686_v23 = vpop.f32.mrf.mxu0 }
0x262c   : > { %v7687_v24 = vadd.f32 %v13099_v22, %v7686_v23  ;;  %v7591_v8 = vadd.f32 %v13093_v47, %v7590_v41  ;;  %v17866_v41 = vld [vmem:[%s18847_s9 + $0x18] sm:$0xff] }
0x262d   : > { %v14410_v25 = vpop.f32.mrf.mxu1  ;;  %v14427_v48 = vpop.f32.mrf.mxu0 }
0x262e   : > { %14446 = vmatpush3.xpose.msk.msra.mxu0 %vm5920_vm15, %v7687_v24 }
0x262f   : > { %v7762_v26 = vpop.f32.mrf.mxu1  ;;  %14447 = vmatprep.subr.mxu0 %v16171_v0 }
0x2630   : > { %v7763_v5 = vadd.f32 %v13105_v49, %v7762_v26  ;;  %v17871_v26 = vld [vmem:[%s18847_s9 + $0x20] sm:$0xff] }
0x2631   : > { %v14432_v28 = vpop.f32.mrf.mxu1 }
0x2632   : > { %14448 = vmatpush3.xpose.msk.msra.mxu0 %vm5920_vm15, %v7682_v27 }
0x2633   : > { %v7767_v53 = vpop.f32.mrf.mxu1  ;;  %14449 = vmatprep.subr.mxu0 %v16171_v0 }
0x2634   : > { %v7768_v7 = vadd.f32 %v13105_v49, %v7767_v53 }
0x2635   : > { %v14435_v31 = vpop.f32.mrf.mxu1 }
0x2636   : > { %14450 = vmatpush3.xpose.msk.msra.mxu0 %vm5920_vm15, %v7677_v30 }
0x2637   : > { %v7772_v37 = vpop.f32.mrf.mxu1  ;;  %14451 = vmatprep.subr.mxu0 %v16171_v0 }
0x2638   : > { %v7773_v44 = vadd.f32 %v13105_v49, %v7772_v37 }
0x2639   : > { %v14438_v36 = vpop.f32.mrf.mxu1 }
0x263a   : > { %14452 = vmatpush3.xpose.msk.msra.mxu0 %vm5920_vm15, %v7672_v42 }
0x263b   : > { %v7777_v38 = vpop.f32.mrf.mxu1  ;;  %14453 = vmatprep.subr.mxu0 %v16171_v0 }
0x263c   : > { %v7778_v12 = vadd.f32 %v13105_v49, %v7777_v38 }
0x263d   : > { %v14441_v43 = vpop.f32.mrf.mxu1 }
0x263e   : > { %14454 = vmatpush3.xpose.msk.msra.mxu0 %vm5920_vm15, %v7667_v63 }
0x263f   : > { %v7782_v50 = vpop.f32.mrf.mxu1  ;;  %14495 = vmatprep.subr.mxu0 %v16171_v0 }
0x2640   : > { %v7783_v55 = vadd.f32 %v13105_v49, %v7782_v50 }
0x2641   : > { %v14444_v60 = vpop.f32.mrf.mxu1  ;;  %14456 = vmatmul.mubr.msk.f32.vlgmr.msra.gmra.mxu0 %vm5920_vm15, %v7571_v45 }
0x2642   : > { %14471 = vmatpush3.msra.mxu1 %v7783_v55  ;;  %14458 = vmatprep.mubr.msk.f32.mxu0 %vm16172_vm0, %v16171_v0 }
0x2643   : > { %14472 = vmatprep.subr.mxu1 %v16171_v0  ;;  %14496 = vmatpush3.msra.mxu0 %v13079_v57 }
0x2644   : > { %14473 = vmatpush3.msra.mxu1 %v7778_v12  ;;  %14529 = vmatprep.subr.mxu0 %v16171_v0 }
0x2645   : > { %14459 = vmatmul.mubr.msk.f32.gmra.mxu0 %vm5920_vm15, %v7576_v2  ;;  %14474 = vmatprep.subr.mxu1 %v16171_v0 }
0x2646   : > { %14475 = vmatpush3.msra.mxu1 %v7773_v44  ;;  %14461 = vmatprep.mubr.msk.f32.mxu0 %vm16172_vm0, %v16171_v0 }
0x2647   : > { %14476 = vmatprep.subr.mxu1 %v16171_v0 }
0x2648   : > { %14477 = vmatpush3.msra.mxu1 %v7768_v7  ;;  %v13138_v7 = vld [vmem:[%s18845_s8 + $0x3] ss:$0 sm:$0xff]  ;;  %s18879_s8 = sld [smem:[#allocation97_spill]] }
0x2649   : > { %14462 = vmatmul.mubr.msk.f32.gmra.mxu0 %vm5920_vm15, %v7581_v51  ;;  %14478 = vmatprep.subr.mxu1 %v16171_v0 }
0x264a   : > { %14479 = vmatpush3.msra.mxu1 %v7763_v5  ;;  %14464 = vmatprep.mubr.msk.f32.mxu0 %vm16172_vm0, %v16171_v0 }
0x264b   : > { %14512 = vmatprep.subr.mxu1 %v16171_v0 }
0x264d   : > { %14465 = vmatmul.mubr.msk.f32.gmra.mxu0 %vm5920_vm15, %v7586_v56 }
0x264e   : > { %14467 = vmatprep.mubr.msk.f32.mxu0 %vm16172_vm0, %v16171_v0 }
0x2651   : > { %14468 = vmatmul.mubr.msk.f32.gmra.mxu0 %vm5920_vm15, %v7591_v8 }
0x2652   : > { %14497 = vmatprep.mubr.msk.f32.mxu0 %vm16172_vm0, %v16171_v0 }
0x2655   : > { %14498 = vmatmul.mubr.msk.f32.vlgmr.msra.gmra.mxu0 %vm5500_vm14, %v17693_v54 }
0x2656   : > { %14500 = vmatprep.mubr.msk.f32.mxu0 %vm16172_vm0, %v16171_v0  ;;  %14530 = vmatpush3.msra.mxu0 %v13087_v10 }
0x2657   : > { %14571 = vmatprep.subr.mxu0 %v16171_v0 }
0x2659   : > { %14501 = vmatmul.mubr.msk.f32.gmra.mxu0 %vm5500_vm14, %v17704_v62 }
0x265a   : > { %14503 = vmatprep.mubr.msk.f32.mxu0 %vm16172_vm0, %v16171_v0 }
0x265d   : > { %14504 = vmatmul.mubr.msk.f32.gmra.mxu0 %vm5500_vm14, %v17716_v4 }
0x265e   : > { %14506 = vmatprep.mubr.msk.f32.mxu0 %vm16172_vm0, %v16171_v0 }
0x2661   : > { %14507 = vmatmul.mubr.msk.f32.gmra.mxu0 %vm5500_vm14, %v17727_v6 }
0x2662   : > { %14509 = vmatprep.mubr.msk.f32.mxu0 %vm16172_vm0, %v16171_v0 }
0x2665   : > { %14510 = vmatmul.mubr.msk.f32.gmra.mxu0 %vm5500_vm14, %v17737_v9 }
0x2666   : > { %14531 = vmatprep.mubr.msk.f32.mxu0 %vm16172_vm0, %v16171_v0 }
0x2669   : > { %14532 = vmatmul.mubr.msk.f32.vlgmr.msra.gmra.mxu0 %vm5500_vm14, %v17693_v54 }
0x266a   : > { %14534 = vmatprep.mubr.msk.f32.mxu0 %vm16172_vm0, %v16171_v0 }
0x266d   : > { %14535 = vmatmul.mubr.msk.f32.gmra.mxu0 %vm5500_vm14, %v17704_v62 }
0x266e   : > { %14537 = vmatprep.mubr.msk.f32.mxu0 %vm16172_vm0, %v16171_v0 }
0x2671   : > { %14538 = vmatmul.mubr.msk.f32.gmra.mxu0 %vm5500_vm14, %v17716_v4 }
0x2672   : > { %14540 = vmatprep.mubr.msk.f32.mxu0 %vm16172_vm0, %v16171_v0 }
0x2675   : > { %14541 = vmatmul.mubr.msk.f32.gmra.mxu0 %vm5500_vm14, %v17727_v6 }
0x2676   : > { %14543 = vmatprep.mubr.msk.f32.mxu0 %vm16172_vm0, %v16171_v0 }
0x2679   : > { %14544 = vmatmul.mubr.msk.f32.gmra.mxu0 %vm5500_vm14, %v17737_v9 }
0x267a   : > { %14581 = vmatprep.mubr.msk.f32.mxu0 %vm16172_vm0, %v16171_v0 }
0x2701   : > { %v7882_v61 = vpop.f32.mrf.mxu0 }
0x2702   : > { %v17848_v14 = vadd.f32 %v17845_v3, %v7882_v61 }
0x2703   : > { %v14457_v11 = vpop.f32.mrf.mxu0 }
0x2704   : > { %v7906_v15 = vsel %vm6041_vm1, %v17848_v14, -inf }
0x2705   : > { %7907 = vmax.xlane.f32.xlu0 %v7906_v15  ;;  %v7887_v18 = vpop.f32.mrf.mxu0 }
0x2706   : > { %v17856_v32 = vadd.f32 %v17853_v16, %v7887_v18 }
0x2707   : > { %v14460_v33 = vpop.f32.mrf.mxu0 }
0x2708   : > { %v7909_v46 = vsel %vm6041_vm1, %v17856_v32, -inf }
0x2709   : > { %7910 = vmax.xlane.f32.xlu1 %v7909_v46  ;;  %v7892_v17 = vpop.f32.mrf.mxu0 }
0x270a   : > { %v7893_v19 = vadd.f32 %v17861_v39, %v7892_v17 }
0x270b   : > { %v14463_v20 = vpop.f32.mrf.mxu0 }
0x270c   : > { %v7912_v21 = vsel %vm6041_vm1, %v7893_v19, -inf }
0x270d   : > { %7913 = vmax.xlane.f32.xlu0 %v7912_v21  ;;  %v7897_v22 = vpop.f32.mrf.mxu0 }
0x270e   : > { %v7898_v23 = vadd.f32 %v17866_v41, %v7897_v22 }
0x270f   : > { %v14466_v24 = vpop.f32.mrf.mxu0 }
0x2710   : > { %v7915_v25 = vsel %vm6041_vm1, %v7898_v23, -inf }
0x2711   : > { %7916 = vmax.xlane.f32.xlu1 %v7915_v25  ;;  %v7902_v48 = vpop.f32.mrf.mxu0 }
0x2712   : > { %v7903_v27 = vadd.f32 %v17871_v26, %v7902_v48 }
0x2713   : > { %v14469_v28 = vpop.f32.mrf.mxu0 }
0x2714   : > { %v7918_v53 = vsel %vm6041_vm1, %v7903_v27, -inf }
0x2715   : > { %7919 = vmax.xlane.f32.xlu0 %v7918_v53  ;;  %v17875_v30 = vpop.f32.mrf.mxu0 }
0x2717   : > { %v14499_v31 = vpop.f32.mrf.mxu0 }
0x2719   : > { %v17877_v37 = vpop.f32.mrf.mxu0 }
0x271b   : > { %v14502_v42 = vpop.f32.mrf.mxu0 }
0x271d   : > { %v17879_v36 = vpop.f32.mrf.mxu0 }
0x271f   : > { %v14505_v38 = vpop.f32.mrf.mxu0 }
0x2721   : > { %v17881_v47 = vpop.f32.mrf.mxu0 }
0x2723   : > { %v14508_v63 = vpop.f32.mrf.mxu0 }
0x2725   : > { %v17883_v43 = vpop.f32.mrf.mxu0 }
0x2727   : > { %v14511_v45 = vpop.f32.mrf.mxu0 }
0x2729   : > { %v8330_v49 = vpop.f32.mrf.mxu0 }
0x272a   : > { %v8331_v11 = vadd.f32 %v13138_v7, %v8330_v49 }
0x272b   : > { %v14533_v50 = vpop.f32.mrf.mxu0 }
0x272d   : > { %v8335_v55 = vpop.f32.mrf.mxu0 }
0x272e   : > { %v8336_v61 = vadd.f32 %v13138_v7, %v8335_v55 }
0x272f   : > { %v14536_v57 = vpop.f32.mrf.mxu0 }
0x2731   : > { %v8340_v60 = vpop.f32.mrf.mxu0 }
0x2732   : > { %v8341_v10 = vadd.f32 %v13138_v7, %v8340_v60 }
0x2733   : > { %v14539_v12 = vpop.f32.mrf.mxu0 }
0x2735   : > { %v8345_v2 = vpop.f32.mrf.mxu0 }
0x2736   : > { %v8346_v8 = vadd.f32 %v13138_v7, %v8345_v2 }
0x2737   : > { %v14542_v44 = vpop.f32.mrf.mxu0 }
0x2739   : > { %v8350_v51 = vpop.f32.mrf.mxu0 }
0x273a   : > { %v8351_v5 = vadd.f32 %v13138_v7, %v8350_v51  ;;  %v13083_v7 = vld [vmem:[%s18833_s1 + $0x18] sm:$0xff]  ;;  %s18864_s1 = sld [smem:[#allocation89_spill]] }
0x273b   : > { %v14545_v56 = vpop.f32.mrf.mxu0 }
0x273c   : > { %14572 = vmatpush3.msra.mxu0 %v8351_v5 }
0x273d   : > { %14573 = vmatprep.subr.mxu0 %v16171_v0 }
0x273e   : > { %14574 = vmatpush3.msra.mxu0 %v8346_v8 }
0x273f   : > { %14575 = vmatprep.subr.mxu0 %v16171_v0 }
0x2740   : > { %14576 = vmatpush3.msra.mxu0 %v8341_v10 }
0x2741   : > { %14577 = vmatprep.subr.mxu0 %v16171_v0 }
0x2742   : > { %14578 = vmatpush3.msra.mxu0 %v8336_v61 }
0x2743   : > { %14579 = vmatprep.subr.mxu0 %v16171_v0 }
0x2744   : > { %14580 = vmatpush3.msra.mxu0 %v8331_v11 }
0x2745   : > { %14613 = vmatprep.subr.mxu0 %v16171_v0 }
0x278e   : > { %v7908_v15 = vpop.xlane.xlu0 %7907 }
0x278f   : > { %v7921_v18 = vsub.f32 %v17848_v14, %v7908_v15 }
0x2791   : > { %v7926_v33 = vmul.f32 1.442695, %v7921_v18 }
0x2792   : > { %v7911_v46 = vpop.xlane.xlu1 %7910 }
0x2793   : > { %15365 = vpow2.f32 %v7926_v33  ;;  %v7922_v17 = vsub.f32 %v17856_v32, %v7911_v46 }
0x2795   : > { %v7928_v20 = vmul.f32 1.442695, %v7922_v17 }
0x2796   : > { %v7914_v21 = vpop.xlane.xlu0 %7913 }
0x2797   : > { %15367 = vpow2.f32 %v7928_v20  ;;  %v7923_v22 = vsub.f32 %v7893_v19, %v7914_v21 }
0x2799   : > { %v7930_v24 = vmul.f32 1.442695, %v7923_v22 }
0x279a   : > { %v7917_v25 = vpop.xlane.xlu1 %7916 }
0x279b   : > { %15369 = vpow2.f32 %v7930_v24  ;;  %v7924_v48 = vsub.f32 %v7898_v23, %v7917_v25 }
0x279d   : > { %v7932_v28 = vmul.f32 1.442695, %v7924_v48 }
0x279e   : > { %v7920_v53 = vpop.xlane.xlu0 %7919 }
0x279f   : > { %15371 = vpow2.f32 %v7932_v28  ;;  %v7925_v31 = vsub.f32 %v7903_v27, %v7920_v53 }
0x27a0   : > { %v15366_v42 = vpop.eup %15365 }
0x27a1   : > { %v7934_v38 = vmul.f32 1.442695, %v7925_v31  ;;  %v7936_v14 = vsel %vm6041_vm1, %v15366_v42, 0.0 }
0x27a2   : > { %7937 = vadd.xlane.f32.xlu1 %v7936_v14 }
0x27a3   : > { %15373 = vpow2.f32 %v7934_v38  ;;  %v13132_v38 = vld [vmem:[%s18841_s5 + $0x3] ss:$0 sm:$0xff] }
0x27a4   : > { %v15368_v63 = vpop.eup %15367 }
0x27a5   : > { %v7939_v32 = vsel %vm6041_vm1, %v15368_v63, 0.0 }
0x27a6   : > { %7940 = vadd.xlane.f32.xlu0 %v7939_v32 }
0x27a8   : > { %v15370_v45 = vpop.eup %15369 }
0x27a9   : > { %v7942_v19 = vsel %vm6041_vm1, %v15370_v45, 0.0 }
0x27aa   : > { %7943 = vadd.xlane.f32.xlu1 %v7942_v19 }
0x27ac   : > { %v15372_v49 = vpop.eup %15371 }
0x27ad   : > { %v7945_v23 = vsel %vm6041_vm1, %v15372_v49, 0.0 }
0x27ae   : > { %7946 = vadd.xlane.f32.xlu0 %v7945_v23  ;;  %v13126_v23 = vld [vmem:[%s18843_s6 + $0x3] ss:$0 sm:$0xff] }
0x27b0   : > { %v15374_v27 = vpop.eup %15373 }
0x27b1   : > { %v7948_v50 = vsel %vm6041_vm1, %v15374_v27, 0.0 }
0x27b2   : > { %7949 = vadd.xlane.f32.xlu1 %v7948_v50  ;;  %v8139_v50 = vadd.f32 %v13126_v23, %v17875_v30  ;;  %v8154_v30 = vadd.f32 %v13126_v23, %v17881_v47 }
0x282b   : > { %v7938_v55 = vpop.xlane.xlu1 %7937 }
0x282c   : > { %15375 = vrcp.f32 %v7938_v55  ;;  %v8144_v55 = vadd.f32 %v13126_v23, %v17877_v37  ;;  %v8159_v37 = vadd.f32 %v13126_v23, %v17883_v43 }
0x282f   : > { %v7941_v57 = vpop.xlane.xlu0 %7940 }
0x2830   : > { %15377 = vrcp.f32 %v7941_v57  ;;  %v8149_v57 = vadd.f32 %v13126_v23, %v17879_v36 }
0x2833   : > { %v7944_v60 = vpop.xlane.xlu1 %7943 }
0x2834   : > { %15379 = vrcp.f32 %v7944_v60 }
0x2837   : > { %v7947_v12 = vpop.xlane.xlu0 %7946 }
0x2838   : > { %15381 = vrcp.f32 %v7947_v12 }
0x2839   : > { %v15376_v2 = vpop.eup %15375 }
0x283a   : > { %v7952_v44 = vmul.f32 %v15376_v2, %v15366_v42 }
0x283b   : > { %v7950_v51 = vpop.xlane.xlu1 %7949 }
0x283c   : > { %15383 = vrcp.f32 %v7950_v51  ;;  %14481 = vmatmul.mubr.msk.f32.vlgmr.msra.gmra.mxu1 %vm6041_vm1, %v7952_v44 }
0x283d   : > { %v15378_v5 = vpop.eup %15377  ;;  %14513 = vmatpush3.msra.mxu1 %v13083_v7  ;;  %14483 = vmatprep.mubr.msk.f32.mxu1 %vm16172_vm0, %v16171_v0 }
0x283e   : > { %v7954_v56 = vmul.f32 %v15378_v5, %v15368_v63  ;;  %14546 = vmatprep.subr.mxu1 %v16171_v0 }
0x2840   : > { %14484 = vmatmul.mubr.msk.f32.gmra.mxu1 %vm6041_vm1, %v7954_v56 }
0x2841   : > { %v15380_v8 = vpop.eup %15379  ;;  %14486 = vmatprep.mubr.msk.f32.mxu1 %vm16172_vm0, %v16171_v0 }
0x2842   : > { %v7956_v10 = vmul.f32 %v15380_v8, %v15370_v45 }
0x2844   : > { %14487 = vmatmul.mubr.msk.f32.gmra.mxu1 %vm6041_vm1, %v7956_v10 }
0x2845   : > { %v15382_v61 = vpop.eup %15381  ;;  %14489 = vmatprep.mubr.msk.f32.mxu1 %vm16172_vm0, %v16171_v0 }
0x2846   : > { %v7958_v11 = vmul.f32 %v15382_v61, %v15372_v49 }
0x2848   : > { %14490 = vmatmul.mubr.msk.f32.gmra.mxu1 %vm6041_vm1, %v7958_v11 }
0x2849   : > { %v15384_v15 = vpop.eup %15383  ;;  %14492 = vmatprep.mubr.msk.f32.mxu1 %vm16172_vm0, %v16171_v0 }
0x284a   : > { %v7960_v18 = vmul.f32 %v15384_v15, %v15374_v27 }
0x284c   : > { %14493 = vmatmul.mubr.msk.f32.gmra.mxu1 %vm6041_vm1, %v7960_v18 }
0x284d   : > { %14514 = vmatprep.mubr.msk.f32.mxu1 %vm16172_vm0, %v16171_v0 }
0x2850   : > { %14515 = vmatmul.mubr.msk.f32.vlgmr.msra.gmra.mxu1 %vm5500_vm14, %v17693_v54 }
0x2851   : > { %14517 = vmatprep.mubr.msk.f32.mxu1 %vm16172_vm0, %v16171_v0 }
0x2854   : > { %14518 = vmatmul.mubr.msk.f32.gmra.mxu1 %vm5500_vm14, %v17704_v62 }
0x2855   : > { %14520 = vmatprep.mubr.msk.f32.mxu1 %vm16172_vm0, %v16171_v0 }
0x2858   : > { %14521 = vmatmul.mubr.msk.f32.gmra.mxu1 %vm5500_vm14, %v17716_v4 }
0x2859   : > { %14523 = vmatprep.mubr.msk.f32.mxu1 %vm16172_vm0, %v16171_v0 }
0x285c   : > { %14524 = vmatmul.mubr.msk.f32.gmra.mxu1 %vm5500_vm14, %v17727_v6 }
0x285d   : > { %14526 = vmatprep.mubr.msk.f32.mxu1 %vm16172_vm0, %v16171_v0 }
0x2860   : > { %14527 = vmatmul.mubr.msk.f32.gmra.mxu1 %vm5500_vm14, %v17737_v9 }
0x2861   : > { %14556 = vmatprep.mubr.msk.f32.mxu1 %vm16172_vm0, %v16171_v0 }
0x28fc   : > { %v17935_v54 = vpop.f32.mrf.mxu1 }
0x28fe   : > { %v14482_v62 = vpop.f32.mrf.mxu1 }
0x2900   : > { %v17937_v33 = vpop.f32.mrf.mxu1 }
0x2902   : > { %v14485_v4 = vpop.f32.mrf.mxu1 }
0x2904   : > { %v17939_v46 = vpop.f32.mrf.mxu1 }
0x2906   : > { %v14488_v17 = vpop.f32.mrf.mxu1 }
0x2908   : > { %v17941_v6 = vpop.f32.mrf.mxu1 }
0x290a   : > { %v14491_v20 = vpop.f32.mrf.mxu1 }
0x290c   : > { %v17943_v21 = vpop.f32.mrf.mxu1 }
0x290e   : > { %v14494_v22 = vpop.f32.mrf.mxu1 }
0x2910   : > { %v8234_v9 = vpop.f32.mrf.mxu1 }
0x2911   : > { %v8235_v27 = vadd.f32 %v13132_v38, %v8234_v9 }
0x2912   : > { %v14516_v24 = vpop.f32.mrf.mxu1 }
0x2914   : > { %v8239_v25 = vpop.f32.mrf.mxu1 }
0x2915   : > { %v8240_v49 = vadd.f32 %v13132_v38, %v8239_v25 }
0x2916   : > { %v14519_v48 = vpop.f32.mrf.mxu1 }
0x2918   : > { %v8244_v28 = vpop.f32.mrf.mxu1 }
0x2919   : > { %v8245_v19 = vadd.f32 %v13132_v38, %v8244_v28 }
0x291a   : > { %v14522_v53 = vpop.f32.mrf.mxu1 }
0x291c   : > { %v8249_v31 = vpop.f32.mrf.mxu1 }
0x291d   : > { %v8250_v45 = vadd.f32 %v13132_v38, %v8249_v31 }
0x291e   : > { %v14525_v42 = vpop.f32.mrf.mxu1 }
0x2920   : > { %v8254_v14 = vpop.f32.mrf.mxu1 }
0x2921   : > { %v8255_v63 = vadd.f32 %v13132_v38, %v8254_v14 }
0x2922   : > { %v14528_v32 = vpop.f32.mrf.mxu1 }
0x2923   : > { %14547 = vmatpush3.xpose.msk.msra.mxu1 %vm5920_vm15, %v8255_v63 }
0x2924   : > { %14548 = vmatprep.subr.mxu1 %v16171_v0 }
0x2927   : > { %14549 = vmatpush3.xpose.msk.msra.mxu1 %vm5920_vm15, %v8250_v45 }
0x2928   : > { %14550 = vmatprep.subr.mxu1 %v16171_v0 }
0x292b   : > { %14551 = vmatpush3.xpose.msk.msra.mxu1 %vm5920_vm15, %v8245_v19 }
0x292c   : > { %14552 = vmatprep.subr.mxu1 %v16171_v0 }
0x292f   : > { %14553 = vmatpush3.xpose.msk.msra.mxu1 %vm5920_vm15, %v8240_v49 }
0x2930   : > { %14554 = vmatprep.subr.mxu1 %v16171_v0 }
0x2933   : > { %14555 = vmatpush3.xpose.msk.msra.mxu1 %vm5920_vm15, %v8235_v27 }
0x2934   : > { %14596 = vmatprep.subr.mxu1 %v16171_v0 }
0x2936   : > { %14557 = vmatmul.mubr.msk.f32.vlgmr.msra.gmra.mxu1 %vm5920_vm15, %v8139_v50 }
0x2937   : > { %14559 = vmatprep.mubr.msk.f32.mxu1 %vm16172_vm0, %v16171_v0 }
0x293a   : > { %14560 = vmatmul.mubr.msk.f32.gmra.mxu1 %vm5920_vm15, %v8144_v55  ;;  %v13091_v55 = vld [vmem:[%s18849_s10 + $0xc] sm:$0xf] }
0x293b   : > { %14562 = vmatprep.mubr.msk.f32.mxu1 %vm16172_vm0, %v16171_v0  ;;  %14597 = vmatpush3.msk.msra.mxu1 %vm6785_vm2, %v13091_v55 }
0x293c   : > { %14630 = vmatprep.subr.mxu1 %v16171_v0 }
0x293e   : > { %14563 = vmatmul.mubr.msk.f32.gmra.mxu1 %vm5920_vm15, %v8149_v57 }
0x293f   : > { %14565 = vmatprep.mubr.msk.f32.mxu1 %vm16172_vm0, %v16171_v0 }
0x2942   : > { %14566 = vmatmul.mubr.msk.f32.gmra.mxu1 %vm5920_vm15, %v8154_v30 }
0x2943   : > { %14568 = vmatprep.mubr.msk.f32.mxu1 %vm16172_vm0, %v16171_v0 }
0x2946   : > { %14569 = vmatmul.mubr.msk.f32.gmra.mxu1 %vm5920_vm15, %v8159_v37 }
0x2947   : > { %14598 = vmatprep.mubr.msk.f32.mxu1 %vm16172_vm0, %v16171_v0 }
0x29f6   : > { %v8450_v36 = vpop.f32.mrf.mxu1 }
0x29f7   : > { %v8451_v60 = vadd.f32 %v17845_v3, %v8450_v36 }
0x29f8   : > { %v14558_v12 = vpop.f32.mrf.mxu1 }
0x29f9   : > { %v8474_v2 = vsel %vm6041_vm1, %v8451_v60, -inf }
0x29fa   : > { %8475 = vmax.xlane.f32.xlu0 %v8474_v2  ;;  %v8455_v47 = vpop.f32.mrf.mxu1  ;;  %v13090_v2 = vld [vmem:[%s18849_s10 + $0x8] sm:$0xf] }
0x29fb   : > { %v8456_v44 = vadd.f32 %v17853_v16, %v8455_v47 }
0x29fc   : > { %v14561_v7 = vpop.f32.mrf.mxu1 }
0x29fd   : > { %v8477_v51 = vsel %vm6041_vm1, %v8456_v44, -inf }
0x29fe   : > { %8478 = vmax.xlane.f32.xlu1 %v8477_v51  ;;  %v8460_v43 = vpop.f32.mrf.mxu1 }
0x29ff   : > { %v8461_v5 = vadd.f32 %v17861_v39, %v8460_v43 }
0x2a00   : > { %v14564_v56 = vpop.f32.mrf.mxu1 }
0x2a01   : > { %v8480_v8 = vsel %vm6041_vm1, %v8461_v5, -inf }
0x2a02   : > { %8481 = vmax.xlane.f32.xlu0 %v8480_v8  ;;  %v8465_v10 = vpop.f32.mrf.mxu1 }
0x2a03   : > { %v8466_v3 = vadd.f32 %v17866_v41, %v8465_v10 }
0x2a04   : > { %v14567_v61 = vpop.f32.mrf.mxu1 }
0x2a05   : > { %v8483_v11 = vsel %vm6041_vm1, %v8466_v3, -inf }
0x2a06   : > { %8484 = vmax.xlane.f32.xlu1 %v8483_v11  ;;  %v8470_v15 = vpop.f32.mrf.mxu1 }
0x2a07   : > { %v8471_v16 = vadd.f32 %v17871_v26, %v8470_v15 }
0x2a08   : > { %v14570_v18 = vpop.f32.mrf.mxu1 }
0x2a09   : > { %v8486_v62 = vsel %vm6041_vm1, %v8471_v16, -inf }
0x2a0a   : > { %8487 = vmax.xlane.f32.xlu0 %v8486_v62 }
0x2a83   : > { %v8476_v4 = vpop.xlane.xlu0 %8475 }
0x2a84   : > { %v8489_v39 = vsub.f32 %v8451_v60, %v8476_v4 }
0x2a86   : > { %v8494_v17 = vmul.f32 1.442695, %v8489_v39 }
0x2a87   : > { %v8479_v20 = vpop.xlane.xlu1 %8478 }
0x2a88   : > { %15385 = vpow2.f32 %v8494_v17  ;;  %v8490_v22 = vsub.f32 %v8456_v44, %v8479_v20 }
0x2a8a   : > { %v8496_v9 = vmul.f32 1.442695, %v8490_v22 }
0x2a8b   : > { %v8482_v24 = vpop.xlane.xlu0 %8481 }
0x2a8c   : > { %15387 = vpow2.f32 %v8496_v9  ;;  %v8491_v41 = vsub.f32 %v8461_v5, %v8482_v24 }
0x2a8e   : > { %v8498_v25 = vmul.f32 1.442695, %v8491_v41 }
0x2a8f   : > { %v8485_v48 = vpop.xlane.xlu1 %8484 }
0x2a90   : > { %15389 = vpow2.f32 %v8498_v25  ;;  %v8492_v28 = vsub.f32 %v8466_v3, %v8485_v48  ;;  %v13171_v25 = vld [vmem:[%s18851_s11 + $0x1] ss:$0 sm:$0xff] }
0x2a92   : > { %v8500_v53 = vmul.f32 1.442695, %v8492_v28 }
0x2a93   : > { %v8488_v26 = vpop.xlane.xlu0 %8487 }
0x2a94   : > { %15391 = vpow2.f32 %v8500_v53  ;;  %v8493_v31 = vsub.f32 %v8471_v16, %v8488_v26 }
0x2a95   : > { %v15386_v42 = vpop.eup %15385 }
0x2a96   : > { %v8502_v38 = vmul.f32 1.442695, %v8493_v31  ;;  %v8504_v14 = vsel %vm6041_vm1, %v15386_v42, 0.0 }
0x2a97   : > { %8505 = vadd.xlane.f32.xlu1 %v8504_v14 }
0x2a98   : > { %15393 = vpow2.f32 %v8502_v38 }
0x2a99   : > { %v15388_v63 = vpop.eup %15387 }
0x2a9a   : > { %v8507_v32 = vsel %vm6041_vm1, %v15388_v63, 0.0 }
0x2a9b   : > { %8508 = vadd.xlane.f32.xlu0 %v8507_v32 }
0x2a9d   : > { %v15390_v45 = vpop.eup %15389 }
0x2a9e   : > { %v8510_v19 = vsel %vm6041_vm1, %v15390_v45, 0.0 }
0x2a9f   : > { %8511 = vadd.xlane.f32.xlu1 %v8510_v19 }
0x2aa1   : > { %v15392_v49 = vpop.eup %15391 }
0x2aa2   : > { %v8513_v23 = vsel %vm6041_vm1, %v15392_v49, 0.0 }
0x2aa3   : > { %8514 = vadd.xlane.f32.xlu0 %v8513_v23 }
0x2aa5   : > { %v15394_v27 = vpop.eup %15393 }
0x2aa6   : > { %v8516_v50 = vsel %vm6041_vm1, %v15394_v27, 0.0 }
0x2aa7   : > { %8517 = vadd.xlane.f32.xlu1 %v8516_v50 }
0x2b20   : > { %v8506_v57 = vpop.xlane.xlu1 %8505 }
0x2b21   : > { %15395 = vrcp.f32 %v8506_v57 }
0x2b24   : > { %v8509_v30 = vpop.xlane.xlu0 %8508 }
0x2b25   : > { %15397 = vrcp.f32 %v8509_v30 }
0x2b28   : > { %v8512_v37 = vpop.xlane.xlu1 %8511 }
0x2b29   : > { %15399 = vrcp.f32 %v8512_v37 }
0x2b2c   : > { %v8515_v36 = vpop.xlane.xlu0 %8514 }
0x2b2d   : > { %15401 = vrcp.f32 %v8515_v36 }
0x2b2e   : > { %v15396_v60 = vpop.eup %15395 }
0x2b2f   : > { %v8520_v12 = vmul.f32 %v15396_v60, %v15386_v42 }
0x2b30   : > { %v8518_v47 = vpop.xlane.xlu1 %8517 }
0x2b31   : > { %15403 = vrcp.f32 %v8518_v47  ;;  %14582 = vmatmul.mubr.msk.f32.vlgmr.msra.gmra.mxu0 %vm6041_vm1, %v8520_v12 }
0x2b32   : > { %v15398_v44 = vpop.eup %15397  ;;  %14584 = vmatprep.mubr.msk.f32.mxu0 %vm16172_vm0, %v16171_v0  ;;  %14614 = vmatpush3.msk.msra.mxu0 %vm6785_vm2, %v13090_v2  ;;  %vm9542_vm2 = vcmask 516544  }
0x2b33   : > { %v8522_v7 = vmul.f32 %v15398_v44, %v15388_v63  ;;  %14647 = vmatprep.subr.mxu0 %v16171_v0 }
0x2b35   : > { %14585 = vmatmul.mubr.msk.f32.gmra.mxu0 %vm6041_vm1, %v8522_v7 }
0x2b36   : > { %v15400_v51 = vpop.eup %15399  ;;  %14587 = vmatprep.mubr.msk.f32.mxu0 %vm16172_vm0, %v16171_v0 }
0x2b37   : > { %v8524_v43 = vmul.f32 %v15400_v51, %v15390_v45 }
0x2b39   : > { %14588 = vmatmul.mubr.msk.f32.gmra.mxu0 %vm6041_vm1, %v8524_v43 }
0x2b3a   : > { %v15402_v5 = vpop.eup %15401  ;;  %14590 = vmatprep.mubr.msk.f32.mxu0 %vm16172_vm0, %v16171_v0 }
0x2b3b   : > { %v8526_v56 = vmul.f32 %v15402_v5, %v15392_v49 }
0x2b3d   : > { %14591 = vmatmul.mubr.msk.f32.gmra.mxu0 %vm6041_vm1, %v8526_v56 }
0x2b3e   : > { %v15404_v8 = vpop.eup %15403  ;;  %14593 = vmatprep.mubr.msk.f32.mxu0 %vm16172_vm0, %v16171_v0 }
0x2b3f   : > { %v8528_v10 = vmul.f32 %v15404_v8, %v15394_v27 }
0x2b41   : > { %14594 = vmatmul.mubr.msk.f32.gmra.mxu0 %vm6041_vm1, %v8528_v10  ;;  %vm9515_vm1 = vcmask 450944  }
0x2b42   : > { %14615 = vmatprep.mubr.msk.f32.mxu0 %vm16172_vm0, %v16171_v0 }
0x2b45   : > { %14616 = vmatmul.mubr.msk.f32.vlgmr.msra.gmra.mxu0 %vm5920_vm15, %v17935_v54 }
0x2b46   : > { %14618 = vmatprep.mubr.msk.f32.mxu0 %vm16172_vm0, %v16171_v0 }
0x2b49   : > { %14619 = vmatmul.mubr.msk.f32.gmra.mxu0 %vm5920_vm15, %v17937_v33 }
0x2b4a   : > { %14621 = vmatprep.mubr.msk.f32.mxu0 %vm16172_vm0, %v16171_v0 }
0x2b4d   : > { %14622 = vmatmul.mubr.msk.f32.gmra.mxu0 %vm5920_vm15, %v17939_v46 }
0x2b4e   : > { %14624 = vmatprep.mubr.msk.f32.mxu0 %vm16172_vm0, %v16171_v0 }
0x2b51   : > { %14625 = vmatmul.mubr.msk.f32.gmra.mxu0 %vm5920_vm15, %v17941_v6 }
0x2b52   : > { %14627 = vmatprep.mubr.msk.f32.mxu0 %vm16172_vm0, %v16171_v0 }
0x2b55   : > { %14628 = vmatmul.mubr.msk.f32.gmra.mxu0 %vm5920_vm15, %v17943_v21 }
0x2b56   : > { %14651 = vmatprep.mubr.msk.f32.mxu0 %vm16172_vm0, %v16171_v0 }
0x2bf1   : > { %v8610_v54 = vpop.f32.mrf.mxu0 }
0x2bf2   : > { %14599 = vmatmul.mubr.msk.f32.vlgmr.msra.gmra.mxu1 %vm5920_vm15, %v8610_v54 }
0x2bf3   : > { %v14583_v33 = vpop.f32.mrf.mxu0  ;;  %14601 = vmatprep.mubr.msk.f32.mxu1 %vm16172_vm0, %v16171_v0 }
0x2bf5   : > { %v8615_v46 = vpop.f32.mrf.mxu0 }
0x2bf6   : > { %14602 = vmatmul.mubr.msk.f32.gmra.mxu1 %vm5920_vm15, %v8615_v46 }
0x2bf7   : > { %v14586_v6 = vpop.f32.mrf.mxu0  ;;  %14604 = vmatprep.mubr.msk.f32.mxu1 %vm16172_vm0, %v16171_v0 }
0x2bf9   : > { %v8620_v3 = vpop.f32.mrf.mxu0 }
0x2bfa   : > { %14605 = vmatmul.mubr.msk.f32.gmra.mxu1 %vm5920_vm15, %v8620_v3 }
0x2bfb   : > { %v14589_v21 = vpop.f32.mrf.mxu0  ;;  %14607 = vmatprep.mubr.msk.f32.mxu1 %vm16172_vm0, %v16171_v0 }
0x2bfd   : > { %v8625_v61 = vpop.f32.mrf.mxu0 }
0x2bfe   : > { %14608 = vmatmul.mubr.msk.f32.gmra.mxu1 %vm5920_vm15, %v8625_v61 }
0x2bff   : > { %v14592_v11 = vpop.f32.mrf.mxu0  ;;  %14610 = vmatprep.mubr.msk.f32.mxu1 %vm16172_vm0, %v16171_v0 }
0x2c01   : > { %v8630_v15 = vpop.f32.mrf.mxu0 }
0x2c02   : > { %14611 = vmatmul.mubr.msk.f32.gmra.mxu1 %vm5920_vm15, %v8630_v15  ;;  %vm9488_vm15 = vcmask 385344  }
0x2c03   : > { %v14595_v16 = vpop.f32.mrf.mxu0  ;;  %14632 = vmatprep.mubr.msk.f32.mxu1 %vm16172_vm0, %v16171_v0 }
0x2c05   : > { %v8826_v18 = vpop.f32.mrf.mxu0 }
0x2c07   : > { %v14617_v62 = vpop.f32.mrf.mxu0 }
0x2c09   : > { %v8831_v4 = vpop.f32.mrf.mxu0 }
0x2c0b   : > { %v14620_v39 = vpop.f32.mrf.mxu0 }
0x2c0d   : > { %v8836_v17 = vpop.f32.mrf.mxu0 }
0x2c0f   : > { %v14623_v20 = vpop.f32.mrf.mxu0 }
0x2c11   : > { %v8841_v22 = vpop.f32.mrf.mxu0 }
0x2c13   : > { %v14626_v9 = vpop.f32.mrf.mxu0 }
0x2c14   : > { %v13176_v9 = vld [vmem:[%s18853_s12 + $0x8] sm:$0xff] }
0x2c15   : > { %v8846_v24 = vpop.f32.mrf.mxu0  ;;  %14631 = vmatpush3.msra.mxu1 %v13176_v9 }
0x2c16   : > { %14666 = vmatprep.subr.mxu1 %v16171_v0 }
0x2c17   : > { %v14629_v41 = vpop.f32.mrf.mxu0 }
0x2cb2   : > { %v8718_v48 = vpop.f32.mrf.mxu1 }
0x2cb3   : > { %v8827_v28 = vadd.f32 %v8826_v18, %v8718_v48 }
0x2cb4   : > { %v14600_v53 = vpop.f32.mrf.mxu1 }
0x2cb5   : > { %v8856_v26 = vadd.f32 %v13171_v25, %v8827_v28 }
0x2cb6   : > { %v8723_v31 = vpop.f32.mrf.mxu1 }
0x2cb7   : > { %v18050_v42 = vadd.f32 %v8856_v26, %v17645_v29  ;;  %v8832_v38 = vadd.f32 %v8831_v4, %v8723_v31 }
0x2cb8   : > { %v14603_v14 = vpop.f32.mrf.mxu1 }
0x2cb9   : > { %v8857_v63 = vadd.f32 %v13171_v25, %v8832_v38  ;;  %v8870_v32 = vsel %vm5500_vm14, %v18050_v42, 0.0 }
0x2cba   : > { %8871 = vadd.xlane.f32.xlu0 %v8870_v32  ;;  %v8728_v45 = vpop.f32.mrf.mxu1 }
0x2cbb   : > { %v18055_v19 = vadd.f32 %v8857_v63, %v17650_v59  ;;  %v8837_v49 = vadd.f32 %v8836_v17, %v8728_v45 }
0x2cbc   : > { %v14606_v23 = vpop.f32.mrf.mxu1 }
0x2cbd   : > { %v8858_v27 = vadd.f32 %v13171_v25, %v8837_v49  ;;  %v8873_v50 = vsel %vm5500_vm14, %v18055_v19, 0.0 }
0x2cbe   : > { %8874 = vadd.xlane.f32.xlu1 %v8873_v50  ;;  %v8733_v29 = vpop.f32.mrf.mxu1 }
0x2cbf   : > { %v18060_v55 = vadd.f32 %v8858_v27, %v17655_v40  ;;  %v8842_v57 = vadd.f32 %v8841_v22, %v8733_v29  ;;  %v13174_v27 = vld [vmem:[%s18855_s14 + $0x1] ss:$0 sm:$0xff] }
0x2cc0   : > { %v14609_v30 = vpop.f32.mrf.mxu1 }
0x2cc1   : > { %v8859_v37 = vadd.f32 %v13171_v25, %v8842_v57  ;;  %v8876_v36 = vsel %vm5500_vm14, %v18060_v55, 0.0  ;;  %v13175_v57 = vld [vmem:[%s18857_s19 + $0x1] ss:$0 sm:$0xff] }
0x2cc2   : > { %8877 = vadd.xlane.f32.xlu0 %v8876_v36  ;;  %v8738_v59 = vpop.f32.mrf.mxu1 }
0x2cc3   : > { %v18065_v60 = vadd.f32 %v8859_v37, %v17660_v52  ;;  %v8847_v12 = vadd.f32 %v8846_v24, %v8738_v59 }
0x2cc4   : > { %v14612_v2 = vpop.f32.mrf.mxu1 }
0x2cc5   : > { %v8860_v47 = vadd.f32 %v13171_v25, %v8847_v12  ;;  %v8879_v44 = vsel %vm5500_vm14, %v18065_v60, 0.0 }
0x2cc6   : > { %8880 = vadd.xlane.f32.xlu1 %v8879_v44 }
0x2cc7   : > { %v18070_v40 = vadd.f32 %v8860_v47, %v17665_v1 }
0x2cc9   : > { %v8882_v7 = vsel %vm5500_vm14, %v18070_v40, 0.0 }
0x2cca   : > { %8883 = vadd.xlane.f32.xlu0 %v8882_v7 }
0x2d43   : > { %v8872_v51 = vpop.xlane.xlu0 %8871 }
0x2d44   : > { %v8885_v43 = vmul.f32 0.125, %v8872_v51 }
0x2d46   : > { %v8890_v5 = vsub.f32 %v18050_v42, %v8885_v43 }
0x2d47   : > { %v8875_v52 = vpop.xlane.xlu1 %8874 }
0x2d48   : > { %v8886_v56 = vmul.f32 0.125, %v8875_v52  ;;  %v8895_v8 = vmul.f32 %v8890_v5, %v8890_v5 }
0x2d4a   : > { %v8891_v10 = vsub.f32 %v18055_v19, %v8886_v56  ;;  %v8900_v54 = vsel %vm5500_vm14, %v8895_v8, 0.0 }
0x2d4b   : > { %v8878_v33 = vpop.xlane.xlu0 %8877  ;;  %8901 = vadd.xlane.f32.xlu1 %v8900_v54 }
0x2d4c   : > { %v8887_v46 = vmul.f32 0.125, %v8878_v33  ;;  %v8896_v1 = vmul.f32 %v8891_v10, %v8891_v10 }
0x2d4e   : > { %v8892_v6 = vsub.f32 %v18060_v55, %v8887_v46  ;;  %v8903_v3 = vsel %vm5500_vm14, %v8896_v1, 0.0  ;;  %v13185_v46 = vld [vmem:[%s18859_s20 + $0x18] sm:$0xff]  ;;  %v13184_v1 = vld [vmem:[%s18859_s20 + $0x10] sm:$0xff] }
0x2d4f   : > { %v8881_v21 = vpop.xlane.xlu1 %8880  ;;  %8904 = vadd.xlane.f32.xlu0 %v8903_v3  ;;  %14648 = vmatpush3.msra.mxu0 %v13185_v46 }
0x2d50   : > { %v8888_v61 = vmul.f32 0.125, %v8881_v21  ;;  %v8897_v11 = vmul.f32 %v8892_v6, %v8892_v6  ;;  %14649 = vmatprep.subr.mxu0 %v16171_v0 }
0x2d51   : > { %14650 = vmatpush3.msra.mxu0 %v13184_v1 }
0x2d52   : > { %v8893_v15 = vsub.f32 %v18065_v60, %v8888_v61  ;;  %v8906_v16 = vsel %vm5500_vm14, %v8897_v11, 0.0 }
0x2d53   : > { %8907 = vadd.xlane.f32.xlu1 %v8906_v16  ;;  %v8884_v18 = vpop.xlane.xlu0 %8883 }
0x2d54   : > { %v8889_v62 = vmul.f32 0.125, %v8884_v18  ;;  %v8898_v4 = vmul.f32 %v8893_v15, %v8893_v15 }
0x2d56   : > { %v8894_v39 = vsub.f32 %v18070_v40, %v8889_v62  ;;  %v8909_v17 = vsel %vm5500_vm14, %v8898_v4, 0.0 }
0x2d57   : > { %8910 = vadd.xlane.f32.xlu0 %v8909_v17 }
0x2d58   : > { %v8899_v20 = vmul.f32 %v8894_v39, %v8894_v39 }
0x2d5a   : > { %v8912_v22 = vsel %vm5500_vm14, %v8899_v20, 0.0 }
0x2d5b   : > { %8913 = vadd.xlane.f32.xlu1 %v8912_v22 }
0x2dd4   : > { %v8902_v24 = vpop.xlane.xlu1 %8901 }
0x2dd5   : > { %v8915_v41 = vmul.f32 0.125, %v8902_v24 }
0x2dd7   : > { %v8920_v25 = vadd.f32 1e-06, %v8915_v41 }
0x2dd8   : > { %v8905_v48 = vpop.xlane.xlu0 %8904 }
0x2dd9   : > { %15405 = vrsqrt.f32 %v8920_v25  ;;  %v8916_v28 = vmul.f32 0.125, %v8905_v48 }
0x2ddb   : > { %v8921_v53 = vadd.f32 1e-06, %v8916_v28 }
0x2ddc   : > { %v8908_v26 = vpop.xlane.xlu1 %8907 }
0x2ddd   : > { %15407 = vrsqrt.f32 %v8921_v53  ;;  %v8917_v31 = vmul.f32 0.125, %v8908_v26 }
0x2ddf   : > { %v8922_v38 = vadd.f32 1e-06, %v8917_v31 }
0x2de0   : > { %v8911_v14 = vpop.xlane.xlu0 %8910 }
0x2de1   : > { %15409 = vrsqrt.f32 %v8922_v38  ;;  %v8918_v63 = vmul.f32 0.125, %v8911_v14 }
0x2de3   : > { %v8923_v32 = vadd.f32 1e-06, %v8918_v63 }
0x2de4   : > { %v8914_v45 = vpop.xlane.xlu1 %8913 }
0x2de5   : > { %15411 = vrsqrt.f32 %v8923_v32  ;;  %v8919_v49 = vmul.f32 0.125, %v8914_v45 }
0x2de6   : > { %v15406_v23 = vpop.eup %15405 }
0x2de7   : > { %v8930_v50 = vmul.f32 %v15406_v23, %v8890_v5  ;;  %v8924_v29 = vadd.f32 1e-06, %v8919_v49 }
0x2de9   : > { %v8941_v30 = vmul.f32 %v13174_v27, %v8930_v50  ;;  %15413 = vrsqrt.f32 %v8924_v29 }
0x2dea   : > { %v15408_v37 = vpop.eup %15407 }
0x2deb   : > { %v8952_v36 = vadd.f32 %v13175_v57, %v8941_v30  ;;  %v8931_v59 = vmul.f32 %v15408_v37, %v8891_v10 }
0x2ded   : > { %14633 = vmatmul.mubr.msk.f32.vlgmr.msra.gmra.mxu1 %vm5500_vm14, %v8952_v36  ;;  %v8942_v12 = vmul.f32 %v13174_v27, %v8931_v59 }
0x2dee   : > { %v15410_v2 = vpop.eup %15409  ;;  %14635 = vmatprep.mubr.msk.f32.mxu1 %vm16172_vm0, %v16171_v0 }
0x2def   : > { %v8932_v47 = vmul.f32 %v15410_v2, %v8892_v6  ;;  %v8953_v44 = vadd.f32 %v13175_v57, %v8942_v12  ;;  %v13178_v6 = vld [vmem:[%s18861_s21 + $0x1] ss:$0 sm:$0xff] }
0x2df1   : > { %14636 = vmatmul.mubr.msk.f32.gmra.mxu1 %vm5500_vm14, %v8953_v44  ;;  %v8943_v7 = vmul.f32 %v13174_v27, %v8932_v47 }
0x2df2   : > { %v15412_v51 = vpop.eup %15411  ;;  %14638 = vmatprep.mubr.msk.f32.mxu1 %vm16172_vm0, %v16171_v0 }
0x2df3   : > { %v8933_v43 = vmul.f32 %v15412_v51, %v8893_v15  ;;  %v8954_v5 = vadd.f32 %v13175_v57, %v8943_v7 }
0x2df5   : > { %14639 = vmatmul.mubr.msk.f32.gmra.mxu1 %vm5500_vm14, %v8954_v5  ;;  %v8944_v52 = vmul.f32 %v13174_v27, %v8933_v43 }
0x2df6   : > { %v15414_v56 = vpop.eup %15413  ;;  %14641 = vmatprep.mubr.msk.f32.mxu1 %vm16172_vm0, %v16171_v0 }
0x2df7   : > { %v8934_v8 = vmul.f32 %v15414_v56, %v8894_v39  ;;  %v8955_v10 = vadd.f32 %v13175_v57, %v8944_v52 }
0x2df9   : > { %14642 = vmatmul.mubr.msk.f32.gmra.mxu1 %vm5500_vm14, %v8955_v10  ;;  %v8945_v54 = vmul.f32 %v13174_v27, %v8934_v8 }
0x2dfa   : > { %14644 = vmatprep.mubr.msk.f32.mxu1 %vm16172_vm0, %v16171_v0 }
0x2dfb   : > { %v8956_v33 = vadd.f32 %v13175_v57, %v8945_v54 }
0x2dfd   : > { %14645 = vmatmul.mubr.msk.f32.gmra.mxu1 %vm5500_vm14, %v8956_v33 }
0x2dfe   : > { %14682 = vmatprep.mubr.msk.f32.mxu1 %vm16172_vm0, %v16171_v0 }
0x2ead   : > { %v9048_v3 = vpop.f32.mrf.mxu1 }
0x2eae   : > { %v9049_v21 = vadd.f32 %v13178_v6, %v9048_v3 }
0x2eaf   : > { %v14634_v61 = vpop.f32.mrf.mxu1 }
0x2eb0   : > { %v9072_v11 = vmul.f32 %v9049_v21, %v9049_v21 }
0x2eb1   : > { %v9053_v15 = vpop.f32.mrf.mxu1 }
0x2eb2   : > { %v9077_v16 = vmul.f32 %v9072_v11, %v9049_v21  ;;  %v9054_v18 = vadd.f32 %v13178_v6, %v9053_v15 }
0x2eb3   : > { %v14637_v62 = vpop.f32.mrf.mxu1 }
0x2eb4   : > { %v9082_v4 = vmul.f32 0.044715, %v9077_v16  ;;  %v9073_v39 = vmul.f32 %v9054_v18, %v9054_v18 }
0x2eb5   : > { %v9058_v17 = vpop.f32.mrf.mxu1 }
0x2eb6   : > { %v9087_v20 = vadd.f32 %v9082_v4, %v9049_v21  ;;  %v9078_v22 = vmul.f32 %v9073_v39, %v9054_v18  ;;  %v9059_v9 = vadd.f32 %v13178_v6, %v9058_v17 }
0x2eb7   : > { %v14640_v24 = vpop.f32.mrf.mxu1 }
0x2eb8   : > { %v9092_v41 = vmul.f32 0.7978846, %v9087_v20  ;;  %v9083_v25 = vmul.f32 0.044715, %v9078_v22  ;;  %v9074_v48 = vmul.f32 %v9059_v9, %v9059_v9 }
0x2eb9   : > { %v9063_v28 = vpop.f32.mrf.mxu1 }
0x2eba   : > { %15415 = vtanh.f32 %v9092_v41  ;;  %v9088_v53 = vadd.f32 %v9083_v25, %v9054_v18  ;;  %v9079_v26 = vmul.f32 %v9074_v48, %v9059_v9  ;;  %v9064_v31 = vadd.f32 %v13178_v6, %v9063_v28 }
0x2ebb   : > { %v14643_v38 = vpop.f32.mrf.mxu1 }
0x2ebc   : > { %v9093_v14 = vmul.f32 0.7978846, %v9088_v53  ;;  %v9084_v63 = vmul.f32 0.044715, %v9079_v26  ;;  %v9075_v32 = vmul.f32 %v9064_v31, %v9064_v31 }
0x2ebd   : > { %v9068_v45 = vpop.f32.mrf.mxu1 }
0x2ebe   : > { %15417 = vtanh.f32 %v9093_v14  ;;  %v9089_v49 = vadd.f32 %v9084_v63, %v9059_v9  ;;  %v9080_v23 = vmul.f32 %v9075_v32, %v9064_v31  ;;  %v9069_v27 = vadd.f32 %v13178_v6, %v9068_v45 }
0x2ebf   : > { %v14646_v50 = vpop.f32.mrf.mxu1 }
0x2ec0   : > { %v9094_v29 = vmul.f32 0.7978846, %v9089_v49  ;;  %v9085_v57 = vmul.f32 0.044715, %v9080_v23  ;;  %v9076_v30 = vmul.f32 %v9069_v27, %v9069_v27 }
0x2ec2   : > { %15419 = vtanh.f32 %v9094_v29  ;;  %v9090_v37 = vadd.f32 %v9085_v57, %v9064_v31  ;;  %v9081_v36 = vmul.f32 %v9076_v30, %v9069_v27  ;;  %v18126_v30 = vld [vmem:[#allocation15] ss:$0 sm:$0xff] }
0x2ec4   : > { %v9095_v59 = vmul.f32 0.7978846, %v9090_v37  ;;  %v9086_v12 = vmul.f32 0.044715, %v9081_v36  ;;  %v18128_v36 = vld [vmem:[#allocation17] ss:$0 sm:$0xff] }
0x2ec6   : > { %15421 = vtanh.f32 %v9095_v59  ;;  %v9091_v2 = vadd.f32 %v9086_v12, %v9069_v27 }
0x2ec7   : > { %v15416_v47 = vpop.eup %15415 }
0x2ec8   : > { %v9102_v44 = vadd.f32 1.0, %v15416_v47  ;;  %v9096_v7 = vmul.f32 0.7978846, %v9091_v2 }
0x2eca   : > { %v9107_v51 = vmul.f32 0.5, %v9102_v44  ;;  %15423 = vtanh.f32 %v9096_v7 }
0x2ecb   : > { %v15418_v43 = vpop.eup %15417 }
0x2ecc   : > { %v9112_v5 = vmul.f32 %v9107_v51, %v9049_v21  ;;  %v9103_v52 = vadd.f32 1.0, %v15418_v43 }
0x2ece   : > { %v9108_v56 = vmul.f32 0.5, %v9103_v52  ;;  %14652 = vmatmul.mubr.msk.f32.vlgmr.msra.gmra.mxu0 %vm2711_vm8, %v9112_v5 }
0x2ecf   : > { %v15420_v8 = vpop.eup %15419  ;;  %14654 = vmatprep.mubr.msk.f32.mxu0 %vm16172_vm0, %v16171_v0 }
0x2ed0   : > { %v9113_v10 = vmul.f32 %v9108_v56, %v9054_v18  ;;  %v9104_v54 = vadd.f32 1.0, %v15420_v8  ;;  %v13187_v18 = vld [vmem:[%s18863_s23 + $0x1] ss:$0 sm:$0xff] }
0x2ed2   : > { %v9109_v33 = vmul.f32 0.5, %v9104_v54  ;;  %14655 = vmatmul.mubr.msk.f32.gmra.mxu0 %vm2711_vm8, %v9113_v10  ;;  %v9552_v54 = vld [vmem:[%s18864_s1 + $0x38] sm:$0xff] }
0x2ed3   : > { %v15422_v46 = vpop.eup %15421  ;;  %14657 = vmatprep.mubr.msk.f32.mxu0 %vm16172_vm0, %v16171_v0  ;;  %14667 = vmatpush3.msra.mxu1 %v9552_v54 }
0x2ed4   : > { %v9114_v1 = vmul.f32 %v9109_v33, %v9059_v9  ;;  %v9105_v6 = vadd.f32 1.0, %v15422_v46  ;;  %14668 = vmatprep.subr.mxu1 %v16171_v0  ;;  %v9550_v33 = vld [vmem:[%s18864_s1 + $0x28] sm:$0xff]  ;;  %v9549_v46 = vld [vmem:[%s18864_s1 + $0x20] sm:$0xff] }
0x2ed6   : > { %v9110_v3 = vmul.f32 0.5, %v9105_v6  ;;  %14658 = vmatmul.mubr.msk.f32.gmra.mxu0 %vm2711_vm8, %v9114_v1  ;;  %v9547_v1 = vld [vmem:[%s18864_s1 + $0x10] sm:$0xff]  ;;  %v9546_v6 = vld [vmem:[%s18864_s1 + $0x8] sm:$0xff] }
0x2ed7   : > { %v15424_v21 = vpop.eup %15423  ;;  %14660 = vmatprep.mubr.msk.f32.mxu0 %vm16172_vm0, %v16171_v0 }
0x2ed8   : > { %v9115_v61 = vmul.f32 %v9110_v3, %v9064_v31  ;;  %v9106_v11 = vadd.f32 1.0, %v15424_v21  ;;  %v9545_v21 = vld [vmem:[%s18864_s1] sm:$0xff] }
0x2eda   : > { %v9111_v15 = vmul.f32 0.5, %v9106_v11  ;;  %14661 = vmatmul.mubr.msk.f32.gmra.mxu0 %vm2711_vm8, %v9115_v61 }
0x2edb   : > { %14663 = vmatprep.mubr.msk.f32.mxu0 %vm16172_vm0, %v16171_v0 }
0x2edc   : > { %v9116_v16 = vmul.f32 %v9111_v15, %v9069_v27 }
0x2ede   : > { %14664 = vmatmul.mubr.msk.f32.gmra.mxu0 %vm2711_vm8, %v9116_v16 }
0x2f8e   : > { %v9209_v62 = vpop.f32.mrf.mxu0 }
0x2f8f   : > { %v9210_v4 = vadd.f32 %v13187_v18, %v9209_v62 }
0x2f90   : > { %v14653_v39 = vpop.f32.mrf.mxu0 }
0x2f91   : > { %v18145_v10 = vadd.f32 %v9210_v4, %v18050_v42  ;;  %v9548_v42 = vld [vmem:[%s18864_s1 + $0x18] sm:$0xff] }
0x2f92   : > { %v9214_v17 = vpop.f32.mrf.mxu0 }
0x2f93   : > { %v9215_v20 = vadd.f32 %v13187_v18, %v9214_v17 }
0x2f94   : > { %v14656_v22 = vpop.f32.mrf.mxu0 }
0x2f95   : > { %v9234_v5 = vadd.f32 %v9215_v20, %v18055_v19  ;;  %v9240_v19 = vsel %vm5500_vm14, %v18145_v10, 0.0 }
0x2f96   : > { %v9219_v9 = vpop.f32.mrf.mxu0 }
0x2f97   : > { %v9220_v24 = vadd.f32 %v13187_v18, %v9219_v9  ;;  %v9243_v56 = vsel %vm5500_vm14, %v9234_v5, 0.0 }
0x2f98   : > { %v14659_v41 = vpop.f32.mrf.mxu0 }
0x2f99   : > { %v18139_v52 = vadd.f32 %v9220_v24, %v18060_v55  ;;  %v9551_v55 = vld [vmem:[%s18864_s1 + $0x30] sm:$0xff] }
0x2f9a   : > { %v9224_v25 = vpop.f32.mrf.mxu0  ;;  %14669 = vmatpush3.msra.mxu1 %v9551_v55 }
0x2f9b   : > { %v18121_v48 = vadd.f32 %v13187_v18, %v9224_v25  ;;  %v9246_v8 = vsel %vm5500_vm14, %v18139_v52, 0.0  ;;  %14670 = vmatprep.subr.mxu1 %v16171_v0 }
0x2f9c   : > { %v14662_v28 = vpop.f32.mrf.mxu0  ;;  %14671 = vmatpush3.msra.mxu1 %v9550_v33 }
0x2f9d   : > { %14672 = vmatprep.subr.mxu1 %v16171_v0  ;;  %v9236_v61 = vadd.f32 %v18121_v48, %v18065_v60 }
0x2f9e   : > { %v9229_v53 = vpop.f32.mrf.mxu0  ;;  %14673 = vmatpush3.msra.mxu1 %v9549_v46 }
0x2f9f   : > { %v9230_v26 = vadd.f32 %v13187_v18, %v9229_v53  ;;  %14674 = vmatprep.subr.mxu1 %v16171_v0  ;;  %v9249_v11 = vsel %vm5500_vm14, %v9236_v61, 0.0 }
0x2fa0   : > { %v14665_v31 = vpop.f32.mrf.mxu0  ;;  %14675 = vmatpush3.msra.mxu1 %v9548_v42 }
0x2fa1   : > { %v9237_v38 = vadd.f32 %v9230_v26, %v18070_v40  ;;  %14676 = vmatprep.subr.mxu1 %v16171_v0 }
0x2fa2   : > { %14677 = vmatpush3.msra.mxu1 %v9547_v1 }
0x2fa3   : > { %v9252_v14 = vsel %vm5500_vm14, %v9237_v38, 0.0  ;;  %14678 = vmatprep.subr.mxu1 %v16171_v0 }
0x2fa4   : > { %9253 = vadd.xlane.f32.xlu0 %v9252_v14  ;;  %14679 = vmatpush3.msra.mxu1 %v9546_v6 }
0x2fa5   : > { %14680 = vmatprep.subr.mxu1 %v16171_v0 }
0x2fa6   : > { %14681 = vmatpush3.msra.mxu1 %v9545_v21 }
0x2fa7   : > { %14696 = vmatprep.subr.mxu1 %v16171_v0 }
0x302d   : > { %v9254_v63 = vpop.xlane.xlu0 %9253 }
0x302e   : > { %v9259_v32 = vmul.f32 0.125, %v9254_v63 }
0x3030   : > { %v9264_v45 = vsub.f32 %v9237_v38, %v9259_v32 }
0x3032   : > { %v9269_v49 = vmul.f32 %v9264_v45, %v9264_v45 }
0x3034   : > { %v9282_v23 = vsel %vm5500_vm14, %v9269_v49, 0.0 }
0x3035   : > { %9283 = vadd.xlane.f32.xlu1 %v9282_v23 }
0x30be   : > { %v9284_v27 = vpop.xlane.xlu1 %9283 }
0x30bf   : > { %v9289_v50 = vmul.f32 0.125, %v9284_v27 }
0x30c1   : > { %v9294_v29 = vadd.f32 1e-06, %v9289_v50 }
0x30c3   : > { %15425 = vrsqrt.f32 %v9294_v29 }
0x30d0   : > { %v15426_v57 = vpop.eup %15425 }
0x30d1   : > { %v9304_v37 = vmul.f32 %v15426_v57, %v9264_v45 }
0x30d3   : > { %v9315_v40 = vmul.f32 %v18126_v30, %v9304_v37 }
0x30d5   : > { %v9326_v59 = vadd.f32 %v18128_v36, %v9315_v40 }
0x30d7   : > { %9331 = vst.msk [vmem:[#allocation3 + $0x20] sm:$0xff] %vm5500_vm14, %v9326_v59 }
0x30de   : > { %v9404_v12 = vld [vmem:[#allocation3 + $0x22] sm:$0x1]  ;;  %v9378_v2 = vld [vmem:[#allocation3 + $0x21] sm:$0x1]  ;;  %v9356_v47 = vld [vmem:[#allocation3 + $0x20] sm:$0x1] }
0x30df   : > { %9406 = vrot.lane.b32.xlu1 %v9404_v12, %s18669_s0  ;;  %9380 = vrot.lane.b32.xlu0 %v9378_v2, %s16174_s15  ;;  %9357 = vst.msk [vmem:[#allocation5] sm:$0x1] %vm9333_vm3, %v9356_v47  ;;  %v9430_v44 = vld [vmem:[#allocation3 + $0x23] sm:$0x1]  ;;  %v9483_v7 = vld [vmem:[#allocation3 + $0x25] sm:$0x1] }
0x30e0   : > { %v9456_v51 = vld [vmem:[#allocation3 + $0x24] sm:$0x1]  ;;  %v9510_v43 = vld [vmem:[#allocation3 + $0x26] sm:$0x1]  ;;  %s16178_s0 = smov 48  }
0x30e1   : > { %v9537_v3 = vld [vmem:[#allocation3 + $0x27] sm:$0x1] }
0x30e3   : > { %9432 = vrot.lane.b32.xlu1 %v9430_v44, %s16175_s18  ;;  %9485 = vrot.lane.b32.xlu0 %v9483_v7, %s16176_s2  ;;  %s18865_s2 = sld [smem:[#allocation98_spill]] }
0x30e7   : > { %9458 = vrot.lane.b32.xlu1 %v9456_v51, %s16177_s3  ;;  %s16179_s3 = smov 56  }
0x30e9   : > { %v9691_v53 = vld [vmem:[%s18865_s2 + $0x18] sm:$0xff]  ;;  %v9690_v14 = vld [vmem:[%s18865_s2 + $0x10] sm:$0xff]  ;;  %v9689_v32 = vld [vmem:[%s18865_s2 + $0x8] sm:$0xff] }
0x30ea   : > { %v9688_v23 = vld [vmem:[%s18865_s2] sm:$0xff] }
0x30eb   : > { %9512 = vrot.lane.b32.xlu1 %v9510_v43, %s16178_s0  ;;  %s18866_s0 = sld [smem:[#allocation99_spill]] }
0x3102   : > { %9244 = vadd.xlane.f32.xlu0 %v9243_v56 }
0x3106   : > { %9247 = vadd.xlane.f32.xlu0 %v9246_v8 }
0x310f   : > { %9241 = vadd.xlane.f32.xlu1 %v9240_v19 }
0x311c   : > { %9539 = vrot.lane.b32.xlu0 %v9537_v3, %s16179_s3  ;;  %s18867_s3 = smov %s18866_s0 }
0x313b   : > { %9250 = vadd.xlane.f32.xlu0 %v9249_v11 }
0x3151   : > { %v9407_v15 = vpop.permute.xlu1 %9406  ;;  %v9381_v16 = vpop.permute.xlu0 %9380 }
0x3152   : > { %9383 = vst.msk [vmem:[#allocation5] sm:$0x1] %vm9340_vm5, %v9381_v16 }
0x3153   : > { %9409 = vst.msk [vmem:[#allocation5] sm:$0x1] %vm9347_vm6, %v9407_v15 }
0x3155   : > { %v9433_v18 = vpop.permute.xlu1 %9432  ;;  %v9486_v4 = vpop.permute.xlu0 %9485 }
0x3156   : > { %9435 = vst.msk [vmem:[#allocation5] sm:$0x1] %vm9354_vm10, %v9433_v18 }
0x3159   : > { %v9459_v62 = vpop.permute.xlu1 %9458 }
0x315a   : > { %9462 = vst.msk [vmem:[#allocation5] sm:$0x1] %vm9461_vm13, %v9459_v62 }
0x315b   : > { %9489 = vst.msk [vmem:[#allocation5] sm:$0x1] %vm9488_vm15, %v9486_v4 }
0x315d   : > { %v9513_v60 = vpop.permute.xlu1 %9512 }
0x315e   : > { %9516 = vst.msk [vmem:[#allocation5] sm:$0x1] %vm9515_vm1, %v9513_v60 }
0x318b   : > { %v9245_v39 = vpop.xlane.xlu0 %9244 }
0x318c   : > { %v9256_v17 = vmul.f32 0.125, %v9245_v39 }
0x318e   : > { %v9261_v20 = vsub.f32 %v9234_v5, %v9256_v17 }
0x318f   : > { %v9248_v22 = vpop.xlane.xlu0 %9247 }
0x3190   : > { %v9266_v9 = vmul.f32 %v9261_v20, %v9261_v20  ;;  %v9257_v25 = vmul.f32 0.125, %v9248_v22 }
0x3192   : > { %v9273_v24 = vsel %vm5500_vm14, %v9266_v9, 0.0  ;;  %v9262_v26 = vsub.f32 %v18139_v52, %v9257_v25 }
0x3193   : > { %9274 = vadd.xlane.f32.xlu0 %v9273_v24  ;;  %v9540_v41 = vpop.permute.xlu0 %9539  ;;  %v9553_v24 = vld [vmem:[#allocation18] sm:$0x1] }
0x3194   : > { %9543 = vst.msk [vmem:[#allocation5] sm:$0x1] %vm9542_vm2, %v9540_v41  ;;  %v9267_v49 = vmul.f32 %v9262_v26, %v9262_v26 }
0x3196   : > { %v9276_v27 = vsel %vm5500_vm14, %v9267_v49, 0.0 }
0x3198   : > { %v9242_v48 = vpop.xlane.xlu1 %9241 }
0x3199   : > { %v9255_v28 = vmul.f32 0.125, %v9242_v48 }
0x319b   : > { %v9260_v31 = vsub.f32 %v18145_v10, %v9255_v28  ;;  %v9544_v38 = vld [vmem:[#allocation5] sm:$0x1] }
0x319c   : > { %14683 = vmatmul.mubr.msk.f32.vlgmr.msra.gmra.mxu1 %vm3560_vm12, %v9544_v38  ;;  %v13201_v28 = vld [vmem:[%s18866_s0] ss:$0 sm:$0xff]  ;;  %s18868_s0 = smov 16  }
0x319d   : > { %14697 = vmatpush3.msra.mxu1 %v9691_v53  ;;  %v9265_v63 = vmul.f32 %v9260_v31, %v9260_v31  ;;  %14704 = vmatprep.mubr.msk.f32.mxu1 %vm16172_vm0, %v16171_v0 }
0x319e   : > { %14698 = vmatprep.subr.mxu1 %v16171_v0 }
0x319f   : > { %14699 = vmatpush3.msra.mxu1 %v9690_v14  ;;  %v9270_v45 = vsel %vm5500_vm14, %v9265_v63, 0.0 }
0x31a0   : > { %14700 = vmatprep.subr.mxu1 %v16171_v0  ;;  %9271 = vadd.xlane.f32.xlu1 %v9270_v45 }
0x31a1   : > { %14701 = vmatpush3.msra.mxu1 %v9689_v32 }
0x31a2   : > { %14702 = vmatprep.subr.mxu1 %v16171_v0 }
0x31a3   : > { %14703 = vmatpush3.msra.mxu1 %v9688_v23 }
0x31a4   : > { %14705 = vmatmul.mubr.msk.f32.vlgmr.msra.gmra.mxu1 %vm2485_vm7, %v16808_v35  ;;  %9277 = vadd.xlane.f32.xlu1 %v9276_v27 }
0x31c4   : > { %v9251_v50 = vpop.xlane.xlu0 %9250 }
0x31c5   : > { %v9258_v29 = vmul.f32 0.125, %v9251_v50 }
0x31c7   : > { %v18188_v57 = vsub.f32 %v9236_v61, %v9258_v29 }
0x31c9   : > { %v9268_v37 = vmul.f32 %v18188_v57, %v18188_v57 }
0x31cb   : > { %v9279_v40 = vsel %vm5500_vm14, %v9268_v37, 0.0 }
0x31cc   : > { %9280 = vadd.xlane.f32.xlu0 %v9279_v40 }
0x321c   : > { %v9275_v59 = vpop.xlane.xlu0 %9274 }
0x321d   : > { %v9286_v12 = vmul.f32 0.125, %v9275_v59 }
0x321f   : > { %v9291_v2 = vadd.f32 1e-06, %v9286_v12 }
0x3221   : > { %15427 = vrsqrt.f32 %v9291_v2 }
0x3229   : > { %v9272_v47 = vpop.xlane.xlu1 %9271 }
0x322a   : > { %v9285_v44 = vmul.f32 0.125, %v9272_v47 }
0x322c   : > { %v9290_v7 = vadd.f32 1e-06, %v9285_v44 }
0x322d   : > { %v9278_v51 = vpop.xlane.xlu1 %9277 }
0x322e   : > { %v15428_v43 = vpop.eup %15427  ;;  %15429 = vrsqrt.f32 %v9290_v7  ;;  %v9287_v5 = vmul.f32 0.125, %v9278_v51 }
0x322f   : > { %v9301_v52 = vmul.f32 %v15428_v43, %v9261_v20 }
0x3230   : > { %v9292_v56 = vadd.f32 1e-06, %v9287_v5 }
0x3231   : > { %v9312_v8 = vmul.f32 %v18126_v30, %v9301_v52 }
0x3232   : > { %15431 = vrsqrt.f32 %v9292_v56 }
0x3233   : > { %v9323_v10 = vadd.f32 %v18128_v36, %v9312_v8 }
0x3235   : > { %9328 = vst.msk [vmem:[#allocation3 + $0x8] sm:$0xff] %vm5500_vm14, %v9323_v10 }
0x323b   : > { %v15430_v54 = vpop.eup %15429 }
0x323c   : > { %v9300_v19 = vmul.f32 %v15430_v54, %v9260_v31  ;;  %v9384_v33 = vld [vmem:[#allocation3 + $0x8] sm:$0x1]  ;;  %v9410_v46 = vld [vmem:[#allocation3 + $0xc] sm:$0x1]  ;;  %v9386_v62 = vld [vmem:[#allocation3 + $0x9] sm:$0x1] }
0x323d   : > { %9385 = vst.msk [vmem:[#allocation4 + $0x2] sm:$0x1] %vm9333_vm3, %v9384_v33  ;;  %9411 = vst.msk [vmem:[#allocation4 + $0x3] sm:$0x1] %vm9333_vm3, %v9410_v46  ;;  %v9412_v39 = vld [vmem:[#allocation3 + $0xd] sm:$0x1] }
0x323e   : > { %v9311_v55 = vmul.f32 %v18126_v30, %v9300_v19  ;;  %v9424_v47 = vld [vmem:[#allocation3 + $0xf] sm:$0x1]  ;;  %v9398_v44 = vld [vmem:[#allocation3 + $0xb] sm:$0x1] }
0x323f   : > { %v15432_v42 = vpop.eup %15431 }
0x3240   : > { %v9322_v1 = vadd.f32 %v18128_v36, %v9311_v55  ;;  %v9302_v6 = vmul.f32 %v15432_v42, %v9262_v26 }
0x3242   : > { %9327 = vst.msk [vmem:[#allocation3] sm:$0xff] %vm5500_vm14, %v9322_v1  ;;  %v9313_v3 = vmul.f32 %v18126_v30, %v9302_v6 }
0x3244   : > { %v9324_v21 = vadd.f32 %v18128_v36, %v9313_v3 }
0x3246   : > { %9329 = vst.msk [vmem:[#allocation3 + $0x10] sm:$0xff] %vm5500_vm14, %v9324_v21 }
0x3249   : > { %v9335_v61 = vld [vmem:[#allocation3 + $0x1] sm:$0x1]  ;;  %v9360_v11 = vld [vmem:[#allocation3 + $0x5] sm:$0x1]  ;;  %v9332_v15 = vld [vmem:[#allocation3] sm:$0x1] }
0x324a   : > { %9337 = vrot.lane.b32.xlu1 %v9335_v61, %s16174_s15  ;;  %9362 = vrot.lane.b32.xlu0 %v9360_v11, %s16174_s15  ;;  %v9358_v16 = vld [vmem:[#allocation3 + $0x4] sm:$0x1]  ;;  %9334 = vst.msk [vmem:[#allocation4] sm:$0x1] %vm9333_vm3, %v9332_v15  ;;  %v9366_v50 = vld [vmem:[#allocation3 + $0x6] sm:$0x1] }
0x324b   : > { %9359 = vst.msk [vmem:[#allocation4 + $0x1] sm:$0x1] %vm9333_vm3, %v9358_v16  ;;  %v9342_v29 = vld [vmem:[#allocation3 + $0x2] sm:$0x1]  ;;  %v9372_v12 = vld [vmem:[#allocation3 + $0x7] sm:$0x1] }
0x324c   : > { %v9349_v2 = vld [vmem:[#allocation3 + $0x3] sm:$0x1] }
0x324d   : > { %v9465_v18 = vld [vmem:[#allocation3 + $0x15] sm:$0x1]  ;;  %v9463_v4 = vld [vmem:[#allocation3 + $0x14] sm:$0x1]  ;;  %v9436_v60 = vld [vmem:[#allocation3 + $0x10] sm:$0x1] }
0x324e   : > { %9467 = vrot.lane.b32.xlu0 %v9465_v18, %s16174_s15  ;;  %9388 = vrot.lane.b32.xlu1 %v9386_v62, %s16174_s15  ;;  %9464 = vst.msk [vmem:[#allocation4 + $0x5] sm:$0x1] %vm9333_vm3, %v9463_v4  ;;  %9437 = vst.msk [vmem:[#allocation4 + $0x4] sm:$0x1] %vm9333_vm3, %v9436_v60  ;;  %v9438_v20 = vld [vmem:[#allocation3 + $0x11] sm:$0x1] }
0x324f   : > { %v9444_v37 = vld [vmem:[#allocation3 + $0x12] sm:$0x1]  ;;  %v9477_v7 = vld [vmem:[#allocation3 + $0x17] sm:$0x1]  ;;  %v9450_v51 = vld [vmem:[#allocation3 + $0x13] sm:$0x1] }
0x3252   : > { %9414 = vrot.lane.b32.xlu1 %v9412_v39, %s16174_s15 }
0x3255   : > { %v9281_v17 = vpop.xlane.xlu0 %9280 }
0x3256   : > { %v9288_v22 = vmul.f32 0.125, %v9281_v17  ;;  %9440 = vrot.lane.b32.xlu1 %v9438_v20, %s16174_s15 }
0x3258   : > { %v9293_v9 = vadd.f32 1e-06, %v9288_v22 }
0x325a   : > { %15433 = vrsqrt.f32 %v9293_v9 }
0x325c   : > { %v9623_v41 = vpop.f32.mrf.mxu1 }
0x325d   : > { %v9624_v25 = vadd.f32 %v9623_v41, %v9553_v24 }
0x325e   : > { %v14684_v48 = vpop.f32.mrf.mxu1 }
0x325f   : > { %9627 = vst.msk [vmem:[#allocation4 + $0x8] sm:$0x1] %vm2410_vm4, %v9624_v25 }
0x3264   : > { %v9872_v53 = vpop.f32.mrf.mxu1 }
0x3265   : > { %v9873_v26 = vadd.f32 %v13201_v28, %v9872_v53 }
0x3266   : > { %v14706_v31 = vpop.f32.mrf.mxu1  ;;  %v9629_v52 = vld [vmem:[#allocation4 + $0x8] sm:$0x1] }
0x3267   : > { %v15434_v38 = vpop.eup %15433  ;;  %14718 = vmatprep.subr.msk.mxu1 %vm2711_vm8, %v9873_v26 }
0x3268   : > { %v9303_v14 = vmul.f32 %v15434_v38, %v18188_v57  ;;  %14719 = vmatpush3.xpose.msk.msra.mxu1 %vm2711_vm8, %v9873_v26  ;;  %v9471_v57 = vld [vmem:[#allocation3 + $0x16] sm:$0x1] }
0x326a   : > { %v9314_v63 = vmul.f32 %v18126_v30, %v9303_v14  ;;  %v9418_v30 = vld [vmem:[#allocation3 + $0xe] sm:$0x1] }
0x326c   : > { %v9325_v32 = vadd.f32 %v18128_v36, %v9314_v63  ;;  %v9392_v36 = vld [vmem:[#allocation3 + $0xa] sm:$0x1] }
0x326e   : > { %9330 = vst.msk [vmem:[#allocation3 + $0x18] sm:$0xff] %vm5500_vm14, %v9325_v32  ;;  %vm10039_vm14 = vcmask 49152  }
0x3275   : > { %v9519_v45 = vld [vmem:[#allocation3 + $0x1d] sm:$0x1]  ;;  %v9492_v49 = vld [vmem:[#allocation3 + $0x19] sm:$0x1]  ;;  %v9490_v23 = vld [vmem:[#allocation3 + $0x18] sm:$0x1] }
0x3276   : > { %9521 = vrot.lane.b32.xlu0 %v9519_v45, %s16174_s15  ;;  %9494 = vrot.lane.b32.xlu1 %v9492_v49, %s16174_s15  ;;  %v9517_v27 = vld [vmem:[#allocation3 + $0x1c] sm:$0x1]  ;;  %9491 = vst.msk [vmem:[#allocation4 + $0x6] sm:$0x1] %vm9333_vm3, %v9490_v23  ;;  %v9525_v40 = vld [vmem:[#allocation3 + $0x1e] sm:$0x1] }
0x3277   : > { %9518 = vst.msk [vmem:[#allocation4 + $0x7] sm:$0x1] %vm9333_vm3, %v9517_v27  ;;  %v9498_v59 = vld [vmem:[#allocation3 + $0x1a] sm:$0x1]  ;;  %s18869_s15 = sld [smem:[#allocation91_spill]] }
0x3278   : > { %v9531_v43 = vld [vmem:[#allocation3 + $0x1f] sm:$0x1]  ;;  %v9504_v5 = vld [vmem:[#allocation3 + $0x1b] sm:$0x1] }
0x327a   : > { %9368 = vrot.lane.b32.xlu0 %v9366_v50, %s18868_s0  ;;  %9344 = vrot.lane.b32.xlu1 %v9342_v29, %s18868_s0 }
0x327d   : > { %s18870_s1 = smov %s18869_s15  ;;  %v9631_v56 = vld [vmem:[%s18869_s15 + $0x8] sm:$0x1]  ;;  %s18875_s15 = sld [smem:[#allocation95_spill]] }
0x327e   : > { %9420 = vrot.lane.b32.xlu0 %v9418_v30, %s18868_s0  ;;  %9394 = vrot.lane.b32.xlu1 %v9392_v36, %s18868_s0  ;;  %v18243_v8 = vadd.f32 %v9631_v56, %v9629_v52  ;;  %v9630_v41 = vld [vmem:[%s18870_s1] sm:$0xff] }
0x3280   : > { %v9639_v10 = vsel %vm2410_vm4, %v18243_v8, 0.0 }
0x3282   : > { %9473 = vrot.lane.b32.xlu0 %v9471_v57, %s18868_s0  ;;  %9446 = vrot.lane.b32.xlu1 %v9444_v37, %s18868_s0 }
0x3283   : > { %s18876_s5 = smov %s18875_s15 }
0x3286   : > { %9527 = vrot.lane.b32.xlu0 %v9525_v40, %s18868_s0  ;;  %9500 = vrot.lane.b32.xlu1 %v9498_v59, %s18868_s0  ;;  %s18873_s0 = sld [smem:[#allocation94_spill]] }
0x328a   : > { %9374 = vrot.lane.b32.xlu0 %v9372_v12, %s16175_s18  ;;  %9351 = vrot.lane.b32.xlu1 %v9349_v2, %s16175_s18 }
0x328c   : > { %s18874_s1 = smov %s18873_s0 }
0x328e   : > { %9426 = vrot.lane.b32.xlu0 %v9424_v47, %s16175_s18  ;;  %9400 = vrot.lane.b32.xlu1 %v9398_v44, %s16175_s18  ;;  %v13196_v47 = vld [vmem:[%s18873_s0] ss:$0 sm:$0xff]  ;;  %s18880_s0 = sld [smem:[#allocation101_spill]] }
0x3292   : > { %9479 = vrot.lane.b32.xlu0 %v9477_v7, %s16175_s18  ;;  %9452 = vrot.lane.b32.xlu1 %v9450_v51, %s16175_s18  ;;  %v13197_v7 = vld [vmem:[%s18875_s15] ss:$0 sm:$0xff]  ;;  %s18882_s15 = sld [smem:[#allocation102_spill]] }
0x3294   : > { %s18881_s9 = smov %s18880_s0 }
0x3296   : > { %9533 = vrot.lane.b32.xlu0 %v9531_v43, %s16175_s18  ;;  %9506 = vrot.lane.b32.xlu1 %v9504_v5, %s16175_s18  ;;  %s18871_s18 = sld [smem:[#allocation96_spill]] }
0x3298   : > { %s18883_s10 = smov %s18882_s15 }
0x329c   : > { %s18872_s4 = smov %s18871_s18  ;;  %v9681_v27 = vld [vmem:[%s18871_s18 + $0x18] sm:$0xff]  ;;  %s18877_s18 = sld [smem:[#allocation100_spill]] }
0x329d   : > { %v9680_v50 = vld [vmem:[%s18872_s4 + $0x10] sm:$0xff]  ;;  %14685 = vmatprep.subr.mxu0 %v9681_v27  ;;  %v9679_v29 = vld [vmem:[%s18872_s4 + $0x8] sm:$0xff]  ;;  %v9678_v30 = vld [vmem:[%s18872_s4] sm:$0xff] }
0x329e   : > { %14686 = vmatpush3.msra.mxu0 %v9681_v27 }
0x329f   : > { %14687 = vmatprep.subr.mxu0 %v9680_v50 }
0x32a0   : > { %14688 = vmatpush3.msra.mxu0 %v9680_v50 }
0x32a1   : > { %14689 = vmatprep.subr.mxu0 %v9679_v29 }
0x32a2   : > { %14690 = vmatpush3.msra.mxu0 %v9679_v29  ;;  %s18878_s6 = smov %s18877_s18 }
0x32a3   : > { %14691 = vmatprep.subr.mxu0 %v9678_v30 }
0x32a4   : > { %14692 = vmatpush3.msra.mxu0 %v9678_v30 }
0x32a5   : > { %14707 = vmatprep.subr.mxu0 %v16171_v0 }
0x32b5   : > { %9640 = vadd.xlane.f32.xlu0 %v9639_v10 }
0x32bc   : > { %v9338_v54 = vpop.permute.xlu1 %9337  ;;  %v9363_v19 = vpop.permute.xlu0 %9362 }
0x32bd   : > { %9341 = vst.msk [vmem:[#allocation4] sm:$0x1] %vm9340_vm5, %v9338_v54  ;;  %9365 = vst.msk [vmem:[#allocation4 + $0x1] sm:$0x1] %vm9340_vm5, %v9363_v19  ;;  %v9701_v54 = vld [vmem:[%s18877_s18 + $0x18] sm:$0xff]  ;;  %v9700_v19 = vld [vmem:[%s18878_s6 + $0x10] sm:$0xff] }
0x32be   : > { %s18884_s18 = sld [smem:[#allocation105_spill]] }
0x32c0   : > { %v9389_v55 = vpop.permute.xlu1 %9388  ;;  %v9468_v33 = vpop.permute.xlu0 %9467 }
0x32c1   : > { %9391 = vst.msk [vmem:[#allocation4 + $0x2] sm:$0x1] %vm9340_vm5, %v9389_v55  ;;  %9470 = vst.msk [vmem:[#allocation4 + $0x5] sm:$0x1] %vm9340_vm5, %v9468_v33  ;;  %v9699_v55 = vld [vmem:[%s18878_s6 + $0x8] sm:$0xff]  ;;  %v9698_v33 = vld [vmem:[%s18878_s6] sm:$0xff] }
0x32c4   : > { %v9415_v46 = vpop.permute.xlu1 %9414  ;;  %s18885_s11 = smov %s18884_s18 }
0x32c5   : > { %9417 = vst.msk [vmem:[#allocation4 + $0x3] sm:$0x1] %vm9340_vm5, %v9415_v46  ;;  %v9685_v46 = vld [vmem:[%s18872_s4 + $0x38] sm:$0xff] }
0x32c6   : > { %14728 = vmatprep.subr.mxu1 %v9685_v46 }
0x32c8   : > { %v9441_v42 = vpop.permute.xlu1 %9440 }
0x32c9   : > { %9443 = vst.msk [vmem:[#allocation4 + $0x4] sm:$0x1] %vm9340_vm5, %v9441_v42 }
0x32e8   : > { %v9495_v1 = vpop.permute.xlu1 %9494  ;;  %v9522_v6 = vpop.permute.xlu0 %9521 }
0x32e9   : > { %9497 = vst.msk [vmem:[#allocation4 + $0x6] sm:$0x1] %vm9340_vm5, %v9495_v1  ;;  %9524 = vst.msk [vmem:[#allocation4 + $0x7] sm:$0x1] %vm9340_vm5, %v9522_v6  ;;  %v13198_v1 = vld [vmem:[%s18879_s8] ss:$0 sm:$0xff] }
0x32ec   : > { %v9345_v3 = vpop.permute.xlu1 %9344  ;;  %v9369_v21 = vpop.permute.xlu0 %9368 }
0x32ed   : > { %9348 = vst.msk [vmem:[#allocation4] sm:$0x1] %vm9347_vm6, %v9345_v3  ;;  %9371 = vst.msk [vmem:[#allocation4 + $0x1] sm:$0x1] %vm9347_vm6, %v9369_v21 }
0x32f0   : > { %v9395_v61 = vpop.permute.xlu1 %9394  ;;  %v9421_v11 = vpop.permute.xlu0 %9420 }
0x32f1   : > { %9397 = vst.msk [vmem:[#allocation4 + $0x2] sm:$0x1] %vm9347_vm6, %v9395_v61  ;;  %9423 = vst.msk [vmem:[#allocation4 + $0x3] sm:$0x1] %vm9347_vm6, %v9421_v11  ;;  %v9684_v61 = vld [vmem:[%s18872_s4 + $0x30] sm:$0xff] }
0x32f2   : > { %v13203_v11 = vld [vmem:[%s18880_s0] ss:$0 sm:$0xff]  ;;  %s18886_s0 = sld [smem:[#allocation107_spill]] }
0x32f4   : > { %v9447_v15 = vpop.permute.xlu1 %9446  ;;  %v9474_v16 = vpop.permute.xlu0 %9473 }
0x32f5   : > { %9449 = vst.msk [vmem:[#allocation4 + $0x4] sm:$0x1] %vm9347_vm6, %v9447_v15  ;;  %9476 = vst.msk [vmem:[#allocation4 + $0x5] sm:$0x1] %vm9347_vm6, %v9474_v16  ;;  %v9683_v15 = vld [vmem:[%s18872_s4 + $0x28] sm:$0xff] }
0x32f8   : > { %v9501_v18 = vpop.permute.xlu1 %9500  ;;  %v9528_v62 = vpop.permute.xlu0 %9527  ;;  %s18887_s12 = smov %s18886_s0 }
0x32f9   : > { %9503 = vst.msk [vmem:[#allocation4 + $0x6] sm:$0x1] %vm9347_vm6, %v9501_v18  ;;  %9530 = vst.msk [vmem:[#allocation4 + $0x7] sm:$0x1] %vm9347_vm6, %v9528_v62  ;;  %v9682_v62 = vld [vmem:[%s18872_s4 + $0x20] sm:$0xff] }
0x32fc   : > { %v9352_v4 = vpop.permute.xlu1 %9351  ;;  %v9375_v60 = vpop.permute.xlu0 %9374 }
0x32fd   : > { %9355 = vst.msk [vmem:[#allocation4] sm:$0x1] %vm9354_vm10, %v9352_v4  ;;  %9377 = vst.msk [vmem:[#allocation4 + $0x1] sm:$0x1] %vm9354_vm10, %v9375_v60  ;;  %v9705_v60 = vld [vmem:[%s18878_s6 + $0x38] sm:$0xff] }
0x3300   : > { %v9401_v39 = vpop.permute.xlu1 %9400  ;;  %v9427_v17 = vpop.permute.xlu0 %9426 }
0x3301   : > { %9403 = vst.msk [vmem:[#allocation4 + $0x2] sm:$0x1] %vm9354_vm10, %v9401_v39  ;;  %9429 = vst.msk [vmem:[#allocation4 + $0x3] sm:$0x1] %vm9354_vm10, %v9427_v17  ;;  %v9704_v39 = vld [vmem:[%s18878_s6 + $0x30] sm:$0xff]  ;;  %v9703_v17 = vld [vmem:[%s18878_s6 + $0x28] sm:$0xff] }
0x3304   : > { %v9453_v20 = vpop.permute.xlu1 %9452  ;;  %v9480_v22 = vpop.permute.xlu0 %9479 }
0x3305   : > { %9455 = vst.msk [vmem:[#allocation4 + $0x4] sm:$0x1] %vm9354_vm10, %v9453_v20  ;;  %9482 = vst.msk [vmem:[#allocation4 + $0x5] sm:$0x1] %vm9354_vm10, %v9480_v22  ;;  %v9702_v20 = vld [vmem:[%s18878_s6 + $0x20] sm:$0xff] }
0x3308   : > { %v9507_v9 = vpop.permute.xlu1 %9506  ;;  %v9534_v24 = vpop.permute.xlu0 %9533 }
0x3309   : > { %9509 = vst.msk [vmem:[#allocation4 + $0x6] sm:$0x1] %vm9354_vm10, %v9507_v9  ;;  %9536 = vst.msk [vmem:[#allocation4 + $0x7] sm:$0x1] %vm9354_vm10, %v9534_v24 }
0x3310   : > { %v9628_v25 = vld [vmem:[#allocation4] sm:$0xff] }
0x3311   : > { %v18272_v48 = vadd.f32 %v9630_v41, %v9628_v25  ;;  %v13211_v25 = vld [vmem:[%s18879_s8 + $0x1] ss:$0 sm:$0xff] }
0x3313   : > { %v9636_v28 = vsel %vm2485_vm7, %v18272_v48, 0.0 }
0x3314   : > { %9637 = vadd.xlane.f32.xlu1 %v9636_v28 }
0x333e   : > { %v9641_v53 = vpop.xlane.xlu0 %9640 }
0x333f   : > { %v9643_v26 = vmul.f32 0.03125, %v9641_v53 }
0x3341   : > { %v9645_v14 = vsub.f32 %v18243_v8, %v9643_v26 }
0x3343   : > { %v9647_v49 = vmul.f32 %v9645_v14, %v9645_v14 }
0x3345   : > { %v9651_v23 = vsel %vm2410_vm4, %v9647_v49, 0.0 }
0x339d   : > { %v9638_v31 = vpop.xlane.xlu1 %9637 }
0x339e   : > { %v9642_v38 = vmul.f32 0.03125, %v9638_v31 }
0x33a0   : > { %v9644_v63 = vsub.f32 %v18272_v48, %v9642_v38 }
0x33a2   : > { %v9646_v32 = vmul.f32 %v9644_v63, %v9644_v63 }
0x33a4   : > { %v9648_v45 = vsel %vm2485_vm7, %v9646_v32, 0.0 }
0x33a5   : > { %9649 = vadd.xlane.f32.xlu0 %v9648_v45 }
0x33a9   : > { %9652 = vadd.xlane.f32.xlu0 %v9651_v23 }
0x342e   : > { %v9650_v36 = vpop.xlane.xlu0 %9649 }
0x342f   : > { %v9654_v57 = vmul.f32 0.03125, %v9650_v36 }
0x3431   : > { %v9656_v37 = vadd.f32 1e-06, %v9654_v57 }
0x3432   : > { %v9653_v40 = vpop.xlane.xlu0 %9652 }
0x3433   : > { %15435 = vrsqrt.f32 %v9656_v37  ;;  %v9655_v59 = vmul.f32 0.03125, %v9653_v40 }
0x3435   : > { %v9657_v12 = vadd.f32 1e-06, %v9655_v59 }
0x3437   : > { %15437 = vrsqrt.f32 %v9657_v12 }
0x3440   : > { %v15436_v2 = vpop.eup %15435 }
0x3441   : > { %v9660_v44 = vmul.f32 %v15436_v2, %v9644_v63  ;;  %v9695_v2 = vld [vmem:[%s18865_s2 + $0x38] sm:$0xff] }
0x3443   : > { %v9668_v51 = vmul.f32 %v13196_v47, %v9660_v44  ;;  %v9693_v44 = vld [vmem:[%s18865_s2 + $0x28] sm:$0xff] }
0x3444   : > { %v15438_v43 = vpop.eup %15437 }
0x3445   : > { %v9661_v5 = vmul.f32 %v15438_v43, %v9645_v14  ;;  %v9676_v52 = vadd.f32 %v13197_v7, %v9668_v51 }
0x3447   : > { %v9669_v56 = vmul.f32 %v13196_v47, %v9661_v5  ;;  %14693 = vmatprep.mubr.msk.f32.mxu0 %vm2485_vm7, %v9676_v52  ;;  %v9694_v47 = vld [vmem:[%s18865_s2 + $0x30] sm:$0xff] }
0x3449   : > { %v9677_v10 = vadd.f32 %v13197_v7, %v9669_v56  ;;  %v9692_v7 = vld [vmem:[%s18865_s2 + $0x20] sm:$0xff] }
0x344a   : > { %v13216_v56 = vld [vmem:[%s18881_s9 + $0x1] ss:$0 sm:$0xff] }
0x344b   : > { %14694 = vmatmul.mubr.msk.f32.vlgmr.msra.gmra.mxu0 %vm2485_vm7, %v9677_v10 }
0x344c   : > { %14708 = vmatpush3.msra.mxu0 %v9701_v54  ;;  %14715 = vmatprep.mubr.msk.f32.mxu0 %vm16172_vm0, %v16171_v0 }
0x344d   : > { %14709 = vmatprep.subr.mxu0 %v16171_v0 }
0x344e   : > { %14710 = vmatpush3.msra.mxu0 %v9700_v19 }
0x344f   : > { %14711 = vmatprep.subr.mxu0 %v16171_v0 }
0x3450   : > { %14712 = vmatpush3.msra.mxu0 %v9699_v55 }
0x3451   : > { %14713 = vmatprep.subr.mxu0 %v16171_v0 }
0x3452   : > { %14714 = vmatpush3.msra.mxu0 %v9698_v33 }
0x3453   : > { %14716 = vmatmul.mubr.msk.f32.vlgmr.msra.gmra.mxu0 %vm2485_vm7, %v16808_v35 }
0x350b   : > { %v14695_v42 = vpop.f32.mrf.mxu0 }
0x350c   : > { %v9797_v21 = vadd.f32 %v14695_v42, %v13198_v1 }
0x350d   : > { %v9791_v6 = vpop.f32.mrf.mxu0 }
0x350e   : > { %v9792_v3 = vadd.f32 %v13198_v1, %v9791_v6 }
0x3510   : > { %14720 = vmatprep.mubr.msk.f32.mxu1 %vm2711_vm8, %v9792_v3 }
0x3511   : > { %14721 = vmatmul.mubr.msk.f32.vlgmr.msra.gmra.mxu1 %vm2711_vm8, %v9797_v21 }
0x3512   : > { %14729 = vmatpush3.msra.mxu1 %v9685_v46  ;;  %14736 = vmatprep.mubr.msk.f32.mxu1 %vm2485_vm7, %v9676_v52  ;;  %v13214_v52 = vld [vmem:[%s18867_s3 + $0x1] ss:$0 sm:$0xff] }
0x3513   : > { %v9948_v16 = vpop.f32.mrf.mxu0  ;;  %14730 = vmatprep.subr.mxu1 %v9684_v61 }
0x3514   : > { %v9949_v18 = vadd.f32 %v13203_v11, %v9948_v16  ;;  %14731 = vmatpush3.msra.mxu1 %v9684_v61 }
0x3515   : > { %v14717_v4 = vpop.f32.mrf.mxu0  ;;  %14732 = vmatprep.subr.mxu1 %v9683_v15 }
0x3516   : > { %14723 = vmatprep.subr.msk.mxu0 %vm2804_vm9, %v9949_v18  ;;  %14733 = vmatpush3.msra.mxu1 %v9683_v15  ;;  %v9709_v4 = vld [vmem:[%s18882_s15 + $0x8] sm:$0xff]  ;;  %s2305_s15 = sand.u32 1, %s16071_s16  }
0x3517   : > { %14724 = vmatpush3.msk.msra.mxu0 %vm2804_vm9, %v9949_v18  ;;  %14734 = vmatprep.subr.mxu1 %v9682_v62 }
0x3518   : > { %14735 = vmatpush3.msra.mxu1 %v9682_v62  ;;  %14739 = vmatprep.subr.mxu0 %v16171_v0 }
0x3519   : > { %14737 = vmatmul.mubr.msk.f32.vlgmr.msra.gmra.mxu1 %vm2485_vm7, %v9677_v10  ;;  %14750 = vmatprep.subr.mxu1 %v16171_v0 }
0x351a   : > { %14751 = vmatpush3.msra.mxu1 %v9705_v60  ;;  %14758 = vmatprep.mubr.msk.f32.mxu1 %vm16172_vm0, %v16171_v0 }
0x351b   : > { %14752 = vmatprep.subr.mxu1 %v16171_v0 }
0x351c   : > { %14753 = vmatpush3.msra.mxu1 %v9704_v39 }
0x351d   : > { %14754 = vmatprep.subr.mxu1 %v16171_v0 }
0x351e   : > { %14755 = vmatpush3.msra.mxu1 %v9703_v17 }
0x351f   : > { %14756 = vmatprep.subr.mxu1 %v16171_v0 }
0x3520   : > { %14757 = vmatpush3.msra.mxu1 %v9702_v20 }
0x3521   : > { %14759 = vmatmul.mubr.msk.f32.vlgmr.msra.gmra.mxu1 %vm2485_vm7, %v16808_v35 }
0x35d1   : > { %v14722_v22 = vpop.f32.mrf.mxu1 }
0x35d2   : > { %v10040_v9 = vsel %vm10039_vm14, %v14722_v22, -inf }
0x35d3   : > { %10041 = vmax.xlane.f32.xlu0 %v10040_v9  ;;  %v10027_v24 = vpop.f32.mrf.mxu1 }
0x35d4   : > { %v10036_v41 = vsel %vm2800_vm11, %v10027_v24, -inf }
0x35d5   : > { %10037 = vmax.xlane.f32.xlu1 %v10036_v41  ;;  %v9711_v41 = vld [vmem:[%s18883_s10 + $0x18] sm:$0xff] }
0x35d6   : > { %14771 = vmatprep.subr.mxu1 %v9711_v41 }
0x35d7   : > { %14772 = vmatpush3.msra.mxu1 %v9711_v41 }
0x35d9   : > { %v14738_v28 = vpop.f32.mrf.mxu1 }
0x35da   : > { %v10221_v53 = vadd.f32 %v14738_v28, %v13211_v25 }
0x35db   : > { %v10215_v26 = vpop.f32.mrf.mxu1 }
0x35dc   : > { %v10216_v51 = vadd.f32 %v13211_v25, %v10215_v26  ;;  %v9710_v25 = vld [vmem:[%s18883_s10 + $0x10] sm:$0xff] }
0x35dd   : > { %14773 = vmatprep.subr.mxu1 %v9710_v25 }
0x35de   : > { %14774 = vmatpush3.msra.mxu1 %v9710_v25 }
0x35e1   : > { %v10372_v31 = vpop.f32.mrf.mxu1 }
0x35e2   : > { %v10373_v55 = vadd.f32 %v13216_v56, %v10372_v31  ;;  %v13228_v31 = vld [vmem:[#allocation23] ss:$0 sm:$0xff] }
0x35e3   : > { %v14760_v38 = vpop.f32.mrf.mxu1 }
0x365c   : > { %v10042_v14 = vpop.xlane.xlu0 %10041 }
0x365d   : > { %v10044_v63 = vsub.f32 %v14722_v22, %v10042_v14 }
0x365e   : > { %v10038_v32 = vpop.xlane.xlu1 %10037 }
0x365f   : > { %v10047_v45 = vmul.f32 1.442695, %v10044_v63  ;;  %v10043_v49 = vsub.f32 %v10027_v24, %v10038_v32  ;;  %v9708_v24 = vld [vmem:[%s18883_s10] sm:$0xff] }
0x3661   : > { %15439 = vpow2.f32 %v10047_v45  ;;  %v10045_v23 = vmul.f32 1.442695, %v10043_v49 }
0x3663   : > { %15441 = vpow2.f32 %v10045_v23 }
0x366e   : > { %v15440_v27 = vpop.eup %15439 }
0x366f   : > { %v10052_v50 = vsel %vm10039_vm14, %v15440_v27, 0.0 }
0x3670   : > { %v15442_v29 = vpop.eup %15441  ;;  %10053 = vadd.xlane.f32.xlu0 %v10052_v50 }
0x3671   : > { %v10049_v30 = vsel %vm2800_vm11, %v15442_v29, 0.0 }
0x3672   : > { %10050 = vadd.xlane.f32.xlu1 %v10049_v30 }
0x36f9   : > { %v10054_v36 = vpop.xlane.xlu0 %10053 }
0x36fa   : > { %15443 = vrcp.f32 %v10054_v36 }
0x36fb   : > { %v10051_v57 = vpop.xlane.xlu1 %10050 }
0x36fc   : > { %15445 = vrcp.f32 %v10051_v57 }
0x3707   : > { %v15444_v37 = vpop.eup %15443 }
0x3708   : > { %v10058_v12 = vmul.f32 %v15444_v37, %v15440_v27 }
0x3709   : > { %v15446_v40 = vpop.eup %15445 }
0x370a   : > { %v10056_v59 = vmul.f32 %v15446_v40, %v15442_v29 }
0x370c   : > { %14725 = vmatprep.mubr.msk.f32.mxu0 %vm2800_vm11, %v10056_v59 }
0x370d   : > { %14726 = vmatmul.mubr.msk.f32.vlgmr.msra.gmra.mxu0 %vm2800_vm11, %v10058_v12 }
0x370e   : > { %14740 = vmatpush3.msra.mxu0 %v9695_v2  ;;  %14747 = vmatprep.mubr.msk.f32.mxu0 %vm16172_vm0, %v16171_v0 }
0x370f   : > { %14741 = vmatprep.subr.mxu0 %v16171_v0 }
0x3710   : > { %14742 = vmatpush3.msra.mxu0 %v9694_v47 }
0x3711   : > { %14743 = vmatprep.subr.mxu0 %v16171_v0 }
0x3712   : > { %14744 = vmatpush3.msra.mxu0 %v9693_v44  ;;  %v10785_v44 = vld [vmem:[%s18884_s18 + $0x18] sm:$0xff]  ;;  %s13327_s18 = sshll.u32 %s16562_s22, 4 }
0x3713   : > { %14745 = vmatprep.subr.mxu0 %v16171_v0  ;;  %14785 = vmatprep.subr.mxu1 %v10785_v44 }
0x3714   : > { %14746 = vmatpush3.msra.mxu0 %v9692_v7  ;;  %v10784_v7 = vld [vmem:[%s18885_s11 + $0x10] sm:$0xff] }
0x3715   : > { %14748 = vmatmul.mubr.msk.f32.vlgmr.msra.gmra.mxu0 %vm2485_vm7, %v16808_v35 }
0x3716   : > { %14763 = vmatprep.mubr.msk.f32.mxu0 %vm2711_vm8, %v10216_v51  ;;  %v10783_v51 = vld [vmem:[%s18885_s11 + $0x8] sm:$0xff] }
0x37cd   : > { %v14727_v43 = vpop.f32.mrf.mxu0 }
0x37cf   : > { %v10134_v5 = vpop.f32.mrf.mxu0 }
0x37d5   : > { %v10296_v10 = vpop.f32.mrf.mxu0 }
0x37d6   : > { %v10297_v54 = vadd.f32 %v13214_v52, %v10296_v10 }
0x37d7   : > { %v14749_v19 = vpop.f32.mrf.mxu0 }
0x37d8   : > { %14761 = vmatprep.subr.msk.mxu0 %vm2711_vm8, %v10297_v54 }
0x37d9   : > { %14762 = vmatpush3.xpose.msk.msra.mxu0 %vm2711_vm8, %v10297_v54 }
0x37da   : > { %14766 = vmatprep.subr.msk.mxu0 %vm2804_vm9, %v10373_v55 }
0x37dc   : > { %14764 = vmatmul.mubr.msk.f32.vlgmr.msra.gmra.mxu0 %vm2711_vm8, %v10221_v53 }
0x37dd   : > { %14767 = vmatpush3.msk.msra.mxu0 %vm2804_vm9, %v10373_v55 }
0x37de   : > { %14778 = vmatprep.subr.mxu0 %v9709_v4 }
0x389c   : > { %v14765_v35 = vpop.f32.mrf.mxu0 }
0x389d   : > { %v10463_v33 = vsel %vm10039_vm14, %v14765_v35, -inf }
0x389e   : > { %10464 = vmax.xlane.f32.xlu0 %v10463_v33  ;;  %v10451_v46 = vpop.f32.mrf.mxu0 }
0x389f   : > { %v10460_v42 = vsel %vm2800_vm11, %v10451_v46, -inf }
0x38a0   : > { %10461 = vmax.xlane.f32.xlu1 %v10460_v42 }
0x3927   : > { %v10465_v1 = vpop.xlane.xlu0 %10464 }
0x3928   : > { %v10467_v6 = vsub.f32 %v14765_v35, %v10465_v1  ;;  %v13229_v35 = vld [vmem:[#allocation24] ss:$0 sm:$0xff] }
0x3929   : > { %v10462_v3 = vpop.xlane.xlu1 %10461 }
0x392a   : > { %v10470_v21 = vmul.f32 1.442695, %v10467_v6  ;;  %v10466_v61 = vsub.f32 %v10451_v46, %v10462_v3  ;;  %v13230_v6 = vld [vmem:[#allocation26] ss:$0 sm:$0xff] }
0x392c   : > { %15447 = vpow2.f32 %v10470_v21  ;;  %v10468_v11 = vmul.f32 1.442695, %v10466_v61 }
0x392e   : > { %15449 = vpow2.f32 %v10468_v11  ;;  %v10899_v11 = vld [vmem:[%s18886_s0 + $0x38] sm:$0xff]  ;;  %s2306_s0 = scalar_lea.vmem [#allocation35], %s2305_s15 }
0x3939   : > { %v15448_v15 = vpop.eup %15447 }
0x393a   : > { %v10475_v16 = vsel %vm10039_vm14, %v15448_v15, 0.0 }
0x393b   : > { %v15450_v18 = vpop.eup %15449  ;;  %10476 = vadd.xlane.f32.xlu0 %v10475_v16  ;;  %v10897_v16 = vld [vmem:[%s18887_s12 + $0x28] sm:$0xff] }
0x393c   : > { %v10472_v62 = vsel %vm2800_vm11, %v15450_v18, 0.0 }
0x393d   : > { %10473 = vadd.xlane.f32.xlu1 %v10472_v62  ;;  %v10895_v62 = vld [vmem:[%s18887_s12 + $0x18] sm:$0xff] }
0x39c4   : > { %v10477_v60 = vpop.xlane.xlu0 %10476 }
0x39c5   : > { %15451 = vrcp.f32 %v10477_v60  ;;  %v10893_v60 = vld [vmem:[%s18887_s12 + $0x8] sm:$0xff] }
0x39c6   : > { %v10474_v39 = vpop.xlane.xlu1 %10473 }
0x39c7   : > { %15453 = vrcp.f32 %v10474_v39  ;;  %v10892_v39 = vld [vmem:[%s18887_s12] sm:$0xff] }
0x39d2   : > { %v15452_v17 = vpop.eup %15451 }
0x39d3   : > { %v10481_v9 = vmul.f32 %v15452_v17, %v15448_v15  ;;  %v10898_v15 = vld [vmem:[%s18887_s12 + $0x30] sm:$0xff]  ;;  %v13231_v17 = vld [vmem:[#allocation27] ss:$0 sm:$0xff] }
0x39d4   : > { %v15454_v20 = vpop.eup %15453 }
0x39d5   : > { %v10479_v22 = vmul.f32 %v15454_v20, %v15450_v18  ;;  %v10896_v18 = vld [vmem:[%s18887_s12 + $0x20] sm:$0xff] }
0x39d7   : > { %14768 = vmatprep.mubr.msk.f32.mxu0 %vm2800_vm11, %v10479_v22 }
0x39d8   : > { %14769 = vmatmul.mubr.msk.f32.vlgmr.msra.gmra.mxu0 %vm2800_vm11, %v10481_v9 }
0x39d9   : > { %14779 = vmatpush3.msra.mxu0 %v9709_v4  ;;  %14782 = vmatprep.mubr.msk.f32.mxu0 %vm2711_vm8, %v10134_v5  ;;  %v10894_v4 = vld [vmem:[%s18887_s12 + $0x10] sm:$0xff] }
0x39da   : > { %14780 = vmatprep.subr.mxu0 %v9708_v24 }
0x39db   : > { %14781 = vmatpush3.msra.mxu0 %v9708_v24 }
0x39dc   : > { %14783 = vmatmul.mubr.msk.f32.vlgmr.msra.gmra.mxu0 %vm2711_vm8, %v14727_v43  ;;  %v10782_v43 = vld [vmem:[%s18885_s11] sm:$0xff]  ;;  %14796 = vmatprep.subr.mxu0 %v10899_v11 }
0x39dd   : > { %14797 = vmatpush3.msra.mxu0 %v10899_v11  ;;  %v13242_v11 = vld [vmem:[%s18872_s4 + $0x48] sm:$0xff] }
0x39de   : > { %14798 = vmatprep.subr.mxu0 %v10898_v15 }
0x39df   : > { %14799 = vmatpush3.msra.mxu0 %v10898_v15  ;;  %v13241_v15 = vld [vmem:[%s18872_s4 + $0x40] sm:$0xff] }
0x39e0   : > { %14800 = vmatprep.subr.mxu0 %v10897_v16 }
0x39e1   : > { %14801 = vmatpush3.msra.mxu0 %v10897_v16 }
0x39e2   : > { %14802 = vmatprep.subr.mxu0 %v10896_v18 }
0x39e3   : > { %14803 = vmatpush3.msra.mxu0 %v10896_v18 }
0x39e4   : > { %14804 = vmatprep.subr.mxu0 %v10895_v62 }
0x39e5   : > { %14805 = vmatpush3.msra.mxu0 %v10895_v62 }
0x39e6   : > { %14806 = vmatprep.subr.mxu0 %v10894_v4 }
0x39e7   : > { %14807 = vmatpush3.msra.mxu0 %v10894_v4 }
0x39e8   : > { %14808 = vmatprep.subr.mxu0 %v10893_v60 }
0x39e9   : > { %14809 = vmatpush3.msra.mxu0 %v10893_v60 }
0x39ea   : > { %14810 = vmatprep.subr.mxu0 %v10892_v39 }
0x39eb   : > { %14811 = vmatpush3.msra.mxu0 %v10892_v39 }
0x39ec   : > { %14837 = vmatprep.subr.mxu0 %v16171_v0 }
0x3a98   : > { %v14770_v28 = vpop.f32.mrf.mxu0 }
0x3a9a   : > { %v10557_v53 = vpop.f32.mrf.mxu0 }
0x3a9b   : > { %14775 = vmatprep.mubr.msk.f32.mxu1 %vm2711_vm8, %v10557_v53 }
0x3a9c   : > { %14776 = vmatmul.mubr.msk.f32.vlgmr.msra.gmra.mxu1 %vm2711_vm8, %v14770_v28  ;;  %v14784_v26 = vpop.f32.mrf.mxu0 }
0x3a9d   : > { %14786 = vmatpush3.msra.mxu1 %v10785_v44 }
0x3a9e   : > { %v10719_v63 = vpop.f32.mrf.mxu0  ;;  %14787 = vmatprep.subr.mxu1 %v10784_v7 }
0x3a9f   : > { %14788 = vmatpush3.msra.mxu1 %v10784_v7 }
0x3aa0   : > { %14789 = vmatprep.subr.mxu1 %v10783_v51 }
0x3aa1   : > { %14790 = vmatpush3.msra.mxu1 %v10783_v51 }
0x3aa2   : > { %14791 = vmatprep.subr.mxu1 %v10782_v43 }
0x3aa3   : > { %14792 = vmatpush3.msra.mxu1 %v10782_v43 }
0x3b5c   : > { %v14777_v38 = vpop.f32.mrf.mxu1 }
0x3b5d   : > { %v10725_v14 = vadd.f32 %v14784_v26, %v14777_v38 }
0x3b5e   : > { %v10638_v32 = vpop.f32.mrf.mxu1 }
0x3b5f   : > { %v10735_v45 = vadd.f32 %v13228_v31, %v10725_v14  ;;  %v10720_v49 = vadd.f32 %v10719_v63, %v10638_v32 }
0x3b61   : > { %v18366_v23 = vadd.f32 %v10735_v45, %v18243_v8  ;;  %v10734_v27 = vadd.f32 %v13228_v31, %v10720_v49 }
0x3b63   : > { %v18369_v50 = vadd.f32 %v10734_v27, %v18272_v48  ;;  %v10743_v29 = vsel %vm2410_vm4, %v18366_v23, 0.0 }
0x3b64   : > { %10744 = vadd.xlane.f32.xlu0 %v10743_v29 }
0x3b65   : > { %v10740_v30 = vsel %vm2485_vm7, %v18369_v50, 0.0 }
0x3b66   : > { %10741 = vadd.xlane.f32.xlu1 %v10740_v30 }
0x3bed   : > { %v10745_v36 = vpop.xlane.xlu0 %10744 }
0x3bee   : > { %v10747_v57 = vmul.f32 0.03125, %v10745_v36 }
0x3bef   : > { %v10742_v37 = vpop.xlane.xlu1 %10741 }
0x3bf0   : > { %v10749_v8 = vsub.f32 %v18366_v23, %v10747_v57  ;;  %v10746_v40 = vmul.f32 0.03125, %v10742_v37 }
0x3bf2   : > { %v10748_v48 = vsub.f32 %v18369_v50, %v10746_v40  ;;  %v10751_v59 = vmul.f32 %v10749_v8, %v10749_v8  ;;  %v13263_v40 = vld [vmem:[%s18878_s6 + $0x50] sm:$0xff] }
0x3bf4   : > { %v10755_v12 = vsel %vm2410_vm4, %v10751_v59, 0.0  ;;  %v10750_v2 = vmul.f32 %v10748_v48, %v10748_v48  ;;  %v13261_v59 = vld [vmem:[%s18878_s6 + $0x40] sm:$0xff] }
0x3bf5   : > { %10756 = vadd.xlane.f32.xlu0 %v10755_v12  ;;  %v13234_v12 = vld [vmem:[#allocation29] ss:$0 sm:$0xff] }
0x3bf6   : > { %v10752_v47 = vsel %vm2485_vm7, %v10750_v2, 0.0 }
0x3bf7   : > { %10753 = vadd.xlane.f32.xlu1 %v10752_v47 }
0x3c7e   : > { %v10757_v5 = vpop.xlane.xlu0 %10756 }
0x3c7f   : > { %v10759_v52 = vmul.f32 0.03125, %v10757_v5 }
0x3c80   : > { %v10754_v56 = vpop.xlane.xlu1 %10753 }
0x3c81   : > { %v10761_v10 = vadd.f32 1e-06, %v10759_v52  ;;  %v10758_v54 = vmul.f32 0.03125, %v10754_v56  ;;  %v13280_v52 = vld [vmem:[%s18881_s9 + $0x2] ss:$0 sm:$0xff] }
0x3c83   : > { %15455 = vrsqrt.f32 %v10761_v10  ;;  %v10760_v19 = vadd.f32 1e-06, %v10758_v54 }
0x3c85   : > { %15457 = vrsqrt.f32 %v10760_v19 }
0x3c90   : > { %v15456_v55 = vpop.eup %15455 }
0x3c91   : > { %v10765_v33 = vmul.f32 %v15456_v55, %v10749_v8  ;;  %v13264_v8 = vld [vmem:[%s18878_s6 + $0x58] sm:$0xff] }
0x3c92   : > { %v15458_v46 = vpop.eup %15457 }
0x3c93   : > { %v10764_v42 = vmul.f32 %v15458_v46, %v10748_v48  ;;  %v10773_v1 = vmul.f32 %v13229_v35, %v10765_v33  ;;  %v13262_v48 = vld [vmem:[%s18878_s6 + $0x48] sm:$0xff] }
0x3c95   : > { %v10772_v3 = vmul.f32 %v13229_v35, %v10764_v42  ;;  %v10781_v61 = vadd.f32 %v13230_v6, %v10773_v1 }
0x3c97   : > { %v10780_v21 = vadd.f32 %v13230_v6, %v10772_v3 }
0x3c99   : > { %14793 = vmatprep.mubr.msk.f32.mxu1 %vm2485_vm7, %v10780_v21  ;;  %v13244_v21 = vld [vmem:[%s18872_s4 + $0x58] sm:$0xff] }
0x3c9a   : > { %14794 = vmatmul.mubr.msk.f32.vlgmr.msra.gmra.mxu1 %vm2485_vm7, %v10781_v61  ;;  %v13243_v61 = vld [vmem:[%s18872_s4 + $0x50] sm:$0xff]  ;;  %14815 = vmatprep.subr.mxu1 %v13244_v21 }
0x3c9b   : > { %14816 = vmatpush3.msra.mxu1 %v13244_v21 }
0x3c9c   : > { %14817 = vmatprep.subr.mxu1 %v13243_v61 }
0x3c9d   : > { %14818 = vmatpush3.msra.mxu1 %v13243_v61 }
0x3c9e   : > { %14819 = vmatprep.subr.mxu1 %v13242_v11 }
0x3c9f   : > { %14820 = vmatpush3.msra.mxu1 %v13242_v11 }
0x3ca0   : > { %14821 = vmatprep.subr.mxu1 %v13241_v15 }
0x3ca1   : > { %14822 = vmatpush3.msra.mxu1 %v13241_v15 }
0x3ca2   : > { %14826 = vmatprep.subr.mxu1 %v16171_v0 }
0x3d5a   : > { %v14795_v20 = vpop.f32.mrf.mxu1 }
0x3d5b   : > { %v10871_v22 = vadd.f32 %v14795_v20, %v13231_v17  ;;  %v13239_v20 = vld [vmem:[%s18874_s1 + $0x1] ss:$0 sm:$0xff]  ;;  %s12502_s1 = sshll.u32 %s2306_s0, 4  ;;  %s12503_s1 = int_to_ptr.vmem [resolvable:$true] %s12502_s1 }
0x3d5c   : > { %v10865_v9 = vpop.f32.mrf.mxu1 }
0x3d5d   : > { %v10875_v24 = vmul.f32 %v10871_v22, %v10871_v22  ;;  %v10866_v41 = vadd.f32 %v13231_v17, %v10865_v9 }
0x3d5f   : > { %v10877_v25 = vmul.f32 %v10875_v24, %v10871_v22  ;;  %v10874_v28 = vmul.f32 %v10866_v41, %v10866_v41 }
0x3d61   : > { %v10879_v53 = vmul.f32 0.044715, %v10877_v25  ;;  %v10876_v26 = vmul.f32 %v10874_v28, %v10866_v41  ;;  %v13240_v25 = vld [vmem:[%s18876_s5 + $0x1] ss:$0 sm:$0xff]  ;;  %s16180_s5 = smov [#allocation35]  }
0x3d63   : > { %v10881_v31 = vadd.f32 %v10879_v53, %v10871_v22  ;;  %v10878_v38 = vmul.f32 0.044715, %v10876_v26 }
0x3d65   : > { %v10883_v14 = vmul.f32 0.7978846, %v10881_v31  ;;  %v10880_v63 = vadd.f32 %v10878_v38, %v10866_v41  ;;  %v13254_v31 = vld [vmem:[%s18865_s2 + $0x58] sm:$0xff]  ;;  %v13253_v38 = vld [vmem:[%s18865_s2 + $0x50] sm:$0xff] }
0x3d67   : > { %15459 = vtanh.f32 %v10883_v14  ;;  %v10882_v32 = vmul.f32 0.7978846, %v10880_v63  ;;  %v13252_v14 = vld [vmem:[%s18865_s2 + $0x48] sm:$0xff]  ;;  %v13251_v63 = vld [vmem:[%s18865_s2 + $0x40] sm:$0xff] }
0x3d69   : > { %15461 = vtanh.f32 %v10882_v32 }
0x3d74   : > { %v15460_v45 = vpop.eup %15459 }
0x3d75   : > { %v10887_v49 = vadd.f32 1.0, %v15460_v45  ;;  %v13275_v45 = vld [vmem:[%s18879_s8 + $0x2] ss:$0 sm:$0xff] }
0x3d76   : > { %v15462_v27 = vpop.eup %15461 }
0x3d77   : > { %v10886_v29 = vadd.f32 1.0, %v15462_v27  ;;  %v10889_v30 = vmul.f32 0.5, %v10887_v49 }
0x3d79   : > { %v10888_v36 = vmul.f32 0.5, %v10886_v29  ;;  %v10891_v37 = vmul.f32 %v10889_v30, %v10871_v22  ;;  %v13278_v29 = vld [vmem:[%s18867_s3 + $0x2] ss:$0 sm:$0xff] }
0x3d7b   : > { %v10890_v57 = vmul.f32 %v10888_v36, %v10866_v41 }
0x3d7d   : > { %14812 = vmatprep.mubr.msk.f32.mxu0 %vm3560_vm12, %v10890_v57 }
0x3d7e   : > { %14813 = vmatmul.mubr.msk.f32.vlgmr.msra.gmra.mxu0 %vm3560_vm12, %v10891_v37  ;;  %v13248_v37 = vld [vmem:[%s18872_s4 + $0x78] sm:$0xff] }
0x3d7f   : > { %14838 = vmatpush3.msra.mxu0 %v13264_v8  ;;  %14845 = vmatprep.mubr.msk.f32.mxu0 %vm16172_vm0, %v16171_v0 }
0x3d80   : > { %14839 = vmatprep.subr.mxu0 %v16171_v0 }
0x3d81   : > { %14840 = vmatpush3.msra.mxu0 %v13263_v40  ;;  %v13247_v40 = vld [vmem:[%s18872_s4 + $0x70] sm:$0xff] }
0x3d82   : > { %14841 = vmatprep.subr.mxu0 %v16171_v0 }
0x3d83   : > { %14842 = vmatpush3.msra.mxu0 %v13262_v48  ;;  %v13246_v48 = vld [vmem:[%s18872_s4 + $0x68] sm:$0xff] }
0x3d84   : > { %14843 = vmatprep.subr.mxu0 %v16171_v0 }
0x3d85   : > { %14844 = vmatpush3.msra.mxu0 %v13261_v59  ;;  %v13245_v59 = vld [vmem:[%s18872_s4 + $0x60] sm:$0xff]  ;;  %s15979_s4 = scalar_lea.vmem %s12503_s1, 16 }
0x3d86   : > { %14846 = vmatmul.mubr.msk.f32.vlgmr.msra.gmra.mxu0 %vm2485_vm7, %v16977_v58  ;;  %p15980_p0 = scmp.ne.s32.totalorder %s12503_s1, %s15979_s4 }
0x3d88   : > { %p15981_p2 = pnand %p15980_p0, %p18888_p1 }
0x3d8a   : > { %p15982_p3 = pneg %p15981_p2 }
0x3e3e   : > { %v14814_v2 = vpop.f32.mrf.mxu0 }
0x3e3f   : > { %v10985_v47 = vadd.f32 %v14814_v2, %v13234_v12  ;;  %v13267_v2 = vld [vmem:[%s18878_s6 + $0x70] sm:$0xff] }
0x3e40   : > { %v10979_v44 = vpop.f32.mrf.mxu0 }
0x3e41   : > { %v18408_v7 = vadd.f32 %v10985_v47, %v18366_v23  ;;  %v10980_v51 = vadd.f32 %v13234_v12, %v10979_v44  ;;  %v13268_v12 = vld [vmem:[%s18878_s6 + $0x78] sm:$0xff]  ;;  %v13266_v47 = vld [vmem:[%s18878_s6 + $0x68] sm:$0xff]  ;;  %v13265_v44 = vld [vmem:[%s18878_s6 + $0x60] sm:$0xff]  ;;  %s15983_s6 = sshll.u32 %s16180_s5, 4  ;;  %s15984_s6 = int_to_ptr.vmem [resolvable:$false] %s15983_s6 }
0x3e42   : > { %p15986_p9 = scmp.lt.s32.totalorder %s12503_s1, %s15984_s6 }
0x3e43   : > { %v18411_v43 = vadd.f32 %v10980_v51, %v18369_v50  ;;  %v10997_v5 = vsel %vm2410_vm4, %v18408_v7, 0.0 }
0x3e44   : > { %10998 = vadd.xlane.f32.xlu0 %v10997_v5 }
0x3e45   : > { %v10994_v56 = vsel %vm2485_vm7, %v18411_v43, 0.0 }
0x3e46   : > { %v11314_v10 = vpop.f32.mrf.mxu0  ;;  %10995 = vadd.xlane.f32.xlu1 %v10994_v56 }
0x3e47   : > { %v11315_v54 = vadd.f32 %v13280_v52, %v11314_v10  ;;  %v13288_v10 = vld [vmem:[%s18879_s8 + $0x3] ss:$0 sm:$0xff]  ;;  %s15985_s8 = scalar_lea.vmem %s15984_s6, 32 }
0x3e48   : > { %v14847_v19 = vpop.f32.mrf.mxu0  ;;  %p15987_p4 = scmp.lt.s32.totalorder %s15985_s8, %s15979_s4 }
0x3e49   : > { %14853 = vmatprep.subr.msk.mxu0 %vm2804_vm9, %v11315_v54 }
0x3e4a   : > { %14854 = vmatpush3.msk.msra.mxu0 %vm2804_vm9, %v11315_v54  ;;  %p15988_p5 = por %p15987_p4, %p15986_p9 }
0x3e4b   : > { %14869 = vmatprep.subr.mxu0 %v16171_v0 }
0x3e4c   : > { %p15989_p6 = pnand %p15988_p5, %p15982_p3 }
0x3ecd   : > { %v10999_v23 = vpop.xlane.xlu0 %10998 }
0x3ece   : > { %v11001_v50 = vmul.f32 0.03125, %v10999_v23 }
0x3ecf   : > { %v10996_v55 = vpop.xlane.xlu1 %10995 }
0x3ed0   : > { %v11003_v35 = vsub.f32 %v18408_v7, %v11001_v50  ;;  %v11000_v33 = vmul.f32 0.03125, %v10996_v55 }
0x3ed2   : > { %v11002_v46 = vsub.f32 %v18411_v43, %v11000_v33  ;;  %v11005_v42 = vmul.f32 %v11003_v35, %v11003_v35 }
0x3ed4   : > { %v11009_v1 = vsel %vm2410_vm4, %v11005_v42, 0.0  ;;  %v11004_v6 = vmul.f32 %v11002_v46, %v11002_v46 }
0x3ed5   : > { %11010 = vadd.xlane.f32.xlu0 %v11009_v1 }
0x3ed6   : > { %v11006_v3 = vsel %vm2485_vm7, %v11004_v6, 0.0 }
0x3ed7   : > { %11007 = vadd.xlane.f32.xlu1 %v11006_v3 }
0x3f5e   : > { %v11011_v16 = vpop.xlane.xlu0 %11010 }
0x3f5f   : > { %v11013_v18 = vmul.f32 0.03125, %v11011_v16 }
0x3f60   : > { %v11008_v62 = vpop.xlane.xlu1 %11007 }
0x3f61   : > { %v11015_v4 = vadd.f32 1e-06, %v11013_v18  ;;  %v11012_v60 = vmul.f32 0.03125, %v11008_v62 }
0x3f63   : > { %15463 = vrsqrt.f32 %v11015_v4  ;;  %v11014_v39 = vadd.f32 1e-06, %v11012_v60 }
0x3f65   : > { %15465 = vrsqrt.f32 %v11014_v39  ;;  %v13258_v39 = vld [vmem:[%s18865_s2 + $0x78] sm:$0xff] }
0x3f70   : > { %v15464_v17 = vpop.eup %15463 }
0x3f71   : > { %v11019_v22 = vmul.f32 %v15464_v17, %v11003_v35  ;;  %v13257_v17 = vld [vmem:[%s18865_s2 + $0x70] sm:$0xff] }
0x3f72   : > { %v15466_v9 = vpop.eup %15465 }
0x3f73   : > { %v11018_v24 = vmul.f32 %v15466_v9, %v11002_v46  ;;  %v11027_v41 = vmul.f32 %v13239_v20, %v11019_v22  ;;  %v13255_v22 = vld [vmem:[%s18865_s2 + $0x60] sm:$0xff] }
0x3f75   : > { %v11026_v28 = vmul.f32 %v13239_v20, %v11018_v24  ;;  %v11035_v26 = vadd.f32 %v13240_v25, %v11027_v41  ;;  %v13256_v20 = vld [vmem:[%s18865_s2 + $0x68] sm:$0xff]  ;;  %s12500_s2 = scalar_lea.hbm %s16539_s24, %s13327_s18 }
0x3f77   : > { %v11034_v53 = vadd.f32 %v13240_v25, %v11026_v28  ;;  %v13291_v25 = vld [vmem:[%s18867_s3 + $0x3] ss:$0 sm:$0xff]  ;;  %s12490_s3 = scalar_lea.sflag [#allocation8], %s2305_s15 }
0x3f78   : > { %v13293_v28 = vld [vmem:[%s18881_s9 + $0x3] ss:$0 sm:$0xff] }
0x3f79   : > { %14823 = vmatprep.mubr.msk.f32.mxu1 %vm2485_vm7, %v11034_v53 }
0x3f7a   : > { %14824 = vmatmul.mubr.msk.f32.vlgmr.msra.gmra.mxu1 %vm2485_vm7, %v11035_v26 }
0x3f7b   : > { %14827 = vmatpush3.msra.mxu1 %v13254_v31  ;;  %14834 = vmatprep.mubr.msk.f32.mxu1 %vm16172_vm0, %v16171_v0 }
0x3f7c   : > { %14828 = vmatprep.subr.mxu1 %v16171_v0 }
0x3f7d   : > { %14829 = vmatpush3.msra.mxu1 %v13253_v38 }
0x3f7e   : > { %14830 = vmatprep.subr.mxu1 %v16171_v0 }
0x3f7f   : > { %14831 = vmatpush3.msra.mxu1 %v13252_v14 }
0x3f80   : > { %14832 = vmatprep.subr.mxu1 %v16171_v0 }
0x3f81   : > { %14833 = vmatpush3.msra.mxu1 %v13251_v63 }
0x3f82   : > { %14835 = vmatmul.mubr.msk.f32.vlgmr.msra.gmra.mxu1 %vm2485_vm7, %v16977_v58 }
0x403a   : > { %v14825_v32 = vpop.f32.mrf.mxu1 }
0x403b   : > { %v11163_v8 = vadd.f32 %v14825_v32, %v13275_v45 }
0x403c   : > { %v11157_v49 = vpop.f32.mrf.mxu1 }
0x403d   : > { %v11158_v27 = vadd.f32 %v13275_v45, %v11157_v49 }
0x403f   : > { %14850 = vmatprep.mubr.msk.f32.mxu1 %vm2711_vm8, %v11158_v27 }
0x4042   : > { %v11238_v30 = vpop.f32.mrf.mxu1 }
0x4043   : > { %v11239_v36 = vadd.f32 %v13278_v29, %v11238_v30 }
0x4044   : > { %v14836_v57 = vpop.f32.mrf.mxu1 }
0x4045   : > { %14848 = vmatprep.subr.msk.mxu1 %vm2711_vm8, %v11239_v36 }
0x4046   : > { %14849 = vmatpush3.xpose.msk.msra.mxu1 %vm2711_vm8, %v11239_v36 }
0x4047   : > { %14858 = vmatprep.subr.mxu1 %v13248_v37 }
0x4049   : > { %14851 = vmatmul.mubr.msk.f32.vlgmr.msra.gmra.mxu1 %vm2711_vm8, %v11163_v8 }
0x404a   : > { %14859 = vmatpush3.msra.mxu1 %v13248_v37  ;;  %14866 = vmatprep.mubr.msk.f32.mxu1 %vm2485_vm7, %v11034_v53 }
0x404b   : > { %14860 = vmatprep.subr.mxu1 %v13247_v40 }
0x404c   : > { %14861 = vmatpush3.msra.mxu1 %v13247_v40 }
0x404d   : > { %14862 = vmatprep.subr.mxu1 %v13246_v48 }
0x404e   : > { %14863 = vmatpush3.msra.mxu1 %v13246_v48  ;;  %v13272_v48 = vld [vmem:[%s18883_s10 + $0x28] sm:$0xff] }
0x404f   : > { %14864 = vmatprep.subr.mxu1 %v13245_v59 }
0x4050   : > { %14865 = vmatpush3.msra.mxu1 %v13245_v59 }
0x4051   : > { %14867 = vmatmul.mubr.msk.f32.vlgmr.msra.gmra.mxu1 %vm2485_vm7, %v11035_v26  ;;  %14880 = vmatprep.subr.mxu1 %v16171_v0 }
0x4052   : > { %14881 = vmatpush3.msra.mxu1 %v13268_v12  ;;  %14888 = vmatprep.mubr.msk.f32.mxu1 %vm16172_vm0, %v16171_v0 }
0x4053   : > { %14882 = vmatprep.subr.mxu1 %v16171_v0 }
0x4054   : > { %14883 = vmatpush3.msra.mxu1 %v13267_v2 }
0x4055   : > { %14884 = vmatprep.subr.mxu1 %v16171_v0 }
0x4056   : > { %14885 = vmatpush3.msra.mxu1 %v13266_v47 }
0x4057   : > { %14886 = vmatprep.subr.mxu1 %v16171_v0 }
0x4058   : > { %14887 = vmatpush3.msra.mxu1 %v13265_v44 }
0x4059   : > { %14889 = vmatmul.mubr.msk.f32.vlgmr.msra.gmra.mxu1 %vm2485_vm7, %v16977_v58 }
0x4109   : > { %v14852_v51 = vpop.f32.mrf.mxu1 }
0x410a   : > { %v11405_v5 = vsel %vm10039_vm14, %v14852_v51, -inf }
0x410b   : > { %11406 = vmax.xlane.f32.xlu0 %v11405_v5  ;;  %v11393_v52 = vpop.f32.mrf.mxu1  ;;  %v13271_v5 = vld [vmem:[%s18883_s10 + $0x20] sm:$0xff] }
0x410c   : > { %v11402_v56 = vsel %vm2800_vm11, %v11393_v52, -inf }
0x410d   : > { %11403 = vmax.xlane.f32.xlu1 %v11402_v56  ;;  %v13273_v56 = vld [vmem:[%s18883_s10 + $0x30] sm:$0xff] }
0x4111   : > { %v14868_v54 = vpop.f32.mrf.mxu1 }
0x4112   : > { %v11586_v19 = vadd.f32 %v14868_v54, %v13288_v10 }
0x4113   : > { %v11580_v23 = vpop.f32.mrf.mxu1 }
0x4114   : > { %v11581_v9 = vadd.f32 %v13288_v10, %v11580_v23  ;;  %v13305_v23 = vld [vmem:[#allocation23 + $0x1] ss:$0 sm:$0xff] }
0x4119   : > { %v11737_v50 = vpop.f32.mrf.mxu1 }
0x411a   : > { %v11738_v38 = vadd.f32 %v13293_v28, %v11737_v50 }
0x411b   : > { %v14890_v55 = vpop.f32.mrf.mxu1 }
0x4194   : > { %v11407_v35 = vpop.xlane.xlu0 %11406 }
0x4195   : > { %v11409_v33 = vsub.f32 %v14852_v51, %v11407_v35 }
0x4196   : > { %v11404_v46 = vpop.xlane.xlu1 %11403 }
0x4197   : > { %v11412_v42 = vmul.f32 1.442695, %v11409_v33  ;;  %v11408_v1 = vsub.f32 %v11393_v52, %v11404_v46  ;;  %v13274_v52 = vld [vmem:[%s18883_s10 + $0x38] sm:$0xff] }
0x4198   : > { %14901 = vmatprep.subr.mxu1 %v13274_v52 }
0x4199   : > { %15467 = vpow2.f32 %v11412_v42  ;;  %v11410_v6 = vmul.f32 1.442695, %v11408_v1  ;;  %14902 = vmatpush3.msra.mxu1 %v13274_v52  ;;  %v13315_v52 = vld [vmem:[%s18887_s12 + $0x40] sm:$0xff] }
0x419a   : > { %14903 = vmatprep.subr.mxu1 %v13273_v56 }
0x419b   : > { %15469 = vpow2.f32 %v11410_v6  ;;  %14904 = vmatpush3.msra.mxu1 %v13273_v56  ;;  %v13312_v56 = vld [vmem:[#allocation27 + $0x1] ss:$0 sm:$0xff] }
0x41a6   : > { %v15468_v3 = vpop.eup %15467 }
0x41a7   : > { %v11417_v21 = vsel %vm10039_vm14, %v15468_v3, 0.0 }
0x41a8   : > { %v15470_v61 = vpop.eup %15469  ;;  %11418 = vadd.xlane.f32.xlu0 %v11417_v21 }
0x41a9   : > { %v11414_v11 = vsel %vm2800_vm11, %v15470_v61, 0.0 }
0x41aa   : > { %11415 = vadd.xlane.f32.xlu1 %v11414_v11 }
0x4231   : > { %v11419_v15 = vpop.xlane.xlu0 %11418 }
0x4232   : > { %15471 = vrcp.f32 %v11419_v15 }
0x4233   : > { %v11416_v16 = vpop.xlane.xlu1 %11415 }
0x4234   : > { %15473 = vrcp.f32 %v11416_v16  ;;  %v12958_v16 = vld [vmem:[%s18828_s17 + $0x1] ss:$0 sm:$0xff] }
0x423f   : > { %v15472_v18 = vpop.eup %15471 }
0x4240   : > { %v11423_v60 = vmul.f32 %v15472_v18, %v15468_v3 }
0x4241   : > { %v15474_v62 = vpop.eup %15473 }
0x4242   : > { %v11421_v4 = vmul.f32 %v15474_v62, %v15470_v61 }
0x4244   : > { %14855 = vmatprep.mubr.msk.f32.mxu0 %vm2800_vm11, %v11421_v4  ;;  %v4861_v4 = vadd.f32 %v12958_v16, %v17194_v34  ;;  %v13309_v34 = vld [vmem:[%s18885_s11 + $0x28] sm:$0xff] }
0x4245   : > { %14856 = vmatmul.mubr.msk.f32.vlgmr.msra.gmra.mxu0 %vm2800_vm11, %v11423_v60 }
0x4246   : > { %14870 = vmatpush3.msra.mxu0 %v13258_v39  ;;  %14877 = vmatprep.mubr.msk.f32.mxu0 %vm16172_vm0, %v16171_v0 }
0x4247   : > { %14871 = vmatprep.subr.mxu0 %v16171_v0 }
0x4248   : > { %14872 = vmatpush3.msra.mxu0 %v13257_v17 }
0x4249   : > { %14873 = vmatprep.subr.mxu0 %v16171_v0 }
0x424a   : > { %14874 = vmatpush3.msra.mxu0 %v13256_v20  ;;  %v4864_v20 = vadd.f32 %v4861_v4, %v17081_v13 }
0x424b   : > { %14875 = vmatprep.subr.mxu0 %v16171_v0 }
0x424c   : > { %14876 = vmatpush3.msra.mxu0 %v13255_v22 }
0x424d   : > { %14878 = vmatmul.mubr.msk.f32.vlgmr.msra.gmra.mxu0 %vm2485_vm7, %v16977_v58 }
0x424e   : > { %14893 = vmatprep.mubr.msk.f32.mxu0 %vm2711_vm8, %v11581_v9 }
0x4305   : > { %v14857_v24 = vpop.f32.mrf.mxu0 }
0x4307   : > { %v11499_v41 = vpop.f32.mrf.mxu0 }
0x430d   : > { %v11661_v53 = vpop.f32.mrf.mxu0 }
0x430e   : > { %v11662_v26 = vadd.f32 %v13291_v25, %v11661_v53  ;;  %v13308_v25 = vld [vmem:[%s18885_s11 + $0x20] sm:$0xff] }
0x430f   : > { %v14879_v31 = vpop.f32.mrf.mxu0 }
0x4310   : > { %14891 = vmatprep.subr.msk.mxu0 %vm2711_vm8, %v11662_v26 }
0x4311   : > { %14892 = vmatpush3.xpose.msk.msra.mxu0 %vm2711_vm8, %v11662_v26 }
0x4312   : > { %14896 = vmatprep.subr.msk.mxu0 %vm2804_vm9, %v11738_v38 }
0x4314   : > { %14894 = vmatmul.mubr.msk.f32.vlgmr.msra.gmra.mxu0 %vm2711_vm8, %v11586_v19 }
0x4315   : > { %14897 = vmatpush3.msk.msra.mxu0 %vm2804_vm9, %v11738_v38 }
0x4316   : > { %14908 = vmatprep.subr.mxu0 %v13272_v48 }
0x43d4   : > { %v14895_v58 = vpop.f32.mrf.mxu0 }
0x43d5   : > { %v11828_v14 = vsel %vm10039_vm14, %v14895_v58, -inf }
0x43d6   : > { %11829 = vmax.xlane.f32.xlu0 %v11828_v14  ;;  %v11816_v63 = vpop.f32.mrf.mxu0 }
0x43d7   : > { %v11825_v32 = vsel %vm2800_vm11, %v11816_v63, -inf }
0x43d8   : > { %11826 = vmax.xlane.f32.xlu1 %v11825_v32 }
0x445f   : > { %v11830_v45 = vpop.xlane.xlu0 %11829 }
0x4460   : > { %v11832_v49 = vsub.f32 %v14895_v58, %v11830_v45 }
0x4461   : > { %v11827_v27 = vpop.xlane.xlu1 %11826 }
0x4462   : > { %v11835_v29 = vmul.f32 1.442695, %v11832_v49  ;;  %v11831_v30 = vsub.f32 %v11816_v63, %v11827_v27  ;;  %v13306_v27 = vld [vmem:[#allocation24 + $0x1] ss:$0 sm:$0xff] }
0x4464   : > { %15475 = vpow2.f32 %v11835_v29  ;;  %v11833_v36 = vmul.f32 1.442695, %v11831_v30 }
0x4466   : > { %15477 = vpow2.f32 %v11833_v36 }
0x4471   : > { %v15476_v57 = vpop.eup %15475 }
0x4472   : > { %v11840_v37 = vsel %vm10039_vm14, %v15476_v57, 0.0 }
0x4473   : > { %v15478_v8 = vpop.eup %15477  ;;  %11841 = vadd.xlane.f32.xlu0 %v11840_v37  ;;  %v13307_v37 = vld [vmem:[#allocation26 + $0x1] ss:$0 sm:$0xff] }
0x4474   : > { %v11837_v40 = vsel %vm2800_vm11, %v15478_v8, 0.0 }
0x4475   : > { %11838 = vadd.xlane.f32.xlu1 %v11837_v40 }
0x44fc   : > { %v11842_v59 = vpop.xlane.xlu0 %11841 }
0x44fd   : > { %15479 = vrcp.f32 %v11842_v59  ;;  %v13322_v59 = vld [vmem:[%s18887_s12 + $0x78] sm:$0xff] }
0x44fe   : > { %v11839_v12 = vpop.xlane.xlu1 %11838 }
0x44ff   : > { %15481 = vrcp.f32 %v11839_v12  ;;  %v13321_v12 = vld [vmem:[%s18887_s12 + $0x70] sm:$0xff] }
0x450a   : > { %v15480_v2 = vpop.eup %15479 }
0x450b   : > { %v11846_v51 = vmul.f32 %v15480_v2, %v15476_v57  ;;  %v13320_v2 = vld [vmem:[%s18887_s12 + $0x68] sm:$0xff] }
0x450c   : > { %v15482_v47 = vpop.eup %15481 }
0x450d   : > { %v11844_v44 = vmul.f32 %v15482_v47, %v15478_v8  ;;  %v13319_v47 = vld [vmem:[%s18887_s12 + $0x60] sm:$0xff] }
0x450f   : > { %14898 = vmatprep.mubr.msk.f32.mxu0 %vm2800_vm11, %v11844_v44  ;;  %v13318_v44 = vld [vmem:[%s18887_s12 + $0x58] sm:$0xff] }
0x4510   : > { %14899 = vmatmul.mubr.msk.f32.vlgmr.msra.gmra.mxu0 %vm2800_vm11, %v11846_v51  ;;  %v13317_v51 = vld [vmem:[%s18887_s12 + $0x50] sm:$0xff] }
0x4511   : > { %14909 = vmatpush3.msra.mxu0 %v13272_v48  ;;  %14912 = vmatprep.mubr.msk.f32.mxu0 %vm2711_vm8, %v11499_v41  ;;  %v13310_v41 = vld [vmem:[%s18885_s11 + $0x30] sm:$0xff] }
0x4512   : > { %14910 = vmatprep.subr.mxu0 %v13271_v5 }
0x4513   : > { %14911 = vmatpush3.msra.mxu0 %v13271_v5  ;;  %v13316_v5 = vld [vmem:[%s18887_s12 + $0x48] sm:$0xff] }
0x4514   : > { %14913 = vmatmul.mubr.msk.f32.vlgmr.msra.gmra.mxu0 %vm2711_vm8, %v14857_v24  ;;  %v13311_v24 = vld [vmem:[%s18885_s11 + $0x38] sm:$0xff]  ;;  %14926 = vmatprep.subr.mxu0 %v13322_v59 }
0x4515   : > { %14915 = vmatprep.subr.mxu1 %v13311_v24  ;;  %14927 = vmatpush3.msra.mxu0 %v13322_v59 }
0x4516   : > { %14928 = vmatprep.subr.mxu0 %v13321_v12 }
0x4517   : > { %14929 = vmatpush3.msra.mxu0 %v13321_v12 }
0x4518   : > { %14930 = vmatprep.subr.mxu0 %v13320_v2 }
0x4519   : > { %14931 = vmatpush3.msra.mxu0 %v13320_v2 }
0x451a   : > { %14932 = vmatprep.subr.mxu0 %v13319_v47 }
0x451b   : > { %14933 = vmatpush3.msra.mxu0 %v13319_v47 }
0x451c   : > { %14934 = vmatprep.subr.mxu0 %v13318_v44 }
0x451d   : > { %14935 = vmatpush3.msra.mxu0 %v13318_v44 }
0x451e   : > { %14936 = vmatprep.subr.mxu0 %v13317_v51 }
0x451f   : > { %14937 = vmatpush3.msra.mxu0 %v13317_v51  ;;  %v12400_v51 = vld [vmem:[%s16529_s13 + $0x18] sm:$0xff] }
0x4520   : > { %14938 = vmatprep.subr.mxu0 %v13316_v5 }
0x4521   : > { %14939 = vmatpush3.msra.mxu0 %v13316_v5  ;;  %v12399_v5 = vld [vmem:[%s16529_s13 + $0x10] sm:$0xff] }
0x4522   : > { %14940 = vmatprep.subr.mxu0 %v13315_v52 }
0x4523   : > { %14941 = vmatpush3.msra.mxu0 %v13315_v52  ;;  %v12398_v52 = vld [vmem:[%s16529_s13 + $0x8] sm:$0xff] }
0x45d0   : > { %v14900_v10 = vpop.f32.mrf.mxu0 }
0x45d2   : > { %v11922_v54 = vpop.f32.mrf.mxu0 }
0x45d3   : > { %14905 = vmatprep.mubr.msk.f32.mxu1 %vm2711_vm8, %v11922_v54 }
0x45d4   : > { %14906 = vmatmul.mubr.msk.f32.vlgmr.msra.gmra.mxu1 %vm2711_vm8, %v14900_v10  ;;  %v14914_v19 = vpop.f32.mrf.mxu0  ;;  %vm4867_vm8 = vcmask 260102  }
0x45d5   : > { %v4868_v9 = vsel %vm4867_vm8, %v4864_v20, 0.0  ;;  %14916 = vmatpush3.msra.mxu1 %v13311_v24 }
0x45d6   : > { %v12084_v35 = vpop.f32.mrf.mxu0  ;;  %14917 = vmatprep.subr.mxu1 %v13310_v41 }
0x45d7   : > { %14918 = vmatpush3.msra.mxu1 %v13310_v41 }
0x45d8   : > { %14919 = vmatprep.subr.mxu1 %v13309_v34 }
0x45d9   : > { %14920 = vmatpush3.msra.mxu1 %v13309_v34 }
0x45da   : > { %14921 = vmatprep.subr.mxu1 %v13308_v25 }
0x45db   : > { %14922 = vmatpush3.msra.mxu1 %v13308_v25 }
0x45dc   : > { %14945 = vmatprep.subr.mxu1 %v16171_v0 }
0x4694   : > { %v14907_v50 = vpop.f32.mrf.mxu1 }
0x4695   : > { %v12090_v55 = vadd.f32 %v14914_v19, %v14907_v50 }
0x4696   : > { %v12003_v33 = vpop.f32.mrf.mxu1 }
0x4697   : > { %v12100_v46 = vadd.f32 %v13305_v23, %v12090_v55  ;;  %v12085_v42 = vadd.f32 %v12084_v35, %v12003_v33 }
0x4699   : > { %v18510_v1 = vadd.f32 %v12100_v46, %v18408_v7  ;;  %v12099_v6 = vadd.f32 %v13305_v23, %v12085_v42 }
0x469b   : > { %v12110_v3 = vsel %vm2410_vm4, %v18510_v1, 0.0  ;;  %v12101_v21 = vadd.f32 %v12099_v6, %v18411_v43 }
0x469c   : > { %12111 = vadd.xlane.f32.xlu0 %v12110_v3 }
0x469d   : > { %v12107_v61 = vsel %vm2485_vm7, %v12101_v21, 0.0 }
0x469e   : > { %12108 = vadd.xlane.f32.xlu1 %v12107_v61 }
0x4725   : > { %v12112_v11 = vpop.xlane.xlu0 %12111 }
0x4726   : > { %v12114_v15 = vmul.f32 0.03125, %v12112_v11 }
0x4727   : > { %v12109_v18 = vpop.xlane.xlu1 %12108 }
0x4728   : > { %v12116_v62 = vsub.f32 %v18510_v1, %v12114_v15  ;;  %v12113_v7 = vmul.f32 0.03125, %v12109_v18 }
0x472a   : > { %v12115_v60 = vsub.f32 %v12101_v21, %v12113_v7  ;;  %v12118_v39 = vmul.f32 %v12116_v62, %v12116_v62 }
0x472c   : > { %v12122_v43 = vsel %vm2410_vm4, %v12118_v39, 0.0  ;;  %v12117_v17 = vmul.f32 %v12115_v60, %v12115_v60  ;;  %v13323_v39 = vld [vmem:[#allocation29 + $0x1] ss:$0 sm:$0xff] }
0x472d   : > { %12123 = vadd.xlane.f32.xlu0 %v12122_v43 }
0x472e   : > { %v12119_v22 = vsel %vm2485_vm7, %v12117_v17, 0.0 }
0x472f   : > { %12120 = vadd.xlane.f32.xlu1 %v12119_v22 }
0x4733   : > { %4869 = vadd.xlane.f32.xlu1 %v4868_v9 }
0x47b6   : > { %v12124_v13 = vpop.xlane.xlu0 %12123 }
0x47b7   : > { %v12126_v28 = vmul.f32 0.03125, %v12124_v13 }
0x47b8   : > { %v12121_v53 = vpop.xlane.xlu1 %12120 }
0x47b9   : > { %v12128_v26 = vadd.f32 1e-06, %v12126_v28  ;;  %v12125_v31 = vmul.f32 0.03125, %v12121_v53 }
0x47bb   : > { %15483 = vrsqrt.f32 %v12128_v26  ;;  %v12127_v38 = vadd.f32 1e-06, %v12125_v31 }
0x47bc   : > { %v4870_v58 = vpop.xlane.xlu1 %4869 }
0x47bd   : > { %15485 = vrsqrt.f32 %v12127_v38  ;;  %v4871_v14 = vmul.f32 0.03125, %v4870_v58 }
0x47bf   : > { %v18528_v63 = vsub.f32 %v4864_v20, %v4871_v14 }
0x47c1   : > { %v4873_v32 = vmul.f32 %v18528_v63, %v18528_v63 }
0x47c3   : > { %v4874_v45 = vsel %vm4867_vm8, %v4873_v32, 0.0  ;;  %v12960_v32 = vld [vmem:[#allocation9] ss:$0 sm:$0xff] }
0x47c4   : > { %4875 = vadd.xlane.f32.xlu1 %v4874_v45 }
0x47c8   : > { %v15484_v49 = vpop.eup %15483 }
0x47c9   : > { %v12132_v29 = vmul.f32 %v15484_v49, %v12116_v62  ;;  %v12961_v49 = vld [vmem:[#allocation11] ss:$0 sm:$0xff] }
0x47ca   : > { %v15486_v30 = vpop.eup %15485 }
0x47cb   : > { %v12131_v36 = vmul.f32 %v15486_v30, %v12115_v60  ;;  %v12140_v57 = vmul.f32 %v13306_v27, %v12132_v29  ;;  %v12359_v29 = vld [vmem:[#allocation20] sm:$0x1] }
0x47cd   : > { %v12139_v8 = vmul.f32 %v13306_v27, %v12131_v36  ;;  %v12148_v48 = vadd.f32 %v13307_v37, %v12140_v57  ;;  %v12360_v57 = vld [vmem:[#allocation21] sm:$0x1] }
0x47cf   : > { %v12147_v40 = vadd.f32 %v13307_v37, %v12139_v8 }
0x47d1   : > { %14923 = vmatprep.mubr.msk.f32.mxu1 %vm2485_vm7, %v12147_v40 }
0x47d2   : > { %14924 = vmatmul.mubr.msk.f32.vlgmr.msra.gmra.mxu1 %vm2485_vm7, %v12148_v48 }
0x47d3   : > { %14953 = vmatprep.mubr.msk.f32.mxu1 %vm16172_vm0, %v16171_v0  ;;  %14946 = vmatpush3.msra.mxu1 %v12400_v51  ;;  %vm12475_vm0 = vcmask 40960  }
0x47d4   : > { %14947 = vmatprep.subr.mxu1 %v16171_v0 }
0x47d5   : > { %14948 = vmatpush3.msra.mxu1 %v12399_v5 }
0x47d6   : > { %14949 = vmatprep.subr.mxu1 %v16171_v0 }
0x47d7   : > { %14950 = vmatpush3.msra.mxu1 %v12398_v52 }
0x47d8   : > { %14951 = vmatprep.subr.mxu1 %v16171_v0 }
0x484d   : > { %v4876_v28 = vpop.xlane.xlu1 %4875 }
0x484e   : > { %v4877_v53 = vmul.f32 0.03125, %v4876_v28 }
0x4850   : > { %v4878_v26 = vadd.f32 1e-06, %v4877_v53 }
0x4892   : > { %v14925_v10 = vpop.f32.mrf.mxu1 }
0x4893   : > { %v12240_v54 = vadd.f32 %v14925_v10, %v13312_v56 }
0x4894   : > { %v12234_v19 = vpop.f32.mrf.mxu1 }
0x4895   : > { %v12244_v23 = vmul.f32 %v12240_v54, %v12240_v54  ;;  %v12235_v50 = vadd.f32 %v13312_v56, %v12234_v19  ;;  %v12397_v56 = vld [vmem:[%s16529_s13] sm:$0xff] }
0x4896   : > { %14952 = vmatpush3.msra.mxu1 %v12397_v56 }
0x4897   : > { %v12246_v55 = vmul.f32 %v12244_v23, %v12240_v54  ;;  %v12243_v35 = vmul.f32 %v12235_v50, %v12235_v50 }
0x4899   : > { %v12248_v33 = vmul.f32 0.044715, %v12246_v55  ;;  %v12245_v46 = vmul.f32 %v12243_v35, %v12235_v50  ;;  %v12381_v35 = vld [vmem:[#allocation32] sm:$0x1] }
0x489b   : > { %v12250_v42 = vadd.f32 %v12248_v33, %v12240_v54  ;;  %v12247_v6 = vmul.f32 0.044715, %v12245_v46 }
0x489d   : > { %v12252_v3 = vmul.f32 0.7978846, %v12250_v42  ;;  %v12249_v21 = vadd.f32 %v12247_v6, %v12235_v50  ;;  %v12401_v42 = vld [vmem:[#allocation33] sm:$0x1] }
0x489f   : > { %15487 = vtanh.f32 %v12252_v3  ;;  %v12251_v61 = vmul.f32 0.7978846, %v12249_v21 }
0x48a1   : > { %15489 = vtanh.f32 %v12251_v61 }
0x48a2   : > { %15491 = vrsqrt.f32 %v4878_v26 }
0x48ac   : > { %v15488_v11 = vpop.eup %15487 }
0x48ad   : > { %v12256_v15 = vadd.f32 1.0, %v15488_v11 }
0x48ae   : > { %v15490_v16 = vpop.eup %15489 }
0x48af   : > { %v12255_v18 = vadd.f32 1.0, %v15490_v16  ;;  %v12258_v62 = vmul.f32 0.5, %v12256_v15  ;;  %v15492_v14 = vpop.eup %15491 }
0x48b1   : > { %v12257_v7 = vmul.f32 0.5, %v12255_v18  ;;  %v12260_v60 = vmul.f32 %v12258_v62, %v12240_v54 }
0x48b3   : > { %v12259_v4 = vmul.f32 %v12257_v7, %v12235_v50  ;;  %v12380_v50 = vld [vmem:[#allocation30] sm:$0x1] }
0x48b5   : > { %14942 = vmatprep.mubr.msk.f32.mxu0 %vm3560_vm12, %v12259_v4 }
0x48b6   : > { %14943 = vmatmul.mubr.msk.f32.vlgmr.msra.gmra.mxu0 %vm3560_vm12, %v12260_v60 }
0x4976   : > { %v14944_v43 = vpop.f32.mrf.mxu0 }
0x4977   : > { %v12355_v17 = vadd.f32 %v14944_v43, %v13323_v39 }
0x4978   : > { %v12350_v20 = vpop.f32.mrf.mxu0 }
0x4979   : > { %v12358_v22 = vadd.f32 %v12355_v17, %v18510_v1  ;;  %v4880_v1 = vmul.f32 %v15492_v14, %v18528_v63 }
0x497b   : > { %v12361_v9 = vsel %vm2410_vm4, %v12358_v22, 0.0  ;;  %v4887_v45 = vmul.f32 %v12960_v32, %v4880_v1 }
0x497c   : > { %12362 = vadd.xlane.f32.xlu0 %v12361_v9 }
0x497d   : > { %v4894_v30 = vadd.f32 %v12961_v49, %v4887_v45 }
0x497f   : > { %v12377_v40 = vrot.slane %v4894_v30, 6 }
0x4a05   : > { %v12363_v24 = vpop.xlane.xlu0 %12362 }
0x4a06   : > { %v12364_v41 = vmul.f32 0.03125, %v12363_v24 }
0x4a08   : > { %v12365_v34 = vsub.f32 %v12358_v22, %v12364_v41 }
0x4a0a   : > { %v12366_v25 = vmul.f32 %v12365_v34, %v12365_v34 }
0x4a0c   : > { %v12367_v13 = vsel %vm2410_vm4, %v12366_v25, 0.0 }
0x4a0d   : > { %12368 = vadd.xlane.f32.xlu0 %v12367_v13 }
0x4a96   : > { %v12369_v31 = vpop.xlane.xlu0 %12368 }
0x4a97   : > { %v12370_v38 = vmul.f32 0.03125, %v12369_v31 }
0x4a99   : > { %v12371_v58 = vadd.f32 1e-06, %v12370_v38 }
0x4a9b   : > { %15493 = vrsqrt.f32 %v12371_v58 }
0x4aa8   : > { %v15494_v27 = vpop.eup %15493 }
0x4aa9   : > { %v12373_v36 = vmul.f32 %v15494_v27, %v12365_v34 }
0x4aab   : > { %v12374_v37 = vmul.f32 %v12373_v36, %v12359_v29 }
0x4aad   : > { %v12375_v8 = vadd.f32 %v12374_v37, %v12360_v57 }
0x4aaf   : > { %v12379_v48 = vadd.f32 %v12377_v40, %v12375_v8 }
0x4ab1   : > { %v12382_v59 = vsel %vm2410_vm4, %v12379_v48, 0.0 }
0x4ab2   : > { %12383 = vadd.xlane.f32.xlu1 %v12382_v59 }
0x4b3b   : > { %v12384_v63 = vpop.xlane.xlu1 %12383 }
0x4b3c   : > { %v12385_v12 = vmul.f32 0.03125, %v12384_v63 }
0x4b3e   : > { %v12386_v2 = vsub.f32 %v12379_v48, %v12385_v12 }
0x4b40   : > { %v12387_v47 = vmul.f32 %v12386_v2, %v12386_v2 }
0x4b42   : > { %v12388_v44 = vsel %vm2410_vm4, %v12387_v47, 0.0 }
0x4b43   : > { %12389 = vadd.xlane.f32.xlu0 %v12388_v44 }
0x4bcc   : > { %v12390_v10 = vpop.xlane.xlu0 %12389 }
0x4bcd   : > { %v12391_v54 = vmul.f32 0.03125, %v12390_v10 }
0x4bcf   : > { %v12392_v19 = vadd.f32 1e-05, %v12391_v54 }
0x4bd1   : > { %15495 = vrsqrt.f32 %v12392_v19 }
0x4bde   : > { %v15496_v23 = vpop.eup %15495 }
0x4bdf   : > { %v12394_v55 = vmul.f32 %v15496_v23, %v12386_v2 }
0x4be1   : > { %v12395_v33 = vmul.f32 %v12394_v55, %v12380_v50 }
0x4be3   : > { %v12396_v46 = vadd.f32 %v12395_v33, %v12381_v35 }
0x4be5   : > { %14954 = vmatmul.mubr.msk.f32.vlgmr.msra.gmra.mxu1 %vm2485_vm7, %v12396_v46 }
0x4ca5   : > { %v12471_v6 = vpop.f32.mrf.mxu1 }
0x4ca6   : > { %v12472_v3 = vadd.f32 %v12471_v6, %v12401_v42 }
0x4ca7   : > { %v14955_v0 = vpop.f32.mrf.mxu1 }
0x4ca8   : > { %v12476_v21 = vsel %vm12475_vm0, %v12472_v3, -inf }
0x4ca9   : > { %12477 = vmax.xlane.f32.xlu1 %v12476_v21 }
0x4d32   : > { %v12478_v61 = vpop.xlane.xlu1 %12477 }
0x4d33   : > { %v12479_v11 = vsub.f32 %v12472_v3, %v12478_v61 }
0x4d35   : > { %v12480_v15 = vmul.f32 1.442695, %v12479_v11 }
0x4d37   : > { %15497 = vpow2.f32 %v12480_v15 }
0x4d44   : > { %v15498_v16 = vpop.eup %15497 }
0x4d45   : > { %v12482_v18 = vsel %vm12475_vm0, %v15498_v16, 0.0 }
0x4d46   : > { %12483 = vadd.xlane.f32.xlu0 %v12482_v18 }
0x4dcf   : > { %v12484_v62 = vpop.xlane.xlu0 %12483 }
0x4dd0   : > { %15499 = vlog2.f32 %v12484_v62 }
0x4ddd   : > { %v15500_v7 = vpop.eup %15499 }
0x4dde   : > { %v12486_v4 = vmul.f32 0.6931472, %v15500_v7 }
0x4de0   : > { %v12487_v60 = vsub.f32 %v12479_v11, %v12486_v4 }
0x4de2   : > { %12488 = vst.msk [vmem:[%s2306_s0] sm:$0x1] %vm12475_vm0, %v12487_v60 }
0x4de3   : > { %15992 = shalt.err (!%p15989_p6)
}
0x4de4   : > { %s15993_s22 = scalar_lea.hbm %s12500_s2, 16  ;;  %s15997_s15 = scalar_lea.hbm %s16539_s24, 32 }
0x4de5   : > { %p15994_p10 = scmp.ne.s32.totalorder %s12500_s2, %s15993_s22  ;;  %p15998_p8 = scmp.lt.s32.totalorder %s12500_s2, %s16539_s24 }
0x4de6   : > { %p15999_p12 = scmp.lt.s32.totalorder %s15997_s15, %s15993_s22 }
0x4de7   : > { %p15995_p13 = pnand %p15994_p10, %p18888_p1 }
0x4de8   : > { %p16000_p11 = por %p15999_p12, %p15998_p8 }
0x4de9   : > { %p15996_p7 = pneg %p15995_p13 }
0x4deb   : > { %p16001_p0 = pnand %p16000_p11, %p15996_p7 }
0x4ded   : > { %16004 = shalt.err (!%p16001_p0)
}
0x4dee   : > { %15028 = dma.vmem_to_hbm [thread:$0]  (%p18888_p1), %s12503_s1, 16, %s12500_s2, %s12490_s3  }
0x4def PF: > { %s18889_s5 = sld [smem:[#allocation114_spill]] }
0x4df0   : > { %s18890_s8 = sld [smem:[#allocation112_spill]] }
0x4df1   : > { %s18891_s6 = sld [smem:[#allocation117_spill]] }
0x4df5   : > { %p15125_p2 = scmp.ge.s32.totalorder %s18889_s5, 2 }
0x4df6   : > { %s12514_s4 = sand.u32 1, %s18890_s8  }
0x4df7   : > { %p18892_p3 = scmp.ne.s32.totalorder %s18891_s6, 0  ;;  %s12515_s18 = scalar_lea.sflag [#allocation8], %s12514_s4 }
0x4df9   : > { %p15086_p9 = pnand %p15125_p2, %p18892_p3 }
0x4dfb   : > { %p15087_p4 = pneg %p15086_p9 }
0x4dfd   : > { %16062 = dma.done.wait (%p15087_p4), %s12515_s18, 16  }
0x4dfe   : > { %16064 = vsyncadd (%p15087_p4), %s12515_s18, 4294967280  ;;  %s18893_s0 = sld [smem:[#allocation115_spill]]  ;;  %s18896_s15 = smov %s16071_s16 }
0x4dff   : > { %s18894_s22 = sld [smem:[#allocation113_spill]] }
0x4e00   : > { %s18895_s18 = sld [smem:[#allocation116_spill]] }
0x4e04   : > { %p163_p5 = scmp.ge.s32.totalorder %s18893_s0, 4  }
0x4e05   : > { %s18897_s16 = smov %s18894_s22 }
0x4e06   :  { %165 = sbr.rel (!%p163_p5) target bundleno = 156 (0x9c), region = 531 }
0x4e0b   :  { %12519 = vsyncpa [#allocation7], 1 }
0x4e0c   :  { %12521 = vsyncpa [#allocation7 + $0x1], 1 }
0x4e0d   :  { %12522 = vsyncpa [#allocation10], 1 }
0x4e0e   :  { %12523 = vsyncpa [#allocation13], 1 }
0x4e0f   :  { %12524 = vsyncpa [#allocation16], 1 }
0x4e10   :  { %12525 = vsyncpa [#allocation19], 1 }
0x4e11   :  { %12526 = vsyncpa [#allocation22], 1 }
0x4e12   :  { %12527 = vsyncpa [#allocation25], 1 }
0x4e13   :  { %12528 = vsyncpa [#allocation28], 1 }
0x4e14   :  { %12529 = vsyncpa [#allocation31], 1 }
0x4e15   :  { %12530 = vsyncpa [#allocation34], 1 }
0x4e16   :  { %12531 = vsyncpa [#allocation8], 1 }
0x4e17   :  { %12533 = vsyncpa [#allocation8 + $0x1], 1 }

</bundles_post_ra>
